<compile_context>
chip_gen: v7x
topology: tpu7x:2x2x1
jax: 0.10.0
libtpu: 0.0.40
codegen_flags: <defaults>
</compile_context>

<pallas_src>
import functools

import numpy as np

import jax
import jax.numpy as jnp
from jax.experimental import pallas as pl
from jax.experimental.pallas import tpu as pltpu


def _round_up(x, m):
    return ((x + m - 1) // m) * m


# -----------------------------------------------------------------------------
# Pallas kernel 1: batched matmul + per-channel scale/shift (+ optional ReLU)
# -----------------------------------------------------------------------------
def _bmm_kernel(a_ref, b_ref, s_ref, t_ref, o_ref, *, relu):
    # bf16 operands -> MXU; f32 accumulation; BN scale/shift (+ReLU) epilogue in f32.
    acc = jnp.dot(a_ref[0], b_ref[0], preferred_element_type=jnp.float32)
    out = acc * s_ref[0] + t_ref[0]
    if relu:
        out = jnp.maximum(out, 0.0)
    o_ref[0] = out.astype(o_ref.dtype)


def pallas_bmm_scale_shift(a, b, scale, shift, relu=False, out_dtype=jnp.bfloat16):
    """a: (N, M, K), b: (N, K, C), scale/shift: (N, 1, C) -> (N, M, C) out_dtype."""
    a = a.astype(jnp.bfloat16)
    b = b.astype(jnp.bfloat16)
    N, M, K = a.shape
    C = b.shape[-1]
    if M <= 64:
        # tiny matmuls (per-sample CondConv): one full-extent block, N supplies grid
        tm = M
    else:
        # >=2 M tiles so both v7x TensorCores are fed; cap at 1024 rows (amortizes the
        # ~0.35us/step overhead, <1 MiB per double-buffered block on every generation)
        tm = min(1024, _round_up(pl.cdiv(M, 2), 8))
    gm = pl.cdiv(M, tm)  # ragged last block is write-masked by Pallas (row-wise epilogue)

    out = pl.pallas_call(
        functools.partial(_bmm_kernel, relu=relu),
        out_shape=jax.ShapeDtypeStruct((N, M, C), out_dtype),
        grid=(N, gm),
        in_specs=[
            # K and C are full-extent block dims -> no host-side padding copies.
            pl.BlockSpec((1, tm, K), lambda n, m: (n, m, 0)),
            pl.BlockSpec((1, K, C), lambda n, m: (n, 0, 0)),
            pl.BlockSpec((1, 1, C), lambda n, m: (n, 0, 0)),
            pl.BlockSpec((1, 1, C), lambda n, m: (n, 0, 0)),
        ],
        out_specs=pl.BlockSpec((1, tm, C), lambda n, m: (n, m, 0)),
        compiler_params=pltpu.CompilerParams(
            dimension_semantics=("parallel", "parallel")),
    )(a, b, scale.astype(jnp.float32), shift.astype(jnp.float32))
    return out


# -----------------------------------------------------------------------------
# Pallas kernel 2: fused CondConv attention chain over the temporal axis
#   per (b, l):  q = conv3x3_pad1(prior);  attn = softmax(q k^T);  prior = attn v
#   output: spatial mean of the updated prior (the only thing forward() needs)
# -----------------------------------------------------------------------------
def _condattn_kernel(prior0_ref, s_ref, qw_ref, qb_ref, kt_ref, v_ref,
                     feat_ref, prior_scr):
    l = pl.program_id(1)

    @pl.when(l == 0)
    def _():
        prior_scr[...] = prior0_ref[0]

    prior = prior_scr[...]                                   # (P, Cin) f32
    # 3x3 / pad-1 query conv expressed as 9 shift-matmul taps: sum_t S_t @ prior @ Wq_t
    q = jnp.zeros((prior.shape[0], qw_ref.shape[-1]), jnp.float32) + qb_ref[...]
    for t in range(9):                                       # static unroll
        shifted = jnp.dot(s_ref[t], prior, preferred_element_type=jnp.float32)
        q = q + jnp.dot(shifted, qw_ref[t], preferred_element_type=jnp.float32)
    # attention: softmax over key positions, then weighted sum of values (all f32)
    energy = jnp.dot(q, kt_ref[0, 0], preferred_element_type=jnp.float32)  # (P, P)
    m = jnp.max(energy, axis=-1, keepdims=True)
    p = jnp.exp(energy - m)
    attn = p * pl.reciprocal(jnp.sum(p, axis=-1, keepdims=True), approx=True)
    new_prior = jnp.dot(attn, v_ref[0, 0], preferred_element_type=jnp.float32)
    prior_scr[...] = new_prior                               # carried to step l+1
    feat_ref[0, 0] = jnp.mean(new_prior, axis=0, keepdims=True)   # (1, Cin)


@functools.lru_cache(maxsize=None)
def _shift_mats_np(h, w):
    """S[t] @ flat(x) == flat(shift of x by tap t of a 3x3/pad1 conv), zeros OOB."""
    P = h * w
    S = np.zeros((9, P, P), np.float32)
    for di in range(3):
        for dj in range(3):
            t = di * 3 + dj
            for y in range(h):
                for x in range(w):
                    yy, xx = y + di - 1, x + dj - 1
                    if 0 <= yy < h and 0 <= xx < w:
                        S[t, y * w + x, yy * w + xx] = 1.0
    return S


def pallas_condconv_attention(prior0, k_all, v_all, q_w, q_b):
    """prior0: (B, P, Cin), k_all: (B, L, P, Cq), v_all: (B, L, P, Cin),
    q_w: (Cq, Cin, 3, 3) torch layout, q_b: (Cq,).
    Returns per-step spatial-mean features (B, L, Cin) float32."""
    B, P, Cin = prior0.shape
    L = k_all.shape[1]
    Cq = q_w.shape[0]
    h = int(round(P ** 0.5))
    S = jnp.asarray(_shift_mats_np(h, h))                            # (9, P, P)
    qw = jnp.transpose(q_w, (2, 3, 1, 0)).reshape(9, Cin, Cq).astype(jnp.float32)
    qb = q_b.reshape(1, Cq).astype(jnp.float32)
    kt = jnp.swapaxes(k_all.astype(jnp.float32), -1, -2)             # (B, L, Cq, P)
    v = v_all.astype(jnp.float32)
    prior0 = prior0.astype(jnp.float32)

    feat = pl.pallas_call(
        _condattn_kernel,
        out_shape=jax.ShapeDtypeStruct((B, L, 1, Cin), jnp.float32),
        grid=(B, L),                      # b: parallel (2 TCs on v7x), l: sequential
        in_specs=[
            pl.BlockSpec((1, P, Cin), lambda b, l: (b, 0, 0)),
            pl.BlockSpec((9, P, P), lambda b, l: (0, 0, 0)),
            pl.BlockSpec((9, Cin, Cq), lambda b, l: (0, 0, 0)),
            pl.BlockSpec((1, Cq), lambda b, l: (0, 0)),
            pl.BlockSpec((1, 1, Cq, P), lambda b, l: (b, l, 0, 0)),
            pl.BlockSpec((1, 1, P, Cin), lambda b, l: (b, l, 0, 0)),
        ],
        out_specs=pl.BlockSpec((1, 1, 1, Cin), lambda b, l: (b, l, 0, 0)),
        scratch_shapes=[pltpu.VMEM((P, Cin), jnp.float32)],   # prior, carried over l
        compiler_params=pltpu.CompilerParams(
            dimension_semantics=("parallel", "arbitrary")),
    )(prior0, S, qw, qb, kt, v)
    return feat.reshape(B, L, Cin)


# -----------------------------------------------------------------------------
# Glue: im2col (NHWC), pooling, conv wrapper, CondConv2d, backbone
# -----------------------------------------------------------------------------
def _im2col_nhwc(x, kh, kw, stride, padding):
    """x: (N, H, W, C) -> (N, OH*OW, kh*kw*C); K ordering is (i, j, c)."""
    N, H, W, C = x.shape
    if padding:
        x = jnp.pad(x, ((0, 0), (padding, padding), (padding, padding), (0, 0)))
    Hp, Wp = H + 2 * padding, W + 2 * padding
    OH = (Hp - kh) // stride + 1
    OW = (Wp - kw) // stride + 1
    cols = []
    for i in range(kh):
        for j in range(kw):
            cols.append(x[:, i:i + stride * (OH - 1) + 1:stride,
                             j:j + stride * (OW - 1) + 1:stride, :])
    p = jnp.concatenate(cols, axis=-1)                # (N, OH, OW, kh*kw*C)
    return p.reshape(N, OH * OW, kh * kw * C), OH, OW


def conv2d(x, w, b, stride=1, padding=0, bn=None, relu=False,
           out_dtype=jnp.bfloat16):
    """NHWC conv via im2col + Pallas matmul with folded eval-BN / bias / ReLU.
    x: (N, H, W, C) NHWC, w: (OC, C, kh, kw) torch layout, b: (OC,)."""
    N, H, W, C = x.shape
    OC, _, kh, kw = w.shape
    patches, OH, OW = _im2col_nhwc(x.astype(jnp.bfloat16), kh, kw, stride, padding)
    A = patches.reshape(1, N * OH * OW, kh * kw * C)
    Wm = w.transpose(2, 3, 1, 0).reshape(1, kh * kw * C, OC)          # (i, j, c)
    if bn is None:
        scale = jnp.ones((1, 1, OC), jnp.float32)
        shift = b.reshape(1, 1, OC).astype(jnp.float32)
    else:
        gamma, beta, mean, var = bn
        s = gamma / jnp.sqrt(var + 1e-5)
        scale = s.reshape(1, 1, OC)
        shift = ((b - mean) * s + beta).reshape(1, 1, OC)
    out = pallas_bmm_scale_shift(A, Wm, scale, shift, relu, out_dtype=out_dtype)
    return out.reshape(N, OH, OW, OC)


def maxpool2d(x, k=3, s=2):
    """NHWC max pool (VALID) via k*k shifted maxima (no reduce_window dtype edge cases)."""
    N, H, W, C = x.shape
    OH = (H - k) // s + 1
    OW = (W - k) // s + 1
    out = None
    for i in range(k):
        for j in range(k):
            v = x[:, i:i + s * (OH - 1) + 1:s, j:j + s * (OW - 1) + 1:s, :]
            out = v if out is None else jnp.maximum(out, v)
    return out


def adaptive_max_pool_hw(x, oh, ow):
    """PyTorch-style adaptive max pool over the H, W dims of (..., H, W, C)."""
    H, W = x.shape[-3], x.shape[-2]
    if (H, W) == (oh, ow):
        return x                                       # identity (cc1 case)
    rows = []
    for i in range(oh):
        hs, he = (i * H) // oh, -(-((i + 1) * H) // oh)
        cols = []
        for j in range(ow):
            ws, we = (j * W) // ow, -(-((j + 1) * W) // ow)
            cols.append(jnp.max(x[..., hs:he, ws:we, :], axis=(-3, -2)))
        rows.append(jnp.stack(cols, axis=-2))
    return jnp.stack(rows, axis=-3)


def cond_conv2d(x, p, bn_follow, relu, out_dtype=jnp.bfloat16):
    """CondConv2d.forward + following BatchNorm(+ReLU).  x: (B, L, H, W, Cin) NHWC."""
    B, L, H, W, Cin = x.shape
    OC = p['weight'].shape[2]
    k = p['weight'].shape[-1]
    a = p['attn']

    # ---- generateweight ----
    xet = adaptive_max_pool_hw(x, 5, 5)                          # (B, L, 5, 5, Cin)
    xet_flat = xet.reshape(B * L, 5, 5, Cin)
    # init conv on frame 0; key/value convs on every frame (hoisted out of the L loop)
    prior0 = conv2d(xet[:, 0], p['init_w'], p['init_b'], 1, 1,
                    out_dtype=jnp.float32)                        # (B, 5, 5, Cin)
    Cq = a['k_w'].shape[0]
    k_all = conv2d(xet_flat, a['k_w'], a['k_b'], 1, 1,
                   out_dtype=jnp.float32).reshape(B, L, 25, Cq)
    v_all = conv2d(xet_flat, a['v_w'], a['v_b'], 1, 1,
                   out_dtype=jnp.float32).reshape(B, L, 25, Cin)
    # fused q-conv + attention + prior chain -> per-step spatial means (avgpool)
    feat = pallas_condconv_attention(prior0.reshape(B, 25, Cin),
                                     k_all, v_all, a['q_w'], a['q_b'])  # (B, L, Cin)
    # 1x1x1 Conv3d's (zero-initialised in the PyTorch __init__)
    calib = jnp.einsum('oc,blc->blo', p['tconv_w'][:, :, 0, 0, 0], feat) + p['tconv_b']
    finalweight = p['weight'] * (calib + 1.0)[:, :, None, :, None, None]  # (B,L,OC,Cin,k,k)
    fcv = jnp.einsum('oc,blc->blo', p['fc_w'][:, :, 0, 0, 0], feat) + p['fc_b']
    finalbias = p['bias'] * (fcv + 1.0)                           # (B, L, OC)

    # ---- per-sample (grouped) conv with BN/ReLU folded into the Pallas matmul ----
    xf = x.reshape(B * L, H, W, Cin)
    patches, OH, OW = _im2col_nhwc(xf.astype(jnp.bfloat16), k, k, 1, 0)
    wm = finalweight.reshape(B * L, OC, Cin, k, k)
    wm = wm.transpose(0, 3, 4, 2, 1).reshape(B * L, k * k * Cin, OC)   # (i, j, c)
    gamma, beta, mean, var = bn_follow
    s = gamma / jnp.sqrt(var + 1e-5)
    fb = finalbias.reshape(B * L, OC)
    scale = jnp.broadcast_to(s[None, None, :], (B * L, 1, OC))
    shift = ((fb - mean[None, :]) * s[None, :] + beta[None, :])[:, None, :]
    out = pallas_bmm_scale_shift(patches, wm, scale, shift, relu, out_dtype=out_dtype)
    return out.reshape(B * L, OH, OW, OC)


def temporal_alexnet_forward(params, xset):
    """xset: (B, L, 3, H, W) NCHW -> (B*L, cfg[5], H', W') NCHW."""
    B, L = xset.shape[0], xset.shape[1]
    x = xset.reshape((-1,) + xset.shape[2:])
    x = jnp.transpose(x, (0, 2, 3, 1))          # -> NHWC once, at the model boundary
    # block1: Conv(k11,s2)+BN, MaxPool(3,2), ReLU (ReLU fused into the conv kernel;
    # it commutes with MaxPool so the result is identical)
    x = conv2d(x, params['b1_w'], params['b1_b'], stride=2, padding=0,
               bn=params['bn1'], relu=True)
    x = maxpool2d(x)
    # block2: Conv(k5)+BN, MaxPool(3,2), ReLU (fused as above)
    x = conv2d(x, params['b2_w'], params['b2_b'], 1, 0, bn=params['bn2'], relu=True)
    x = maxpool2d(x)
    # block3: Conv(k3) + BN + ReLU (fused)
    x = conv2d(x, params['b3_w'], params['b3_b'], 1, 0, bn=params['bn3'], relu=True)
    # temporalconv1 + b_f1 (BN + ReLU)
    x = x.reshape((B, L) + x.shape[1:])
    x = cond_conv2d(x, params['cc1'], params['bnf1'], relu=True)
    # temporalconv2 + b_f2 (BN); keep the model output in f32
    x = x.reshape((B, L) + x.shape[1:])
    x = cond_conv2d(x, params['cc2'], params['bnf2'], relu=False,
                    out_dtype=jnp.float32)
    return jnp.transpose(x, (0, 3, 1, 2))       # back to NCHW at the boundary


# -----------------------------------------------------------------------------
# Deterministic parameter initialisation (per the module __init__ shapes)
# -----------------------------------------------------------------------------
CONFIGS = [3, 96, 256, 384, 384, 256]
WIDTH_MULT = 1.0 / 8.0
CFG = [3 if c == 3 else int(c * WIDTH_MULT) for c in CONFIGS]  # [3, 12, 32, 48, 48, 32]


def _nrm(key, shape, std=0.05):
    return std * jax.random.normal(key, shape, jnp.float32)


def _bn_params(key, c):
    k1, k2, k3, k4 = jax.random.split(key, 4)
    gamma = 1.0 + 0.1 * jax.random.normal(k1, (c,), jnp.float32)
    beta = 0.1 * jax.random.normal(k2, (c,), jnp.float32)
    mean = 0.1 * jax.random.normal(k3, (c,), jnp.float32)
    var = 1.0 + 0.1 * jnp.abs(jax.random.normal(k4, (c,), jnp.float32))
    return (gamma, beta, mean, var)


def _attn_params(key, c):
    ks = jax.random.split(key, 6)
    c16 = c // 16
    return dict(q_w=_nrm(ks[0], (c16, c, 3, 3)), q_b=_nrm(ks[1], (c16,)),
                k_w=_nrm(ks[2], (c16, c, 3, 3)), k_b=_nrm(ks[3], (c16,)),
                v_w=_nrm(ks[4], (c, c, 3, 3)), v_b=_nrm(ks[5], (c,)))


def _condconv_params(key, cin, cout, k=3):
    ks = jax.random.split(key, 5)
    return dict(
        init_w=_nrm(ks[0], (cin, cin, 3, 3)), init_b=_nrm(ks[1], (cin,)),
        # all nn.Conv3d weights/biases are constant-0 in the PyTorch __init__
        tconv_w=jnp.zeros((cin, cin, 1, 1, 1), jnp.float32),
        tconv_b=jnp.zeros((cin,), jnp.float32),
        fc_w=jnp.zeros((1, cin, 1, 1, 1), jnp.float32),
        fc_b=jnp.zeros((1,), jnp.float32),
        attn=_attn_params(ks[2], cin),
        weight=_nrm(ks[3], (1, 1, cout, cin, k, k)),
        bias=_nrm(ks[4], (1, 1, cout)),
    )


def init_params(key):
    ks = jax.random.split(key, 13)
    p = {}
    p['b1_w'] = _nrm(ks[0], (CFG[1], CFG[0], 11, 11)); p['b1_b'] = _nrm(ks[1], (CFG[1],))
    p['bn1'] = _bn_params(ks[2], CFG[1])
    p['b2_w'] = _nrm(ks[3], (CFG[2], CFG[1], 5, 5)); p['b2_b'] = _nrm(ks[4], (CFG[2],))
    p['bn2'] = _bn_params(ks[5], CFG[2])
    p['b3_w'] = _nrm(ks[6], (CFG[3], CFG[2], 3, 3)); p['b3_b'] = _nrm(ks[7], (CFG[3],))
    p['bn3'] = _bn_params(ks[8], CFG[3])
    p['cc1'] = _condconv_params(ks[9], CFG[3], CFG[4])
    p['bnf1'] = _bn_params(ks[10], CFG[4])
    p['cc2'] = _condconv_params(ks[11], CFG[4], CFG[5])
    p['bnf2'] = _bn_params(ks[12], CFG[5])
    return p


if __name__ == "__main__":
    key = jax.random.PRNGKey(0)
    pkey, xkey = jax.random.split(key)
    params = init_params(pkey)

    B, L, H = 2, 2, 87          # 87x87 input -> 5x5 after block3 -> 3x3 -> 1x1
    xset = jax.random.normal(xkey, (B, L, 3, H, H), jnp.float32)

    fwd = jax.jit(temporal_alexnet_forward)
    out = jax.block_until_ready(fwd(params, xset))

    assert out.shape == (B * L, CFG[5], 1, 1), out.shape
    assert bool(jnp.all(jnp.isfinite(out)))
    print("KERNEL_OK")
</pallas_src>

<mosaic_0001>
module attributes {stable_mosaic.version = 11 : i64} {
  func.func @_bmm_kernel(%arg0: i32, %arg1: i32, %arg2: memref<1x1024x363xbf16, #tpu.memory_space<vmem>>, %arg3: memref<1x363x12xbf16, #tpu.memory_space<vmem>>, %arg4: memref<1x1x12xf32, #tpu.memory_space<vmem>>, %arg5: memref<1x1x12xf32, #tpu.memory_space<vmem>>, %arg6: memref<1x1024x12xbf16, #tpu.memory_space<vmem>>) attributes {dimension_semantics = [#tpu.dimension_semantics<parallel>, #tpu.dimension_semantics<parallel>], iteration_bounds = array<i64: 1, 6>, scalar_prefetch = 0 : i64, scratch_operands = 0 : i64, tpu.core_type = #tpu.core_type<tc>, window_params = [{transform_indices = @transform_0, window_bounds = array<i64: 1, 1024, 363>}, {transform_indices = @transform_1, window_bounds = array<i64: 1, 363, 12>}, {transform_indices = @transform_2, window_bounds = array<i64: 1, 1, 12>}, {transform_indices = @transform_3, window_bounds = array<i64: 1, 1, 12>}, {transform_indices = @transform_4, window_bounds = array<i64: 1, 1024, 12>}]} {
    %c0 = arith.constant 0 : index
    %c0_0 = arith.constant 0 : index
    %c0_1 = arith.constant 0 : index
    %0 = vector.load %arg2[%c0, %c0_0, %c0_1] : memref<1x1024x363xbf16, #tpu.memory_space<vmem>>, vector<1x1024x363xbf16>
    %1 = vector.shape_cast %0 : vector<1x1024x363xbf16> to vector<1024x363xbf16>
    %c0_2 = arith.constant 0 : index
    %c0_3 = arith.constant 0 : index
    %c0_4 = arith.constant 0 : index
    %2 = vector.load %arg3[%c0_2, %c0_3, %c0_4] : memref<1x363x12xbf16, #tpu.memory_space<vmem>>, vector<1x363x12xbf16>
    %3 = vector.shape_cast %2 : vector<1x363x12xbf16> to vector<363x12xbf16>
    %cst = arith.constant dense<0.000000e+00> : vector<1024x12xf32>
    %4 = tpu.matmul %1, %3, %cst {dimension_numbers = #tpu.dot_dimension_numbers<[1], [0], [0], [1], [0, 0, 1, 1], [], []>} : vector<1024x363xbf16>, vector<363x12xbf16>, vector<1024x12xf32> -> vector<1024x12xf32>
    %c0_5 = arith.constant 0 : index
    %c0_6 = arith.constant 0 : index
    %c0_7 = arith.constant 0 : index
    %5 = vector.load %arg4[%c0_5, %c0_6, %c0_7] : memref<1x1x12xf32, #tpu.memory_space<vmem>>, vector<1x1x12xf32>
    %6 = vector.shape_cast %5 : vector<1x1x12xf32> to vector<1x12xf32>
    %7 = vector.broadcast %6 : vector<1x12xf32> to vector<1024x12xf32>
    %8 = arith.mulf %4, %7 : vector<1024x12xf32>
    %c0_8 = arith.constant 0 : index
    %c0_9 = arith.constant 0 : index
    %c0_10 = arith.constant 0 : index
    %9 = vector.load %arg5[%c0_8, %c0_9, %c0_10] : memref<1x1x12xf32, #tpu.memory_space<vmem>>, vector<1x1x12xf32>
    %10 = vector.shape_cast %9 : vector<1x1x12xf32> to vector<1x12xf32>
    %11 = vector.broadcast %10 : vector<1x12xf32> to vector<1024x12xf32>
    %12 = arith.addf %8, %11 : vector<1024x12xf32>
    %cst_11 = arith.constant 0.000000e+00 : f32
    %13 = vector.broadcast %cst_11 : f32 to vector<1024x12xf32>
    %14 = arith.maximumf %12, %13 : vector<1024x12xf32>
    %15 = arith.truncf %14 : vector<1024x12xf32> to vector<1024x12xbf16>
    %c0_12 = arith.constant 0 : index
    %c0_13 = arith.constant 0 : index
    %c0_14 = arith.constant 0 : index
    %16 = vector.load %arg6[%c0_12, %c0_13, %c0_14] : memref<1x1024x12xbf16, #tpu.memory_space<vmem>>, vector<1x1024x12xbf16>
    %17 = vector.shape_cast %16 : vector<1x1024x12xbf16> to vector<1024x12xbf16>
    %18 = vector.shape_cast %15 : vector<1024x12xbf16> to vector<1x1024x12xbf16>
    tpu.vector_store %arg6[%c0_12, %c0_13, %c0_14], %18 {strides = array<i32>} : memref<1x1024x12xbf16, #tpu.memory_space<vmem>>, vector<1x1024x12xbf16>,
    return
  }
  func.func @transform_0(%arg0: i32, %arg1: i32) -> (i32, i32, i32) {
    %c0_i32 = arith.constant 0 : i32
    %c0_i32_0 = arith.constant 0 : i32
    return %arg0, %arg1, %c0_i32 : i32, i32, i32
  }
  func.func @transform_1(%arg0: i32, %arg1: i32) -> (i32, i32, i32) {
    %c0_i32 = arith.constant 0 : i32
    %c0_i32_0 = arith.constant 0 : i32
    %c0_i32_1 = arith.constant 0 : i32
    return %arg0, %c0_i32, %c0_i32_0 : i32, i32, i32
  }
  func.func @transform_2(%arg0: i32, %arg1: i32) -> (i32, i32, i32) {
    %c0_i32 = arith.constant 0 : i32
    %c0_i32_0 = arith.constant 0 : i32
    %c0_i32_1 = arith.constant 0 : i32
    return %arg0, %c0_i32, %c0_i32_0 : i32, i32, i32
  }
  func.func @transform_3(%arg0: i32, %arg1: i32) -> (i32, i32, i32) {
    %c0_i32 = arith.constant 0 : i32
    %c0_i32_0 = arith.constant 0 : i32
    %c0_i32_1 = arith.constant 0 : i32
    return %arg0, %c0_i32, %c0_i32_0 : i32, i32, i32
  }
  func.func @transform_4(%arg0: i32, %arg1: i32) -> (i32, i32, i32) {
    %c0_i32 = arith.constant 0 : i32
    %c0_i32_0 = arith.constant 0 : i32
    return %arg0, %arg1, %c0_i32 : i32, i32, i32
  }
}

module attributes {stable_mosaic.version = 11 : i64} {
  func.func @_bmm_kernel(%arg0: i32, %arg1: i32, %arg2: memref<1x456x300xbf16, #tpu.memory_space<vmem>>, %arg3: memref<1x300x32xbf16, #tpu.memory_space<vmem>>, %arg4: memref<1x1x32xf32, #tpu.memory_space<vmem>>, %arg5: memref<1x1x32xf32, #tpu.memory_space<vmem>>, %arg6: memref<1x456x32xbf16, #tpu.memory_space<vmem>>) attributes {dimension_semantics = [#tpu.dimension_semantics<parallel>, #tpu.dimension_semantics<parallel>], iteration_bounds = array<i64: 1, 2>, scalar_prefetch = 0 : i64, scratch_operands = 0 : i64, tpu.core_type = #tpu.core_type<tc>, window_params = [{transform_indices = @transform_0, window_bounds = array<i64: 1, 456, 300>}, {transform_indices = @transform_1, window_bounds = array<i64: 1, 300, 32>}, {transform_indices = @transform_2, window_bounds = array<i64: 1, 1, 32>}, {transform_indices = @transform_3, window_bounds = array<i64: 1, 1, 32>}, {transform_indices = @transform_4, window_bounds = array<i64: 1, 456, 32>}]} {
    %c0 = arith.constant 0 : index
    %c0_0 = arith.constant 0 : index
    %c0_1 = arith.constant 0 : index
    %0 = vector.load %arg2[%c0, %c0_0, %c0_1] : memref<1x456x300xbf16, #tpu.memory_space<vmem>>, vector<1x456x300xbf16>
    %1 = vector.shape_cast %0 : vector<1x456x300xbf16> to vector<456x300xbf16>
    %c0_2 = arith.constant 0 : index
    %c0_3 = arith.constant 0 : index
    %c0_4 = arith.constant 0 : index
    %2 = vector.load %arg3[%c0_2, %c0_3, %c0_4] : memref<1x300x32xbf16, #tpu.memory_space<vmem>>, vector<1x300x32xbf16>
    %3 = vector.shape_cast %2 : vector<1x300x32xbf16> to vector<300x32xbf16>
    %cst = arith.constant dense<0.000000e+00> : vector<456x32xf32>
    %4 = tpu.matmul %1, %3, %cst {dimension_numbers = #tpu.dot_dimension_numbers<[1], [0], [0], [1], [0, 0, 1, 1], [], []>} : vector<456x300xbf16>, vector<300x32xbf16>, vector<456x32xf32> -> vector<456x32xf32>
    %c0_5 = arith.constant 0 : index
    %c0_6 = arith.constant 0 : index
    %c0_7 = arith.constant 0 : index
    %5 = vector.load %arg4[%c0_5, %c0_6, %c0_7] : memref<1x1x32xf32, #tpu.memory_space<vmem>>, vector<1x1x32xf32>
    %6 = vector.shape_cast %5 : vector<1x1x32xf32> to vector<1x32xf32>
    %7 = vector.broadcast %6 : vector<1x32xf32> to vector<456x32xf32>
    %8 = arith.mulf %4, %7 : vector<456x32xf32>
    %c0_8 = arith.constant 0 : index
    %c0_9 = arith.constant 0 : index
    %c0_10 = arith.constant 0 : index
    %9 = vector.load %arg5[%c0_8, %c0_9, %c0_10] : memref<1x1x32xf32, #tpu.memory_space<vmem>>, vector<1x1x32xf32>
    %10 = vector.shape_cast %9 : vector<1x1x32xf32> to vector<1x32xf32>
    %11 = vector.broadcast %10 : vector<1x32xf32> to vector<456x32xf32>
    %12 = arith.addf %8, %11 : vector<456x32xf32>
    %cst_11 = arith.constant 0.000000e+00 : f32
    %13 = vector.broadcast %cst_11 : f32 to vector<456x32xf32>
    %14 = arith.maximumf %12, %13 : vector<456x32xf32>
    %15 = arith.truncf %14 : vector<456x32xf32> to vector<456x32xbf16>
    %c0_12 = arith.constant 0 : index
    %c0_13 = arith.constant 0 : index
    %c0_14 = arith.constant 0 : index
    %16 = vector.load %arg6[%c0_12, %c0_13, %c0_14] : memref<1x456x32xbf16, #tpu.memory_space<vmem>>, vector<1x456x32xbf16>
    %17 = vector.shape_cast %16 : vector<1x456x32xbf16> to vector<456x32xbf16>
    %18 = vector.shape_cast %15 : vector<456x32xbf16> to vector<1x456x32xbf16>
    tpu.vector_store %arg6[%c0_12, %c0_13, %c0_14], %18 {strides = array<i32>} : memref<1x456x32xbf16, #tpu.memory_space<vmem>>, vector<1x456x32xbf16>,
    return
  }
  func.func @transform_0(%arg0: i32, %arg1: i32) -> (i32, i32, i32) {
    %c0_i32 = arith.constant 0 : i32
    %c0_i32_0 = arith.constant 0 : i32
    return %arg0, %arg1, %c0_i32 : i32, i32, i32
  }
  func.func @transform_1(%arg0: i32, %arg1: i32) -> (i32, i32, i32) {
    %c0_i32 = arith.constant 0 : i32
    %c0_i32_0 = arith.constant 0 : i32
    %c0_i32_1 = arith.constant 0 : i32
    return %arg0, %c0_i32, %c0_i32_0 : i32, i32, i32
  }
  func.func @transform_2(%arg0: i32, %arg1: i32) -> (i32, i32, i32) {
    %c0_i32 = arith.constant 0 : i32
    %c0_i32_0 = arith.constant 0 : i32
    %c0_i32_1 = arith.constant 0 : i32
    return %arg0, %c0_i32, %c0_i32_0 : i32, i32, i32
  }
  func.func @transform_3(%arg0: i32, %arg1: i32) -> (i32, i32, i32) {
    %c0_i32 = arith.constant 0 : i32
    %c0_i32_0 = arith.constant 0 : i32
    %c0_i32_1 = arith.constant 0 : i32
    return %arg0, %c0_i32, %c0_i32_0 : i32, i32, i32
  }
  func.func @transform_4(%arg0: i32, %arg1: i32) -> (i32, i32, i32) {
    %c0_i32 = arith.constant 0 : i32
    %c0_i32_0 = arith.constant 0 : i32
    return %arg0, %arg1, %c0_i32 : i32, i32, i32
  }
}

module attributes {stable_mosaic.version = 11 : i64} {
  func.func @_bmm_kernel(%arg0: i32, %arg1: i32, %arg2: memref<1x56x288xbf16, #tpu.memory_space<vmem>>, %arg3: memref<1x288x48xbf16, #tpu.memory_space<vmem>>, %arg4: memref<1x1x48xf32, #tpu.memory_space<vmem>>, %arg5: memref<1x1x48xf32, #tpu.memory_space<vmem>>, %arg6: memref<1x56x48xbf16, #tpu.memory_space<vmem>>) attributes {dimension_semantics = [#tpu.dimension_semantics<parallel>, #tpu.dimension_semantics<parallel>], iteration_bounds = array<i64: 1, 2>, scalar_prefetch = 0 : i64, scratch_operands = 0 : i64, tpu.core_type = #tpu.core_type<tc>, window_params = [{transform_indices = @transform_0, window_bounds = array<i64: 1, 56, 288>}, {transform_indices = @transform_1, window_bounds = array<i64: 1, 288, 48>}, {transform_indices = @transform_2, window_bounds = array<i64: 1, 1, 48>}, {transform_indices = @transform_3, window_bounds = array<i64: 1, 1, 48>}, {transform_indices = @transform_4, window_bounds = array<i64: 1, 56, 48>}]} {
    %c0 = arith.constant 0 : index
    %c0_0 = arith.constant 0 : index
    %c0_1 = arith.constant 0 : index
    %0 = vector.load %arg2[%c0, %c0_0, %c0_1] : memref<1x56x288xbf16, #tpu.memory_space<vmem>>, vector<1x56x288xbf16>
    %1 = vector.shape_cast %0 : vector<1x56x288xbf16> to vector<56x288xbf16>
    %c0_2 = arith.constant 0 : index
    %c0_3 = arith.constant 0 : index
    %c0_4 = arith.constant 0 : index
    %2 = vector.load %arg3[%c0_2, %c0_3, %c0_4] : memref<1x288x48xbf16, #tpu.memory_space<vmem>>, vector<1x288x48xbf16>
    %3 = vector.shape_cast %2 : vector<1x288x48xbf16> to vector<288x48xbf16>
    %cst = arith.constant dense<0.000000e+00> : vector<56x48xf32>
    %4 = tpu.matmul %1, %3, %cst {dimension_numbers = #tpu.dot_dimension_numbers<[1], [0], [0], [1], [0, 0, 1, 1], [], []>} : vector<56x288xbf16>, vector<288x48xbf16>, vector<56x48xf32> -> vector<56x48xf32>
    %c0_5 = arith.constant 0 : index
    %c0_6 = arith.constant 0 : index
    %c0_7 = arith.constant 0 : index
    %5 = vector.load %arg4[%c0_5, %c0_6, %c0_7] : memref<1x1x48xf32, #tpu.memory_space<vmem>>, vector<1x1x48xf32>
    %6 = vector.shape_cast %5 : vector<1x1x48xf32> to vector<1x48xf32>
    %7 = vector.broadcast %6 : vector<1x48xf32> to vector<56x48xf32>
    %8 = arith.mulf %4, %7 : vector<56x48xf32>
    %c0_8 = arith.constant 0 : index
    %c0_9 = arith.constant 0 : index
    %c0_10 = arith.constant 0 : index
    %9 = vector.load %arg5[%c0_8, %c0_9, %c0_10] : memref<1x1x48xf32, #tpu.memory_space<vmem>>, vector<1x1x48xf32>
    %10 = vector.shape_cast %9 : vector<1x1x48xf32> to vector<1x48xf32>
    %11 = vector.broadcast %10 : vector<1x48xf32> to vector<56x48xf32>
    %12 = arith.addf %8, %11 : vector<56x48xf32>
    %cst_11 = arith.constant 0.000000e+00 : f32
    %13 = vector.broadcast %cst_11 : f32 to vector<56x48xf32>
    %14 = arith.maximumf %12, %13 : vector<56x48xf32>
    %15 = arith.truncf %14 : vector<56x48xf32> to vector<56x48xbf16>
    %c0_12 = arith.constant 0 : index
    %c0_13 = arith.constant 0 : index
    %c0_14 = arith.constant 0 : index
    %16 = vector.load %arg6[%c0_12, %c0_13, %c0_14] : memref<1x56x48xbf16, #tpu.memory_space<vmem>>, vector<1x56x48xbf16>
    %17 = vector.shape_cast %16 : vector<1x56x48xbf16> to vector<56x48xbf16>
    %18 = vector.shape_cast %15 : vector<56x48xbf16> to vector<1x56x48xbf16>
    tpu.vector_store %arg6[%c0_12, %c0_13, %c0_14], %18 {strides = array<i32>} : memref<1x56x48xbf16, #tpu.memory_space<vmem>>, vector<1x56x48xbf16>,
    return
  }
  func.func @transform_0(%arg0: i32, %arg1: i32) -> (i32, i32, i32) {
    %c0_i32 = arith.constant 0 : i32
    %c0_i32_0 = arith.constant 0 : i32
    return %arg0, %arg1, %c0_i32 : i32, i32, i32
  }
  func.func @transform_1(%arg0: i32, %arg1: i32) -> (i32, i32, i32) {
    %c0_i32 = arith.constant 0 : i32
    %c0_i32_0 = arith.constant 0 : i32
    %c0_i32_1 = arith.constant 0 : i32
    return %arg0, %c0_i32, %c0_i32_0 : i32, i32, i32
  }
  func.func @transform_2(%arg0: i32, %arg1: i32) -> (i32, i32, i32) {
    %c0_i32 = arith.constant 0 : i32
    %c0_i32_0 = arith.constant 0 : i32
    %c0_i32_1 = arith.constant 0 : i32
    return %arg0, %c0_i32, %c0_i32_0 : i32, i32, i32
  }
  func.func @transform_3(%arg0: i32, %arg1: i32) -> (i32, i32, i32) {
    %c0_i32 = arith.constant 0 : i32
    %c0_i32_0 = arith.constant 0 : i32
    %c0_i32_1 = arith.constant 0 : i32
    return %arg0, %c0_i32, %c0_i32_0 : i32, i32, i32
  }
  func.func @transform_4(%arg0: i32, %arg1: i32) -> (i32, i32, i32) {
    %c0_i32 = arith.constant 0 : i32
    %c0_i32_0 = arith.constant 0 : i32
    return %arg0, %arg1, %c0_i32 : i32, i32, i32
  }
}

module attributes {stable_mosaic.version = 11 : i64} {
  func.func @_bmm_kernel(%arg0: i32, %arg1: i32, %arg2: memref<1x56x432xbf16, #tpu.memory_space<vmem>>, %arg3: memref<1x432x48xbf16, #tpu.memory_space<vmem>>, %arg4: memref<1x1x48xf32, #tpu.memory_space<vmem>>, %arg5: memref<1x1x48xf32, #tpu.memory_space<vmem>>, %arg6: memref<1x56x48xf32, #tpu.memory_space<vmem>>) attributes {dimension_semantics = [#tpu.dimension_semantics<parallel>, #tpu.dimension_semantics<parallel>], iteration_bounds = array<i64: 1, 2>, scalar_prefetch = 0 : i64, scratch_operands = 0 : i64, tpu.core_type = #tpu.core_type<tc>, window_params = [{transform_indices = @transform_0, window_bounds = array<i64: 1, 56, 432>}, {transform_indices = @transform_1, window_bounds = array<i64: 1, 432, 48>}, {transform_indices = @transform_2, window_bounds = array<i64: 1, 1, 48>}, {transform_indices = @transform_3, window_bounds = array<i64: 1, 1, 48>}, {transform_indices = @transform_4, window_bounds = array<i64: 1, 56, 48>}]} {
    %c0 = arith.constant 0 : index
    %c0_0 = arith.constant 0 : index
    %c0_1 = arith.constant 0 : index
    %0 = vector.load %arg2[%c0, %c0_0, %c0_1] : memref<1x56x432xbf16, #tpu.memory_space<vmem>>, vector<1x56x432xbf16>
    %1 = vector.shape_cast %0 : vector<1x56x432xbf16> to vector<56x432xbf16>
    %c0_2 = arith.constant 0 : index
    %c0_3 = arith.constant 0 : index
    %c0_4 = arith.constant 0 : index
    %2 = vector.load %arg3[%c0_2, %c0_3, %c0_4] : memref<1x432x48xbf16, #tpu.memory_space<vmem>>, vector<1x432x48xbf16>
    %3 = vector.shape_cast %2 : vector<1x432x48xbf16> to vector<432x48xbf16>
    %cst = arith.constant dense<0.000000e+00> : vector<56x48xf32>
    %4 = tpu.matmul %1, %3, %cst {dimension_numbers = #tpu.dot_dimension_numbers<[1], [0], [0], [1], [0, 0, 1, 1], [], []>} : vector<56x432xbf16>, vector<432x48xbf16>, vector<56x48xf32> -> vector<56x48xf32>
    %c0_5 = arith.constant 0 : index
    %c0_6 = arith.constant 0 : index
    %c0_7 = arith.constant 0 : index
    %5 = vector.load %arg4[%c0_5, %c0_6, %c0_7] : memref<1x1x48xf32, #tpu.memory_space<vmem>>, vector<1x1x48xf32>
    %6 = vector.shape_cast %5 : vector<1x1x48xf32> to vector<1x48xf32>
    %7 = vector.broadcast %6 : vector<1x48xf32> to vector<56x48xf32>
    %8 = arith.mulf %4, %7 : vector<56x48xf32>
    %c0_8 = arith.constant 0 : index
    %c0_9 = arith.constant 0 : index
    %c0_10 = arith.constant 0 : index
    %9 = vector.load %arg5[%c0_8, %c0_9, %c0_10] : memref<1x1x48xf32, #tpu.memory_space<vmem>>, vector<1x1x48xf32>
    %10 = vector.shape_cast %9 : vector<1x1x48xf32> to vector<1x48xf32>
    %11 = vector.broadcast %10 : vector<1x48xf32> to vector<56x48xf32>
    %12 = arith.addf %8, %11 : vector<56x48xf32>
    %c0_11 = arith.constant 0 : index
    %c0_12 = arith.constant 0 : index
    %c0_13 = arith.constant 0 : index
    %13 = vector.load %arg6[%c0_11, %c0_12, %c0_13] : memref<1x56x48xf32, #tpu.memory_space<vmem>>, vector<1x56x48xf32>
    %14 = vector.shape_cast %13 : vector<1x56x48xf32> to vector<56x48xf32>
    %15 = vector.shape_cast %12 : vector<56x48xf32> to vector<1x56x48xf32>
    tpu.vector_store %arg6[%c0_11, %c0_12, %c0_13], %15 {strides = array<i32>} : memref<1x56x48xf32, #tpu.memory_space<vmem>>, vector<1x56x48xf32>,
    return
  }
  func.func @transform_0(%arg0: i32, %arg1: i32) -> (i32, i32, i32) {
    %c0_i32 = arith.constant 0 : i32
    %c0_i32_0 = arith.constant 0 : i32
    return %arg0, %arg1, %c0_i32 : i32, i32, i32
  }
  func.func @transform_1(%arg0: i32, %arg1: i32) -> (i32, i32, i32) {
    %c0_i32 = arith.constant 0 : i32
    %c0_i32_0 = arith.constant 0 : i32
    %c0_i32_1 = arith.constant 0 : i32
    return %arg0, %c0_i32, %c0_i32_0 : i32, i32, i32
  }
  func.func @transform_2(%arg0: i32, %arg1: i32) -> (i32, i32, i32) {
    %c0_i32 = arith.constant 0 : i32
    %c0_i32_0 = arith.constant 0 : i32
    %c0_i32_1 = arith.constant 0 : i32
    return %arg0, %c0_i32, %c0_i32_0 : i32, i32, i32
  }
  func.func @transform_3(%arg0: i32, %arg1: i32) -> (i32, i32, i32) {
    %c0_i32 = arith.constant 0 : i32
    %c0_i32_0 = arith.constant 0 : i32
    %c0_i32_1 = arith.constant 0 : i32
    return %arg0, %c0_i32, %c0_i32_0 : i32, i32, i32
  }
  func.func @transform_4(%arg0: i32, %arg1: i32) -> (i32, i32, i32) {
    %c0_i32 = arith.constant 0 : i32
    %c0_i32_0 = arith.constant 0 : i32
    return %arg0, %arg1, %c0_i32 : i32, i32, i32
  }
}

module attributes {stable_mosaic.version = 11 : i64} {
  func.func @_bmm_kernel(%arg0: i32, %arg1: i32, %arg2: memref<1x56x432xbf16, #tpu.memory_space<vmem>>, %arg3: memref<1x432x3xbf16, #tpu.memory_space<vmem>>, %arg4: memref<1x1x3xf32, #tpu.memory_space<vmem>>, %arg5: memref<1x1x3xf32, #tpu.memory_space<vmem>>, %arg6: memref<1x56x3xf32, #tpu.memory_space<vmem>>) attributes {dimension_semantics = [#tpu.dimension_semantics<parallel>, #tpu.dimension_semantics<parallel>], iteration_bounds = array<i64: 1, 2>, scalar_prefetch = 0 : i64, scratch_operands = 0 : i64, tpu.core_type = #tpu.core_type<tc>, window_params = [{transform_indices = @transform_0, window_bounds = array<i64: 1, 56, 432>}, {transform_indices = @transform_1, window_bounds = array<i64: 1, 432, 3>}, {transform_indices = @transform_2, window_bounds = array<i64: 1, 1, 3>}, {transform_indices = @transform_3, window_bounds = array<i64: 1, 1, 3>}, {transform_indices = @transform_4, window_bounds = array<i64: 1, 56, 3>}]} {
    %c0 = arith.constant 0 : index
    %c0_0 = arith.constant 0 : index
    %c0_1 = arith.constant 0 : index
    %0 = vector.load %arg2[%c0, %c0_0, %c0_1] : memref<1x56x432xbf16, #tpu.memory_space<vmem>>, vector<1x56x432xbf16>
    %1 = vector.shape_cast %0 : vector<1x56x432xbf16> to vector<56x432xbf16>
    %c0_2 = arith.constant 0 : index
    %c0_3 = arith.constant 0 : index
    %c0_4 = arith.constant 0 : index
    %2 = vector.load %arg3[%c0_2, %c0_3, %c0_4] : memref<1x432x3xbf16, #tpu.memory_space<vmem>>, vector<1x432x3xbf16>
    %3 = vector.shape_cast %2 : vector<1x432x3xbf16> to vector<432x3xbf16>
    %cst = arith.constant dense<0.000000e+00> : vector<56x3xf32>
    %4 = tpu.matmul %1, %3, %cst {dimension_numbers = #tpu.dot_dimension_numbers<[1], [0], [0], [1], [0, 0, 1, 1], [], []>} : vector<56x432xbf16>, vector<432x3xbf16>, vector<56x3xf32> -> vector<56x3xf32>
    %c0_5 = arith.constant 0 : index
    %c0_6 = arith.constant 0 : index
    %c0_7 = arith.constant 0 : index
    %5 = vector.load %arg4[%c0_5, %c0_6, %c0_7] : memref<1x1x3xf32, #tpu.memory_space<vmem>>, vector<1x1x3xf32>
    %6 = vector.shape_cast %5 : vector<1x1x3xf32> to vector<1x3xf32>
    %7 = vector.broadcast %6 : vector<1x3xf32> to vector<56x3xf32>
    %8 = arith.mulf %4, %7 : vector<56x3xf32>
    %c0_8 = arith.constant 0 : index
    %c0_9 = arith.constant 0 : index
    %c0_10 = arith.constant 0 : index
    %9 = vector.load %arg5[%c0_8, %c0_9, %c0_10] : memref<1x1x3xf32, #tpu.memory_space<vmem>>, vector<1x1x3xf32>
    %10 = vector.shape_cast %9 : vector<1x1x3xf32> to vector<1x3xf32>
    %11 = vector.broadcast %10 : vector<1x3xf32> to vector<56x3xf32>
    %12 = arith.addf %8, %11 : vector<56x3xf32>
    %c0_11 = arith.constant 0 : index
    %c0_12 = arith.constant 0 : index
    %c0_13 = arith.constant 0 : index
    %13 = vector.load %arg6[%c0_11, %c0_12, %c0_13] : memref<1x56x3xf32, #tpu.memory_space<vmem>>, vector<1x56x3xf32>
    %14 = vector.shape_cast %13 : vector<1x56x3xf32> to vector<56x3xf32>
    %15 = vector.shape_cast %12 : vector<56x3xf32> to vector<1x56x3xf32>
    tpu.vector_store %arg6[%c0_11, %c0_12, %c0_13], %15 {strides = array<i32>} : memref<1x56x3xf32, #tpu.memory_space<vmem>>, vector<1x56x3xf32>,
    return
  }
  func.func @transform_0(%arg0: i32, %arg1: i32) -> (i32, i32, i32) {
    %c0_i32 = arith.constant 0 : i32
    %c0_i32_0 = arith.constant 0 : i32
    return %arg0, %arg1, %c0_i32 : i32, i32, i32
  }
  func.func @transform_1(%arg0: i32, %arg1: i32) -> (i32, i32, i32) {
    %c0_i32 = arith.constant 0 : i32
    %c0_i32_0 = arith.constant 0 : i32
    %c0_i32_1 = arith.constant 0 : i32
    return %arg0, %c0_i32, %c0_i32_0 : i32, i32, i32
  }
  func.func @transform_2(%arg0: i32, %arg1: i32) -> (i32, i32, i32) {
    %c0_i32 = arith.constant 0 : i32
    %c0_i32_0 = arith.constant 0 : i32
    %c0_i32_1 = arith.constant 0 : i32
    return %arg0, %c0_i32, %c0_i32_0 : i32, i32, i32
  }
  func.func @transform_3(%arg0: i32, %arg1: i32) -> (i32, i32, i32) {
    %c0_i32 = arith.constant 0 : i32
    %c0_i32_0 = arith.constant 0 : i32
    %c0_i32_1 = arith.constant 0 : i32
    return %arg0, %c0_i32, %c0_i32_0 : i32, i32, i32
  }
  func.func @transform_4(%arg0: i32, %arg1: i32) -> (i32, i32, i32) {
    %c0_i32 = arith.constant 0 : i32
    %c0_i32_0 = arith.constant 0 : i32
    return %arg0, %arg1, %c0_i32 : i32, i32, i32
  }
}

module attributes {stable_mosaic.version = 11 : i64} {
  func.func @_bmm_kernel(%arg0: i32, %arg1: i32, %arg2: memref<1x50x432xbf16, #tpu.memory_space<vmem>>, %arg3: memref<1x432x48xbf16, #tpu.memory_space<vmem>>, %arg4: memref<1x1x48xf32, #tpu.memory_space<vmem>>, %arg5: memref<1x1x48xf32, #tpu.memory_space<vmem>>, %arg6: memref<1x50x48xf32, #tpu.memory_space<vmem>>) attributes {dimension_semantics = [#tpu.dimension_semantics<parallel>, #tpu.dimension_semantics<parallel>], iteration_bounds = array<i64: 1, 1>, scalar_prefetch = 0 : i64, scratch_operands = 0 : i64, tpu.core_type = #tpu.core_type<tc>, window_params = [{transform_indices = @transform_0, window_bounds = array<i64: 1, 50, 432>}, {transform_indices = @transform_1, window_bounds = array<i64: 1, 432, 48>}, {transform_indices = @transform_2, window_bounds = array<i64: 1, 1, 48>}, {transform_indices = @transform_3, window_bounds = array<i64: 1, 1, 48>}, {transform_indices = @transform_4, window_bounds = array<i64: 1, 50, 48>}]} {
    %c0 = arith.constant 0 : index
    %c0_0 = arith.constant 0 : index
    %c0_1 = arith.constant 0 : index
    %0 = vector.load %arg2[%c0, %c0_0, %c0_1] : memref<1x50x432xbf16, #tpu.memory_space<vmem>>, vector<1x50x432xbf16>
    %1 = vector.shape_cast %0 : vector<1x50x432xbf16> to vector<50x432xbf16>
    %c0_2 = arith.constant 0 : index
    %c0_3 = arith.constant 0 : index
    %c0_4 = arith.constant 0 : index
    %2 = vector.load %arg3[%c0_2, %c0_3, %c0_4] : memref<1x432x48xbf16, #tpu.memory_space<vmem>>, vector<1x432x48xbf16>
    %3 = vector.shape_cast %2 : vector<1x432x48xbf16> to vector<432x48xbf16>
    %cst = arith.constant dense<0.000000e+00> : vector<50x48xf32>
    %4 = tpu.matmul %1, %3, %cst {dimension_numbers = #tpu.dot_dimension_numbers<[1], [0], [0], [1], [0, 0, 1, 1], [], []>} : vector<50x432xbf16>, vector<432x48xbf16>, vector<50x48xf32> -> vector<50x48xf32>
    %c0_5 = arith.constant 0 : index
    %c0_6 = arith.constant 0 : index
    %c0_7 = arith.constant 0 : index
    %5 = vector.load %arg4[%c0_5, %c0_6, %c0_7] : memref<1x1x48xf32, #tpu.memory_space<vmem>>, vector<1x1x48xf32>
    %6 = vector.shape_cast %5 : vector<1x1x48xf32> to vector<1x48xf32>
    %7 = vector.broadcast %6 : vector<1x48xf32> to vector<50x48xf32>
    %8 = arith.mulf %4, %7 : vector<50x48xf32>
    %c0_8 = arith.constant 0 : index
    %c0_9 = arith.constant 0 : index
    %c0_10 = arith.constant 0 : index
    %9 = vector.load %arg5[%c0_8, %c0_9, %c0_10] : memref<1x1x48xf32, #tpu.memory_space<vmem>>, vector<1x1x48xf32>
    %10 = vector.shape_cast %9 : vector<1x1x48xf32> to vector<1x48xf32>
    %11 = vector.broadcast %10 : vector<1x48xf32> to vector<50x48xf32>
    %12 = arith.addf %8, %11 : vector<50x48xf32>
    %c0_11 = arith.constant 0 : index
    %c0_12 = arith.constant 0 : index
    %c0_13 = arith.constant 0 : index
    %13 = vector.load %arg6[%c0_11, %c0_12, %c0_13] : memref<1x50x48xf32, #tpu.memory_space<vmem>>, vector<1x50x48xf32>
    %14 = vector.shape_cast %13 : vector<1x50x48xf32> to vector<50x48xf32>
    %15 = vector.shape_cast %12 : vector<50x48xf32> to vector<1x50x48xf32>
    tpu.vector_store %arg6[%c0_11, %c0_12, %c0_13], %15 {strides = array<i32>} : memref<1x50x48xf32, #tpu.memory_space<vmem>>, vector<1x50x48xf32>,
    return
  }
  func.func @transform_0(%arg0: i32, %arg1: i32) -> (i32, i32, i32) {
    %c0_i32 = arith.constant 0 : i32
    %c0_i32_0 = arith.constant 0 : i32
    return %arg0, %arg1, %c0_i32 : i32, i32, i32
  }
  func.func @transform_1(%arg0: i32, %arg1: i32) -> (i32, i32, i32) {
    %c0_i32 = arith.constant 0 : i32
    %c0_i32_0 = arith.constant 0 : i32
    %c0_i32_1 = arith.constant 0 : i32
    return %arg0, %c0_i32, %c0_i32_0 : i32, i32, i32
  }
  func.func @transform_2(%arg0: i32, %arg1: i32) -> (i32, i32, i32) {
    %c0_i32 = arith.constant 0 : i32
    %c0_i32_0 = arith.constant 0 : i32
    %c0_i32_1 = arith.constant 0 : i32
    return %arg0, %c0_i32, %c0_i32_0 : i32, i32, i32
  }
  func.func @transform_3(%arg0: i32, %arg1: i32) -> (i32, i32, i32) {
    %c0_i32 = arith.constant 0 : i32
    %c0_i32_0 = arith.constant 0 : i32
    %c0_i32_1 = arith.constant 0 : i32
    return %arg0, %c0_i32, %c0_i32_0 : i32, i32, i32
  }
  func.func @transform_4(%arg0: i32, %arg1: i32) -> (i32, i32, i32) {
    %c0_i32 = arith.constant 0 : i32
    %c0_i32_0 = arith.constant 0 : i32
    return %arg0, %arg1, %c0_i32 : i32, i32, i32
  }
}

module attributes {stable_mosaic.version = 11 : i64} {
  func.func @_condattn_kernel(%arg0: i32, %arg1: i32, %arg2: memref<1x25x48xf32, #tpu.memory_space<vmem>>, %arg3: memref<9x25x25xf32, #tpu.memory_space<vmem>>, %arg4: memref<9x48x3xf32, #tpu.memory_space<vmem>>, %arg5: memref<1x3xf32, #tpu.memory_space<vmem>>, %arg6: memref<1x1x3x25xf32, #tpu.memory_space<vmem>>, %arg7: memref<1x1x25x48xf32, #tpu.memory_space<vmem>>, %arg8: memref<1x1x1x48xf32, #tpu.memory_space<vmem>>, %arg9: memref<25x48xf32, #tpu.memory_space<vmem>>) attributes {dimension_semantics = [#tpu.dimension_semantics<parallel>, #tpu.dimension_semantics<arbitrary>], iteration_bounds = array<i64: 2, 2>, scalar_prefetch = 0 : i64, scratch_operands = 1 : i64, tpu.core_type = #tpu.core_type<tc>, window_params = [{transform_indices = @transform_0, window_bounds = array<i64: 1, 25, 48>}, {pipeline_mode = #tpu.pipeline_mode<synchronous>, transform_indices = @transform_1, window_bounds = array<i64: 9, 25, 25>}, {pipeline_mode = #tpu.pipeline_mode<synchronous>, transform_indices = @transform_2, window_bounds = array<i64: 9, 48, 3>}, {pipeline_mode = #tpu.pipeline_mode<synchronous>, transform_indices = @transform_3, window_bounds = array<i64: 1, 3>}, {transform_indices = @transform_4, window_bounds = array<i64: 1, 1, 3, 25>}, {transform_indices = @transform_5, window_bounds = array<i64: 1, 1, 25, 48>}, {transform_indices = @transform_6, window_bounds = array<i64: 1, 1, 1, 48>}]} {
    %c0_i32 = arith.constant 0 : i32
    %0 = arith.cmpi eq, %arg1, %c0_i32 : i32
    %1 = arith.extui %0 : i1 to i32
    %c0_i32_0 = arith.constant 0 : i32
    %2 = arith.cmpi ne, %1, %c0_i32_0 : i32
    scf.if %2 {
      %c0_88 = arith.constant 0 : index
      %c0_89 = arith.constant 0 : index
      %c0_90 = arith.constant 0 : index
      %95 = vector.load %arg2[%c0_88, %c0_89, %c0_90] : memref<1x25x48xf32, #tpu.memory_space<vmem>>, vector<1x25x48xf32>
      %96 = vector.shape_cast %95 : vector<1x25x48xf32> to vector<25x48xf32>
      %c0_91 = arith.constant 0 : index
      %c0_92 = arith.constant 0 : index
      %97 = vector.load %arg9[%c0_91, %c0_92] : memref<25x48xf32, #tpu.memory_space<vmem>>, vector<25x48xf32>
      tpu.vector_store %arg9[%c0_91, %c0_92], %96 {strides = array<i32>} : memref<25x48xf32, #tpu.memory_space<vmem>>, vector<25x48xf32>,
    } else {
    }
    %c0 = arith.constant 0 : index
    %c0_1 = arith.constant 0 : index
    %3 = vector.load %arg9[%c0, %c0_1] : memref<25x48xf32, #tpu.memory_space<vmem>>, vector<25x48xf32>
    %cst = arith.constant 0.000000e+00 : f32
    %4 = vector.broadcast %cst : f32 to vector<25x3xf32>
    %c0_2 = arith.constant 0 : index
    %c0_3 = arith.constant 0 : index
    %5 = vector.load %arg5[%c0_2, %c0_3] : memref<1x3xf32, #tpu.memory_space<vmem>>, vector<1x3xf32>
    %6 = vector.broadcast %5 : vector<1x3xf32> to vector<25x3xf32>
    %7 = arith.addf %4, %6 : vector<25x3xf32>
    %c0_4 = arith.constant 0 : index
    %c0_5 = arith.constant 0 : index
    %c0_6 = arith.constant 0 : index
    %8 = vector.load %arg3[%c0_4, %c0_5, %c0_6] : memref<9x25x25xf32, #tpu.memory_space<vmem>>, vector<1x25x25xf32>
    %9 = vector.shape_cast %8 : vector<1x25x25xf32> to vector<25x25xf32>
    %cst_7 = arith.constant dense<0.000000e+00> : vector<25x48xf32>
    %10 = tpu.matmul %9, %3, %cst_7 {dimension_numbers = #tpu.dot_dimension_numbers<[1], [0], [0], [1], [0, 0, 1, 1], [], []>} : vector<25x25xf32>, vector<25x48xf32>, vector<25x48xf32> -> vector<25x48xf32>
    %c0_8 = arith.constant 0 : index
    %c0_9 = arith.constant 0 : index
    %c0_10 = arith.constant 0 : index
    %11 = vector.load %arg4[%c0_8, %c0_9, %c0_10] : memref<9x48x3xf32, #tpu.memory_space<vmem>>, vector<1x48x3xf32>
    %12 = vector.shape_cast %11 : vector<1x48x3xf32> to vector<48x3xf32>
    %cst_11 = arith.constant dense<0.000000e+00> : vector<25x3xf32>
    %13 = tpu.matmul %10, %12, %cst_11 {dimension_numbers = #tpu.dot_dimension_numbers<[1], [0], [0], [1], [0, 0, 1, 1], [], []>} : vector<25x48xf32>, vector<48x3xf32>, vector<25x3xf32> -> vector<25x3xf32>
    %14 = arith.addf %7, %13 : vector<25x3xf32>
    %c1 = arith.constant 1 : index
    %c0_12 = arith.constant 0 : index
    %c0_13 = arith.constant 0 : index
    %15 = vector.load %arg3[%c1, %c0_12, %c0_13] : memref<9x25x25xf32, #tpu.memory_space<vmem>>, vector<1x25x25xf32>
    %16 = vector.shape_cast %15 : vector<1x25x25xf32> to vector<25x25xf32>
    %cst_14 = arith.constant dense<0.000000e+00> : vector<25x48xf32>
    %17 = tpu.matmul %16, %3, %cst_14 {dimension_numbers = #tpu.dot_dimension_numbers<[1], [0], [0], [1], [0, 0, 1, 1], [], []>} : vector<25x25xf32>, vector<25x48xf32>, vector<25x48xf32> -> vector<25x48xf32>
    %c1_15 = arith.constant 1 : index
    %c0_16 = arith.constant 0 : index
    %c0_17 = arith.constant 0 : index
    %18 = vector.load %arg4[%c1_15, %c0_16, %c0_17] : memref<9x48x3xf32, #tpu.memory_space<vmem>>, vector<1x48x3xf32>
    %19 = vector.shape_cast %18 : vector<1x48x3xf32> to vector<48x3xf32>
    %cst_18 = arith.constant dense<0.000000e+00> : vector<25x3xf32>
    %20 = tpu.matmul %17, %19, %cst_18 {dimension_numbers = #tpu.dot_dimension_numbers<[1], [0], [0], [1], [0, 0, 1, 1], [], []>} : vector<25x48xf32>, vector<48x3xf32>, vector<25x3xf32> -> vector<25x3xf32>
    %21 = arith.addf %14, %20 : vector<25x3xf32>
    %c2 = arith.constant 2 : index
    %c0_19 = arith.constant 0 : index
    %c0_20 = arith.constant 0 : index
    %22 = vector.load %arg3[%c2, %c0_19, %c0_20] : memref<9x25x25xf32, #tpu.memory_space<vmem>>, vector<1x25x25xf32>
    %23 = vector.shape_cast %22 : vector<1x25x25xf32> to vector<25x25xf32>
    %cst_21 = arith.constant dense<0.000000e+00> : vector<25x48xf32>
    %24 = tpu.matmul %23, %3, %cst_21 {dimension_numbers = #tpu.dot_dimension_numbers<[1], [0], [0], [1], [0, 0, 1, 1], [], []>} : vector<25x25xf32>, vector<25x48xf32>, vector<25x48xf32> -> vector<25x48xf32>
    %c2_22 = arith.constant 2 : index
    %c0_23 = arith.constant 0 : index
    %c0_24 = arith.constant 0 : index
    %25 = vector.load %arg4[%c2_22, %c0_23, %c0_24] : memref<9x48x3xf32, #tpu.memory_space<vmem>>, vector<1x48x3xf32>
    %26 = vector.shape_cast %25 : vector<1x48x3xf32> to vector<48x3xf32>
    %cst_25 = arith.constant dense<0.000000e+00> : vector<25x3xf32>
    %27 = tpu.matmul %24, %26, %cst_25 {dimension_numbers = #tpu.dot_dimension_numbers<[1], [0], [0], [1], [0, 0, 1, 1], [], []>} : vector<25x48xf32>, vector<48x3xf32>, vector<25x3xf32> -> vector<25x3xf32>
    %28 = arith.addf %21, %27 : vector<25x3xf32>
    %c3 = arith.constant 3 : index
    %c0_26 = arith.constant 0 : index
    %c0_27 = arith.constant 0 : index
    %29 = vector.load %arg3[%c3, %c0_26, %c0_27] : memref<9x25x25xf32, #tpu.memory_space<vmem>>, vector<1x25x25xf32>
    %30 = vector.shape_cast %29 : vector<1x25x25xf32> to vector<25x25xf32>
    %cst_28 = arith.constant dense<0.000000e+00> : vector<25x48xf32>
    %31 = tpu.matmul %30, %3, %cst_28 {dimension_numbers = #tpu.dot_dimension_numbers<[1], [0], [0], [1], [0, 0, 1, 1], [], []>} : vector<25x25xf32>, vector<25x48xf32>, vector<25x48xf32> -> vector<25x48xf32>
    %c3_29 = arith.constant 3 : index
    %c0_30 = arith.constant 0 : index
    %c0_31 = arith.constant 0 : index
    %32 = vector.load %arg4[%c3_29, %c0_30, %c0_31] : memref<9x48x3xf32, #tpu.memory_space<vmem>>, vector<1x48x3xf32>
    %33 = vector.shape_cast %32 : vector<1x48x3xf32> to vector<48x3xf32>
    %cst_32 = arith.constant dense<0.000000e+00> : vector<25x3xf32>
    %34 = tpu.matmul %31, %33, %cst_32 {dimension_numbers = #tpu.dot_dimension_numbers<[1], [0], [0], [1], [0, 0, 1, 1], [], []>} : vector<25x48xf32>, vector<48x3xf32>, vector<25x3xf32> -> vector<25x3xf32>
    %35 = arith.addf %28, %34 : vector<25x3xf32>
    %c4 = arith.constant 4 : index
    %c0_33 = arith.constant 0 : index
    %c0_34 = arith.constant 0 : index
    %36 = vector.load %arg3[%c4, %c0_33, %c0_34] : memref<9x25x25xf32, #tpu.memory_space<vmem>>, vector<1x25x25xf32>
    %37 = vector.shape_cast %36 : vector<1x25x25xf32> to vector<25x25xf32>
    %cst_35 = arith.constant dense<0.000000e+00> : vector<25x48xf32>
    %38 = tpu.matmul %37, %3, %cst_35 {dimension_numbers = #tpu.dot_dimension_numbers<[1], [0], [0], [1], [0, 0, 1, 1], [], []>} : vector<25x25xf32>, vector<25x48xf32>, vector<25x48xf32> -> vector<25x48xf32>
    %c4_36 = arith.constant 4 : index
    %c0_37 = arith.constant 0 : index
    %c0_38 = arith.constant 0 : index
    %39 = vector.load %arg4[%c4_36, %c0_37, %c0_38] : memref<9x48x3xf32, #tpu.memory_space<vmem>>, vector<1x48x3xf32>
    %40 = vector.shape_cast %39 : vector<1x48x3xf32> to vector<48x3xf32>
    %cst_39 = arith.constant dense<0.000000e+00> : vector<25x3xf32>
    %41 = tpu.matmul %38, %40, %cst_39 {dimension_numbers = #tpu.dot_dimension_numbers<[1], [0], [0], [1], [0, 0, 1, 1], [], []>} : vector<25x48xf32>, vector<48x3xf32>, vector<25x3xf32> -> vector<25x3xf32>
    %42 = arith.addf %35, %41 : vector<25x3xf32>
    %c5 = arith.constant 5 : index
    %c0_40 = arith.constant 0 : index
    %c0_41 = arith.constant 0 : index
    %43 = vector.load %arg3[%c5, %c0_40, %c0_41] : memref<9x25x25xf32, #tpu.memory_space<vmem>>, vector<1x25x25xf32>
    %44 = vector.shape_cast %43 : vector<1x25x25xf32> to vector<25x25xf32>
    %cst_42 = arith.constant dense<0.000000e+00> : vector<25x48xf32>
    %45 = tpu.matmul %44, %3, %cst_42 {dimension_numbers = #tpu.dot_dimension_numbers<[1], [0], [0], [1], [0, 0, 1, 1], [], []>} : vector<25x25xf32>, vector<25x48xf32>, vector<25x48xf32> -> vector<25x48xf32>
    %c5_43 = arith.constant 5 : index
    %c0_44 = arith.constant 0 : index
    %c0_45 = arith.constant 0 : index
    %46 = vector.load %arg4[%c5_43, %c0_44, %c0_45] : memref<9x48x3xf32, #tpu.memory_space<vmem>>, vector<1x48x3xf32>
    %47 = vector.shape_cast %46 : vector<1x48x3xf32> to vector<48x3xf32>
    %cst_46 = arith.constant dense<0.000000e+00> : vector<25x3xf32>
    %48 = tpu.matmul %45, %47, %cst_46 {dimension_numbers = #tpu.dot_dimension_numbers<[1], [0], [0], [1], [0, 0, 1, 1], [], []>} : vector<25x48xf32>, vector<48x3xf32>, vector<25x3xf32> -> vector<25x3xf32>
    %49 = arith.addf %42, %48 : vector<25x3xf32>
    %c6 = arith.constant 6 : index
    %c0_47 = arith.constant 0 : index
    %c0_48 = arith.constant 0 : index
    %50 = vector.load %arg3[%c6, %c0_47, %c0_48] : memref<9x25x25xf32, #tpu.memory_space<vmem>>, vector<1x25x25xf32>
    %51 = vector.shape_cast %50 : vector<1x25x25xf32> to vector<25x25xf32>
    %cst_49 = arith.constant dense<0.000000e+00> : vector<25x48xf32>
    %52 = tpu.matmul %51, %3, %cst_49 {dimension_numbers = #tpu.dot_dimension_numbers<[1], [0], [0], [1], [0, 0, 1, 1], [], []>} : vector<25x25xf32>, vector<25x48xf32>, vector<25x48xf32> -> vector<25x48xf32>
    %c6_50 = arith.constant 6 : index
    %c0_51 = arith.constant 0 : index
    %c0_52 = arith.constant 0 : index
    %53 = vector.load %arg4[%c6_50, %c0_51, %c0_52] : memref<9x48x3xf32, #tpu.memory_space<vmem>>, vector<1x48x3xf32>
    %54 = vector.shape_cast %53 : vector<1x48x3xf32> to vector<48x3xf32>
    %cst_53 = arith.constant dense<0.000000e+00> : vector<25x3xf32>
    %55 = tpu.matmul %52, %54, %cst_53 {dimension_numbers = #tpu.dot_dimension_numbers<[1], [0], [0], [1], [0, 0, 1, 1], [], []>} : vector<25x48xf32>, vector<48x3xf32>, vector<25x3xf32> -> vector<25x3xf32>
    %56 = arith.addf %49, %55 : vector<25x3xf32>
    %c7 = arith.constant 7 : index
    %c0_54 = arith.constant 0 : index
    %c0_55 = arith.constant 0 : index
    %57 = vector.load %arg3[%c7, %c0_54, %c0_55] : memref<9x25x25xf32, #tpu.memory_space<vmem>>, vector<1x25x25xf32>
    %58 = vector.shape_cast %57 : vector<1x25x25xf32> to vector<25x25xf32>
    %cst_56 = arith.constant dense<0.000000e+00> : vector<25x48xf32>
    %59 = tpu.matmul %58, %3, %cst_56 {dimension_numbers = #tpu.dot_dimension_numbers<[1], [0], [0], [1], [0, 0, 1, 1], [], []>} : vector<25x25xf32>, vector<25x48xf32>, vector<25x48xf32> -> vector<25x48xf32>
    %c7_57 = arith.constant 7 : index
    %c0_58 = arith.constant 0 : index
    %c0_59 = arith.constant 0 : index
    %60 = vector.load %arg4[%c7_57, %c0_58, %c0_59] : memref<9x48x3xf32, #tpu.memory_space<vmem>>, vector<1x48x3xf32>
    %61 = vector.shape_cast %60 : vector<1x48x3xf32> to vector<48x3xf32>
    %cst_60 = arith.constant dense<0.000000e+00> : vector<25x3xf32>
    %62 = tpu.matmul %59, %61, %cst_60 {dimension_numbers = #tpu.dot_dimension_numbers<[1], [0], [0], [1], [0, 0, 1, 1], [], []>} : vector<25x48xf32>, vector<48x3xf32>, vector<25x3xf32> -> vector<25x3xf32>
    %63 = arith.addf %56, %62 : vector<25x3xf32>
    %c8 = arith.constant 8 : index
    %c0_61 = arith.constant 0 : index
    %c0_62 = arith.constant 0 : index
    %64 = vector.load %arg3[%c8, %c0_61, %c0_62] : memref<9x25x25xf32, #tpu.memory_space<vmem>>, vector<1x25x25xf32>
    %65 = vector.shape_cast %64 : vector<1x25x25xf32> to vector<25x25xf32>
    %cst_63 = arith.constant dense<0.000000e+00> : vector<25x48xf32>
    %66 = tpu.matmul %65, %3, %cst_63 {dimension_numbers = #tpu.dot_dimension_numbers<[1], [0], [0], [1], [0, 0, 1, 1], [], []>} : vector<25x25xf32>, vector<25x48xf32>, vector<25x48xf32> -> vector<25x48xf32>
    %c8_64 = arith.constant 8 : index
    %c0_65 = arith.constant 0 : index
    %c0_66 = arith.constant 0 : index
    %67 = vector.load %arg4[%c8_64, %c0_65, %c0_66] : memref<9x48x3xf32, #tpu.memory_space<vmem>>, vector<1x48x3xf32>
    %68 = vector.shape_cast %67 : vector<1x48x3xf32> to vector<48x3xf32>
    %cst_67 = arith.constant dense<0.000000e+00> : vector<25x3xf32>
    %69 = tpu.matmul %66, %68, %cst_67 {dimension_numbers = #tpu.dot_dimension_numbers<[1], [0], [0], [1], [0, 0, 1, 1], [], []>} : vector<25x48xf32>, vector<48x3xf32>, vector<25x3xf32> -> vector<25x3xf32>
    %70 = arith.addf %63, %69 : vector<25x3xf32>
    %c0_68 = arith.constant 0 : index
    %c0_69 = arith.constant 0 : index
    %c0_70 = arith.constant 0 : index
    %c0_71 = arith.constant 0 : index
    %71 = vector.load %arg6[%c0_68, %c0_69, %c0_70, %c0_71] : memref<1x1x3x25xf32, #tpu.memory_space<vmem>>, vector<1x1x3x25xf32>
    %72 = vector.shape_cast %71 : vector<1x1x3x25xf32> to vector<3x25xf32>
    %cst_72 = arith.constant dense<0.000000e+00> : vector<25x25xf32>
    %73 = tpu.matmul %70, %72, %cst_72 {dimension_numbers = #tpu.dot_dimension_numbers<[1], [0], [0], [1], [0, 0, 1, 1], [], []>} : vector<25x3xf32>, vector<3x25xf32>, vector<25x25xf32> -> vector<25x25xf32>
    %cst_73 = arith.constant dense<0xFF800000> : vector<25xf32>
    %74 = vector.multi_reduction <maximumf>, %73, %cst_73 [1] : vector<25x25xf32> to vector<25xf32>
    %75 = vector.shape_cast %74 : vector<25xf32> to vector<25x1xf32>
    %76 = vector.broadcast %75 : vector<25x1xf32> to vector<25x25xf32>
    %77 = arith.subf %73, %76 : vector<25x25xf32>
    %78 = math.exp %77 : vector<25x25xf32>
    %cst_74 = arith.constant dense<0.000000e+00> : vector<25xf32>
    %79 = vector.multi_reduction <add>, %78, %cst_74 [1] : vector<25x25xf32> to vector<25xf32>
    %80 = vector.shape_cast %79 : vector<25xf32> to vector<25x1xf32>
    %81 = tpu.reciprocal %80 {approx = true} : vector<25x1xf32> -> vector<25x1xf32>
    %82 = vector.broadcast %81 : vector<25x1xf32> to vector<25x25xf32>
    %83 = arith.mulf %78, %82 : vector<25x25xf32>
    %c0_75 = arith.constant 0 : index
    %c0_76 = arith.constant 0 : index
    %c0_77 = arith.constant 0 : index
    %c0_78 = arith.constant 0 : index
    %84 = vector.load %arg7[%c0_75, %c0_76, %c0_77, %c0_78] : memref<1x1x25x48xf32, #tpu.memory_space<vmem>>, vector<1x1x25x48xf32>
    %85 = vector.shape_cast %84 : vector<1x1x25x48xf32> to vector<25x48xf32>
    %cst_79 = arith.constant dense<0.000000e+00> : vector<25x48xf32>
    %86 = tpu.matmul %83, %85, %cst_79 {dimension_numbers = #tpu.dot_dimension_numbers<[1], [0], [0], [1], [0, 0, 1, 1], [], []>} : vector<25x25xf32>, vector<25x48xf32>, vector<25x48xf32> -> vector<25x48xf32>
    %c0_80 = arith.constant 0 : index
    %c0_81 = arith.constant 0 : index
    %87 = vector.load %arg9[%c0_80, %c0_81] : memref<25x48xf32, #tpu.memory_space<vmem>>, vector<25x48xf32>
    tpu.vector_store %arg9[%c0_80, %c0_81], %86 {strides = array<i32>} : memref<25x48xf32, #tpu.memory_space<vmem>>, vector<25x48xf32>,
    %cst_82 = arith.constant dense<0.000000e+00> : vector<48xf32>
    %88 = vector.multi_reduction <add>, %86, %cst_82 [0] : vector<25x48xf32> to vector<48xf32>
    %89 = vector.shape_cast %88 : vector<48xf32> to vector<1x48xf32>
    %cst_83 = arith.constant 2.500000e+01 : f32
    %90 = vector.broadcast %cst_83 : f32 to vector<1x48xf32>
    %91 = arith.divf %89, %90 : vector<1x48xf32>
    %c0_84 = arith.constant 0 : index
    %c0_85 = arith.constant 0 : index
    %c0_86 = arith.constant 0 : index
    %c0_87 = arith.constant 0 : index
    %92 = vector.load %arg8[%c0_84, %c0_85, %c0_86, %c0_87] : memref<1x1x1x48xf32, #tpu.memory_space<vmem>>, vector<1x1x1x48xf32>
    %93 = vector.shape_cast %92 : vector<1x1x1x48xf32> to vector<1x48xf32>
    %94 = vector.shape_cast %91 : vector<1x48xf32> to vector<1x1x1x48xf32>
    tpu.vector_store %arg8[%c0_84, %c0_85, %c0_86, %c0_87], %94 {strides = array<i32>} : memref<1x1x1x48xf32, #tpu.memory_space<vmem>>, vector<1x1x1x48xf32>,
    return
  }
  func.func @transform_0(%arg0: i32, %arg1: i32) -> (i32, i32, i32) {
    %c0_i32 = arith.constant 0 : i32
    %c0_i32_0 = arith.constant 0 : i32
    %c0_i32_1 = arith.constant 0 : i32
    return %arg0, %c0_i32, %c0_i32_0 : i32, i32, i32
  }
  func.func @transform_1(%arg0: i32, %arg1: i32) -> (i32, i32, i32) {
    %c0_i32 = arith.constant 0 : i32
    %c0_i32_0 = arith.constant 0 : i32
    %c0_i32_1 = arith.constant 0 : i32
    %c0_i32_2 = arith.constant 0 : i32
    return %c0_i32, %c0_i32_0, %c0_i32_1 : i32, i32, i32
  }
  func.func @transform_2(%arg0: i32, %arg1: i32) -> (i32, i32, i32) {
    %c0_i32 = arith.constant 0 : i32
    %c0_i32_0 = arith.constant 0 : i32
    %c0_i32_1 = arith.constant 0 : i32
    %c0_i32_2 = arith.constant 0 : i32
    return %c0_i32, %c0_i32_0, %c0_i32_1 : i32, i32, i32
  }
  func.func @transform_3(%arg0: i32, %arg1: i32) -> (i32, i32) {
    %c0_i32 = arith.constant 0 : i32
    %c0_i32_0 = arith.constant 0 : i32
    %c0_i32_1 = arith.constant 0 : i32
    return %c0_i32, %c0_i32_0 : i32, i32
  }
  func.func @transform_4(%arg0: i32, %arg1: i32) -> (i32, i32, i32, i32) {
    %c0_i32 = arith.constant 0 : i32
    %c0_i32_0 = arith.constant 0 : i32
    %c0_i32_1 = arith.constant 0 : i32
    return %arg0, %arg1, %c0_i32, %c0_i32_0 : i32, i32, i32, i32
  }
  func.func @transform_5(%arg0: i32, %arg1: i32) -> (i32, i32, i32, i32) {
    %c0_i32 = arith.constant 0 : i32
    %c0_i32_0 = arith.constant 0 : i32
    %c0_i32_1 = arith.constant 0 : i32
    return %arg0, %arg1, %c0_i32, %c0_i32_0 : i32, i32, i32, i32
  }
  func.func @transform_6(%arg0: i32, %arg1: i32) -> (i32, i32, i32, i32) {
    %c0_i32 = arith.constant 0 : i32
    %c0_i32_0 = arith.constant 0 : i32
    %c0_i32_1 = arith.constant 0 : i32
    return %arg0, %arg1, %c0_i32, %c0_i32_0 : i32, i32, i32, i32
  }
}

module attributes {stable_mosaic.version = 11 : i64} {
  func.func @_bmm_kernel(%arg0: i32, %arg1: i32, %arg2: memref<1x9x432xbf16, #tpu.memory_space<vmem>>, %arg3: memref<1x432x48xbf16, #tpu.memory_space<vmem>>, %arg4: memref<1x1x48xf32, #tpu.memory_space<vmem>>, %arg5: memref<1x1x48xf32, #tpu.memory_space<vmem>>, %arg6: memref<1x9x48xbf16, #tpu.memory_space<vmem>>) attributes {dimension_semantics = [#tpu.dimension_semantics<parallel>, #tpu.dimension_semantics<parallel>], iteration_bounds = array<i64: 4, 1>, scalar_prefetch = 0 : i64, scratch_operands = 0 : i64, tpu.core_type = #tpu.core_type<tc>, window_params = [{transform_indices = @transform_0, window_bounds = array<i64: 1, 9, 432>}, {transform_indices = @transform_1, window_bounds = array<i64: 1, 432, 48>}, {transform_indices = @transform_2, window_bounds = array<i64: 1, 1, 48>}, {transform_indices = @transform_3, window_bounds = array<i64: 1, 1, 48>}, {transform_indices = @transform_4, window_bounds = array<i64: 1, 9, 48>}]} {
    %c0 = arith.constant 0 : index
    %c0_0 = arith.constant 0 : index
    %c0_1 = arith.constant 0 : index
    %0 = vector.load %arg2[%c0, %c0_0, %c0_1] : memref<1x9x432xbf16, #tpu.memory_space<vmem>>, vector<1x9x432xbf16>
    %1 = vector.shape_cast %0 : vector<1x9x432xbf16> to vector<9x432xbf16>
    %c0_2 = arith.constant 0 : index
    %c0_3 = arith.constant 0 : index
    %c0_4 = arith.constant 0 : index
    %2 = vector.load %arg3[%c0_2, %c0_3, %c0_4] : memref<1x432x48xbf16, #tpu.memory_space<vmem>>, vector<1x432x48xbf16>
    %3 = vector.shape_cast %2 : vector<1x432x48xbf16> to vector<432x48xbf16>
    %cst = arith.constant dense<0.000000e+00> : vector<9x48xf32>
    %4 = tpu.matmul %1, %3, %cst {dimension_numbers = #tpu.dot_dimension_numbers<[1], [0], [0], [1], [0, 0, 1, 1], [], []>} : vector<9x432xbf16>, vector<432x48xbf16>, vector<9x48xf32> -> vector<9x48xf32>
    %c0_5 = arith.constant 0 : index
    %c0_6 = arith.constant 0 : index
    %c0_7 = arith.constant 0 : index
    %5 = vector.load %arg4[%c0_5, %c0_6, %c0_7] : memref<1x1x48xf32, #tpu.memory_space<vmem>>, vector<1x1x48xf32>
    %6 = vector.shape_cast %5 : vector<1x1x48xf32> to vector<1x48xf32>
    %7 = vector.broadcast %6 : vector<1x48xf32> to vector<9x48xf32>
    %8 = arith.mulf %4, %7 : vector<9x48xf32>
    %c0_8 = arith.constant 0 : index
    %c0_9 = arith.constant 0 : index
    %c0_10 = arith.constant 0 : index
    %9 = vector.load %arg5[%c0_8, %c0_9, %c0_10] : memref<1x1x48xf32, #tpu.memory_space<vmem>>, vector<1x1x48xf32>
    %10 = vector.shape_cast %9 : vector<1x1x48xf32> to vector<1x48xf32>
    %11 = vector.broadcast %10 : vector<1x48xf32> to vector<9x48xf32>
    %12 = arith.addf %8, %11 : vector<9x48xf32>
    %cst_11 = arith.constant 0.000000e+00 : f32
    %13 = vector.broadcast %cst_11 : f32 to vector<9x48xf32>
    %14 = arith.maximumf %12, %13 : vector<9x48xf32>
    %15 = arith.truncf %14 : vector<9x48xf32> to vector<9x48xbf16>
    %c0_12 = arith.constant 0 : index
    %c0_13 = arith.constant 0 : index
    %c0_14 = arith.constant 0 : index
    %16 = vector.load %arg6[%c0_12, %c0_13, %c0_14] : memref<1x9x48xbf16, #tpu.memory_space<vmem>>, vector<1x9x48xbf16>
    %17 = vector.shape_cast %16 : vector<1x9x48xbf16> to vector<9x48xbf16>
    %18 = vector.shape_cast %15 : vector<9x48xbf16> to vector<1x9x48xbf16>
    tpu.vector_store %arg6[%c0_12, %c0_13, %c0_14], %18 {strides = array<i32>} : memref<1x9x48xbf16, #tpu.memory_space<vmem>>, vector<1x9x48xbf16>,
    return
  }
  func.func @transform_0(%arg0: i32, %arg1: i32) -> (i32, i32, i32) {
    %c0_i32 = arith.constant 0 : i32
    %c0_i32_0 = arith.constant 0 : i32
    return %arg0, %arg1, %c0_i32 : i32, i32, i32
  }
  func.func @transform_1(%arg0: i32, %arg1: i32) -> (i32, i32, i32) {
    %c0_i32 = arith.constant 0 : i32
    %c0_i32_0 = arith.constant 0 : i32
    %c0_i32_1 = arith.constant 0 : i32
    return %arg0, %c0_i32, %c0_i32_0 : i32, i32, i32
  }
  func.func @transform_2(%arg0: i32, %arg1: i32) -> (i32, i32, i32) {
    %c0_i32 = arith.constant 0 : i32
    %c0_i32_0 = arith.constant 0 : i32
    %c0_i32_1 = arith.constant 0 : i32
    return %arg0, %c0_i32, %c0_i32_0 : i32, i32, i32
  }
  func.func @transform_3(%arg0: i32, %arg1: i32) -> (i32, i32, i32) {
    %c0_i32 = arith.constant 0 : i32
    %c0_i32_0 = arith.constant 0 : i32
    %c0_i32_1 = arith.constant 0 : i32
    return %arg0, %c0_i32, %c0_i32_0 : i32, i32, i32
  }
  func.func @transform_4(%arg0: i32, %arg1: i32) -> (i32, i32, i32) {
    %c0_i32 = arith.constant 0 : i32
    %c0_i32_0 = arith.constant 0 : i32
    return %arg0, %arg1, %c0_i32 : i32, i32, i32
  }
}

module attributes {stable_mosaic.version = 11 : i64} {
  func.func @_bmm_kernel(%arg0: i32, %arg1: i32, %arg2: memref<1x1x432xbf16, #tpu.memory_space<vmem>>, %arg3: memref<1x432x32xbf16, #tpu.memory_space<vmem>>, %arg4: memref<1x1x32xf32, #tpu.memory_space<vmem>>, %arg5: memref<1x1x32xf32, #tpu.memory_space<vmem>>, %arg6: memref<1x1x32xf32, #tpu.memory_space<vmem>>) attributes {dimension_semantics = [#tpu.dimension_semantics<parallel>, #tpu.dimension_semantics<parallel>], iteration_bounds = array<i64: 4, 1>, scalar_prefetch = 0 : i64, scratch_operands = 0 : i64, tpu.core_type = #tpu.core_type<tc>, window_params = [{transform_indices = @transform_0, window_bounds = array<i64: 1, 1, 432>}, {transform_indices = @transform_1, window_bounds = array<i64: 1, 432, 32>}, {transform_indices = @transform_2, window_bounds = array<i64: 1, 1, 32>}, {transform_indices = @transform_3, window_bounds = array<i64: 1, 1, 32>}, {transform_indices = @transform_4, window_bounds = array<i64: 1, 1, 32>}]} {
    %c0 = arith.constant 0 : index
    %c0_0 = arith.constant 0 : index
    %c0_1 = arith.constant 0 : index
    %0 = vector.load %arg2[%c0, %c0_0, %c0_1] : memref<1x1x432xbf16, #tpu.memory_space<vmem>>, vector<1x1x432xbf16>
    %1 = vector.shape_cast %0 : vector<1x1x432xbf16> to vector<1x432xbf16>
    %c0_2 = arith.constant 0 : index
    %c0_3 = arith.constant 0 : index
    %c0_4 = arith.constant 0 : index
    %2 = vector.load %arg3[%c0_2, %c0_3, %c0_4] : memref<1x432x32xbf16, #tpu.memory_space<vmem>>, vector<1x432x32xbf16>
    %3 = vector.shape_cast %2 : vector<1x432x32xbf16> to vector<432x32xbf16>
    %cst = arith.constant dense<0.000000e+00> : vector<1x32xf32>
    %4 = tpu.matmul %1, %3, %cst {dimension_numbers = #tpu.dot_dimension_numbers<[1], [0], [0], [1], [0, 0, 1, 1], [], []>} : vector<1x432xbf16>, vector<432x32xbf16>, vector<1x32xf32> -> vector<1x32xf32>
    %c0_5 = arith.constant 0 : index
    %c0_6 = arith.constant 0 : index
    %c0_7 = arith.constant 0 : index
    %5 = vector.load %arg4[%c0_5, %c0_6, %c0_7] : memref<1x1x32xf32, #tpu.memory_space<vmem>>, vector<1x1x32xf32>
    %6 = vector.shape_cast %5 : vector<1x1x32xf32> to vector<1x32xf32>
    %7 = arith.mulf %4, %6 : vector<1x32xf32>
    %c0_8 = arith.constant 0 : index
    %c0_9 = arith.constant 0 : index
    %c0_10 = arith.constant 0 : index
    %8 = vector.load %arg5[%c0_8, %c0_9, %c0_10] : memref<1x1x32xf32, #tpu.memory_space<vmem>>, vector<1x1x32xf32>
    %9 = vector.shape_cast %8 : vector<1x1x32xf32> to vector<1x32xf32>
    %10 = arith.addf %7, %9 : vector<1x32xf32>
    %c0_11 = arith.constant 0 : index
    %c0_12 = arith.constant 0 : index
    %c0_13 = arith.constant 0 : index
    %11 = vector.load %arg6[%c0_11, %c0_12, %c0_13] : memref<1x1x32xf32, #tpu.memory_space<vmem>>, vector<1x1x32xf32>
    %12 = vector.shape_cast %11 : vector<1x1x32xf32> to vector<1x32xf32>
    %13 = vector.shape_cast %10 : vector<1x32xf32> to vector<1x1x32xf32>
    tpu.vector_store %arg6[%c0_11, %c0_12, %c0_13], %13 {strides = array<i32>} : memref<1x1x32xf32, #tpu.memory_space<vmem>>, vector<1x1x32xf32>,
    return
  }
  func.func @transform_0(%arg0: i32, %arg1: i32) -> (i32, i32, i32) {
    %c0_i32 = arith.constant 0 : i32
    %c0_i32_0 = arith.constant 0 : i32
    return %arg0, %arg1, %c0_i32 : i32, i32, i32
  }
  func.func @transform_1(%arg0: i32, %arg1: i32) -> (i32, i32, i32) {
    %c0_i32 = arith.constant 0 : i32
    %c0_i32_0 = arith.constant 0 : i32
    %c0_i32_1 = arith.constant 0 : i32
    return %arg0, %c0_i32, %c0_i32_0 : i32, i32, i32
  }
  func.func @transform_2(%arg0: i32, %arg1: i32) -> (i32, i32, i32) {
    %c0_i32 = arith.constant 0 : i32
    %c0_i32_0 = arith.constant 0 : i32
    %c0_i32_1 = arith.constant 0 : i32
    return %arg0, %c0_i32, %c0_i32_0 : i32, i32, i32
  }
  func.func @transform_3(%arg0: i32, %arg1: i32) -> (i32, i32, i32) {
    %c0_i32 = arith.constant 0 : i32
    %c0_i32_0 = arith.constant 0 : i32
    %c0_i32_1 = arith.constant 0 : i32
    return %arg0, %c0_i32, %c0_i32_0 : i32, i32, i32
  }
  func.func @transform_4(%arg0: i32, %arg1: i32) -> (i32, i32, i32) {
    %c0_i32 = arith.constant 0 : i32
    %c0_i32_0 = arith.constant 0 : i32
    return %arg0, %arg1, %c0_i32 : i32, i32, i32
  }
}

</mosaic_0001>

<bundles_post_ra>
// kernel: temporal_alexnet_forward.13
= control target key start
LH: loop header
LB: loop body
LE: loop exit
PB: predicated region body
PF: predicated region fallthrough
CT: control target
= control target key end

     0   :  { %s5893_s15 = smov 0   ;;  %s5895_s16 = smov 0   ;;  %s7376_s0 = inlined_call_operand.vmem [shape: bf16[1,6084,363], index: 0, kind: input, shape index: {}]   ;;  %s7377_s1 = inlined_call_operand.vmem [shape: bf16[1,363,12], index: 1, kind: input, shape index: {}]   ;;  %s7378_s2 = inlined_call_operand.vmem [shape: f32[1,1,12], index: 2, kind: input, shape index: {}]   ;;  %s7379_s3 = inlined_call_operand.vmem [shape: f32[1,1,12], index: 3, kind: input, shape index: {}]   ;;  %s7380_s4 = inlined_call_operand.vmem [shape: bf16[1,6084,12], index: 4, kind: output, shape index: {}]  }
   0x1   :  { %s5897_s17 = smov 0   ;;  %s5899_s18 = smov 0  }
   0x2   :  { %s5901_s19 = smov 0  }
   0x3 LB: > { %s4559_s20 = sadd.s32 4294967295, %s5832_s19   ;;  %s23_s21 = sadd.s32 1, %s5828_s18  ;;  %s5832_s19 = sphi %s5901_s19, %s14_s19   ;;  %s5828_s18 = sphi %s5899_s18, %s7428_s18   ;;  %s5824_s17 = sphi %s5897_s17, %s7427_s17   ;;  %s5820_s16 = sphi %s5895_s16, %s7426_s16   ;;  %s5816_s15 = sphi %s5893_s15, %s7425_s15  }
   0x4   : > { %p24_p0 = scmp.ge.s32.totalorder %s23_s21, 6  ;;  %s141_s22 = sadd.s32 1, %s5820_s16 }
   0x5   : > { %p151_p1 = scmp.ne.s32.totalorder %s5820_s16, %s5816_s15  ;;  %p152_p2 = scmp.eq.s32.totalorder %s4559_s20, 5 }
   0x6   : > { %s7430_s21 = smov (%p24_p0, %s23_s21), 0  ;;  %p4566_p4 = scmp.ge.s32.totalorder %s5832_s19, 1 }
   0x7   : > { %p5925_p3 = por %p152_p2, %p151_p1  ;;  %s137_s24 = ssub.s32 %s5828_s18, %s7430_s21 }
   0x8   : > { %p220_p5 = scmp.lt.s32.totalorder %s5832_s19, 7  ;;  %p139_p6 = scmp.eq.s32.totalorder %s137_s24, 0 }
   0xa   : > { %p221_p7 = pnand %p4566_p4, %p220_p5 }
   0xb   : > { %s5934_s25 = scalar_select %p139_p6, %s5820_s16, %s141_s22  }
   0xc   : > { %224 = sbr.rel (%p221_p7) target bundleno = 780 (0x30c), region = 36 }
  0x13   : > { %v5479_v0 = vld [vmem:[%s7377_s1] sm:$0xff]   ;;  %v5866_v1 = vmov 0   ;;  %s5942_s28 = sshll.u32 %s5824_s17, 7  ;;  %v5480_v2 = vld [vmem:[%s7377_s1 + $0x8] sm:$0xff]   ;;  %v5481_v3 = vld [vmem:[%s7377_s1 + $0x10] sm:$0xff]   ;;  %vm1896_vm0 = vcmask 1044480  }
  0x14   : > { %1903 = vmatprep.subr.bf16.mxu0 %v5866_v1  ;;  %5340 = vmatprep.subr.bf16.mxu1 %v5866_v1  ;;  %p274_p8 = scmp.lt.s32.totalorder %s5942_s28, 760  ;;  %v5482_v4 = vld [vmem:[%s7377_s1 + $0x18] sm:$0xff]   ;;  %v5483_v5 = vld [vmem:[%s7377_s1 + $0x20] sm:$0xff]   ;;  %v5484_v7 = vld [vmem:[%s7377_s1 + $0x28] sm:$0xff]   ;;  %vm1897_vm1 = vcmask 1045504   ;;  %v5867_v36 = vmov 65535  }
  0x15   : > { %1904 = vmatpush1.bf16.msra.mxu0 %v5479_v0  ;;  %5356 = vmatpush1.bf16.msra.mxu1 %v5479_v0  ;;  %v5485_v9 = vld [vmem:[%s7377_s1 + $0x30] sm:$0xff]   ;;  %v5486_v10 = vld [vmem:[%s7377_s1 + $0x38] sm:$0xff]   ;;  %v5487_v11 = vld [vmem:[%s7377_s1 + $0x40] sm:$0xff]   ;;  %v1898_v37 = vsel %vm1896_vm0, 4294967295, %v5867_v36  ;;  %vm1703_vm2 = vcmask 875520   ;;  %s263_s29 = sand.u32 1, %s5816_s15  }
  0x16   : > { %1905 = vmatprep.subr.bf16.mxu0 %v5866_v1  ;;  %5341 = vmatprep.subr.bf16.mxu1 %v5866_v1  ;;  %s275_s7 = scalar_select %p274_p8, %s5942_s28, 760  ;;  %v5488_v12 = vld [vmem:[%s7377_s1 + $0x48] sm:$0xff]   ;;  %v5489_v13 = vld [vmem:[%s7377_s1 + $0x50] sm:$0xff]   ;;  %v5490_v14 = vld [vmem:[%s7377_s1 + $0x58] sm:$0xff]   ;;  %v1899_v40 = vsel %vm1897_vm1, %v1898_v37, 0  ;;  %vm3903_vm3 = vcmask 93184  }
  0x17   : > { %v5491_v15 = vld [vmem:[%s7377_s1 + $0x60] sm:$0xff]   ;;  %v5492_v16 = vld [vmem:[%s7377_s1 + $0x68] sm:$0xff]   ;;  %v5493_v17 = vld [vmem:[%s7377_s1 + $0x70] sm:$0xff]   ;;  %s6427_s15 = sshll.u32 %s263_s29, 9  ;;  %s4040_s24 = ssub.s32 (%p5925_p3), 761, %s5942_s28 }
  0x18   : > { %s5372_s10 = smul.u32 12, %s275_s7  ;;  %v5494_v18 = vld [vmem:[%s7377_s1 + $0x78] sm:$0xff]   ;;  %v5501_v19 = vld [vmem:[%s7377_s1 + $0x80] sm:$0xff]   ;;  %v5514_v24 = vld [vmem:[%s7377_s1 + $0x88] sm:$0xff]   ;;  %s6450_s8 = scalar_lea.vmem [#allocation2], %s6427_s15  }
  0x19   : > { %1906 = vmatpush1.bf16.msra.mxu0 %v5480_v2  ;;  %5357 = vmatpush1.bf16.msra.mxu1 %v5480_v2  ;;  %v5527_v26 = vld [vmem:[%s7377_s1 + $0x90] sm:$0xff]   ;;  %v5544_v30 = vld [vmem:[%s7377_s1 + $0x98] sm:$0xff]   ;;  %v5559_v31 = vld [vmem:[%s7377_s1 + $0xa0] sm:$0xff]   ;;  %s5124_s26 = sshll.u32 (%p5925_p3), %s5824_s17, 9  ;;  %p4041_p9 = scmp.lt.s32.totalorder (%p5925_p3), %s4040_s24, 128 }
  0x1a   : > { %1907 = vmatprep.subr.bf16.mxu0 %v5866_v1  ;;  %5342 = vmatprep.subr.bf16.mxu1 %v5866_v1  ;;  %s5967_s20 = scalar_lea.vmem %s7376_s0, %s5372_s10  ;;  %v5572_v38 = vld [vmem:[%s7377_s1 + $0xa8] sm:$0xff]   ;;  %v5585_v39 = vld [vmem:[%s7377_s1 + $0xb0] sm:$0x3f]   ;;  %s7179_s30 = scalar_lea.vmem (%p5925_p3), %s7380_s4, %s5124_s26  }
  0x1b   : > { %v5497_v6 = vld [vmem:[%s5967_s20 + $0x4] ss:$12 sps:$4 sm:$0xff]   ;;  %v5495_v20 = vld [vmem:[%s5967_s20] ss:$12 sps:$4 sm:$0xff]   ;;  %v5502_v22 = vld [vmem:[%s5967_s20 + $0x1c] ss:$12 sps:$4 sm:$0xff]   ;;  %v1901_v45 = vand.u32 %v5585_v39, %v1899_v40 }
  0x1c   : > { %v5500_v8 = vld [vmem:[%s5967_s20 + $0x484] ss:$12 sps:$4 sm:$0xff]   ;;  %1935 = vmatprep.mubr.bf16.mxu0 %v5497_v6  ;;  %v5498_v21 = vld [vmem:[%s5967_s20 + $0x480] ss:$12 sps:$4 sm:$0xff]   ;;  %v5504_v23 = vld [vmem:[%s5967_s20 + $0x49c] ss:$12 sps:$4 sm:$0xff]  }
  0x1d   : > { %1908 = vmatpush1.bf16.msra.mxu0 %v5481_v3  ;;  %5358 = vmatpush1.bf16.msra.mxu1 %v5481_v3  ;;  %v5506_v25 = vld [vmem:[%s5967_s20 + $0x18] ss:$12 sps:$4 sm:$0xff]   ;;  %v5508_v28 = vld [vmem:[%s5967_s20 + $0x34] ss:$12 sps:$4 sm:$0xff]   ;;  %v5512_v32 = vld [vmem:[%s5967_s20 + $0x30] ss:$12 sps:$4 sm:$0xff]  }
  0x1e   : > { %1909 = vmatprep.subr.bf16.mxu0 %v5866_v1  ;;  %5343 = vmatprep.subr.bf16.mxu1 %v5866_v1  ;;  %v5507_v27 = vld [vmem:[%s5967_s20 + $0x498] ss:$12 sps:$4 sm:$0xff]   ;;  %v5510_v29 = vld [vmem:[%s5967_s20 + $0x4b4] ss:$12 sps:$4 sm:$0xff]   ;;  %v5513_v33 = vld [vmem:[%s5967_s20 + $0x4b0] ss:$12 sps:$4 sm:$0xff]  }
  0x1f   : > { %2319 = vmatprep.mubr.bf16.mxu1 %v5500_v8  ;;  %v5515_v34 = vld [vmem:[%s5967_s20 + $0x4c] ss:$12 sps:$4 sm:$0xff]   ;;  %v5519_v41 = vld [vmem:[%s5967_s20 + $0x48] ss:$12 sps:$4 sm:$0xff]   ;;  %v5521_v43 = vld [vmem:[%s5967_s20 + $0x64] ss:$12 sps:$4 sm:$0xff]  }
  0x20   : > { %v5517_v35 = vld [vmem:[%s5967_s20 + $0x4cc] ss:$12 sps:$4 sm:$0xff]   ;;  %v5520_v42 = vld [vmem:[%s5967_s20 + $0x4c8] ss:$12 sps:$4 sm:$0xff]   ;;  %v5523_v44 = vld [vmem:[%s5967_s20 + $0x4e4] ss:$12 sps:$4 sm:$0xff]  }
  0x21   : > { %1910 = vmatpush1.bf16.msra.mxu0 %v5482_v4  ;;  %5359 = vmatpush1.bf16.msra.mxu1 %v5482_v4  ;;  %v5525_v46 = vld [vmem:[%s5967_s20 + $0x60] ss:$12 sps:$4 sm:$0xff]   ;;  %v5528_v48 = vld [vmem:[%s5967_s20 + $0x7c] ss:$12 sps:$4 sm:$0xff]   ;;  %v5532_v50 = vld [vmem:[%s5967_s20 + $0x78] ss:$12 sps:$4 sm:$0xff]  }
  0x22   : > { %1911 = vmatprep.subr.bf16.mxu0 %v5866_v1  ;;  %5344 = vmatprep.subr.bf16.mxu1 %v5866_v1  ;;  %v5526_v47 = vld [vmem:[%s5967_s20 + $0x4e0] ss:$12 sps:$4 sm:$0xff]   ;;  %v5530_v49 = vld [vmem:[%s5967_s20 + $0x4fc] ss:$12 sps:$4 sm:$0xff]   ;;  %v5533_v51 = vld [vmem:[%s5967_s20 + $0x4f8] ss:$12 sps:$4 sm:$0xff]  }
  0x23   : > { %v5534_v52 = vld [vmem:[%s5967_s20 + $0x94] ss:$12 sps:$4 sm:$0xff]   ;;  %v5538_v54 = vld [vmem:[%s5967_s20 + $0x90] ss:$12 sps:$4 sm:$0xff]   ;;  %v5540_v56 = vld [vmem:[%s5967_s20 + $0xac] ss:$12 sps:$4 sm:$0xff]  }
  0x24   : > { %v5536_v53 = vld [vmem:[%s5967_s20 + $0x514] ss:$12 sps:$4 sm:$0xff]   ;;  %v5539_v55 = vld [vmem:[%s5967_s20 + $0x510] ss:$12 sps:$4 sm:$0xff]   ;;  %v5542_v57 = vld [vmem:[%s5967_s20 + $0x52c] ss:$12 sps:$4 sm:$0xff]  }
  0x25   : > { %1912 = vmatpush1.bf16.msra.mxu0 %v5483_v5  ;;  %5360 = vmatpush1.bf16.msra.mxu1 %v5483_v5  ;;  %v5545_v58 = vld [vmem:[%s5967_s20 + $0xa8] ss:$12 sps:$4 sm:$0xff]   ;;  %v5547_v60 = vld [vmem:[%s5967_s20 + $0xc4] ss:$12 sps:$4 sm:$0xff]   ;;  %v5551_v62 = vld [vmem:[%s5967_s20 + $0xc0] ss:$12 sps:$4 sm:$0xff]  }
  0x26   : > { %1913 = vmatprep.subr.bf16.mxu0 %v5866_v1  ;;  %5345 = vmatprep.subr.bf16.mxu1 %v5866_v1  ;;  %v5546_v59 = vld [vmem:[%s5967_s20 + $0x528] ss:$12 sps:$4 sm:$0xff]   ;;  %v5549_v61 = vld [vmem:[%s5967_s20 + $0x544] ss:$12 sps:$4 sm:$0xff]   ;;  %v5552_v63 = vld [vmem:[%s5967_s20 + $0x540] ss:$12 sps:$4 sm:$0xff]  }
  0x27   : > { %v5553_v0 = vld [vmem:[%s5967_s20 + $0xdc] ss:$12 sps:$4 sm:$0xff]   ;;  %v5557_v2 = vld [vmem:[%s5967_s20 + $0xd8] ss:$12 sps:$4 sm:$0xff]   ;;  %v5560_v4 = vld [vmem:[%s5967_s20 + $0xf4] ss:$12 sps:$4 sm:$0xff]  }
  0x28   : > { %v5558_v3 = vld [vmem:[%s5967_s20 + $0x558] ss:$12 sps:$4 sm:$0xff]   ;;  %v5562_v5 = vld [vmem:[%s5967_s20 + $0x574] ss:$12 sps:$4 sm:$0xff]   ;;  %v5564_v6 = vld [vmem:[%s5967_s20 + $0xf0] ss:$12 sps:$4 sm:$0xff]  }
  0x29   : > { %1914 = vmatpush1.bf16.msra.mxu0 %v5484_v7  ;;  %5361 = vmatpush1.bf16.msra.mxu1 %v5484_v7  ;;  %v5565_v7 = vld [vmem:[%s5967_s20 + $0x570] ss:$12 sps:$4 sm:$0xff]   ;;  %v5566_v8 = vld [vmem:[%s5967_s20 + $0x10c] ss:$12 sps:$4 sm:$0xff]   ;;  %v5608_v36 = vld [vmem:[%s5967_s20 + $0x1b4] ss:$12 sps:$4 sm:$0xff]  }
  0x2a   : > { %1915 = vmatprep.subr.bf16.mxu0 %v5866_v1  ;;  %5346 = vmatprep.subr.bf16.mxu1 %v5866_v1  ;;  %v5610_v37 = vld [vmem:[%s5967_s20 + $0x68] ss:$12 sps:$4 sm:$0xff]   ;;  %v5612_v39 = vld [vmem:[%s5967_s20 + $0x80] ss:$12 sps:$4 sm:$0xff]  }
  0x2b   : > { %v5613_v40 = vld [vmem:[%s5967_s20 + $0x1cc] ss:$12 sps:$4 sm:$0xff]  }
  0x2d   : > { %1916 = vmatpush1.bf16.msra.mxu0 %v5485_v9  ;;  %5362 = vmatpush1.bf16.msra.mxu1 %v5485_v9  ;;  %v5568_v9 = vld [vmem:[%s5967_s20 + $0x58c] ss:$12 sps:$4 sm:$0xff]  }
  0x2e   : > { %1917 = vmatprep.subr.bf16.mxu0 %v5866_v1  ;;  %5347 = vmatprep.subr.bf16.mxu1 %v5866_v1 }
  0x31   : > { %1918 = vmatpush1.bf16.msra.mxu0 %v5486_v10  ;;  %5363 = vmatpush1.bf16.msra.mxu1 %v5486_v10  ;;  %v5570_v10 = vld [vmem:[%s5967_s20 + $0x108] ss:$12 sps:$4 sm:$0xff]  }
  0x32   : > { %1919 = vmatprep.subr.bf16.mxu0 %v5866_v1  ;;  %5348 = vmatprep.subr.bf16.mxu1 %v5866_v1 }
  0x35   : > { %1920 = vmatpush1.bf16.msra.mxu0 %v5487_v11  ;;  %5364 = vmatpush1.bf16.msra.mxu1 %v5487_v11  ;;  %v5571_v11 = vld [vmem:[%s5967_s20 + $0x588] ss:$12 sps:$4 sm:$0xff]  }
  0x36   : > { %1921 = vmatprep.subr.bf16.mxu0 %v5866_v1  ;;  %5349 = vmatprep.subr.bf16.mxu1 %v5866_v1 }
  0x39   : > { %1922 = vmatpush1.bf16.msra.mxu0 %v5488_v12  ;;  %5365 = vmatpush1.bf16.msra.mxu1 %v5488_v12  ;;  %v5573_v12 = vld [vmem:[%s5967_s20 + $0x124] ss:$12 sps:$4 sm:$0xff]  }
  0x3a   : > { %1923 = vmatprep.subr.bf16.mxu0 %v5866_v1  ;;  %5350 = vmatprep.subr.bf16.mxu1 %v5866_v1 }
  0x3d   : > { %1924 = vmatpush1.bf16.msra.mxu0 %v5489_v13  ;;  %5366 = vmatpush1.bf16.msra.mxu1 %v5489_v13  ;;  %v5575_v13 = vld [vmem:[%s5967_s20 + $0x5a4] ss:$12 sps:$4 sm:$0xff]  }
  0x3e   : > { %1925 = vmatprep.subr.bf16.mxu0 %v5866_v1  ;;  %5351 = vmatprep.subr.bf16.mxu1 %v5866_v1 }
  0x41   : > { %1926 = vmatpush1.bf16.msra.mxu0 %v5490_v14  ;;  %5367 = vmatpush1.bf16.msra.mxu1 %v5490_v14  ;;  %v5577_v14 = vld [vmem:[%s5967_s20 + $0x120] ss:$12 sps:$4 sm:$0xff]  }
  0x42   : > { %1927 = vmatprep.subr.bf16.mxu0 %v5866_v1  ;;  %5352 = vmatprep.subr.bf16.mxu1 %v5866_v1 }
  0x45   : > { %1928 = vmatpush1.bf16.msra.mxu0 %v5491_v15  ;;  %5368 = vmatpush1.bf16.msra.mxu1 %v5491_v15  ;;  %v5578_v15 = vld [vmem:[%s5967_s20 + $0x5a0] ss:$12 sps:$4 sm:$0xff]  }
  0x46   : > { %1929 = vmatprep.subr.bf16.mxu0 %v5866_v1  ;;  %5353 = vmatprep.subr.bf16.mxu1 %v5866_v1 }
  0x49   : > { %1930 = vmatpush1.bf16.msra.mxu0 %v5492_v16  ;;  %5369 = vmatpush1.bf16.msra.mxu1 %v5492_v16  ;;  %v5579_v16 = vld [vmem:[%s5967_s20 + $0x13c] ss:$12 sps:$4 sm:$0xff]  }
  0x4a   : > { %1931 = vmatprep.subr.bf16.mxu0 %v5866_v1  ;;  %5354 = vmatprep.subr.bf16.mxu1 %v5866_v1 }
  0x4d   : > { %1932 = vmatpush1.bf16.msra.mxu0 %v5493_v17  ;;  %5370 = vmatpush1.bf16.msra.mxu1 %v5493_v17  ;;  %v5581_v17 = vld [vmem:[%s5967_s20 + $0x5bc] ss:$12 sps:$4 sm:$0xff]  }
  0x4e   : > { %1933 = vmatprep.subr.bf16.mxu0 %v5866_v1  ;;  %5355 = vmatprep.subr.bf16.mxu1 %v5866_v1  ;;  %v5555_v1 = vld [vmem:[%s5967_s20 + $0x55c] ss:$12 sps:$4 sm:$0xff]  }
  0x51   : > { %1934 = vmatpush1.bf16.msra.mxu0 %v5494_v18  ;;  %5371 = vmatpush1.bf16.msra.mxu1 %v5494_v18  ;;  %v5583_v18 = vld [vmem:[%s5967_s20 + $0x138] ss:$12 sps:$4 sm:$0xff]  }
  0x52   : > { %5198 = vmatprep.subr.bf16.mxu1 %v5501_v19 }
  0x54   : > { %1936 = vmatmul.mubr.bf16.vlgmr.msra.gmra.mrb[0].mxu0 %v5495_v20  ;;  %2320 = vmatmul.mubr.bf16.vlgmr.msra.gmra.mrb[0].mxu1 %v5498_v21  ;;  %v5586_v20 = vld [vmem:[%s5967_s20 + $0x154] ss:$12 sps:$4 sm:$0xff]  }
  0x55   : > { %5199 = vmatpush3.bf16.msra.mxu1 %v5501_v19  ;;  %1943 = vmatprep.mubr.bf16.mxu0 %v5502_v22  ;;  %v5584_v19 = vld [vmem:[%s5967_s20 + $0x5b8] ss:$12 sps:$4 sm:$0xff]   ;;  %v5588_v21 = vld [vmem:[%s5967_s20 + $0x5d4] ss:$12 sps:$4 sm:$0xff]   ;;  %v5590_v22 = vld [vmem:[%s5967_s20 + $0x150] ss:$12 sps:$4 sm:$0xff]  }
  0x56   : > { %2327 = vmatprep.mubr.bf16.mxu1 %v5504_v23  ;;  %5200 = vmatprep.subr.bf16.mxu1 %v5514_v24  ;;  %v5591_v23 = vld [vmem:[%s5967_s20 + $0x5d0] ss:$12 sps:$4 sm:$0xff]  }
  0x59   : > { %5201 = vmatpush3.bf16.msra.mxu1 %v5514_v24  ;;  %v5592_v24 = vld [vmem:[%s5967_s20 + $0x16c] ss:$12 sps:$4 sm:$0xff]  }
  0x5a   : > { %5202 = vmatprep.subr.bf16.mxu1 %v5527_v26 }
  0x5c   : > { %1944 = vmatmul.mubr.bf16.gmra.mrb[4].mxu0 %v5506_v25  ;;  %2328 = vmatmul.mubr.bf16.gmra.mrb[4].mxu1 %v5507_v27  ;;  %v5594_v25 = vld [vmem:[%s5967_s20 + $0x5ec] ss:$12 sps:$4 sm:$0xff]   ;;  %v5597_v27 = vld [vmem:[%s5967_s20 + $0x5e8] ss:$12 sps:$4 sm:$0xff]  }
  0x5d   : > { %1951 = vmatprep.mubr.bf16.mxu0 %v5508_v28  ;;  %2335 = vmatprep.mubr.bf16.mxu1 %v5510_v29  ;;  %v5598_v28 = vld [vmem:[%s5967_s20 + $0x184] ss:$12 sps:$4 sm:$0xff]   ;;  %v5600_v29 = vld [vmem:[%s5967_s20 + $0x8] ss:$12 sps:$4 sm:$0xff]  }
  0x5e   : > { %5203 = vmatpush3.bf16.msra.mxu1 %v5527_v26  ;;  %v5596_v26 = vld [vmem:[%s5967_s20 + $0x168] ss:$12 sps:$4 sm:$0xff]  }
  0x5f   : > { %5204 = vmatprep.subr.bf16.mxu1 %v5544_v30 }
  0x62   : > { %5205 = vmatpush3.bf16.msra.mxu1 %v5544_v30  ;;  %v5601_v30 = vld [vmem:[%s5967_s20 + $0x180] ss:$12 sps:$4 sm:$0xff]  }
  0x63   : > { %5206 = vmatprep.subr.bf16.mxu1 %v5559_v31 }
  0x64   : > { %1952 = vmatmul.mubr.bf16.gmra.mrb[8].mxu0 %v5512_v32  ;;  %2336 = vmatmul.mubr.bf16.gmra.mrb[8].mxu1 %v5513_v33  ;;  %v5603_v32 = vld [vmem:[%s5967_s20 + $0x19c] ss:$12 sps:$4 sm:$0xff]   ;;  %v5605_v33 = vld [vmem:[%s5967_s20 + $0x38] ss:$12 sps:$4 sm:$0xff]  }
  0x65   : > { %1959 = vmatprep.mubr.bf16.mxu0 %v5515_v34  ;;  %2343 = vmatprep.mubr.bf16.mxu1 %v5517_v35  ;;  %v5606_v34 = vld [vmem:[%s5967_s20 + $0x198] ss:$12 sps:$4 sm:$0xff]   ;;  %v5607_v35 = vld [vmem:[%s5967_s20 + $0x50] ss:$12 sps:$4 sm:$0xff]  }
  0x66   : > { %5207 = vmatpush3.bf16.msra.mxu1 %v5559_v31  ;;  %v5602_v31 = vld [vmem:[%s5967_s20 + $0x20] ss:$12 sps:$4 sm:$0xff]  }
  0x67   : > { %5208 = vmatprep.subr.bf16.mxu1 %v5572_v38 }
  0x6a   : > { %5209 = vmatpush3.bf16.msra.mxu1 %v5572_v38  ;;  %v5611_v38 = vld [vmem:[%s5967_s20 + $0x1b0] ss:$12 sps:$4 sm:$0xff]  }
  0x6b   : > { %5210 = vmatprep.subr.bf16.mxu1 %v1901_v45 }
  0x6c   : > { %1960 = vmatmul.mubr.bf16.gmra.mrb[12].mxu0 %v5519_v41  ;;  %2344 = vmatmul.mubr.bf16.gmra.mrb[12].mxu1 %v5520_v42  ;;  %v5615_v41 = vld [vmem:[%s5967_s20 + $0x98] ss:$12 sps:$4 sm:$0xff]   ;;  %v5616_v42 = vld [vmem:[%s5967_s20 + $0x1c8] ss:$12 sps:$4 sm:$0xff]  }
  0x6d   : > { %1967 = vmatprep.mubr.bf16.mxu0 %v5521_v43  ;;  %2351 = vmatprep.mubr.bf16.mxu1 %v5523_v44  ;;  %v5617_v43 = vld [vmem:[%s5967_s20 + $0xb0] ss:$12 sps:$4 sm:$0xff]  }
  0x6e   : > { %5211 = vmatpush3.bf16.msra.mxu1 %v1901_v45  ;;  %v5618_v44 = vld [vmem:[%s5967_s20 + $0x1e4] ss:$12 sps:$4 sm:$0xff]   ;;  %v5620_v45 = vld [vmem:[%s5967_s20 + $0xc8] ss:$12 sps:$4 sm:$0xff]  }
  0x74   : > { %1968 = vmatmul.mubr.bf16.gmra.mrb[16].mxu0 %v5525_v46  ;;  %2352 = vmatmul.mubr.bf16.gmra.mrb[16].mxu1 %v5526_v47  ;;  %v5621_v46 = vld [vmem:[%s5967_s20 + $0x1e0] ss:$12 sps:$4 sm:$0xff]  }
  0x75   : > { %1975 = vmatprep.mubr.bf16.mxu0 %v5528_v48  ;;  %2359 = vmatprep.mubr.bf16.mxu1 %v5530_v49  ;;  %v5622_v47 = vld [vmem:[%s5967_s20 + $0xe0] ss:$12 sps:$4 sm:$0xff]   ;;  %v5623_v48 = vld [vmem:[%s5967_s20 + $0x1fc] ss:$12 sps:$4 sm:$0xff]   ;;  %v5625_v49 = vld [vmem:[%s5967_s20 + $0xf8] ss:$12 sps:$4 sm:$0xff]  }
  0x7c   : > { %1976 = vmatmul.mubr.bf16.gmra.mrb[20].mxu0 %v5532_v50  ;;  %2360 = vmatmul.mubr.bf16.gmra.mrb[20].mxu1 %v5533_v51  ;;  %v5626_v50 = vld [vmem:[%s5967_s20 + $0x1f8] ss:$12 sps:$4 sm:$0xff]   ;;  %v5627_v51 = vld [vmem:[%s5967_s20 + $0x110] ss:$12 sps:$4 sm:$0xff]  }
  0x7d   : > { %1983 = vmatprep.mubr.bf16.mxu0 %v5534_v52  ;;  %2367 = vmatprep.mubr.bf16.mxu1 %v5536_v53  ;;  %v5628_v52 = vld [vmem:[%s5967_s20 + $0x214] ss:$12 sps:$4 sm:$0xff]  }
  0x7e   : > { %v5630_v53 = vld [vmem:[%s5967_s20 + $0x128] ss:$12 sps:$4 sm:$0xff]  }
  0x84   : > { %1984 = vmatmul.mubr.bf16.gmra.mrb[24].mxu0 %v5538_v54  ;;  %2368 = vmatmul.mubr.bf16.gmra.mrb[24].mxu1 %v5539_v55  ;;  %v5631_v54 = vld [vmem:[%s5967_s20 + $0x210] ss:$12 sps:$4 sm:$0xff]   ;;  %v5632_v55 = vld [vmem:[%s5967_s20 + $0x140] ss:$12 sps:$4 sm:$0xff]  }
  0x85   : > { %1991 = vmatprep.mubr.bf16.mxu0 %v5540_v56  ;;  %2375 = vmatprep.mubr.bf16.mxu1 %v5542_v57  ;;  %v5633_v56 = vld [vmem:[%s5967_s20 + $0x22c] ss:$12 sps:$4 sm:$0xff]  }
  0x86   : > { %v5635_v57 = vld [vmem:[%s5967_s20 + $0x158] ss:$12 sps:$4 sm:$0xff]  }
  0x8c   : > { %1992 = vmatmul.mubr.bf16.gmra.mrb[28].mxu0 %v5545_v58  ;;  %2376 = vmatmul.mubr.bf16.gmra.mrb[28].mxu1 %v5546_v59  ;;  %v5636_v58 = vld [vmem:[%s5967_s20 + $0x228] ss:$12 sps:$4 sm:$0xff]   ;;  %v5637_v59 = vld [vmem:[%s5967_s20 + $0x170] ss:$12 sps:$4 sm:$0xff]  }
  0x8d   : > { %1999 = vmatprep.mubr.bf16.mxu0 %v5547_v60  ;;  %2383 = vmatprep.mubr.bf16.mxu1 %v5549_v61  ;;  %v5638_v60 = vld [vmem:[%s5967_s20 + $0x244] ss:$12 sps:$4 sm:$0xff]   ;;  %v5640_v61 = vld [vmem:[%s5967_s20 + $0x188] ss:$12 sps:$4 sm:$0xff]  }
  0x94   : > { %2000 = vmatmul.mubr.bf16.gmra.mrb[32].mxu0 %v5551_v62  ;;  %2384 = vmatmul.mubr.bf16.gmra.mrb[32].mxu1 %v5552_v63  ;;  %v5641_v62 = vld [vmem:[%s5967_s20 + $0x240] ss:$12 sps:$4 sm:$0xff]  }
  0x95   : > { %2007 = vmatprep.mubr.bf16.mxu0 %v5553_v0  ;;  %2391 = vmatprep.mubr.bf16.mxu1 %v5555_v1  ;;  %v5642_v63 = vld [vmem:[%s5967_s20 + $0x1a0] ss:$12 sps:$4 sm:$0xff]   ;;  %v5643_v0 = vld [vmem:[%s5967_s20 + $0x25c] ss:$12 sps:$4 sm:$0xff]   ;;  %v5645_v1 = vld [vmem:[%s5967_s20 + $0x1b8] ss:$12 sps:$4 sm:$0xff]  }
  0x9c   : > { %2008 = vmatmul.mubr.bf16.gmra.mrb[36].mxu0 %v5557_v2  ;;  %2392 = vmatmul.mubr.bf16.gmra.mrb[36].mxu1 %v5558_v3  ;;  %v5646_v2 = vld [vmem:[%s5967_s20 + $0x258] ss:$12 sps:$4 sm:$0xff]   ;;  %v5647_v3 = vld [vmem:[%s5967_s20 + $0x1d0] ss:$12 sps:$4 sm:$0xff]  }
  0x9d   : > { %2015 = vmatprep.mubr.bf16.mxu0 %v5560_v4  ;;  %2399 = vmatprep.mubr.bf16.mxu1 %v5562_v5  ;;  %v5648_v4 = vld [vmem:[%s5967_s20 + $0x274] ss:$12 sps:$4 sm:$0xff]  }
  0x9e   : > { %v5650_v5 = vld [vmem:[%s5967_s20 + $0x1e8] ss:$12 sps:$4 sm:$0xff]  }
  0xa4   : > { %2016 = vmatmul.mubr.bf16.gmra.mrb[40].mxu0 %v5564_v6  ;;  %2400 = vmatmul.mubr.bf16.gmra.mrb[40].mxu1 %v5565_v7  ;;  %v5651_v6 = vld [vmem:[%s5967_s20 + $0x270] ss:$12 sps:$4 sm:$0xff]   ;;  %v5652_v7 = vld [vmem:[%s5967_s20 + $0x200] ss:$12 sps:$4 sm:$0xff]  }
  0xa5   : > { %2023 = vmatprep.mubr.bf16.mxu0 %v5566_v8  ;;  %2407 = vmatprep.mubr.bf16.mxu1 %v5568_v9  ;;  %v5653_v8 = vld [vmem:[%s5967_s20 + $0x28c] ss:$12 sps:$4 sm:$0xff]  }
  0xa6   : > { %v5655_v9 = vld [vmem:[%s5967_s20 + $0x218] ss:$12 sps:$4 sm:$0xff]  }
  0xac   : > { %2024 = vmatmul.mubr.bf16.gmra.mrb[44].mxu0 %v5570_v10  ;;  %2408 = vmatmul.mubr.bf16.gmra.mrb[44].mxu1 %v5571_v11 }
  0xad   : > { %2031 = vmatprep.mubr.bf16.mxu0 %v5573_v12  ;;  %2415 = vmatprep.mubr.bf16.mxu1 %v5575_v13 }
  0xb4   : > { %2032 = vmatmul.mubr.bf16.gmra.mrb[48].mxu0 %v5577_v14  ;;  %2416 = vmatmul.mubr.bf16.gmra.mrb[48].mxu1 %v5578_v15  ;;  %v5656_v14 = vld [vmem:[%s5967_s20 + $0x288] ss:$12 sps:$4 sm:$0xff]   ;;  %v5657_v15 = vld [vmem:[%s5967_s20 + $0x230] ss:$12 sps:$4 sm:$0xff]  }
  0xb5   : > { %2039 = vmatprep.mubr.bf16.mxu0 %v5579_v16  ;;  %2423 = vmatprep.mubr.bf16.mxu1 %v5581_v17 }
  0xbc   : > { %2040 = vmatmul.mubr.bf16.gmra.mrb[52].mxu0 %v5583_v18  ;;  %2424 = vmatmul.mubr.bf16.gmra.mrb[52].mxu1 %v5584_v19  ;;  %v5658_v18 = vld [vmem:[%s5967_s20 + $0x2a4] ss:$12 sps:$4 sm:$0xff]   ;;  %v5660_v19 = vld [vmem:[%s5967_s20 + $0x248] ss:$12 sps:$4 sm:$0xff]  }
  0xbd   : > { %2047 = vmatprep.mubr.bf16.mxu0 %v5586_v20  ;;  %2431 = vmatprep.mubr.bf16.mxu1 %v5588_v21 }
  0xc4   : > { %2048 = vmatmul.mubr.bf16.gmra.mrb[56].mxu0 %v5590_v22  ;;  %2432 = vmatmul.mubr.bf16.gmra.mrb[56].mxu1 %v5591_v23 }
  0xc5   : > { %2055 = vmatprep.mubr.bf16.mxu0 %v5592_v24  ;;  %2439 = vmatprep.mubr.bf16.mxu1 %v5594_v25 }
  0xcc   : > { %2056 = vmatmul.mubr.bf16.gmra.mrb[60].mxu0 %v5596_v26  ;;  %2440 = vmatmul.mubr.bf16.gmra.mrb[60].mxu1 %v5597_v27  ;;  %v5661_v26 = vld [vmem:[%s5967_s20 + $0x2a0] ss:$12 sps:$4 sm:$0xff]  }
  0xcd   : > { %2063 = vmatprep.mubr.bf16.mxu0 %v5598_v28  ;;  %5212 = vmatprep.mubr.msk.bf16.mxu1 %vm1703_vm2, %v5600_v29  ;;  %v5662_v27 = vld [vmem:[%s5967_s20 + $0x260] ss:$12 sps:$4 sm:$0xff]  }
  0xd4   : > { %2064 = vmatmul.mubr.bf16.gmra.mrb[64].mxu0 %v5601_v30  ;;  %5213 = vmatmul.mubr.msk.bf16.vlgmr.msra.gmra.mrb[64].mxu1 %vm1703_vm2, %v5602_v31  ;;  %v5663_v30 = vld [vmem:[%s5967_s20 + $0x2bc] ss:$12 sps:$4 sm:$0xff]   ;;  %v5665_v31 = vld [vmem:[%s5967_s20 + $0x278] ss:$12 sps:$4 sm:$0xff]  }
  0xd5   : > { %2071 = vmatprep.mubr.bf16.mxu0 %v5603_v32  ;;  %5216 = vmatprep.mubr.msk.bf16.mxu1 %vm1703_vm2, %v5605_v33 }
  0xdc   : > { %2072 = vmatmul.mubr.bf16.gmra.mrb[68].mxu0 %v5606_v34  ;;  %5217 = vmatmul.mubr.msk.bf16.gmra.mrb[68].mxu1 %vm1703_vm2, %v5607_v35 }
  0xdd   : > { %2079 = vmatprep.mubr.bf16.mxu0 %v5608_v36  ;;  %5220 = vmatprep.mubr.msk.bf16.mxu1 %vm1703_vm2, %v5610_v37 }
  0xe4   : > { %2080 = vmatmul.mubr.bf16.gmra.mrb[72].mxu0 %v5611_v38  ;;  %5221 = vmatmul.mubr.msk.bf16.gmra.mrb[72].mxu1 %vm1703_vm2, %v5612_v39  ;;  %v5666_v38 = vld [vmem:[%s5967_s20 + $0x2b8] ss:$12 sps:$4 sm:$0xff]   ;;  %v5667_v39 = vld [vmem:[%s5967_s20 + $0x290] ss:$12 sps:$4 sm:$0xff]  }
  0xe5   : > { %2087 = vmatprep.mubr.bf16.mxu0 %v5613_v40  ;;  %5224 = vmatprep.mubr.msk.bf16.mxu1 %vm1703_vm2, %v5615_v41 }
  0xec   : > { %2088 = vmatmul.mubr.bf16.gmra.mrb[76].mxu0 %v5616_v42  ;;  %5225 = vmatmul.mubr.msk.bf16.gmra.mrb[76].mxu1 %vm1703_vm2, %v5617_v43  ;;  %v5668_v42 = vld [vmem:[%s5967_s20 + $0x2d4] ss:$12 sps:$4 sm:$0xff]  }
  0xed   : > { %2095 = vmatprep.mubr.bf16.mxu0 %v5618_v44  ;;  %5228 = vmatprep.mubr.msk.bf16.mxu1 %vm1703_vm2, %v5620_v45  ;;  %v5670_v43 = vld [vmem:[%s5967_s20 + $0x2a8] ss:$12 sps:$4 sm:$0xff]  }
  0xf4   : > { %2096 = vmatmul.mubr.bf16.gmra.mrb[80].mxu0 %v5621_v46  ;;  %5229 = vmatmul.mubr.msk.bf16.gmra.mrb[80].mxu1 %vm1703_vm2, %v5622_v47 }
  0xf5   : > { %2103 = vmatprep.mubr.bf16.mxu0 %v5623_v48  ;;  %5232 = vmatprep.mubr.msk.bf16.mxu1 %vm1703_vm2, %v5625_v49 }
  0xfc   : > { %2104 = vmatmul.mubr.bf16.gmra.mrb[84].mxu0 %v5626_v50  ;;  %5233 = vmatmul.mubr.msk.bf16.gmra.mrb[84].mxu1 %vm1703_vm2, %v5627_v51  ;;  %v5671_v50 = vld [vmem:[%s5967_s20 + $0x2d0] ss:$12 sps:$4 sm:$0xff]   ;;  %v5672_v51 = vld [vmem:[%s5967_s20 + $0x2c0] ss:$12 sps:$4 sm:$0xff]  }
  0xfd   : > { %2111 = vmatprep.mubr.bf16.mxu0 %v5628_v52  ;;  %5236 = vmatprep.mubr.msk.bf16.mxu1 %vm1703_vm2, %v5630_v53 }
 0x104   : > { %2112 = vmatmul.mubr.bf16.gmra.mrb[88].mxu0 %v5631_v54  ;;  %5237 = vmatmul.mubr.msk.bf16.gmra.mrb[88].mxu1 %vm1703_vm2, %v5632_v55  ;;  %v5673_v54 = vld [vmem:[%s5967_s20 + $0x2ec] ss:$12 sps:$4 sm:$0xff]  }
 0x105   : > { %2119 = vmatprep.mubr.bf16.mxu0 %v5633_v56  ;;  %5240 = vmatprep.mubr.msk.bf16.mxu1 %vm1703_vm2, %v5635_v57  ;;  %v5675_v55 = vld [vmem:[%s5967_s20 + $0x2d8] ss:$12 sps:$4 sm:$0xff]  }
 0x10c   : > { %2120 = vmatmul.mubr.bf16.gmra.mrb[92].mxu0 %v5636_v58  ;;  %5241 = vmatmul.mubr.msk.bf16.gmra.mrb[92].mxu1 %vm1703_vm2, %v5637_v59 }
 0x10d   : > { %2127 = vmatprep.mubr.bf16.mxu0 %v5638_v60  ;;  %5244 = vmatprep.mubr.msk.bf16.mxu1 %vm1703_vm2, %v5640_v61 }
 0x114   : > { %2128 = vmatmul.mubr.bf16.gmra.mrb[96].mxu0 %v5641_v62  ;;  %5245 = vmatmul.mubr.msk.bf16.gmra.mrb[96].mxu1 %vm1703_vm2, %v5642_v63  ;;  %v5676_v62 = vld [vmem:[%s5967_s20 + $0x2e8] ss:$12 sps:$4 sm:$0xff]   ;;  %v5677_v63 = vld [vmem:[%s5967_s20 + $0x2f0] ss:$12 sps:$4 sm:$0xff]  }
 0x115   : > { %2135 = vmatprep.mubr.bf16.mxu0 %v5643_v0  ;;  %5248 = vmatprep.mubr.msk.bf16.mxu1 %vm1703_vm2, %v5645_v1 }
 0x11c   : > { %2136 = vmatmul.mubr.bf16.gmra.mrb[100].mxu0 %v5646_v2  ;;  %5249 = vmatmul.mubr.msk.bf16.gmra.mrb[100].mxu1 %vm1703_vm2, %v5647_v3  ;;  %v5678_v2 = vld [vmem:[%s5967_s20 + $0x304] ss:$12 sps:$4 sm:$0xff]   ;;  %v5680_v3 = vld [vmem:[%s5967_s20 + $0x308] ss:$12 sps:$4 sm:$0xff]  }
 0x11d   : > { %2143 = vmatprep.mubr.bf16.mxu0 %v5648_v4  ;;  %5252 = vmatprep.mubr.msk.bf16.mxu1 %vm1703_vm2, %v5650_v5 }
 0x124   : > { %2144 = vmatmul.mubr.bf16.gmra.mrb[104].mxu0 %v5651_v6  ;;  %5253 = vmatmul.mubr.msk.bf16.gmra.mrb[104].mxu1 %vm1703_vm2, %v5652_v7 }
 0x125   : > { %2151 = vmatprep.mubr.bf16.mxu0 %v5653_v8  ;;  %5256 = vmatprep.mubr.msk.bf16.mxu1 %vm1703_vm2, %v5655_v9 }
 0x127   : > { %v6180_v10 = vpop.f32.mrb[0].mxu0  ;;  %v6182_v11 = vpop.f32.mrb[0].mxu1 }
 0x128   : > { %v1939_v12 = vpop.f32.mrb[1].mxu0  ;;  %v2323_v13 = vpop.f32.mrb[1].mxu1 }
 0x129   : > { %v6186_v16 = vpop.f32.mrb[2].mxu0  ;;  %v6188_v17 = vpop.f32.mrb[2].mxu1  ;;  %v5681_v12 = vld [vmem:[%s5967_s20 + $0x300] ss:$12 sps:$4 sm:$0xff]  }
 0x12a   : > { %v1942_v20 = vpop.f32.mrb[3].mxu0  ;;  %v2326_v21 = vpop.f32.mrb[3].mxu1  ;;  %v5682_v13 = vld [vmem:[%s5967_s20 + $0x320] ss:$12 sps:$4 sm:$0xff]  }
 0x12c   : > { %2152 = vmatmul.mubr.bf16.gmra.mrb[108].mxu0 %v5656_v14  ;;  %5257 = vmatmul.mubr.msk.bf16.gmra.mrb[108].mxu1 %vm1703_vm2, %v5657_v15 }
 0x12d   : > { %2159 = vmatprep.mubr.bf16.mxu0 %v5658_v18  ;;  %5260 = vmatprep.mubr.msk.bf16.mxu1 %vm1703_vm2, %v5660_v19  ;;  %v5683_v18 = vld [vmem:[%s5967_s20 + $0x31c] ss:$12 sps:$4 sm:$0xff]   ;;  %v5685_v19 = vld [vmem:[%s5967_s20 + $0x338] ss:$12 sps:$4 sm:$0xff]  }
 0x12f   : > { %v6194_v22 = vpop.f32.mrb[4].mxu0  ;;  %v6196_v23 = vpop.f32.mrb[4].mxu1 }
 0x130   : > { %v1947_v24 = vpop.f32.mrb[5].mxu0  ;;  %v2331_v25 = vpop.f32.mrb[5].mxu1 }
 0x131   : > { %v6200_v28 = vpop.f32.mrb[6].mxu0  ;;  %v6202_v29 = vpop.f32.mrb[6].mxu1 }
 0x132   : > { %v1950_v32 = vpop.f32.mrb[7].mxu0  ;;  %v2334_v33 = vpop.f32.mrb[7].mxu1 }
 0x134   : > { %2160 = vmatmul.mubr.bf16.gmra.mrb[112].mxu0 %v5661_v26  ;;  %5261 = vmatmul.mubr.msk.bf16.gmra.mrb[112].mxu1 %vm1703_vm2, %v5662_v27 }
 0x135   : > { %2167 = vmatprep.mubr.bf16.mxu0 %v5663_v30  ;;  %5264 = vmatprep.mubr.msk.bf16.mxu1 %vm1703_vm2, %v5665_v31  ;;  %v5686_v30 = vld [vmem:[%s5967_s20 + $0x318] ss:$12 sps:$4 sm:$0xff]   ;;  %v5687_v31 = vld [vmem:[%s5967_s20 + $0x350] ss:$12 sps:$4 sm:$0xff]  }
 0x137   : > { %v6208_v34 = vpop.f32.mrb[8].mxu0  ;;  %v6210_v35 = vpop.f32.mrb[8].mxu1 }
 0x138   : > { %v1955_v36 = vpop.f32.mrb[9].mxu0  ;;  %v2339_v37 = vpop.f32.mrb[9].mxu1 }
 0x139   : > { %v6214_v40 = vpop.f32.mrb[10].mxu0  ;;  %v6216_v41 = vpop.f32.mrb[10].mxu1  ;;  %v5688_v36 = vld [vmem:[%s5967_s20 + $0x334] ss:$12 sps:$4 sm:$0xff]  }
 0x13a   : > { %v1958_v44 = vpop.f32.mrb[11].mxu0  ;;  %v2342_v45 = vpop.f32.mrb[11].mxu1  ;;  %v5690_v37 = vld [vmem:[%s5967_s20 + $0x368] ss:$12 sps:$4 sm:$0xff]  }
 0x13c   : > { %2168 = vmatmul.mubr.bf16.gmra.mrb[116].mxu0 %v5666_v38  ;;  %5265 = vmatmul.mubr.msk.bf16.gmra.mrb[116].mxu1 %vm1703_vm2, %v5667_v39 }
 0x13d   : > { %2175 = vmatprep.mubr.bf16.mxu0 %v5668_v42  ;;  %5268 = vmatprep.mubr.msk.bf16.mxu1 %vm1703_vm2, %v5670_v43 }
 0x13f   : > { %v6222_v46 = vpop.f32.mrb[12].mxu0  ;;  %v6224_v47 = vpop.f32.mrb[12].mxu1 }
 0x140   : > { %v1963_v48 = vpop.f32.mrb[13].mxu0  ;;  %v2347_v49 = vpop.f32.mrb[13].mxu1 }
 0x141   : > { %v6228_v52 = vpop.f32.mrb[14].mxu0  ;;  %v6230_v53 = vpop.f32.mrb[14].mxu1  ;;  %v5691_v48 = vld [vmem:[%s5967_s20 + $0x330] ss:$12 sps:$4 sm:$0xff]   ;;  %v5692_v49 = vld [vmem:[%s5967_s20 + $0x380] ss:$12 sps:$4 sm:$0xff]  }
 0x142   : > { %v1966_v56 = vpop.f32.mrb[15].mxu0  ;;  %v2350_v57 = vpop.f32.mrb[15].mxu1 }
 0x144   : > { %2176 = vmatmul.mubr.bf16.gmra.mrb[120].mxu0 %v5671_v50  ;;  %5269 = vmatmul.mubr.msk.bf16.gmra.mrb[120].mxu1 %vm1703_vm2, %v5672_v51 }
 0x145   : > { %2183 = vmatprep.mubr.bf16.mxu0 %v5673_v54  ;;  %5272 = vmatprep.mubr.msk.bf16.mxu1 %vm1703_vm2, %v5675_v55  ;;  %v5693_v54 = vld [vmem:[%s5967_s20 + $0x34c] ss:$12 sps:$4 sm:$0xff]  }
 0x146   : > { %v5695_v55 = vld [vmem:[%s5967_s20 + $0x398] ss:$12 sps:$4 sm:$0xff]  }
 0x147   : > { %v6236_v58 = vpop.f32.mrb[16].mxu0  ;;  %v6238_v59 = vpop.f32.mrb[16].mxu1 }
 0x148   : > { %v1971_v60 = vpop.f32.mrb[17].mxu0  ;;  %v2355_v61 = vpop.f32.mrb[17].mxu1 }
 0x149   : > { %v6242_v0 = vpop.f32.mrb[18].mxu0  ;;  %v6244_v1 = vpop.f32.mrb[18].mxu1 }
 0x14a   : > { %v1974_v4 = vpop.f32.mrb[19].mxu0  ;;  %v2358_v5 = vpop.f32.mrb[19].mxu1 }
 0x14c   : > { %2184 = vmatmul.mubr.bf16.gmra.mrb[124].mxu0 %v5676_v62  ;;  %5273 = vmatmul.mubr.msk.bf16.gmra.mrb[124].mxu1 %vm1703_vm2, %v5677_v63 }
 0x14d   : > { %2191 = vmatprep.mubr.bf16.mxu0 %v5678_v2  ;;  %5276 = vmatprep.mubr.msk.bf16.mxu1 %vm1703_vm2, %v5680_v3  ;;  %v5696_v2 = vld [vmem:[%s5967_s20 + $0x348] ss:$12 sps:$4 sm:$0xff]   ;;  %v5697_v3 = vld [vmem:[%s5967_s20 + $0x3b0] ss:$12 sps:$4 sm:$0xff]  }
 0x14f   : > { %v6250_v6 = vpop.f32.mrb[20].mxu0  ;;  %v6252_v7 = vpop.f32.mrb[20].mxu1 }
 0x150   : > { %v1979_v8 = vpop.f32.mrb[21].mxu0  ;;  %v2363_v9 = vpop.f32.mrb[21].mxu1 }
 0x151   : > { %v6256_v14 = vpop.f32.mrb[22].mxu0  ;;  %v6258_v15 = vpop.f32.mrb[22].mxu1  ;;  %v5698_v8 = vld [vmem:[%s5967_s20 + $0x364] ss:$12 sps:$4 sm:$0xff]   ;;  %v5700_v9 = vld [vmem:[%s5967_s20 + $0x3c8] ss:$12 sps:$4 sm:$0xff]  }
 0x152   : > { %v1982_v20 = vpop.f32.mrb[23].mxu0  ;;  %v2366_v21 = vpop.f32.mrb[23].mxu1 }
 0x154   : > { %2192 = vmatmul.mubr.bf16.gmra.mrb[128].mxu0 %v5681_v12  ;;  %5277 = vmatmul.mubr.msk.bf16.gmra.mrb[128].mxu1 %vm1703_vm2, %v5682_v13 }
 0x155   : > { %2199 = vmatprep.mubr.bf16.mxu0 %v5683_v18  ;;  %5280 = vmatprep.mubr.msk.bf16.mxu1 %vm1703_vm2, %v5685_v19 }
 0x157   : > { %v6264_v24 = vpop.f32.mrb[24].mxu0  ;;  %v6266_v25 = vpop.f32.mrb[24].mxu1 }
 0x158   : > { %7382 = vst [vmem:[#allocation3_spill] sm:$0xff] %v6266_v25  ;;  %v1987_v26 = vpop.f32.mrb[25].mxu0  ;;  %v2371_v27 = vpop.f32.mrb[25].mxu1 }
 0x159   : > { %v6270_v32 = vpop.f32.mrb[26].mxu0  ;;  %v6272_v33 = vpop.f32.mrb[26].mxu1  ;;  %v5701_v26 = vld [vmem:[%s5967_s20 + $0x360] ss:$12 sps:$4 sm:$0xff]  }
 0x15a   : > { %7383 = vst [vmem:[#allocation4_spill] sm:$0xff] %v6272_v33  ;;  %v1990_v38 = vpop.f32.mrb[27].mxu0  ;;  %v2374_v39 = vpop.f32.mrb[27].mxu1  ;;  %v5702_v27 = vld [vmem:[%s5967_s20 + $0x3e0] ss:$12 sps:$4 sm:$0xff]  }
 0x15c   : > { %2200 = vmatmul.mubr.bf16.gmra.mrb[132].mxu0 %v5686_v30  ;;  %5281 = vmatmul.mubr.msk.bf16.gmra.mrb[132].mxu1 %vm1703_vm2, %v5687_v31 }
 0x15d   : > { %2207 = vmatprep.mubr.bf16.mxu0 %v5688_v36  ;;  %5284 = vmatprep.mubr.msk.bf16.mxu1 %vm1703_vm2, %v5690_v37  ;;  %v5703_v36 = vld [vmem:[%s5967_s20 + $0x37c] ss:$12 sps:$4 sm:$0xff]   ;;  %v5705_v37 = vld [vmem:[%s5967_s20 + $0x3f8] ss:$12 sps:$4 sm:$0xff]  }
 0x15f   : > { %v6278_v42 = vpop.f32.mrb[28].mxu0  ;;  %v6280_v43 = vpop.f32.mrb[28].mxu1 }
 0x160   : > { %7384 = vst [vmem:[#allocation5_spill] sm:$0xff] %v6280_v43  ;;  %v1995_v44 = vpop.f32.mrb[29].mxu0  ;;  %v2379_v45 = vpop.f32.mrb[29].mxu1 }
 0x161   : > { %v6284_v50 = vpop.f32.mrb[30].mxu0  ;;  %v6286_v51 = vpop.f32.mrb[30].mxu1 }
 0x162   : > { %7385 = vst [vmem:[#allocation6_spill] sm:$0xff] %v6286_v51  ;;  %v1998_v56 = vpop.f32.mrb[31].mxu0  ;;  %v2382_v57 = vpop.f32.mrb[31].mxu1 }
 0x164   : > { %2208 = vmatmul.mubr.bf16.gmra.mrb[136].mxu0 %v5691_v48  ;;  %5285 = vmatmul.mubr.msk.bf16.gmra.mrb[136].mxu1 %vm1703_vm2, %v5692_v49 }
 0x165   : > { %2215 = vmatprep.mubr.bf16.mxu0 %v5693_v54  ;;  %5288 = vmatprep.mubr.msk.bf16.mxu1 %vm1703_vm2, %v5695_v55  ;;  %v5706_v54 = vld [vmem:[%s5967_s20 + $0x378] ss:$12 sps:$4 sm:$0xff]   ;;  %v5707_v55 = vld [vmem:[%s5967_s20 + $0x410] ss:$12 sps:$4 sm:$0xff]  }
 0x167   : > { %v6292_v60 = vpop.f32.mrb[32].mxu0  ;;  %v6294_v61 = vpop.f32.mrb[32].mxu1 }
 0x168   : > { %7386 = vst [vmem:[#allocation7_spill] sm:$0xff] %v6294_v61  ;;  %v2003_v62 = vpop.f32.mrb[33].mxu0  ;;  %v2387_v63 = vpop.f32.mrb[33].mxu1 }
 0x169   : > { %v6298_v4 = vpop.f32.mrb[34].mxu0  ;;  %v6300_v5 = vpop.f32.mrb[34].mxu1  ;;  %v5708_v62 = vld [vmem:[%s5967_s20 + $0x394] ss:$12 sps:$4 sm:$0xff]  }
 0x16a   : > { %7387 = vst [vmem:[#allocation8_spill] sm:$0xff] %v6300_v5  ;;  %v2006_v12 = vpop.f32.mrb[35].mxu0  ;;  %v2390_v13 = vpop.f32.mrb[35].mxu1  ;;  %v5710_v63 = vld [vmem:[%s5967_s20 + $0x428] ss:$12 sps:$4 sm:$0xff]  }
 0x16b   : > { %v5738_v5 = vld [vmem:[%s5967_s20 + $0x424] ss:$12 sps:$4 sm:$0xff]  }
 0x16c   : > { %2216 = vmatmul.mubr.bf16.gmra.mrb[140].mxu0 %v5696_v2  ;;  %5289 = vmatmul.mubr.msk.bf16.gmra.mrb[140].mxu1 %vm1703_vm2, %v5697_v3 }
 0x16d   : > { %2223 = vmatprep.mubr.bf16.mxu0 %v5698_v8  ;;  %5292 = vmatprep.mubr.msk.bf16.mxu1 %vm1703_vm2, %v5700_v9 }
 0x16f   : > { %v6306_v18 = vpop.f32.mrb[36].mxu0  ;;  %v6308_v19 = vpop.f32.mrb[36].mxu1 }
 0x170   : > { %7388 = vst [vmem:[#allocation9_spill] sm:$0xff] %v6308_v19  ;;  %v2011_v20 = vpop.f32.mrb[37].mxu0  ;;  %v2395_v21 = vpop.f32.mrb[37].mxu1 }
 0x171   : > { %v6312_v30 = vpop.f32.mrb[38].mxu0  ;;  %v6314_v31 = vpop.f32.mrb[38].mxu1  ;;  %v5711_v20 = vld [vmem:[%s5967_s20 + $0x390] ss:$12 sps:$4 sm:$0xff]   ;;  %v5712_v21 = vld [vmem:[%s5967_s20 + $0x440] ss:$12 sps:$4 sm:$0xff]  }
 0x172   : > { %7389 = vst [vmem:[#allocation10_spill] sm:$0xff] %v6314_v31  ;;  %v2014_v38 = vpop.f32.mrb[39].mxu0  ;;  %v2398_v39 = vpop.f32.mrb[39].mxu1  ;;  %v5740_v31 = vld [vmem:[%s5967_s20 + $0x548] ss:$12 sps:$4 sm:$0xff]  }
 0x174   : > { %2224 = vmatmul.mubr.bf16.gmra.mrb[144].mxu0 %v5701_v26  ;;  %5293 = vmatmul.mubr.msk.bf16.gmra.mrb[144].mxu1 %vm1703_vm2, %v5702_v27 }
 0x175   : > { %2231 = vmatprep.mubr.bf16.mxu0 %v5703_v36  ;;  %5296 = vmatprep.mubr.msk.bf16.mxu1 %vm1703_vm2, %v5705_v37  ;;  %v5713_v36 = vld [vmem:[%s5967_s20 + $0x3ac] ss:$12 sps:$4 sm:$0xff]  }
 0x176   : > { %v5715_v37 = vld [vmem:[%s5967_s20 + $0x458] ss:$12 sps:$4 sm:$0xff]  }
 0x177   : > { %v6320_v44 = vpop.f32.mrb[40].mxu0  ;;  %v6322_v45 = vpop.f32.mrb[40].mxu1 }
 0x178   : > { %7390 = vst [vmem:[#allocation11_spill] sm:$0xff] %v6322_v45  ;;  %v2019_v48 = vpop.f32.mrb[41].mxu0  ;;  %v2403_v49 = vpop.f32.mrb[41].mxu1 }
 0x179   : > { %v6326_v56 = vpop.f32.mrb[42].mxu0  ;;  %v6328_v57 = vpop.f32.mrb[42].mxu1 }
 0x17a   : > { %7391 = vst [vmem:[#allocation12_spill] sm:$0xff] %v6328_v57  ;;  %v2022_v2 = vpop.f32.mrb[43].mxu0  ;;  %v2406_v3 = vpop.f32.mrb[43].mxu1 }
 0x17c   : > { %2232 = vmatmul.mubr.bf16.gmra.mrb[148].mxu0 %v5706_v54  ;;  %5297 = vmatmul.mubr.msk.bf16.gmra.mrb[148].mxu1 %vm1703_vm2, %v5707_v55 }
 0x17d   : > { %2239 = vmatprep.mubr.bf16.mxu0 %v5708_v62  ;;  %5300 = vmatprep.mubr.msk.bf16.mxu1 %vm1703_vm2, %v5710_v63  ;;  %v5716_v62 = vld [vmem:[%s5967_s20 + $0x3a8] ss:$12 sps:$4 sm:$0xff]   ;;  %v5717_v63 = vld [vmem:[%s5967_s20 + $0x470] ss:$12 sps:$4 sm:$0xff]  }
 0x17f   : > { %v6334_v8 = vpop.f32.mrb[44].mxu0  ;;  %v6336_v9 = vpop.f32.mrb[44].mxu1 }
 0x180   : > { %7392 = vst [vmem:[#allocation13_spill] sm:$0xff] %v6336_v9  ;;  %v2027_v12 = vpop.f32.mrb[45].mxu0  ;;  %v2411_v13 = vpop.f32.mrb[45].mxu1 }
 0x181   : > { %v6340_v26 = vpop.f32.mrb[46].mxu0  ;;  %v6342_v27 = vpop.f32.mrb[46].mxu1  ;;  %v5718_v12 = vld [vmem:[%s5967_s20 + $0x3c4] ss:$12 sps:$4 sm:$0xff]   ;;  %v5720_v13 = vld [vmem:[%s5967_s20 + $0x488] ss:$12 sps:$4 sm:$0xff]  }
 0x182   : > { %7393 = vst [vmem:[#allocation14_spill] sm:$0xff] %v6342_v27  ;;  %v2030_v38 = vpop.f32.mrb[47].mxu0  ;;  %v2414_v39 = vpop.f32.mrb[47].mxu1  ;;  %v5732_v27 = vld [vmem:[%s5967_s20 + $0x500] ss:$12 sps:$4 sm:$0xff]  }
 0x184   : > { %2240 = vmatmul.mubr.bf16.gmra.mrb[152].mxu0 %v5711_v20  ;;  %5301 = vmatmul.mubr.msk.bf16.gmra.mrb[152].mxu1 %vm1703_vm2, %v5712_v21 }
 0x185   : > { %2247 = vmatprep.mubr.bf16.mxu0 %v5713_v36  ;;  %5304 = vmatprep.mubr.msk.bf16.mxu1 %vm1703_vm2, %v5715_v37 }
 0x187   : > { %v6348_v48 = vpop.f32.mrb[48].mxu0  ;;  %v6350_v49 = vpop.f32.mrb[48].mxu1 }
 0x188   : > { %7394 = vst [vmem:[#allocation15_spill] sm:$0xff] %v6350_v49  ;;  %v2035_v54 = vpop.f32.mrb[49].mxu0  ;;  %v2419_v55 = vpop.f32.mrb[49].mxu1 }
 0x189   : > { %v6354_v2 = vpop.f32.mrb[50].mxu0  ;;  %v6356_v3 = vpop.f32.mrb[50].mxu1  ;;  %v5721_v54 = vld [vmem:[%s5967_s20 + $0x3c0] ss:$12 sps:$4 sm:$0xff]  }
 0x18a   : > { %7395 = vst [vmem:[#allocation16_spill] sm:$0xff] %v6356_v3  ;;  %v2038_v20 = vpop.f32.mrb[51].mxu0  ;;  %v2422_v21 = vpop.f32.mrb[51].mxu1  ;;  %v5722_v55 = vld [vmem:[%s5967_s20 + $0x4a0] ss:$12 sps:$4 sm:$0xff]  }
 0x18c   : > { %2248 = vmatmul.mubr.bf16.gmra.mrb[156].mxu0 %v5716_v62  ;;  %5305 = vmatmul.mubr.msk.bf16.gmra.mrb[156].mxu1 %vm1703_vm2, %v5717_v63  ;;  %v5723_v62 = vld [vmem:[%s5967_s20 + $0x3dc] ss:$12 sps:$4 sm:$0xff]   ;;  %v5725_v63 = vld [vmem:[%s5967_s20 + $0x4b8] ss:$12 sps:$4 sm:$0xff]  }
 0x18d   : > { %2255 = vmatprep.mubr.bf16.mxu0 %v5718_v12  ;;  %5308 = vmatprep.mubr.msk.bf16.mxu1 %vm1703_vm2, %v5720_v13 }
 0x18f   : > { %v6362_v36 = vpop.f32.mrb[52].mxu0  ;;  %v6364_v37 = vpop.f32.mrb[52].mxu1 }
 0x190   : > { %7396 = vst [vmem:[#allocation17_spill] sm:$0xff] %v6364_v37  ;;  %v2043_v38 = vpop.f32.mrb[53].mxu0  ;;  %v2427_v39 = vpop.f32.mrb[53].mxu1  ;;  %v5726_v37 = vld [vmem:[%s5967_s20 + $0x3d8] ss:$12 sps:$4 sm:$0xff]  }
 0x191   : > { %v6368_v3 = vpop.f32.mrb[54].mxu0  ;;  %v6370_v20 = vpop.f32.mrb[54].mxu1 }
 0x192   : > { %7397 = vst [vmem:[#allocation18_spill] sm:$0xff] %v6370_v20  ;;  %v2046_v12 = vpop.f32.mrb[55].mxu0  ;;  %v2430_v13 = vpop.f32.mrb[55].mxu1  ;;  %v5727_v20 = vld [vmem:[%s5967_s20 + $0x4d0] ss:$12 sps:$4 sm:$0xff]  }
 0x194   : > { %2256 = vmatmul.mubr.bf16.gmra.mrb[160].mxu0 %v5721_v54  ;;  %5309 = vmatmul.mubr.msk.bf16.gmra.mrb[160].mxu1 %vm1703_vm2, %v5722_v55  ;;  %v5728_v54 = vld [vmem:[%s5967_s20 + $0x3f4] ss:$12 sps:$4 sm:$0xff]  }
 0x195   : > { %2263 = vmatprep.mubr.bf16.mxu0 %v5723_v62  ;;  %5312 = vmatprep.mubr.msk.bf16.mxu1 %vm1703_vm2, %v5725_v63  ;;  %v5730_v55 = vld [vmem:[%s5967_s20 + $0x4e8] ss:$12 sps:$4 sm:$0xff]  }
 0x197   : > { %v6376_v21 = vpop.f32.mrb[56].mxu0  ;;  %v6378_v38 = vpop.f32.mrb[56].mxu1 }
 0x198   : > { %7398 = vst [vmem:[#allocation19_spill] sm:$0xff] %v6378_v38  ;;  %v2051_v39 = vpop.f32.mrb[57].mxu0  ;;  %v2435_v49 = vpop.f32.mrb[57].mxu1 }
 0x199   : > { %v6382_v57 = vpop.f32.mrb[58].mxu0  ;;  %v6384_v12 = vpop.f32.mrb[58].mxu1 }
 0x19a   : > { %7399 = vst [vmem:[#allocation20_spill] sm:$0xff] %v6384_v12  ;;  %v2054_v62 = vpop.f32.mrb[59].mxu0  ;;  %v2438_v63 = vpop.f32.mrb[59].mxu1  ;;  %v5731_v12 = vld [vmem:[%s5967_s20 + $0x3f0] ss:$12 sps:$4 sm:$0xff]  }
 0x19b   : > { %v5733_v62 = vld [vmem:[%s5967_s20 + $0x40c] ss:$12 sps:$4 sm:$0xff]   ;;  %v6410_v63 = vld [vmem:[%s7378_s2] ss:$0 sm:$0xff] }
 0x19c   : > { %2264 = vmatmul.mubr.bf16.gmra.mrb[164].mxu0 %v5726_v37  ;;  %5313 = vmatmul.mubr.msk.bf16.gmra.mrb[164].mxu1 %vm1703_vm2, %v5727_v20  ;;  %v5735_v37 = vld [vmem:[%s5967_s20 + $0x518] ss:$12 sps:$4 sm:$0xff]  }
 0x19d   : > { %2271 = vmatprep.mubr.bf16.mxu0 %v5728_v54  ;;  %5316 = vmatprep.mubr.msk.bf16.mxu1 %vm1703_vm2, %v5730_v55 }
 0x19f   : > { %v6390_v49 = vpop.f32.mrb[60].mxu0  ;;  %v6392_v13 = vpop.f32.mrb[60].mxu1 }
 0x1a0   : > { %7400 = vst [vmem:[#allocation21_spill] sm:$0xff] %v6392_v13  ;;  %v2059_v39 = vpop.f32.mrb[61].mxu0  ;;  %v2443_v38 = vpop.f32.mrb[61].mxu1 }
 0x1a1   : > { %v6396_v45 = vpop.f32.mrb[62].mxu0  ;;  %v6398_v9 = vpop.f32.mrb[62].mxu1 }
 0x1a2   : > { %7401 = vst [vmem:[#allocation22_spill] sm:$0xff] %v6398_v9  ;;  %v2062_v20 = vpop.f32.mrb[63].mxu0  ;;  %v2446_v54 = vpop.f32.mrb[63].mxu1 }
 0x1a3   : > { %v5736_v20 = vld [vmem:[%s5967_s20 + $0x408] ss:$12 sps:$4 sm:$0xff]  }
 0x1a4   : > { %2272 = vmatmul.mubr.bf16.gmra.mrb[168].mxu0 %v5731_v12  ;;  %5317 = vmatmul.mubr.msk.bf16.gmra.mrb[168].mxu1 %vm1703_vm2, %v5732_v27  ;;  %v6415_v12 = vld [vmem:[%s7379_s3] ss:$0 sm:$0xff] }
 0x1a5   : > { %2279 = vmatprep.mubr.bf16.mxu0 %v5733_v62  ;;  %5320 = vmatprep.mubr.msk.bf16.mxu1 %vm1703_vm2, %v5735_v37  ;;  %v5737_v37 = vld [vmem:[%s5967_s20 + $0x530] ss:$12 sps:$4 sm:$0xff]  }
 0x1a7   : > { %v6405_v38 = vpop.f32.mrb[64].mxu0  ;;  %v5214_v55 = vpop.f32.mrb[64].mxu1 }
 0x1a8   : > { %v2491_v27 = vadd.f32 %v5214_v55, %v6194_v22  ;;  %v2067_v39 = vpop.f32.mrb[65].mxu0  ;;  %v2482_v62 = vpop.f32.mrb[65].mxu1 }
 0x1a9   : > { %v2483_v54 = vadd.f32 %v2482_v62, %v6180_v10  ;;  %v6421_v9 = vpop.f32.mrb[66].mxu0  ;;  %v5215_v13 = vpop.f32.mrb[66].mxu1 }
 0x1aa   : > { %v3002_v61 = vmul.f32 %v6410_v63, %v2491_v27  ;;  %v2494_v19 = vadd.f32 %v5215_v13, %v6200_v28  ;;  %v2070_v33 = vpop.f32.mrb[67].mxu0  ;;  %v2485_v51 = vpop.f32.mrb[67].mxu1 }
 0x1ab   : > { %v3000_v22 = vmul.f32 %v6410_v63, %v2483_v54  ;;  %v2486_v55 = vadd.f32 %v2485_v51, %v6186_v16  ;;  %v5741_v16 = vld [vmem:[%s5967_s20 + $0x420] ss:$12 sps:$4 sm:$0xff]  }
 0x1ac   : > { %v3137_v10 = vadd.f32 %v6415_v12, %v3002_v61  ;;  %v3003_v39 = vmul.f32 %v6410_v63, %v2494_v19  ;;  %2280 = vmatmul.mubr.bf16.gmra.mrb[172].mxu0 %v5736_v20  ;;  %5321 = vmatmul.mubr.msk.bf16.gmra.mrb[172].mxu1 %vm1703_vm2, %v5737_v37  ;;  %v5742_v20 = vld [vmem:[%s5967_s20 + $0x560] ss:$12 sps:$4 sm:$0xff]  }
 0x1ad   : > { %v3135_v27 = vadd.f32 %v6415_v12, %v3000_v22  ;;  %v3001_v28 = vmul.f32 %v6410_v63, %v2486_v55  ;;  %2287 = vmatprep.mubr.bf16.mxu0 %v5738_v5  ;;  %5324 = vmatprep.mubr.msk.bf16.mxu1 %vm1703_vm2, %v5740_v31  ;;  %v5743_v55 = vld [vmem:[%s5967_s20 + $0x43c] ss:$12 sps:$4 sm:$0xff]  }
 0x1ae   : > { %v3265_v33 = vmax.f32 %v3137_v10, 0.0  ;;  %v3138_v13 = vadd.f32 %v6415_v12, %v3003_v39 }
 0x1af   : > { %v3263_v51 = vmax.f32 %v3135_v27, 0.0  ;;  %v3136_v61 = vadd.f32 %v6415_v12, %v3001_v28  ;;  %v6440_v19 = vpop.f32.mrb[68].mxu0  ;;  %v5218_v62 = vpop.f32.mrb[68].mxu1  ;;  %v5745_v28 = vld [vmem:[%s5967_s20 + $0x578] ss:$12 sps:$4 sm:$0xff]  }
 0x1b0   : > { %v4998_v37 = vpack.c.bf16 %v3265_v33, %v3265_v33  ;;  %v3266_v54 = vmax.f32 %v3138_v13, 0.0  ;;  %v2507_v5 = vadd.f32 %v5218_v62, %v6222_v46  ;;  %v2075_v22 = vpop.f32.mrb[69].mxu0  ;;  %v2498_v31 = vpop.f32.mrb[69].mxu1 }
 0x1b1   : > { %v4996_v10 = vpack.c.bf16 %v3263_v51, %v3263_v51  ;;  %v3264_v39 = vmax.f32 %v3136_v61, 0.0  ;;  %v2499_v25 = vadd.f32 %v2498_v31, %v6208_v34  ;;  %v6446_v27 = vpop.f32.mrb[70].mxu0  ;;  %v5219_v43 = vpop.f32.mrb[70].mxu1 }
 0x1b2   : > { %3906 = vst.msk [vmem:[%s6450_s8 + $0x8] sm:$0xf] %vm3903_vm3, %v4998_v37  ;;  %v4999_v46 = vpack.c.bf16 %v3266_v54, %v3266_v54  ;;  %v3006_v33 = vmul.f32 %v6410_v63, %v2507_v5  ;;  %v2510_v13 = vadd.f32 %v5219_v43, %v6228_v52  ;;  %v2078_v51 = vpop.f32.mrb[71].mxu0  ;;  %v2501_v61 = vpop.f32.mrb[71].mxu1  ;;  %v5746_v54 = vld [vmem:[%s5967_s20 + $0x438] ss:$12 sps:$4 sm:$0xff]  }
 0x1b3   : > { %3904 = vst.msk [vmem:[%s6450_s8] sm:$0xf] %vm3903_vm3, %v4996_v10  ;;  %v4997_v34 = vpack.c.bf16 %v3264_v39, %v3264_v39  ;;  %v3004_v62 = vmul.f32 %v6410_v63, %v2499_v25  ;;  %v2502_v22 = vadd.f32 %v2501_v61, %v6214_v40  ;;  %v5747_v39 = vld [vmem:[%s5967_s20 + $0x590] ss:$12 sps:$4 sm:$0xff]   ;;  %v5748_v51 = vld [vmem:[%s5967_s20 + $0x454] ss:$12 sps:$4 sm:$0xff]  }
 0x1b4   : > { %3907 = vst.msk [vmem:[%s6450_s8 + $0xc] sm:$0xf] %vm3903_vm3, %v4999_v46  ;;  %v3141_v31 = vadd.f32 %v6415_v12, %v3006_v33  ;;  %v3007_v37 = vmul.f32 %v6410_v63, %v2510_v13  ;;  %2288 = vmatmul.mubr.bf16.gmra.mrb[176].mxu0 %v5741_v16  ;;  %5325 = vmatmul.mubr.msk.bf16.gmra.mrb[176].mxu1 %vm1703_vm2, %v5742_v20 }
 0x1b5   : > { %3905 = vst.msk [vmem:[%s6450_s8 + $0x4] sm:$0xf] %vm3903_vm3, %v4997_v34  ;;  %v3139_v52 = vadd.f32 %v6415_v12, %v3004_v62  ;;  %v3005_v43 = vmul.f32 %v6410_v63, %v2502_v22  ;;  %2295 = vmatprep.mubr.bf16.mxu0 %v5743_v55  ;;  %5328 = vmatprep.mubr.msk.bf16.mxu1 %vm1703_vm2, %v5745_v28 }
 0x1b6   : > { %v3269_v40 = vmax.f32 %v3141_v31, 0.0  ;;  %v3142_v25 = vadd.f32 %v6415_v12, %v3007_v37  ;;  %v5750_v37 = vld [vmem:[%s5967_s20 + $0x5a8] ss:$12 sps:$4 sm:$0xff]  }
 0x1b7   : > { %v3267_v5 = vmax.f32 %v3139_v52, 0.0  ;;  %v3140_v16 = vadd.f32 %v6415_v12, %v3005_v43  ;;  %v6473_v20 = vpop.f32.mrb[72].mxu0  ;;  %v5222_v10 = vpop.f32.mrb[72].mxu1 }
 0x1b8   : > { %v5002_v46 = vpack.c.bf16 %v3269_v40, %v3269_v40  ;;  %v3270_v33 = vmax.f32 %v3142_v25, 0.0  ;;  %v2523_v13 = vadd.f32 %v5222_v10, %v6250_v6  ;;  %v2083_v55 = vpop.f32.mrb[73].mxu0  ;;  %v2514_v28 = vpop.f32.mrb[73].mxu1 }
 0x1b9   : > { %v5000_v61 = vpack.c.bf16 %v3267_v5, %v3267_v5  ;;  %v3268_v34 = vmax.f32 %v3140_v16, 0.0  ;;  %v2515_v62 = vadd.f32 %v2514_v28, %v6236_v58  ;;  %v6479_v22 = vpop.f32.mrb[74].mxu0  ;;  %v5223_v31 = vpop.f32.mrb[74].mxu1  ;;  %v5751_v55 = vld [vmem:[%s5967_s20 + $0x450] ss:$12 sps:$4 sm:$0xff]  }
 0x1ba   : > { %3910 = vst.msk [vmem:[%s6450_s8 + $0x18] sm:$0xf] %vm3903_vm3, %v5002_v46  ;;  %v5003_v52 = vpack.c.bf16 %v3270_v33, %v3270_v33  ;;  %v3010_v43 = vmul.f32 %v6410_v63, %v2523_v13  ;;  %v2526_v6 = vadd.f32 %v5223_v31, %v6256_v14  ;;  %v2086_v40 = vpop.f32.mrb[75].mxu0  ;;  %v2517_v25 = vpop.f32.mrb[75].mxu1 }
 0x1bb   : > { %3908 = vst.msk [vmem:[%s6450_s8 + $0x10] sm:$0xf] %vm3903_vm3, %v5000_v61  ;;  %v5001_v5 = vpack.c.bf16 %v3268_v34, %v3268_v34  ;;  %v3008_v58 = vmul.f32 %v6410_v63, %v2515_v62  ;;  %v2518_v16 = vadd.f32 %v2517_v25, %v6242_v0  ;;  %v5752_v34 = vld [vmem:[%s5967_s20 + $0x5c0] ss:$12 sps:$4 sm:$0xff]  }
 0x1bc   : > { %3911 = vst.msk [vmem:[%s6450_s8 + $0x1c] sm:$0xf] %vm3903_vm3, %v5003_v52  ;;  %v3145_v10 = vadd.f32 %v6415_v12, %v3010_v43  ;;  %v3011_v46 = vmul.f32 %v6410_v63, %v2526_v6  ;;  %2296 = vmatmul.mubr.bf16.gmra.mrb[180].mxu0 %v5746_v54  ;;  %5329 = vmatmul.mubr.msk.bf16.gmra.mrb[180].mxu1 %vm1703_vm2, %v5747_v39  ;;  %v5753_v43 = vld [vmem:[%s5967_s20 + $0x46c] ss:$12 sps:$4 sm:$0xff]  }
 0x1bd   : > { %3909 = vst.msk [vmem:[%s6450_s8 + $0x14] sm:$0xf] %vm3903_vm3, %v5001_v5  ;;  %v3143_v14 = vadd.f32 %v6415_v12, %v3008_v58  ;;  %v3009_v33 = vmul.f32 %v6410_v63, %v2518_v16  ;;  %2303 = vmatprep.mubr.bf16.mxu0 %v5748_v51  ;;  %5332 = vmatprep.mubr.msk.bf16.mxu1 %vm1703_vm2, %v5750_v37  ;;  %v5755_v16 = vld [vmem:[%s5967_s20 + $0x5d8] ss:$12 sps:$4 sm:$0xff]  }
 0x1be   : > { %v3273_v0 = vmax.f32 %v3145_v10, 0.0  ;;  %v3146_v13 = vadd.f32 %v6415_v12, %v3011_v46 }
 0x1bf   : > { %v3271_v28 = vmax.f32 %v3143_v14, 0.0  ;;  %v3144_v54 = vadd.f32 %v6415_v12, %v3009_v33  ;;  %v6503_v39 = vpop.f32.mrb[76].mxu0  ;;  %v5226_v61 = vpop.f32.mrb[76].mxu1 }
 0x1c0   : > { %v5006_v62 = vpack.c.bf16 %v3273_v0, %v3273_v0  ;;  %v3274_v31 = vmax.f32 %v3146_v13, 0.0  ;;  %v2539_v52 = vadd.f32 %v5226_v61, %v6278_v42  ;;  %v2091_v51 = vpop.f32.mrb[77].mxu0  ;;  %v2530_v37 = vpop.f32.mrb[77].mxu1 }
 0x1c1   : > { %v5004_v6 = vpack.c.bf16 %v3271_v28, %v3271_v28  ;;  %v3272_v40 = vmax.f32 %v3144_v54, 0.0  ;;  %v2531_v25 = vadd.f32 %v2530_v37, %v6264_v24  ;;  %v6509_v5 = vpop.f32.mrb[78].mxu0  ;;  %v5227_v58 = vpop.f32.mrb[78].mxu1  ;;  %v5756_v51 = vld [vmem:[%s5967_s20 + $0x468] ss:$12 sps:$4 sm:$0xff]  }
 0x1c2   : > { %3914 = vst.msk [vmem:[%s6450_s8 + $0x28] sm:$0xf] %vm3903_vm3, %v5006_v62  ;;  %v5007_v10 = vpack.c.bf16 %v3274_v31, %v3274_v31  ;;  %v3014_v46 = vmul.f32 %v6410_v63, %v2539_v52  ;;  %v2542_v42 = vadd.f32 %v5227_v58, %v6284_v50  ;;  %v2094_v14 = vpop.f32.mrb[79].mxu0  ;;  %v2533_v33 = vpop.f32.mrb[79].mxu1  ;;  %v5757_v58 = vld [vmem:[%s5967_s20 + $0x5f0] ss:$12 sps:$4 sm:$0xff]  }
 0x1c3   : > { %3912 = vst.msk [vmem:[%s6450_s8 + $0x20] sm:$0xf] %vm3903_vm3, %v5004_v6  ;;  %v5005_v0 = vpack.c.bf16 %v3272_v40, %v3272_v40  ;;  %v3012_v13 = vmul.f32 %v6410_v63, %v2531_v25  ;;  %v2534_v24 = vadd.f32 %v2533_v33, %v6270_v32 }
 0x1c4   : > { %3915 = vst.msk [vmem:[%s6450_s8 + $0x2c] sm:$0xf] %vm3903_vm3, %v5007_v10  ;;  %v3149_v28 = vadd.f32 %v6415_v12, %v3014_v46  ;;  %v3015_v54 = vmul.f32 %v6410_v63, %v2542_v42  ;;  %2304 = vmatmul.mubr.bf16.gmra.mrb[184].mxu0 %v5751_v55  ;;  %5333 = vmatmul.mubr.msk.bf16.gmra.mrb[184].mxu1 %vm1703_vm2, %v5752_v34 }
 0x1c5   : > { %3913 = vst.msk [vmem:[%s6450_s8 + $0x24] sm:$0xf] %vm3903_vm3, %v5005_v0  ;;  %v3147_v50 = vadd.f32 %v6415_v12, %v3012_v13  ;;  %v3013_v61 = vmul.f32 %v6410_v63, %v2534_v24  ;;  %2311 = vmatprep.mubr.bf16.mxu0 %v5753_v43  ;;  %5336 = vmatprep.mubr.msk.bf16.mxu1 %vm1703_vm2, %v5755_v16 }
 0x1c6   : > { %v3277_v32 = vmax.f32 %v3149_v28, 0.0  ;;  %v3150_v62 = vadd.f32 %v6415_v12, %v3015_v54 }
 0x1c7   : > { %v3275_v31 = vmax.f32 %v3147_v50, 0.0  ;;  %v3148_v52 = vadd.f32 %v6415_v12, %v3013_v61  ;;  %v6532_v55 = vpop.f32.mrb[80].mxu0  ;;  %v5230_v34 = vpop.f32.mrb[80].mxu1 }
 0x1c8   : > { %v5010_v37 = vpack.c.bf16 %v3277_v32, %v3277_v32  ;;  %v3278_v6 = vmax.f32 %v3150_v62, 0.0  ;;  %v2555_v40 = vadd.f32 %v5230_v34, %v6306_v18  ;;  %v2099_v25 = vpop.f32.mrb[81].mxu0  ;;  %v2546_v43 = vpop.f32.mrb[81].mxu1 }
 0x1c9   : > { %v5008_v16 = vpack.c.bf16 %v3275_v31, %v3275_v31  ;;  %v3276_v10 = vmax.f32 %v3148_v52, 0.0  ;;  %v2547_v46 = vadd.f32 %v2546_v43, %v6292_v60  ;;  %v6538_v42 = vpop.f32.mrb[82].mxu0  ;;  %v5231_v14 = vpop.f32.mrb[82].mxu1 }
 0x1ca   : > { %3918 = vst.msk [vmem:[%s6450_s8 + $0x38] sm:$0xf] %vm3903_vm3, %v5010_v37  ;;  %v5011_v33 = vpack.c.bf16 %v3278_v6, %v3278_v6  ;;  %v3018_v0 = vmul.f32 %v6410_v63, %v2555_v40  ;;  %v2558_v13 = vadd.f32 %v5231_v14, %v6312_v30  ;;  %v2102_v18 = vpop.f32.mrb[83].mxu0  ;;  %v2549_v24 = vpop.f32.mrb[83].mxu1 }
 0x1cb   : > { %3916 = vst.msk [vmem:[%s6450_s8 + $0x30] sm:$0xf] %vm3903_vm3, %v5008_v16  ;;  %v5009_v28 = vpack.c.bf16 %v3276_v10, %v3276_v10  ;;  %v3016_v54 = vmul.f32 %v6410_v63, %v2547_v46  ;;  %v2550_v60 = vadd.f32 %v2549_v24, %v6298_v4 }
 0x1cc   : > { %3919 = vst.msk [vmem:[%s6450_s8 + $0x3c] sm:$0xf] %vm3903_vm3, %v5011_v33  ;;  %v3153_v50 = vadd.f32 %v6415_v12, %v3018_v0  ;;  %v3019_v61 = vmul.f32 %v6410_v63, %v2558_v13  ;;  %2312 = vmatmul.mubr.bf16.gmra.mrb[188].mxu0 %v5756_v51  ;;  %5337 = vmatmul.mubr.msk.bf16.gmra.mrb[188].mxu1 %vm1703_vm2, %v5757_v58 }
 0x1cd   : > { %3917 = vst.msk [vmem:[%s6450_s8 + $0x34] sm:$0xf] %vm3903_vm3, %v5009_v28  ;;  %v3151_v30 = vadd.f32 %v6415_v12, %v3016_v54  ;;  %v3017_v32 = vmul.f32 %v6410_v63, %v2550_v60 }
 0x1ce   : > { %v3281_v62 = vmax.f32 %v3153_v50, 0.0  ;;  %v3154_v31 = vadd.f32 %v6415_v12, %v3019_v61 }
 0x1cf   : > { %v3279_v4 = vmax.f32 %v3151_v30, 0.0  ;;  %v3152_v52 = vadd.f32 %v6415_v12, %v3017_v32  ;;  %v6559_v34 = vpop.f32.mrb[84].mxu0  ;;  %v5234_v37 = vpop.f32.mrb[84].mxu1 }
 0x1d0   : > { %v5014_v6 = vpack.c.bf16 %v3281_v62, %v3281_v62  ;;  %v3282_v51 = vmax.f32 %v3154_v31, 0.0  ;;  %v2571_v40 = vadd.f32 %v5234_v37, %v6334_v8  ;;  %v2107_v25 = vpop.f32.mrb[85].mxu0  ;;  %v2562_v43 = vpop.f32.mrb[85].mxu1 }
 0x1d1   : > { %v5012_v58 = vpack.c.bf16 %v3279_v4, %v3279_v4  ;;  %v3280_v16 = vmax.f32 %v3152_v52, 0.0  ;;  %v2563_v10 = vadd.f32 %v2562_v43, %v6320_v44  ;;  %v6563_v46 = vpop.f32.mrb[86].mxu0  ;;  %v5235_v14 = vpop.f32.mrb[86].mxu1 }
 0x1d2   : > { %3922 = vst.msk [vmem:[%s6450_s8 + $0x48] sm:$0xf] %vm3903_vm3, %v5014_v6  ;;  %v5015_v33 = vpack.c.bf16 %v3282_v51, %v3282_v51  ;;  %v3022_v0 = vmul.f32 %v6410_v63, %v2571_v40  ;;  %v2574_v13 = vadd.f32 %v5235_v14, %v6340_v26  ;;  %v2110_v18 = vpop.f32.mrb[87].mxu0  ;;  %v2565_v8 = vpop.f32.mrb[87].mxu1 }
 0x1d3   : > { %3920 = vst.msk [vmem:[%s6450_s8 + $0x40] sm:$0xf] %vm3903_vm3, %v5012_v58  ;;  %v5013_v24 = vpack.c.bf16 %v3280_v16, %v3280_v16  ;;  %v3020_v28 = vmul.f32 %v6410_v63, %v2563_v10  ;;  %v2566_v44 = vadd.f32 %v2565_v8, %v6326_v56 }
 0x1d4   : > { %3923 = vst.msk [vmem:[%s6450_s8 + $0x4c] sm:$0xf] %vm3903_vm3, %v5015_v33  ;;  %v3157_v54 = vadd.f32 %v6415_v12, %v3022_v0  ;;  %v3023_v60 = vmul.f32 %v6410_v63, %v2574_v13 }
 0x1d5   : > { %3921 = vst.msk [vmem:[%s6450_s8 + $0x44] sm:$0xf] %vm3903_vm3, %v5013_v24  ;;  %v3155_v50 = vadd.f32 %v6415_v12, %v3020_v28  ;;  %v3021_v26 = vmul.f32 %v6410_v63, %v2566_v44 }
 0x1d6   : > { %v3285_v61 = vmax.f32 %v3157_v54, 0.0  ;;  %v3158_v30 = vadd.f32 %v6415_v12, %v3023_v60 }
 0x1d7   : > { %v3283_v32 = vmax.f32 %v3155_v50, 0.0  ;;  %v3156_v62 = vadd.f32 %v6415_v12, %v3021_v26  ;;  %v6583_v56 = vpop.f32.mrb[88].mxu0  ;;  %v5238_v31 = vpop.f32.mrb[88].mxu1 }
 0x1d8   : > { %v5018_v4 = vpack.c.bf16 %v3285_v61, %v3285_v61  ;;  %v3286_v52 = vmax.f32 %v3158_v30, 0.0  ;;  %v2587_v37 = vadd.f32 %v5238_v31, %v6362_v36  ;;  %v2115_v6 = vpop.f32.mrb[89].mxu0  ;;  %v2578_v51 = vpop.f32.mrb[89].mxu1 }
 0x1d9   : > { %v5016_v40 = vpack.c.bf16 %v3283_v32, %v3283_v32  ;;  %v3284_v25 = vmax.f32 %v3156_v62, 0.0  ;;  %v2579_v43 = vadd.f32 %v2578_v51, %v6348_v48  ;;  %v6587_v58 = vpop.f32.mrb[90].mxu0  ;;  %v5239_v16 = vpop.f32.mrb[90].mxu1 }
 0x1da   : > { %3926 = vst.msk [vmem:[%s6450_s8 + $0x58] sm:$0xf] %vm3903_vm3, %v5018_v4  ;;  %v5019_v10 = vpack.c.bf16 %v3286_v52, %v3286_v52  ;;  %v3026_v14 = vmul.f32 %v6410_v63, %v2587_v37  ;;  %v2590_v33 = vadd.f32 %v5239_v16, %v6368_v3  ;;  %v2118_v0 = vpop.f32.mrb[91].mxu0  ;;  %v2581_v36 = vpop.f32.mrb[91].mxu1 }
 0x1db   : > { %3924 = vst.msk [vmem:[%s6450_s8 + $0x50] sm:$0xf] %vm3903_vm3, %v5016_v40  ;;  %v5017_v13 = vpack.c.bf16 %v3284_v25, %v3284_v25  ;;  %v3024_v18 = vmul.f32 %v6410_v63, %v2579_v43  ;;  %v2582_v48 = vadd.f32 %v2581_v36, %v6354_v2 }
 0x1dc   : > { %3927 = vst.msk [vmem:[%s6450_s8 + $0x5c] sm:$0xf] %vm3903_vm3, %v5019_v10  ;;  %v3161_v8 = vadd.f32 %v6415_v12, %v3026_v14  ;;  %v3027_v24 = vmul.f32 %v6410_v63, %v2590_v33 }
 0x1dd   : > { %3925 = vst.msk [vmem:[%s6450_s8 + $0x54] sm:$0xf] %vm3903_vm3, %v5017_v13  ;;  %v3159_v28 = vadd.f32 %v6415_v12, %v3024_v18  ;;  %v3025_v3 = vmul.f32 %v6410_v63, %v2582_v48 }
 0x1de   : > { %v3289_v44 = vmax.f32 %v3161_v8, 0.0  ;;  %v3162_v54 = vadd.f32 %v6415_v12, %v3027_v24 }
 0x1df   : > { %v3287_v60 = vmax.f32 %v3159_v28, 0.0  ;;  %v3160_v50 = vadd.f32 %v6415_v12, %v3025_v3  ;;  %v6607_v2 = vpop.f32.mrb[92].mxu0  ;;  %v5242_v26 = vpop.f32.mrb[92].mxu1 }
 0x1e0   : > { %v5022_v61 = vpack.c.bf16 %v3289_v44, %v3289_v44  ;;  %v3290_v30 = vmax.f32 %v3162_v54, 0.0  ;;  %v2603_v32 = vadd.f32 %v5242_v26, %v6390_v49  ;;  %v2123_v62 = vpop.f32.mrb[93].mxu0  ;;  %v2594_v31 = vpop.f32.mrb[93].mxu1 }
 0x1e1   : > { %v5020_v4 = vpack.c.bf16 %v3287_v60, %v3287_v60  ;;  %v3288_v52 = vmax.f32 %v3160_v50, 0.0  ;;  %v2595_v37 = vadd.f32 %v2594_v31, %v6376_v21  ;;  %v6611_v6 = vpop.f32.mrb[94].mxu0  ;;  %v5243_v51 = vpop.f32.mrb[94].mxu1 }
 0x1e2   : > { %3930 = vst.msk [vmem:[%s6450_s8 + $0x68] sm:$0xf] %vm3903_vm3, %v5022_v61  ;;  %v5023_v40 = vpack.c.bf16 %v3290_v30, %v3290_v30  ;;  %v3030_v25 = vmul.f32 %v6410_v63, %v2603_v32  ;;  %v2606_v43 = vadd.f32 %v5243_v51, %v6396_v45  ;;  %v2126_v16 = vpop.f32.mrb[95].mxu0  ;;  %v2597_v49 = vpop.f32.mrb[95].mxu1 }
 0x1e3   : > { %3928 = vst.msk [vmem:[%s6450_s8 + $0x60] sm:$0xf] %vm3903_vm3, %v5020_v4  ;;  %v5021_v10 = vpack.c.bf16 %v3288_v52, %v3288_v52  ;;  %v3028_v14 = vmul.f32 %v6410_v63, %v2595_v37  ;;  %v2598_v21 = vadd.f32 %v2597_v49, %v6382_v57 }
 0x1e4   : > { %3931 = vst.msk [vmem:[%s6450_s8 + $0x6c] sm:$0xf] %vm3903_vm3, %v5023_v40  ;;  %v3165_v33 = vadd.f32 %v6415_v12, %v3030_v25  ;;  %v3031_v0 = vmul.f32 %v6410_v63, %v2606_v43 }
 0x1e5   : > { %3929 = vst.msk [vmem:[%s6450_s8 + $0x64] sm:$0xf] %vm3903_vm3, %v5021_v10  ;;  %v3163_v36 = vadd.f32 %v6415_v12, %v3028_v14  ;;  %v3029_v45 = vmul.f32 %v6410_v63, %v2598_v21 }
 0x1e6   : > { %v3293_v13 = vmax.f32 %v3165_v33, 0.0  ;;  %v3166_v18 = vadd.f32 %v6415_v12, %v3031_v0 }
 0x1e7   : > { %v3291_v48 = vmax.f32 %v3163_v36, 0.0  ;;  %v3164_v8 = vadd.f32 %v6415_v12, %v3029_v45  ;;  %v6631_v57 = vpop.f32.mrb[96].mxu0  ;;  %v5246_v24 = vpop.f32.mrb[96].mxu1 }
 0x1e8   : > { %v5026_v28 = vpack.c.bf16 %v3293_v13, %v3293_v13  ;;  %v3294_v3 = vmax.f32 %v3166_v18, 0.0  ;;  %v2619_v44 = vadd.f32 %v5246_v24, %v6440_v19  ;;  %v2131_v54 = vpop.f32.mrb[97].mxu0  ;;  %v2610_v60 = vpop.f32.mrb[97].mxu1 }
 0x1e9   : > { %v5024_v50 = vpack.c.bf16 %v3291_v48, %v3291_v48  ;;  %v3292_v26 = vmax.f32 %v3164_v8, 0.0  ;;  %v2611_v61 = vadd.f32 %v2610_v60, %v6405_v38  ;;  %v6635_v30 = vpop.f32.mrb[98].mxu0  ;;  %v5247_v32 = vpop.f32.mrb[98].mxu1 }
 0x1ea   : > { %3934 = vst.msk [vmem:[%s6450_s8 + $0x78] sm:$0xf] %vm3903_vm3, %v5026_v28  ;;  %v5027_v62 = vpack.c.bf16 %v3294_v3, %v3294_v3  ;;  %v3034_v31 = vmul.f32 %v6410_v63, %v2619_v44  ;;  %v2622_v4 = vadd.f32 %v5247_v32, %v6446_v27  ;;  %v2134_v52 = vpop.f32.mrb[99].mxu0  ;;  %v2613_v19 = vpop.f32.mrb[99].mxu1 }
 0x1eb   : > { %3932 = vst.msk [vmem:[%s6450_s8 + $0x70] sm:$0xf] %vm3903_vm3, %v5024_v50  ;;  %v5025_v37 = vpack.c.bf16 %v3292_v26, %v3292_v26  ;;  %v3032_v51 = vmul.f32 %v6410_v63, %v2611_v61  ;;  %v2614_v38 = vadd.f32 %v2613_v19, %v6421_v9 }
 0x1ec   : > { %3935 = vst.msk [vmem:[%s6450_s8 + $0x7c] sm:$0xf] %vm3903_vm3, %v5027_v62  ;;  %v3169_v40 = vadd.f32 %v6415_v12, %v3034_v31  ;;  %v3035_v25 = vmul.f32 %v6410_v63, %v2622_v4 }
 0x1ed   : > { %3933 = vst.msk [vmem:[%s6450_s8 + $0x74] sm:$0xf] %vm3903_vm3, %v5025_v37  ;;  %v3167_v43 = vadd.f32 %v6415_v12, %v3032_v51  ;;  %v3033_v27 = vmul.f32 %v6410_v63, %v2614_v38 }
 0x1ee   : > { %v3297_v16 = vmax.f32 %v3169_v40, 0.0  ;;  %v3170_v49 = vadd.f32 %v6415_v12, %v3035_v25 }
 0x1ef   : > { %v3295_v10 = vmax.f32 %v3167_v43, 0.0  ;;  %v3168_v14 = vadd.f32 %v6415_v12, %v3033_v27  ;;  %v6655_v9 = vpop.f32.mrb[100].mxu0  ;;  %v5250_v21 = vpop.f32.mrb[100].mxu1 }
 0x1f0   : > { %v5030_v33 = vpack.c.bf16 %v3297_v16, %v3297_v16  ;;  %v3298_v0 = vmax.f32 %v3170_v49, 0.0  ;;  %v2635_v36 = vadd.f32 %v5250_v21, %v6503_v39  ;;  %v2139_v45 = vpop.f32.mrb[101].mxu0  ;;  %v2626_v13 = vpop.f32.mrb[101].mxu1 }
 0x1f1   : > { %v5028_v18 = vpack.c.bf16 %v3295_v10, %v3295_v10  ;;  %v3296_v48 = vmax.f32 %v3168_v14, 0.0  ;;  %v2627_v8 = vadd.f32 %v2626_v13, %v6473_v20  ;;  %v6659_v24 = vpop.f32.mrb[102].mxu0  ;;  %v5251_v28 = vpop.f32.mrb[102].mxu1 }
 0x1f2   : > { %3938 = vst.msk [vmem:[%s6450_s8 + $0x88] sm:$0xf] %vm3903_vm3, %v5030_v33  ;;  %v5031_v3 = vpack.c.bf16 %v3298_v0, %v3298_v0  ;;  %v3038_v44 = vmul.f32 %v6410_v63, %v2635_v36  ;;  %v2638_v54 = vadd.f32 %v5251_v28, %v6509_v5  ;;  %v2142_v60 = vpop.f32.mrb[103].mxu0  ;;  %v2629_v39 = vpop.f32.mrb[103].mxu1 }
 0x1f3   : > { %3936 = vst.msk [vmem:[%s6450_s8 + $0x80] sm:$0xf] %vm3903_vm3, %v5028_v18  ;;  %v5029_v50 = vpack.c.bf16 %v3296_v48, %v3296_v48  ;;  %v3036_v26 = vmul.f32 %v6410_v63, %v2627_v8  ;;  %v2630_v20 = vadd.f32 %v2629_v39, %v6479_v22 }
 0x1f4   : > { %3939 = vst.msk [vmem:[%s6450_s8 + $0x8c] sm:$0xf] %vm3903_vm3, %v5031_v3  ;;  %v3173_v61 = vadd.f32 %v6415_v12, %v3038_v44  ;;  %v3039_v32 = vmul.f32 %v6410_v63, %v2638_v54 }
 0x1f5   : > { %3937 = vst.msk [vmem:[%s6450_s8 + $0x84] sm:$0xf] %vm3903_vm3, %v5029_v50  ;;  %v3171_v62 = vadd.f32 %v6415_v12, %v3036_v26  ;;  %v3037_v5 = vmul.f32 %v6410_v63, %v2630_v20 }
 0x1f6   : > { %v3301_v31 = vmax.f32 %v3173_v61, 0.0  ;;  %v3174_v4 = vadd.f32 %v6415_v12, %v3039_v32 }
 0x1f7   : > { %v3299_v52 = vmax.f32 %v3171_v62, 0.0  ;;  %v3172_v19 = vadd.f32 %v6415_v12, %v3037_v5  ;;  %v6679_v22 = vpop.f32.mrb[104].mxu0  ;;  %v5254_v37 = vpop.f32.mrb[104].mxu1 }
 0x1f8   : > { %v5034_v51 = vpack.c.bf16 %v3301_v31, %v3301_v31  ;;  %v3302_v38 = vmax.f32 %v3174_v4, 0.0  ;;  %v2651_v40 = vadd.f32 %v5254_v37, %v6559_v34  ;;  %v2147_v25 = vpop.f32.mrb[105].mxu0  ;;  %v2642_v43 = vpop.f32.mrb[105].mxu1 }
 0x1f9   : > { %v5032_v27 = vpack.c.bf16 %v3299_v52, %v3299_v52  ;;  %v3300_v16 = vmax.f32 %v3172_v19, 0.0  ;;  %v2643_v49 = vadd.f32 %v2642_v43, %v6532_v55  ;;  %v6683_v10 = vpop.f32.mrb[106].mxu0  ;;  %v5255_v14 = vpop.f32.mrb[106].mxu1 }
 0x1fa   : > { %3942 = vst.msk [vmem:[%s6450_s8 + $0x98] sm:$0xf] %vm3903_vm3, %v5034_v51  ;;  %v5035_v21 = vpack.c.bf16 %v3302_v38, %v3302_v38  ;;  %v3042_v33 = vmul.f32 %v6410_v63, %v2651_v40  ;;  %v2654_v0 = vadd.f32 %v5255_v14, %v6563_v46  ;;  %v2150_v36 = vpop.f32.mrb[107].mxu0  ;;  %v2645_v34 = vpop.f32.mrb[107].mxu1 }
 0x1fb   : > { %3940 = vst.msk [vmem:[%s6450_s8 + $0x90] sm:$0xf] %vm3903_vm3, %v5032_v27  ;;  %v5033_v45 = vpack.c.bf16 %v3300_v16, %v3300_v16  ;;  %v3040_v13 = vmul.f32 %v6410_v63, %v2643_v49  ;;  %v2646_v55 = vadd.f32 %v2645_v34, %v6538_v42 }
 0x1fc   : > { %3943 = vst.msk [vmem:[%s6450_s8 + $0x9c] sm:$0xf] %vm3903_vm3, %v5035_v21  ;;  %v3177_v18 = vadd.f32 %v6415_v12, %v3042_v33  ;;  %v3043_v48 = vmul.f32 %v6410_v63, %v2654_v0 }
 0x1fd   : > { %3941 = vst.msk [vmem:[%s6450_s8 + $0x94] sm:$0xf] %vm3903_vm3, %v5033_v45  ;;  %v3175_v8 = vadd.f32 %v6415_v12, %v3040_v13  ;;  %v3041_v46 = vmul.f32 %v6410_v63, %v2646_v55 }
 0x1fe   : > { %v3305_v28 = vmax.f32 %v3177_v18, 0.0  ;;  %v3178_v3 = vadd.f32 %v6415_v12, %v3043_v48 }
 0x1ff   : > { %v3303_v44 = vmax.f32 %v3175_v8, 0.0  ;;  %v3176_v54 = vadd.f32 %v6415_v12, %v3041_v46  ;;  %v6703_v42 = vpop.f32.mrb[108].mxu0  ;;  %v5258_v60 = vpop.f32.mrb[108].mxu1 }
 0x200   : > { %v5038_v39 = vpack.c.bf16 %v3305_v28, %v3305_v28  ;;  %v3306_v50 = vmax.f32 %v3178_v3, 0.0  ;;  %v2667_v26 = vadd.f32 %v5258_v60, %v6607_v2  ;;  %v2155_v20 = vpop.f32.mrb[109].mxu0  ;;  %v2658_v61 = vpop.f32.mrb[109].mxu1 }
 0x201   : > { %v5036_v32 = vpack.c.bf16 %v3303_v44, %v3303_v44  ;;  %v3304_v62 = vmax.f32 %v3176_v54, 0.0  ;;  %v2659_v5 = vadd.f32 %v2658_v61, %v6583_v56  ;;  %v6707_v31 = vpop.f32.mrb[110].mxu0  ;;  %v5259_v4 = vpop.f32.mrb[110].mxu1 }
 0x202   : > { %3946 = vst.msk [vmem:[%s6450_s8 + $0xa8] sm:$0xf] %vm3903_vm3, %v5038_v39  ;;  %v5039_v52 = vpack.c.bf16 %v3306_v50, %v3306_v50  ;;  %v3046_v19 = vmul.f32 %v6410_v63, %v2667_v26  ;;  %v2670_v37 = vadd.f32 %v5259_v4, %v6611_v6  ;;  %v2158_v51 = vpop.f32.mrb[111].mxu0  ;;  %v2661_v2 = vpop.f32.mrb[111].mxu1 }
 0x203   : > { %3944 = vst.msk [vmem:[%s6450_s8 + $0xa0] sm:$0xf] %vm3903_vm3, %v5036_v32  ;;  %v5037_v38 = vpack.c.bf16 %v3304_v62, %v3304_v62  ;;  %v3044_v40 = vmul.f32 %v6410_v63, %v2659_v5  ;;  %v2662_v56 = vadd.f32 %v2661_v2, %v6587_v58 }
 0x204   : > { %3947 = vst.msk [vmem:[%s6450_s8 + $0xac] sm:$0xf] %vm3903_vm3, %v5039_v52  ;;  %v3181_v25 = vadd.f32 %v6415_v12, %v3046_v19  ;;  %v3047_v43 = vmul.f32 %v6410_v63, %v2670_v37 }
 0x205   : > { %3945 = vst.msk [vmem:[%s6450_s8 + $0xa4] sm:$0xf] %vm3903_vm3, %v5037_v38  ;;  %v3179_v27 = vadd.f32 %v6415_v12, %v3044_v40  ;;  %v3045_v6 = vmul.f32 %v6410_v63, %v2662_v56 }
 0x206   : > { %v3309_v16 = vmax.f32 %v3181_v25, 0.0  ;;  %v3182_v49 = vadd.f32 %v6415_v12, %v3047_v43 }
 0x207   : > { %v3307_v14 = vmax.f32 %v3179_v27, 0.0  ;;  %v3180_v21 = vadd.f32 %v6415_v12, %v3045_v6  ;;  %v6727_v58 = vpop.f32.mrb[112].mxu0  ;;  %v5262_v33 = vpop.f32.mrb[112].mxu1 }
 0x208   : > { %v5042_v0 = vpack.c.bf16 %v3309_v16, %v3309_v16  ;;  %v3310_v36 = vmax.f32 %v3182_v49, 0.0  ;;  %v2683_v34 = vadd.f32 %v5262_v33, %v6655_v9  ;;  %v2163_v45 = vpop.f32.mrb[113].mxu0  ;;  %v2674_v13 = vpop.f32.mrb[113].mxu1 }
 0x209   : > { %v5040_v55 = vpack.c.bf16 %v3307_v14, %v3307_v14  ;;  %v3308_v18 = vmax.f32 %v3180_v21, 0.0  ;;  %v2675_v48 = vadd.f32 %v2674_v13, %v6631_v57  ;;  %v6731_v8 = vpop.f32.mrb[114].mxu0  ;;  %v5263_v46 = vpop.f32.mrb[114].mxu1 }
 0x20a   : > { %3950 = vst.msk [vmem:[%s6450_s8 + $0xb8] sm:$0xf] %vm3903_vm3, %v5042_v0  ;;  %v5043_v28 = vpack.c.bf16 %v3310_v36, %v3310_v36  ;;  %v3050_v3 = vmul.f32 %v6410_v63, %v2683_v34  ;;  %v2686_v44 = vadd.f32 %v5263_v46, %v6659_v24  ;;  %v2166_v54 = vpop.f32.mrb[115].mxu0  ;;  %v2677_v9 = vpop.f32.mrb[115].mxu1 }
 0x20b   : > { %3948 = vst.msk [vmem:[%s6450_s8 + $0xb0] sm:$0xf] %vm3903_vm3, %v5040_v55  ;;  %v5041_v60 = vpack.c.bf16 %v3308_v18, %v3308_v18  ;;  %v3048_v39 = vmul.f32 %v6410_v63, %v2675_v48  ;;  %v2678_v57 = vadd.f32 %v2677_v9, %v6635_v30 }
 0x20c   : > { %3951 = vst.msk [vmem:[%s6450_s8 + $0xbc] sm:$0xf] %vm3903_vm3, %v5043_v28  ;;  %v3185_v50 = vadd.f32 %v6415_v12, %v3050_v3  ;;  %v3051_v26 = vmul.f32 %v6410_v63, %v2686_v44 }
 0x20d   : > { %3949 = vst.msk [vmem:[%s6450_s8 + $0xb4] sm:$0xf] %vm3903_vm3, %v5041_v60  ;;  %v3183_v20 = vadd.f32 %v6415_v12, %v3048_v39  ;;  %v3049_v24 = vmul.f32 %v6410_v63, %v2678_v57 }
 0x20e   : > { %v3313_v61 = vmax.f32 %v3185_v50, 0.0  ;;  %v3186_v32 = vadd.f32 %v6415_v12, %v3051_v26 }
 0x20f   : > { %v3311_v62 = vmax.f32 %v3183_v20, 0.0  ;;  %v3184_v5 = vadd.f32 %v6415_v12, %v3049_v24  ;;  %v2169_v30 = vpop.f32.mrb[116].mxu0  ;;  %v5266_v4 = vpop.f32.mrb[116].mxu1 }
 0x210   : > { %v5046_v52 = vpack.c.bf16 %v3313_v61, %v3313_v61  ;;  %v3314_v19 = vmax.f32 %v3186_v32, 0.0  ;;  %v2699_v37 = vadd.f32 %v5266_v4, %v6703_v42  ;;  %v2171_v51 = vpop.f32.mrb[117].mxu0  ;;  %v2690_v2 = vpop.f32.mrb[117].mxu1 }
 0x211   : > { %v5044_v38 = vpack.c.bf16 %v3311_v62, %v3311_v62  ;;  %v3312_v40 = vmax.f32 %v3184_v5, 0.0  ;;  %v2691_v56 = vadd.f32 %v2690_v2, %v6679_v22  ;;  %v2172_v25 = vpop.f32.mrb[118].mxu0  ;;  %v5267_v43 = vpop.f32.mrb[118].mxu1 }
 0x212   : > { %3954 = vst.msk [vmem:[%s6450_s8 + $0xc8] sm:$0xf] %vm3903_vm3, %v5046_v52  ;;  %v5047_v27 = vpack.c.bf16 %v3314_v19, %v3314_v19  ;;  %v3054_v6 = vmul.f32 %v6410_v63, %v2699_v37  ;;  %v2702_v16 = vadd.f32 %v5267_v43, %v6707_v31  ;;  %v2174_v49 = vpop.f32.mrb[119].mxu0  ;;  %v2693_v14 = vpop.f32.mrb[119].mxu1 }
 0x213   : > { %3952 = vst.msk [vmem:[%s6450_s8 + $0xc0] sm:$0xf] %vm3903_vm3, %v5044_v38  ;;  %v5045_v42 = vpack.c.bf16 %v3312_v40, %v3312_v40  ;;  %v3052_v21 = vmul.f32 %v6410_v63, %v2691_v56  ;;  %v2694_v33 = vadd.f32 %v2693_v14, %v6683_v10 }
 0x214   : > { %3955 = vst.msk [vmem:[%s6450_s8 + $0xcc] sm:$0xf] %vm3903_vm3, %v5047_v27  ;;  %v3189_v22 = vadd.f32 %v6415_v12, %v3054_v6  ;;  %v3055_v0 = vmul.f32 %v6410_v63, %v2702_v16 }
 0x215   : > { %3953 = vst.msk [vmem:[%s6450_s8 + $0xc4] sm:$0xf] %vm3903_vm3, %v5045_v42  ;;  %v3187_v36 = vadd.f32 %v6415_v12, %v3052_v21  ;;  %v3053_v31 = vmul.f32 %v6410_v63, %v2694_v33 }
 0x216   : > { %v3317_v34 = vmax.f32 %v3189_v22, 0.0  ;;  %v3190_v45 = vadd.f32 %v6415_v12, %v3055_v0 }
 0x217   : > { %v3315_v13 = vmax.f32 %v3187_v36, 0.0  ;;  %v3188_v55 = vadd.f32 %v6415_v12, %v3053_v31  ;;  %v2177_v10 = vpop.f32.mrb[120].mxu0  ;;  %v5270_v18 = vpop.f32.mrb[120].mxu1 }
 0x218   : > { %v5050_v48 = vpack.c.bf16 %v3317_v34, %v3317_v34  ;;  %v3318_v46 = vmax.f32 %v3190_v45, 0.0  ;;  %v2715_v28 = vadd.f32 %v5270_v18, %v2169_v30  ;;  %v2179_v3 = vpop.f32.mrb[121].mxu0  ;;  %v2706_v44 = vpop.f32.mrb[121].mxu1  ;;  %v6805_v45 = vld [vmem:[%s7379_s3] ss:$0 sm:$0xff] }
 0x219   : > { %v5048_v54 = vpack.c.bf16 %v3315_v13, %v3315_v13  ;;  %v3316_v9 = vmax.f32 %v3188_v55, 0.0  ;;  %v2707_v60 = vadd.f32 %v2706_v44, %v6727_v58  ;;  %v2180_v39 = vpop.f32.mrb[122].mxu0  ;;  %v5271_v57 = vpop.f32.mrb[122].mxu1 }
 0x21a   : > { %3958 = vst.msk [vmem:[%s6450_s8 + $0xd8] sm:$0xf] %vm3903_vm3, %v5050_v48  ;;  %v5051_v50 = vpack.c.bf16 %v3318_v46, %v3318_v46  ;;  %v3058_v26 = vmul.f32 %v6410_v63, %v2715_v28  ;;  %v2718_v20 = vadd.f32 %v5271_v57, %v2172_v25  ;;  %v2182_v24 = vpop.f32.mrb[123].mxu0  ;;  %v2709_v61 = vpop.f32.mrb[123].mxu1 }
 0x21b   : > { %3956 = vst.msk [vmem:[%s6450_s8 + $0xd0] sm:$0xf] %vm3903_vm3, %v5048_v54  ;;  %v5049_v32 = vpack.c.bf16 %v3316_v9, %v3316_v9  ;;  %v3056_v62 = vmul.f32 %v6410_v63, %v2707_v60  ;;  %v2710_v5 = vadd.f32 %v2709_v61, %v6731_v8 }
 0x21c   : > { %3959 = vst.msk [vmem:[%s6450_s8 + $0xdc] sm:$0xf] %vm3903_vm3, %v5051_v50  ;;  %v3193_v58 = vadd.f32 %v6415_v12, %v3058_v26  ;;  %v3059_v30 = vmul.f32 %v6410_v63, %v2718_v20 }
 0x21d   : > { %3957 = vst.msk [vmem:[%s6450_s8 + $0xd4] sm:$0xf] %vm3903_vm3, %v5049_v32  ;;  %v3191_v4 = vadd.f32 %v6415_v12, %v3056_v62  ;;  %v3057_v52 = vmul.f32 %v6410_v63, %v2710_v5 }
 0x21e   : > { %v3321_v19 = vmax.f32 %v3193_v58, 0.0  ;;  %v3194_v37 = vadd.f32 %v6415_v12, %v3059_v30 }
 0x21f   : > { %v3319_v51 = vmax.f32 %v3191_v4, 0.0  ;;  %v3192_v2 = vadd.f32 %v6415_v12, %v3057_v52  ;;  %v2185_v8 = vpop.f32.mrb[124].mxu0  ;;  %v5274_v38 = vpop.f32.mrb[124].mxu1  ;;  %v6794_v12 = vld [vmem:[%s7378_s2] ss:$0 sm:$0xff] }
 0x220   : > { %v5054_v40 = vpack.c.bf16 %v3321_v19, %v3321_v19  ;;  %v3322_v56 = vmax.f32 %v3194_v37, 0.0  ;;  %v2731_v25 = vadd.f32 %v5274_v38, %v2185_v8  ;;  %v2187_v43 = vpop.f32.mrb[125].mxu0  ;;  %v2722_v27 = vpop.f32.mrb[125].mxu1 }
 0x221   : > { %v5052_v6 = vpack.c.bf16 %v3319_v51, %v3319_v51  ;;  %v3320_v16 = vmax.f32 %v3192_v2, 0.0  ;;  %v2723_v49 = vadd.f32 %v2722_v27, %v2177_v10  ;;  %v2188_v63 = vpop.f32.mrb[126].mxu0  ;;  %v5275_v14 = vpop.f32.mrb[126].mxu1 }
 0x222   : > { %3962 = vst.msk [vmem:[%s6450_s8 + $0xe8] sm:$0xf] %vm3903_vm3, %v5054_v40  ;;  %v5055_v42 = vpack.c.bf16 %v3322_v56, %v3322_v56  ;;  %v3062_v21 = vmul.f32 %v6794_v12, %v2731_v25  ;;  %v2734_v33 = vadd.f32 %v5275_v14, %v2188_v63  ;;  %v2190_v22 = vpop.f32.mrb[127].mxu0  ;;  %v2725_v0 = vpop.f32.mrb[127].mxu1 }
 0x223   : > { %3960 = vst.msk [vmem:[%s6450_s8 + $0xe0] sm:$0xf] %vm3903_vm3, %v5052_v6  ;;  %v5053_v36 = vpack.c.bf16 %v3320_v16, %v3320_v16  ;;  %v3060_v31 = vmul.f32 %v6794_v12, %v2723_v49  ;;  %v2726_v34 = vadd.f32 %v2725_v0, %v2180_v39 }
 0x224   : > { %3963 = vst.msk [vmem:[%s6450_s8 + $0xec] sm:$0xf] %vm3903_vm3, %v5055_v42  ;;  %v3197_v13 = vadd.f32 %v6805_v45, %v3062_v21  ;;  %v3063_v55 = vmul.f32 %v6794_v12, %v2734_v33 }
 0x225   : > { %3961 = vst.msk [vmem:[%s6450_s8 + $0xe4] sm:$0xf] %vm3903_vm3, %v5053_v36  ;;  %v3195_v10 = vadd.f32 %v6805_v45, %v3060_v31  ;;  %v3061_v18 = vmul.f32 %v6794_v12, %v2726_v34 }
 0x226   : > { %v3325_v48 = vmax.f32 %v3197_v13, 0.0  ;;  %v3198_v46 = vadd.f32 %v6805_v45, %v3063_v55 }
 0x227   : > { %v3323_v28 = vmax.f32 %v3195_v10, 0.0  ;;  %v3196_v3 = vadd.f32 %v6805_v45, %v3061_v18  ;;  %v2193_v44 = vpop.f32.mrb[128].mxu0  ;;  %v5278_v54 = vpop.f32.mrb[128].mxu1 }
 0x228   : > { %v5058_v9 = vpack.c.bf16 %v3325_v48, %v3325_v48  ;;  %v3326_v60 = vmax.f32 %v3198_v46, 0.0  ;;  %v2195_v39 = vpop.f32.mrb[129].mxu0  ;;  %v2738_v57 = vpop.f32.mrb[129].mxu1 }
 0x229   : > { %v5056_v50 = vpack.c.bf16 %v3323_v28, %v3323_v28  ;;  %v3324_v26 = vmax.f32 %v3196_v3, 0.0  ;;  %v2739_v20 = vadd.f32 %v2738_v57, %v2193_v44  ;;  %v2196_v24 = vpop.f32.mrb[130].mxu0  ;;  %v5279_v61 = vpop.f32.mrb[130].mxu1 }
 0x22a   : > { %3966 = vst.msk [vmem:[%s6450_s8 + $0xf8] sm:$0xf] %vm3903_vm3, %v5058_v9  ;;  %v5059_v32 = vpack.c.bf16 %v3326_v60, %v3326_v60  ;;  %v2198_v62 = vpop.f32.mrb[131].mxu0  ;;  %v2741_v5 = vpop.f32.mrb[131].mxu1 }
 0x22b   : > { %3964 = vst.msk [vmem:[%s6450_s8 + $0xf0] sm:$0xf] %vm3903_vm3, %v5056_v50  ;;  %v5057_v58 = vpack.c.bf16 %v3324_v26, %v3324_v26  ;;  %v3064_v30 = vmul.f32 %v6794_v12, %v2739_v20  ;;  %v2742_v4 = vadd.f32 %v2741_v5, %v2196_v24 }
 0x22c   : > { %3967 = vst.msk [vmem:[%s6450_s8 + $0xfc] sm:$0xf] %vm3903_vm3, %v5059_v32 }
 0x22d   : > { %3965 = vst.msk [vmem:[%s6450_s8 + $0xf4] sm:$0xf] %vm3903_vm3, %v5057_v58  ;;  %v3199_v52 = vadd.f32 %v6805_v45, %v3064_v30  ;;  %v3065_v19 = vmul.f32 %v6794_v12, %v2742_v4 }
 0x22f   : > { %v3327_v37 = vmax.f32 %v3199_v52, 0.0  ;;  %v3200_v51 = vadd.f32 %v6805_v45, %v3065_v19  ;;  %v2201_v2 = vpop.f32.mrb[132].mxu0  ;;  %v5282_v8 = vpop.f32.mrb[132].mxu1 }
 0x230   : > { %v2747_v38 = vadd.f32 %v5278_v54, %v2201_v2  ;;  %v2203_v40 = vpop.f32.mrb[133].mxu0  ;;  %v2754_v56 = vpop.f32.mrb[133].mxu1 }
 0x231   : > { %v5060_v25 = vpack.c.bf16 %v3327_v37, %v3327_v37  ;;  %v3328_v43 = vmax.f32 %v3200_v51, 0.0  ;;  %v2204_v27 = vpop.f32.mrb[134].mxu0  ;;  %v5283_v6 = vpop.f32.mrb[134].mxu1 }
 0x232   : > { %v3066_v16 = vmul.f32 %v6794_v12, %v2747_v38  ;;  %v2750_v49 = vadd.f32 %v5279_v61, %v2204_v27  ;;  %v2206_v63 = vpop.f32.mrb[135].mxu0  ;;  %v2757_v14 = vpop.f32.mrb[135].mxu1 }
 0x233   : > { %3968 = vst.msk [vmem:[%s6450_s8 + $0x100] sm:$0xf] %vm3903_vm3, %v5060_v25  ;;  %v5061_v42 = vpack.c.bf16 %v3328_v43, %v3328_v43 }
 0x234   : > { %v3201_v21 = vadd.f32 %v6805_v45, %v3066_v16  ;;  %v3067_v33 = vmul.f32 %v6794_v12, %v2750_v49 }
 0x235   : > { %3969 = vst.msk [vmem:[%s6450_s8 + $0x104] sm:$0xf] %vm3903_vm3, %v5061_v42 }
 0x236   : > { %v3329_v22 = vmax.f32 %v3201_v21, 0.0  ;;  %v3202_v0 = vadd.f32 %v6805_v45, %v3067_v33 }
 0x237   : > { %v2209_v36 = vpop.f32.mrb[136].mxu0  ;;  %v6835_v31 = vpop.f32.mrb[136].mxu1 }
 0x238   : > { %v5062_v34 = vpack.c.bf16 %v3329_v22, %v3329_v22  ;;  %v3330_v13 = vmax.f32 %v3202_v0, 0.0  ;;  %v2755_v55 = vadd.f32 %v2754_v56, %v2209_v36  ;;  %v2211_v10 = vpop.f32.mrb[137].mxu0  ;;  %v2770_v18 = vpop.f32.mrb[137].mxu1 }
 0x239   : > { %v2212_v48 = vpop.f32.mrb[138].mxu0  ;;  %v6837_v46 = vpop.f32.mrb[138].mxu1 }
 0x23a   : > { %3970 = vst.msk [vmem:[%s6450_s8 + $0x108] sm:$0xf] %vm3903_vm3, %v5062_v34  ;;  %v5063_v28 = vpack.c.bf16 %v3330_v13, %v3330_v13  ;;  %v3068_v3 = vmul.f32 %v6794_v12, %v2755_v55  ;;  %v2758_v44 = vadd.f32 %v2757_v14, %v2212_v48  ;;  %v2214_v54 = vpop.f32.mrb[139].mxu0  ;;  %v2773_v9 = vpop.f32.mrb[139].mxu1 }
 0x23c   : > { %3971 = vst.msk [vmem:[%s6450_s8 + $0x10c] sm:$0xf] %vm3903_vm3, %v5063_v28  ;;  %v3203_v60 = vadd.f32 %v6805_v45, %v3068_v3  ;;  %v3069_v39 = vmul.f32 %v6794_v12, %v2758_v44 }
 0x23e   : > { %v3331_v57 = vmax.f32 %v3203_v60, 0.0  ;;  %v3204_v50 = vadd.f32 %v6805_v45, %v3069_v39 }
 0x23f   : > { %v2217_v26 = vpop.f32.mrb[140].mxu0  ;;  %v6847_v20 = vpop.f32.mrb[140].mxu1 }
 0x240   : > { %v5064_v24 = vpack.c.bf16 %v3331_v57, %v3331_v57  ;;  %v3332_v61 = vmax.f32 %v3204_v50, 0.0  ;;  %v2763_v32 = vadd.f32 %v5282_v8, %v2217_v26  ;;  %v2219_v62 = vpop.f32.mrb[141].mxu0  ;;  %v2786_v5 = vpop.f32.mrb[141].mxu1 }
 0x241   : > { %v2220_v58 = vpop.f32.mrb[142].mxu0  ;;  %v6849_v30 = vpop.f32.mrb[142].mxu1 }
 0x242   : > { %3972 = vst.msk [vmem:[%s6450_s8 + $0x110] sm:$0xf] %vm3903_vm3, %v5064_v24  ;;  %v5065_v4 = vpack.c.bf16 %v3332_v61, %v3332_v61  ;;  %v3070_v52 = vmul.f32 %v6794_v12, %v2763_v32  ;;  %v2766_v19 = vadd.f32 %v5283_v6, %v2220_v58  ;;  %v2222_v37 = vpop.f32.mrb[143].mxu0  ;;  %v2789_v51 = vpop.f32.mrb[143].mxu1 }
 0x244   : > { %3973 = vst.msk [vmem:[%s6450_s8 + $0x114] sm:$0xf] %vm3903_vm3, %v5065_v4  ;;  %v3205_v2 = vadd.f32 %v6805_v45, %v3070_v52  ;;  %v3071_v8 = vmul.f32 %v6794_v12, %v2766_v19 }
 0x246   : > { %v3333_v38 = vmax.f32 %v3205_v2, 0.0  ;;  %v3206_v40 = vadd.f32 %v6805_v45, %v3071_v8 }
 0x247   : > { %v2225_v56 = vpop.f32.mrb[144].mxu0  ;;  %v6859_v25 = vpop.f32.mrb[144].mxu1 }
 0x248   : > { %v5066_v43 = vpack.c.bf16 %v3333_v38, %v3333_v38  ;;  %v3334_v27 = vmax.f32 %v3206_v40, 0.0  ;;  %v2771_v16 = vadd.f32 %v2770_v18, %v2225_v56  ;;  %v2227_v6 = vpop.f32.mrb[145].mxu0  ;;  %v6861_v49 = vpop.f32.mrb[145].mxu1 }
 0x249   : > { %v2228_v63 = vpop.f32.mrb[146].mxu0  ;;  %v6863_v14 = vpop.f32.mrb[146].mxu1 }
 0x24a   : > { %3974 = vst.msk [vmem:[%s6450_s8 + $0x118] sm:$0xf] %vm3903_vm3, %v5066_v43  ;;  %v5067_v42 = vpack.c.bf16 %v3334_v27, %v3334_v27  ;;  %v3072_v21 = vmul.f32 %v6794_v12, %v2771_v16  ;;  %v2774_v33 = vadd.f32 %v2773_v9, %v2228_v63  ;;  %v2230_v22 = vpop.f32.mrb[147].mxu0  ;;  %v6868_v0 = vpop.f32.mrb[147].mxu1 }
 0x24c   : > { %3975 = vst.msk [vmem:[%s6450_s8 + $0x11c] sm:$0xf] %vm3903_vm3, %v5067_v42  ;;  %v3207_v36 = vadd.f32 %v6805_v45, %v3072_v21  ;;  %v3073_v34 = vmul.f32 %v6794_v12, %v2774_v33 }
 0x24e   : > { %v3335_v13 = vmax.f32 %v3207_v36, 0.0  ;;  %v3208_v55 = vadd.f32 %v6805_v45, %v3073_v34 }
 0x24f   : > { %v2233_v10 = vpop.f32.mrb[148].mxu0  ;;  %v6875_v18 = vpop.f32.mrb[148].mxu1 }
 0x250   : > { %v5068_v48 = vpack.c.bf16 %v3335_v13, %v3335_v13  ;;  %v3336_v28 = vmax.f32 %v3208_v55, 0.0  ;;  %v2779_v3 = vadd.f32 %v6835_v31, %v2233_v10  ;;  %v2235_v44 = vpop.f32.mrb[149].mxu0  ;;  %v6878_v54 = vpop.f32.mrb[149].mxu1 }
 0x251   : > { %v2236_v9 = vpop.f32.mrb[150].mxu0  ;;  %v6880_v60 = vpop.f32.mrb[150].mxu1 }
 0x252   : > { %3976 = vst.msk [vmem:[%s6450_s8 + $0x120] sm:$0xf] %vm3903_vm3, %v5068_v48  ;;  %v5069_v39 = vpack.c.bf16 %v3336_v28, %v3336_v28  ;;  %v3074_v57 = vmul.f32 %v6794_v12, %v2779_v3  ;;  %v2782_v50 = vadd.f32 %v6837_v46, %v2236_v9  ;;  %v2238_v26 = vpop.f32.mrb[151].mxu0  ;;  %v6886_v24 = vpop.f32.mrb[151].mxu1 }
 0x254   : > { %3977 = vst.msk [vmem:[%s6450_s8 + $0x124] sm:$0xf] %vm3903_vm3, %v5069_v39  ;;  %v3209_v31 = vadd.f32 %v6805_v45, %v3074_v57  ;;  %v3075_v61 = vmul.f32 %v6794_v12, %v2782_v50 }
 0x256   : > { %v3337_v32 = vmax.f32 %v3209_v31, 0.0  ;;  %v3210_v62 = vadd.f32 %v6805_v45, %v3075_v61 }
 0x257   : > { %v2241_v58 = vpop.f32.mrb[152].mxu0  ;;  %v6893_v4 = vpop.f32.mrb[152].mxu1 }
 0x258   : > { %v5070_v52 = vpack.c.bf16 %v3337_v32, %v3337_v32  ;;  %v3338_v19 = vmax.f32 %v3210_v62, 0.0  ;;  %v2787_v46 = vadd.f32 %v2786_v5, %v2241_v58  ;;  %v2243_v37 = vpop.f32.mrb[153].mxu0  ;;  %v6895_v2 = vpop.f32.mrb[153].mxu1 }
 0x259   : > { %v2244_v8 = vpop.f32.mrb[154].mxu0  ;;  %v6897_v38 = vpop.f32.mrb[154].mxu1 }
 0x25a   : > { %3978 = vst.msk [vmem:[%s6450_s8 + $0x128] sm:$0xf] %vm3903_vm3, %v5070_v52  ;;  %v5071_v40 = vpack.c.bf16 %v3338_v19, %v3338_v19  ;;  %v3076_v56 = vmul.f32 %v6794_v12, %v2787_v46  ;;  %v2790_v43 = vadd.f32 %v2789_v51, %v2244_v8  ;;  %v2246_v27 = vpop.f32.mrb[155].mxu0  ;;  %v6902_v16 = vpop.f32.mrb[155].mxu1 }
 0x25c   : > { %3979 = vst.msk [vmem:[%s6450_s8 + $0x12c] sm:$0xf] %vm3903_vm3, %v5071_v40  ;;  %v3211_v5 = vadd.f32 %v6805_v45, %v3076_v56  ;;  %v3077_v6 = vmul.f32 %v6794_v12, %v2790_v43 }
 0x25e   : > { %v3339_v63 = vmax.f32 %v3211_v5, 0.0  ;;  %v3212_v42 = vadd.f32 %v6805_v45, %v3077_v6 }
 0x25f   : > { %v2249_v21 = vpop.f32.mrb[156].mxu0  ;;  %v6909_v33 = vpop.f32.mrb[156].mxu1 }
 0x260   : > { %v5072_v22 = vpack.c.bf16 %v3339_v63, %v3339_v63  ;;  %v3340_v36 = vmax.f32 %v3212_v42, 0.0  ;;  %v2795_v51 = vadd.f32 %v6847_v20, %v2249_v21  ;;  %v2251_v34 = vpop.f32.mrb[157].mxu0  ;;  %v6912_v13 = vpop.f32.mrb[157].mxu1 }
 0x261   : > { %v2252_v55 = vpop.f32.mrb[158].mxu0  ;;  %v6914_v10 = vpop.f32.mrb[158].mxu1 }
 0x262   : > { %3980 = vst.msk [vmem:[%s6450_s8 + $0x130] sm:$0xf] %vm3903_vm3, %v5072_v22  ;;  %v5073_v48 = vpack.c.bf16 %v3340_v36, %v3340_v36  ;;  %v3078_v28 = vmul.f32 %v6794_v12, %v2795_v51  ;;  %v2798_v3 = vadd.f32 %v6849_v30, %v2252_v55  ;;  %v2254_v44 = vpop.f32.mrb[159].mxu0  ;;  %v6920_v9 = vpop.f32.mrb[159].mxu1 }
 0x264   : > { %3981 = vst.msk [vmem:[%s6450_s8 + $0x134] sm:$0xf] %vm3903_vm3, %v5073_v48  ;;  %v3213_v20 = vadd.f32 %v6805_v45, %v3078_v28  ;;  %v3079_v39 = vmul.f32 %v6794_v12, %v2798_v3 }
 0x266   : > { %v3341_v57 = vmax.f32 %v3213_v20, 0.0  ;;  %v3214_v50 = vadd.f32 %v6805_v45, %v3079_v39 }
 0x267   : > { %v2257_v26 = vpop.f32.mrb[160].mxu0  ;;  %v5310_v31 = vpop.f32.mrb[160].mxu1 }
 0x268   : > { %v5074_v61 = vpack.c.bf16 %v3341_v57, %v3341_v57  ;;  %v3342_v32 = vmax.f32 %v3214_v50, 0.0  ;;  %v2803_v62 = vadd.f32 %v6861_v49, %v2257_v26  ;;  %v2875_v30 = vadd.f32 %v5310_v31, %v6196_v23  ;;  %v2259_v58 = vpop.f32.mrb[161].mxu0  ;;  %v2866_v52 = vpop.f32.mrb[161].mxu1 }
 0x269   : > { %v2867_v19 = vadd.f32 %v2866_v52, %v6182_v11  ;;  %v2260_v46 = vpop.f32.mrb[162].mxu0  ;;  %v5311_v37 = vpop.f32.mrb[162].mxu1 }
 0x26a   : > { %3982 = vst.msk [vmem:[%s6450_s8 + $0x138] sm:$0xf] %vm3903_vm3, %v5074_v61  ;;  %v5075_v8 = vpack.c.bf16 %v3342_v32, %v3342_v32  ;;  %v3080_v40 = vmul.f32 %v6794_v12, %v2803_v62  ;;  %v3098_v56 = vmul.f32 %v6794_v12, %v2875_v30  ;;  %v2806_v43 = vadd.f32 %v6868_v0, %v2260_v46  ;;  %v2262_v27 = vpop.f32.mrb[163].mxu0  ;;  %v2869_v49 = vpop.f32.mrb[163].mxu1 }
 0x26b   : > { %v3096_v23 = vmul.f32 %v6794_v12, %v2867_v19  ;;  %v2878_v5 = vadd.f32 %v5311_v37, %v6202_v29  ;;  %v2870_v6 = vadd.f32 %v2869_v49, %v6188_v17 }
 0x26c   : > { %3983 = vst.msk [vmem:[%s6450_s8 + $0x13c] sm:$0xf] %vm3903_vm3, %v5075_v8  ;;  %v3215_v11 = vadd.f32 %v6805_v45, %v3080_v40  ;;  %v3233_v63 = vadd.f32 %v6805_v45, %v3098_v56  ;;  %v3081_v42 = vmul.f32 %v6794_v12, %v2806_v43 }
 0x26d   : > { %v3231_v21 = vadd.f32 %v6805_v45, %v3096_v23  ;;  %v3099_v0 = vmul.f32 %v6794_v12, %v2878_v5  ;;  %v3097_v22 = vmul.f32 %v6794_v12, %v2870_v6 }
 0x26e   : > { %v3343_v36 = vmax.f32 %v3215_v11, 0.0  ;;  %v3361_v51 = vmax.f32 %v3233_v63, 0.0  ;;  %v3216_v29 = vadd.f32 %v6805_v45, %v3081_v42 }
 0x26f   : > { %v3359_v34 = vmax.f32 %v3231_v21, 0.0  ;;  %v3234_v17 = vadd.f32 %v6805_v45, %v3099_v0  ;;  %v3232_v55 = vadd.f32 %v6805_v45, %v3097_v22  ;;  %v2265_v48 = vpop.f32.mrb[164].mxu0  ;;  %v5314_v28 = vpop.f32.mrb[164].mxu1 }
 0x270   : > { %v5076_v3 = vpack.c.bf16 %v3343_v36, %v3343_v36  ;;  %v5094_v44 = vpack.c.bf16 %v3361_v51, %v3361_v51  ;;  %v3344_v20 = vmax.f32 %v3216_v29, 0.0  ;;  %v2811_v39 = vadd.f32 %v6859_v25, %v2265_v48  ;;  %v2267_v57 = vpop.f32.mrb[165].mxu0  ;;  %v2882_v50 = vpop.f32.mrb[165].mxu1 }
 0x271   : > { %v5092_v26 = vpack.c.bf16 %v3359_v34, %v3359_v34  ;;  %v3362_v31 = vmax.f32 %v3234_v17, 0.0  ;;  %v3360_v61 = vmax.f32 %v3232_v55, 0.0  ;;  %v2891_v32 = vadd.f32 %v5314_v28, %v6224_v47  ;;  %v2268_v62 = vpop.f32.mrb[166].mxu0  ;;  %v5315_v30 = vpop.f32.mrb[166].mxu1 }
 0x272   : > { %3984 = vst.msk [vmem:[%s6450_s8 + $0x140] sm:$0xf] %vm3903_vm3, %v5076_v3  ;;  %4002 = vst.msk [vmem:[%s6450_s8 + $0x188] sm:$0xf] %vm3903_vm3, %v5094_v44  ;;  %v5077_v58 = vpack.c.bf16 %v3344_v20, %v3344_v20  ;;  %v3082_v52 = vmul.f32 %v6794_v12, %v2811_v39  ;;  %v2883_v25 = vadd.f32 %v2882_v50, %v6210_v35  ;;  %v2270_v46 = vpop.f32.mrb[167].mxu0  ;;  %v2885_v37 = vpop.f32.mrb[167].mxu1 }
 0x273   : > { %v2814_v19 = vadd.f32 %v6863_v14, %v2268_v62  ;;  %4000 = vst.msk [vmem:[%s6450_s8 + $0x180] sm:$0xf] %vm3903_vm3, %v5092_v26  ;;  %v5095_v47 = vpack.c.bf16 %v3362_v31, %v3362_v31  ;;  %v5093_v8 = vpack.c.bf16 %v3360_v61, %v3360_v61  ;;  %v3102_v40 = vmul.f32 %v6794_v12, %v2891_v32 }
 0x274   : > { %v2894_v56 = vadd.f32 %v5315_v30, %v6230_v53  ;;  %3985 = vst.msk [vmem:[%s6450_s8 + $0x144] sm:$0xf] %vm3903_vm3, %v5077_v58  ;;  %v3217_v43 = vadd.f32 %v6805_v45, %v3082_v52  ;;  %v3100_v27 = vmul.f32 %v6794_v12, %v2883_v25  ;;  %v2886_v14 = vadd.f32 %v2885_v37, %v6216_v41 }
 0x275   : > { %v3083_v35 = vmul.f32 %v6794_v12, %v2814_v19  ;;  %4003 = vst.msk [vmem:[%s6450_s8 + $0x18c] sm:$0xf] %vm3903_vm3, %v5095_v47  ;;  %4001 = vst.msk [vmem:[%s6450_s8 + $0x184] sm:$0xf] %vm3903_vm3, %v5093_v8  ;;  %v3237_v49 = vadd.f32 %v6805_v45, %v3102_v40 }
 0x276   : > { %v3103_v23 = vmul.f32 %v6794_v12, %v2894_v56  ;;  %v3345_v5 = vmax.f32 %v3217_v43, 0.0  ;;  %v3235_v53 = vadd.f32 %v6805_v45, %v3100_v27  ;;  %v3101_v11 = vmul.f32 %v6794_v12, %v2886_v14 }
 0x277   : > { %v3218_v6 = vadd.f32 %v6805_v45, %v3083_v35  ;;  %v3365_v63 = vmax.f32 %v3237_v49, 0.0  ;;  %v2273_v41 = vpop.f32.mrb[168].mxu0  ;;  %v5318_v21 = vpop.f32.mrb[168].mxu1 }
 0x278   : > { %v3238_v42 = vadd.f32 %v6805_v45, %v3103_v23  ;;  %v5078_v0 = vpack.c.bf16 %v3345_v5, %v3345_v5  ;;  %v3363_v22 = vmax.f32 %v3235_v53, 0.0  ;;  %v3236_v51 = vadd.f32 %v6805_v45, %v3101_v11  ;;  %v2275_v29 = vpop.f32.mrb[169].mxu0  ;;  %v2898_v34 = vpop.f32.mrb[169].mxu1 }
 0x279   : > { %v3346_v36 = vmax.f32 %v3218_v6, 0.0  ;;  %v5098_v17 = vpack.c.bf16 %v3365_v63, %v3365_v63  ;;  %v2819_v48 = vadd.f32 %v6878_v54, %v2273_v41  ;;  %v2907_v28 = vadd.f32 %v5318_v21, %v6252_v7  ;;  %v2276_v3 = vpop.f32.mrb[170].mxu0  ;;  %v5319_v44 = vpop.f32.mrb[170].mxu1  ;;  %v7402_v6 = vld [vmem:[#allocation5_spill] sm:$0xff] }
 0x27a   : > { %v3366_v55 = vmax.f32 %v3238_v42, 0.0  ;;  %3986 = vst.msk [vmem:[%s6450_s8 + $0x148] sm:$0xf] %vm3903_vm3, %v5078_v0  ;;  %v5096_v20 = vpack.c.bf16 %v3363_v22, %v3363_v22  ;;  %v3364_v57 = vmax.f32 %v3236_v51, 0.0  ;;  %v2899_v50 = vadd.f32 %v2898_v34, %v6238_v59  ;;  %v2278_v26 = vpop.f32.mrb[171].mxu0  ;;  %v2901_v31 = vpop.f32.mrb[171].mxu1 }
 0x27b   : > { %v5079_v39 = vpack.c.bf16 %v3346_v36, %v3346_v36  ;;  %4006 = vst.msk [vmem:[%s6450_s8 + $0x198] sm:$0xf] %vm3903_vm3, %v5098_v17  ;;  %v3084_v61 = vmul.f32 %v6794_v12, %v2819_v48  ;;  %v3106_v7 = vmul.f32 %v6794_v12, %v2907_v28  ;;  %v2822_v32 = vadd.f32 %v6886_v24, %v2276_v3  ;;  %v7403_v34 = vld [vmem:[#allocation3_spill] sm:$0xff]  ;;  %v7405_v26 = vld [vmem:[#allocation4_spill] sm:$0xff] }
 0x27c   : > { %v5099_v54 = vpack.c.bf16 %v3366_v55, %v3366_v55  ;;  %4004 = vst.msk [vmem:[%s6450_s8 + $0x190] sm:$0xf] %vm3903_vm3, %v5096_v20  ;;  %v5097_v62 = vpack.c.bf16 %v3364_v57, %v3364_v57  ;;  %v3104_v30 = vmul.f32 %v6794_v12, %v2899_v50  ;;  %v2910_v59 = vadd.f32 %v5319_v44, %v6258_v15  ;;  %v7404_v44 = vld [vmem:[#allocation6_spill] sm:$0xff] }
 0x27d   : > { %3987 = vst.msk [vmem:[%s6450_s8 + $0x14c] sm:$0xf] %vm3903_vm3, %v5079_v39  ;;  %v2902_v58 = vadd.f32 %v2901_v31, %v6244_v1  ;;  %v3219_v52 = vadd.f32 %v6805_v45, %v3084_v61  ;;  %v3241_v25 = vadd.f32 %v6805_v45, %v3106_v7  ;;  %v3085_v19 = vmul.f32 %v6794_v12, %v2822_v32 }
 0x27e   : > { %4007 = vst.msk [vmem:[%s6450_s8 + $0x19c] sm:$0xf] %vm3903_vm3, %v5099_v54  ;;  %4005 = vst.msk [vmem:[%s6450_s8 + $0x194] sm:$0xf] %vm3903_vm3, %v5097_v62  ;;  %v3239_v24 = vadd.f32 %v6805_v45, %v3104_v30  ;;  %v3107_v46 = vmul.f32 %v6794_v12, %v2910_v59 }
 0x27f   : > { %v3105_v37 = vmul.f32 %v6794_v12, %v2902_v58  ;;  %v3347_v47 = vmax.f32 %v3219_v52, 0.0  ;;  %v3369_v15 = vmax.f32 %v3241_v25, 0.0  ;;  %v3220_v1 = vadd.f32 %v6805_v45, %v3085_v19  ;;  %v2281_v8 = vpop.f32.mrb[172].mxu0  ;;  %v5322_v40 = vpop.f32.mrb[172].mxu1  ;;  %v7406_v19 = vld [vmem:[#allocation9_spill] sm:$0xff] }
 0x280   : > { %v3367_v56 = vmax.f32 %v3239_v24, 0.0  ;;  %v3242_v43 = vadd.f32 %v6805_v45, %v3107_v46  ;;  %v2827_v35 = vadd.f32 %v6875_v18, %v2281_v8  ;;  %v2283_v14 = vpop.f32.mrb[173].mxu0  ;;  %v2914_v49 = vpop.f32.mrb[173].mxu1  ;;  %v2923_v11 = vadd.f32 %v5322_v40, %v7402_v6 }
 0x281   : > { %v3240_v27 = vadd.f32 %v6805_v45, %v3105_v37  ;;  %v5080_v23 = vpack.c.bf16 %v3347_v47, %v3347_v47  ;;  %v5102_v5 = vpack.c.bf16 %v3369_v15, %v3369_v15  ;;  %v3348_v53 = vmax.f32 %v3220_v1, 0.0  ;;  %v2284_v63 = vpop.f32.mrb[174].mxu0  ;;  %v5323_v42 = vpop.f32.mrb[174].mxu1 }
 0x282   : > { %v5100_v41 = vpack.c.bf16 %v3367_v56, %v3367_v56  ;;  %v3370_v21 = vmax.f32 %v3242_v43, 0.0  ;;  %v3086_v22 = vmul.f32 %v6794_v12, %v2827_v35  ;;  %v2286_v36 = vpop.f32.mrb[175].mxu0  ;;  %v2917_v51 = vpop.f32.mrb[175].mxu1  ;;  %v3110_v29 = vmul.f32 %v6794_v12, %v2923_v11  ;;  %v7407_v35 = vld [vmem:[#allocation7_spill] sm:$0xff] }
 0x283   : > { %v3368_v0 = vmax.f32 %v3240_v27, 0.0  ;;  %3988 = vst.msk [vmem:[%s6450_s8 + $0x150] sm:$0xf] %vm3903_vm3, %v5080_v23  ;;  %4010 = vst.msk [vmem:[%s6450_s8 + $0x1a8] sm:$0xf] %vm3903_vm3, %v5102_v5  ;;  %v5081_v18 = vpack.c.bf16 %v3348_v53, %v3348_v53  ;;  %v2915_v17 = vadd.f32 %v2914_v49, %v7403_v34  ;;  %v2830_v55 = vadd.f32 %v6880_v60, %v2284_v63  ;;  %v7408_v36 = vld [vmem:[#allocation10_spill] sm:$0xff] }
 0x284   : > { %4008 = vst.msk [vmem:[%s6450_s8 + $0x1a0] sm:$0xf] %vm3903_vm3, %v5100_v41  ;;  %v5103_v48 = vpack.c.bf16 %v3370_v21, %v3370_v21  ;;  %v3221_v3 = vadd.f32 %v6805_v45, %v3086_v22  ;;  %v2926_v20 = vadd.f32 %v5323_v42, %v7404_v44  ;;  %v3245_v39 = vadd.f32 %v6805_v45, %v3110_v29 }
 0x285   : > { %v5101_v28 = vpack.c.bf16 %v3368_v0, %v3368_v0  ;;  %3989 = vst.msk [vmem:[%s6450_s8 + $0x154] sm:$0xf] %vm3903_vm3, %v5081_v18  ;;  %v3108_v57 = vmul.f32 %v6794_v12, %v2915_v17  ;;  %v3087_v50 = vmul.f32 %v6794_v12, %v2830_v55  ;;  %v2918_v31 = vadd.f32 %v2917_v51, %v7405_v26  ;;  %v7409_v18 = vld [vmem:[#allocation8_spill] sm:$0xff] }
 0x286   : > { %4011 = vst.msk [vmem:[%s6450_s8 + $0x1ac] sm:$0xf] %vm3903_vm3, %v5103_v48  ;;  %v3349_v60 = vmax.f32 %v3221_v3, 0.0  ;;  %v3111_v54 = vmul.f32 %v6794_v12, %v2926_v20  ;;  %v3373_v61 = vmax.f32 %v3245_v39, 0.0 }
 0x287   : > { %4009 = vst.msk [vmem:[%s6450_s8 + $0x1a4] sm:$0xf] %vm3903_vm3, %v5101_v28  ;;  %v3243_v7 = vadd.f32 %v6805_v45, %v3108_v57  ;;  %v3222_v32 = vadd.f32 %v6805_v45, %v3087_v50  ;;  %v3109_v62 = vmul.f32 %v6794_v12, %v2918_v31  ;;  %v2289_v30 = vpop.f32.mrb[176].mxu0  ;;  %v5326_v59 = vpop.f32.mrb[176].mxu1 }
 0x288   : > { %v5082_v58 = vpack.c.bf16 %v3349_v60, %v3349_v60  ;;  %v3246_v52 = vadd.f32 %v6805_v45, %v3111_v54  ;;  %v2835_v25 = vadd.f32 %v6895_v2, %v2289_v30  ;;  %v2939_v24 = vadd.f32 %v5326_v59, %v7406_v19  ;;  %v2291_v46 = vpop.f32.mrb[177].mxu0  ;;  %v2930_v37 = vpop.f32.mrb[177].mxu1 }
 0x289   : > { %v5106_v47 = vpack.c.bf16 %v3373_v61, %v3373_v61  ;;  %v3371_v15 = vmax.f32 %v3243_v7, 0.0  ;;  %v3350_v1 = vmax.f32 %v3222_v32, 0.0  ;;  %v3244_v8 = vadd.f32 %v6805_v45, %v3109_v62  ;;  %v2292_v40 = vpop.f32.mrb[178].mxu0  ;;  %v5327_v56 = vpop.f32.mrb[178].mxu1  ;;  %v7410_v7 = vld [vmem:[#allocation13_spill] sm:$0xff] }
 0x28a   : > { %3990 = vst.msk [vmem:[%s6450_s8 + $0x158] sm:$0xf] %vm3903_vm3, %v5082_v58  ;;  %v3374_v43 = vmax.f32 %v3246_v52, 0.0  ;;  %v3088_v27 = vmul.f32 %v6794_v12, %v2835_v25  ;;  %v3114_v2 = vmul.f32 %v6794_v12, %v2939_v24  ;;  %v2931_v14 = vadd.f32 %v2930_v37, %v7407_v35  ;;  %v2294_v49 = vpop.f32.mrb[179].mxu0  ;;  %v2933_v23 = vpop.f32.mrb[179].mxu1  ;;  %v7411_v58 = vld [vmem:[#allocation11_spill] sm:$0xff] }
 0x28b   : > { %4014 = vst.msk [vmem:[%s6450_s8 + $0x1b8] sm:$0xf] %vm3903_vm3, %v5106_v47  ;;  %v5104_v5 = vpack.c.bf16 %v3371_v15, %v3371_v15  ;;  %v5083_v53 = vpack.c.bf16 %v3350_v1, %v3350_v1  ;;  %v3372_v6 = vmax.f32 %v3244_v8, 0.0  ;;  %v2838_v11 = vadd.f32 %v6902_v16, %v2292_v40  ;;  %v7413_v35 = vld [vmem:[#allocation12_spill] sm:$0xff] }
 0x28c   : > { %v5107_v63 = vpack.c.bf16 %v3374_v43, %v3374_v43  ;;  %v3223_v42 = vadd.f32 %v6805_v45, %v3088_v27  ;;  %v3249_v41 = vadd.f32 %v6805_v45, %v3114_v2  ;;  %v3112_v21 = vmul.f32 %v6794_v12, %v2931_v14 }
 0x28d   : > { %4012 = vst.msk [vmem:[%s6450_s8 + $0x1b0] sm:$0xf] %vm3903_vm3, %v5104_v5  ;;  %3991 = vst.msk [vmem:[%s6450_s8 + $0x15c] sm:$0xf] %vm3903_vm3, %v5083_v53  ;;  %v5105_v0 = vpack.c.bf16 %v3372_v6, %v3372_v6  ;;  %v3089_v22 = vmul.f32 %v6794_v12, %v2838_v11  ;;  %v2942_v51 = vadd.f32 %v5327_v56, %v7408_v36  ;;  %v7412_v56 = vld [vmem:[#allocation14_spill] sm:$0xff] }
 0x28e   : > { %v2934_v29 = vadd.f32 %v2933_v23, %v7409_v18  ;;  %4015 = vst.msk [vmem:[%s6450_s8 + $0x1bc] sm:$0xf] %vm3903_vm3, %v5107_v63  ;;  %v3351_v16 = vmax.f32 %v3223_v42, 0.0  ;;  %v3377_v34 = vmax.f32 %v3249_v41, 0.0  ;;  %v3247_v17 = vadd.f32 %v6805_v45, %v3112_v21 }
 0x28f   : > { %4013 = vst.msk [vmem:[%s6450_s8 + $0x1b4] sm:$0xf] %vm3903_vm3, %v5105_v0  ;;  %v3224_v55 = vadd.f32 %v6805_v45, %v3089_v22  ;;  %v3115_v48 = vmul.f32 %v6794_v12, %v2942_v51  ;;  %v2297_v3 = vpop.f32.mrb[180].mxu0  ;;  %v5330_v44 = vpop.f32.mrb[180].mxu1 }
 0x290   : > { %v3113_v28 = vmul.f32 %v6794_v12, %v2934_v29  ;;  %v5084_v20 = vpack.c.bf16 %v3351_v16, %v3351_v16  ;;  %v5110_v39 = vpack.c.bf16 %v3377_v34, %v3377_v34  ;;  %v3375_v57 = vmax.f32 %v3247_v17, 0.0  ;;  %v2299_v26 = vpop.f32.mrb[181].mxu0  ;;  %v2946_v31 = vpop.f32.mrb[181].mxu1  ;;  %v7414_v34 = vld [vmem:[#allocation17_spill] sm:$0xff] }
 0x291   : > { %v2843_v50 = vadd.f32 %v6893_v4, %v2297_v3  ;;  %v3352_v60 = vmax.f32 %v3224_v55, 0.0  ;;  %v3250_v54 = vadd.f32 %v6805_v45, %v3115_v48  ;;  %v2955_v32 = vadd.f32 %v5330_v44, %v7410_v7  ;;  %v2300_v62 = vpop.f32.mrb[182].mxu0  ;;  %v5331_v30 = vpop.f32.mrb[182].mxu1  ;;  %v7416_v7 = vld [vmem:[#allocation18_spill] sm:$0xff] }
 0x292   : > { %v3248_v61 = vadd.f32 %v6805_v45, %v3113_v28  ;;  %3992 = vst.msk [vmem:[%s6450_s8 + $0x160] sm:$0xf] %vm3903_vm3, %v5084_v20  ;;  %4018 = vst.msk [vmem:[%s6450_s8 + $0x1c8] sm:$0xf] %vm3903_vm3, %v5110_v39  ;;  %v5108_v59 = vpack.c.bf16 %v3375_v57, %v3375_v57  ;;  %v2947_v52 = vadd.f32 %v2946_v31, %v7411_v58  ;;  %v2302_v19 = vpop.f32.mrb[183].mxu0  ;;  %v2949_v24 = vpop.f32.mrb[183].mxu1 }
 0x293   : > { %v3090_v4 = vmul.f32 %v6794_v12, %v2843_v50  ;;  %v2846_v25 = vadd.f32 %v6897_v38, %v2300_v62  ;;  %v5085_v46 = vpack.c.bf16 %v3352_v60, %v3352_v60  ;;  %v3378_v37 = vmax.f32 %v3250_v54, 0.0  ;;  %v7415_v20 = vld [vmem:[#allocation15_spill] sm:$0xff]  ;;  %v7417_v62 = vld [vmem:[#allocation16_spill] sm:$0xff] }
 0x294   : > { %v3376_v47 = vmax.f32 %v3248_v61, 0.0  ;;  %v3118_v15 = vmul.f32 %v6794_v12, %v2955_v32  ;;  %4016 = vst.msk [vmem:[%s6450_s8 + $0x1c0] sm:$0xf] %vm3903_vm3, %v5108_v59  ;;  %v3116_v8 = vmul.f32 %v6794_v12, %v2947_v52  ;;  %v2958_v43 = vadd.f32 %v5331_v30, %v7412_v56 }
 0x295   : > { %v3225_v1 = vadd.f32 %v6805_v45, %v3090_v4  ;;  %v3091_v40 = vmul.f32 %v6794_v12, %v2846_v25  ;;  %3993 = vst.msk [vmem:[%s6450_s8 + $0x164] sm:$0xf] %vm3903_vm3, %v5085_v46  ;;  %v5111_v38 = vpack.c.bf16 %v3378_v37, %v3378_v37  ;;  %v2950_v14 = vadd.f32 %v2949_v24, %v7413_v35 }
 0x296   : > { %v5109_v27 = vpack.c.bf16 %v3376_v47, %v3376_v47  ;;  %v3253_v2 = vadd.f32 %v6805_v45, %v3118_v15  ;;  %v3251_v23 = vadd.f32 %v6805_v45, %v3116_v8  ;;  %v3119_v53 = vmul.f32 %v6794_v12, %v2958_v43 }
 0x297   : > { %v3353_v49 = vmax.f32 %v3225_v1, 0.0  ;;  %v3226_v5 = vadd.f32 %v6805_v45, %v3091_v40  ;;  %4019 = vst.msk [vmem:[%s6450_s8 + $0x1cc] sm:$0xf] %vm3903_vm3, %v5111_v38  ;;  %v3117_v11 = vmul.f32 %v6794_v12, %v2950_v14  ;;  %v2305_v63 = vpop.f32.mrb[184].mxu0  ;;  %v5334_v42 = vpop.f32.mrb[184].mxu1  ;;  %v7418_v14 = vld [vmem:[#allocation21_spill] sm:$0xff] }
 0x298   : > { %4017 = vst.msk [vmem:[%s6450_s8 + $0x1c4] sm:$0xf] %vm3903_vm3, %v5109_v27  ;;  %v3381_v6 = vmax.f32 %v3253_v2, 0.0  ;;  %v3379_v21 = vmax.f32 %v3251_v23, 0.0  ;;  %v3254_v22 = vadd.f32 %v6805_v45, %v3119_v53  ;;  %v2307_v36 = vpop.f32.mrb[185].mxu0  ;;  %v2962_v51 = vpop.f32.mrb[185].mxu1  ;;  %v2851_v16 = vadd.f32 %v6912_v13, %v2305_v63 }
 0x299   : > { %v5086_v41 = vpack.c.bf16 %v3353_v49, %v3353_v49  ;;  %v3354_v0 = vmax.f32 %v3226_v5, 0.0  ;;  %v3252_v29 = vadd.f32 %v6805_v45, %v3117_v11  ;;  %v2971_v17 = vadd.f32 %v5334_v42, %v7414_v34  ;;  %v2308_v55 = vpop.f32.mrb[186].mxu0  ;;  %v5335_v48 = vpop.f32.mrb[186].mxu1 }
 0x29a   : > { %v5114_v18 = vpack.c.bf16 %v3381_v6, %v3381_v6  ;;  %v5112_v28 = vpack.c.bf16 %v3379_v21, %v3379_v21  ;;  %v3382_v44 = vmax.f32 %v3254_v22, 0.0  ;;  %v2963_v39 = vadd.f32 %v2962_v51, %v7415_v20  ;;  %v2310_v57 = vpop.f32.mrb[187].mxu0  ;;  %v2965_v50 = vpop.f32.mrb[187].mxu1 }
 0x29b   : > { %3994 = vst.msk [vmem:[%s6450_s8 + $0x168] sm:$0xf] %vm3903_vm3, %v5086_v41  ;;  %v5087_v3 = vpack.c.bf16 %v3354_v0, %v3354_v0  ;;  %v3380_v26 = vmax.f32 %v3252_v29, 0.0  ;;  %v3092_v13 = vmul.f32 %v6794_v12, %v2851_v16  ;;  %v3122_v31 = vmul.f32 %v6794_v12, %v2971_v17  ;;  %v7419_v0 = vld [vmem:[#allocation19_spill] sm:$0xff]  ;;  %v7420_v16 = vld [vmem:[#allocation22_spill] sm:$0xff] }
 0x29c   : > { %4022 = vst.msk [vmem:[%s6450_s8 + $0x1d8] sm:$0xf] %vm3903_vm3, %v5114_v18  ;;  %v2854_v60 = vadd.f32 %v6920_v9, %v2308_v55  ;;  %4020 = vst.msk [vmem:[%s6450_s8 + $0x1d0] sm:$0xf] %vm3903_vm3, %v5112_v28  ;;  %v5115_v54 = vpack.c.bf16 %v3382_v44, %v3382_v44  ;;  %v3120_v61 = vmul.f32 %v6794_v12, %v2963_v39 }
 0x29d   : > { %3995 = vst.msk [vmem:[%s6450_s8 + $0x16c] sm:$0xf] %vm3903_vm3, %v5087_v3  ;;  %v2974_v32 = vadd.f32 %v5335_v48, %v7416_v7  ;;  %v2966_v30 = vadd.f32 %v2965_v50, %v7417_v62  ;;  %v5113_v59 = vpack.c.bf16 %v3380_v26, %v3380_v26  ;;  %v3227_v4 = vadd.f32 %v6805_v45, %v3092_v13  ;;  %v5760_v48 = vld [vmem:[%s7378_s2] ss:$0 sm:$0xff] }
 0x29e   : > { %v3257_v58 = vadd.f32 %v6805_v45, %v3122_v31  ;;  %v3093_v52 = vmul.f32 %v6794_v12, %v2854_v60  ;;  %4023 = vst.msk [vmem:[%s6450_s8 + $0x1dc] sm:$0xf] %vm3903_vm3, %v5115_v54  ;;  %v3255_v9 = vadd.f32 %v6805_v45, %v3120_v61  ;;  %v5761_v13 = vld [vmem:[%s7379_s3] ss:$0 sm:$0xff] }
 0x29f   : > { %v3123_v25 = vmul.f32 %v6794_v12, %v2974_v32  ;;  %v3121_v19 = vmul.f32 %v6794_v12, %v2966_v30  ;;  %4021 = vst.msk [vmem:[%s6450_s8 + $0x1d4] sm:$0xf] %vm3903_vm3, %v5113_v59  ;;  %v3355_v24 = vmax.f32 %v3227_v4, 0.0  ;;  %v2313_v47 = vpop.f32.mrb[188].mxu0  ;;  %v5338_v15 = vpop.f32.mrb[188].mxu1 }
 0x2a0   : > { %v3385_v46 = vmax.f32 %v3257_v58, 0.0  ;;  %v3228_v37 = vadd.f32 %v6805_v45, %v3093_v52  ;;  %v3383_v1 = vmax.f32 %v3255_v9, 0.0  ;;  %v2859_v56 = vadd.f32 %v6909_v33, %v2313_v47  ;;  %v2315_v43 = vpop.f32.mrb[189].mxu0  ;;  %v2978_v38 = vpop.f32.mrb[189].mxu1 }
 0x2a1   : > { %v3258_v8 = vadd.f32 %v6805_v45, %v3123_v25  ;;  %v3256_v40 = vadd.f32 %v6805_v45, %v3121_v19  ;;  %v5088_v27 = vpack.c.bf16 %v3355_v24, %v3355_v24  ;;  %v2987_v49 = vadd.f32 %v5338_v15, %v7418_v14  ;;  %v2316_v23 = vpop.f32.mrb[190].mxu0  ;;  %v5339_v5 = vpop.f32.mrb[190].mxu1 }
 0x2a2   : > { %v5118_v2 = vpack.c.bf16 %v3385_v46, %v3385_v46  ;;  %v3356_v35 = vmax.f32 %v3228_v37, 0.0  ;;  %v5116_v53 = vpack.c.bf16 %v3383_v1, %v3383_v1  ;;  %v3094_v63 = vmul.f32 %v6794_v12, %v2859_v56  ;;  %v2318_v42 = vpop.f32.mrb[191].mxu0  ;;  %v2981_v41 = vpop.f32.mrb[191].mxu1 }
 0x2a3   : > { %v3386_v6 = vmax.f32 %v3258_v8, 0.0  ;;  %v3384_v11 = vmax.f32 %v3256_v40, 0.0  ;;  %3996 = vst.msk [vmem:[%s6450_s8 + $0x170] sm:$0xf] %vm3903_vm3, %v5088_v27  ;;  %v3126_v21 = vmul.f32 %v6794_v12, %v2987_v49  ;;  %v2979_v22 = vadd.f32 %v2978_v38, %v7419_v0 }
 0x2a4   : > { %4026 = vst.msk [vmem:[%s6450_s8 + $0x1e8] sm:$0xf] %vm3903_vm3, %v5118_v2  ;;  %v5089_v33 = vpack.c.bf16 %v3356_v35, %v3356_v35  ;;  %v2862_v36 = vadd.f32 %v6914_v10, %v2316_v23  ;;  %4024 = vst.msk [vmem:[%s6450_s8 + $0x1e0] sm:$0xf] %vm3903_vm3, %v5116_v53  ;;  %v3229_v29 = vadd.f32 %v6805_v45, %v3094_v63  ;;  %v7421_v10 = vld [vmem:[#allocation20_spill] sm:$0xff] }
 0x2a5   : > { %v5119_v51 = vpack.c.bf16 %v3386_v6, %v3386_v6  ;;  %v5117_v18 = vpack.c.bf16 %v3384_v11, %v3384_v11  ;;  %v2990_v34 = vadd.f32 %v5339_v5, %v7420_v16  ;;  %v3261_v17 = vadd.f32 %v6805_v45, %v3126_v21 }
 0x2a6   : > { %3997 = vst.msk [vmem:[%s6450_s8 + $0x174] sm:$0xf] %vm3903_vm3, %v5089_v33  ;;  %v3124_v55 = vmul.f32 %v6794_v12, %v2979_v22  ;;  %v3095_v28 = vmul.f32 %v5760_v48, %v2862_v36  ;;  %v2982_v3 = vadd.f32 %v2981_v41, %v7421_v10  ;;  %v3357_v44 = vmax.f32 %v3229_v29, 0.0 }
 0x2a7   : > { %4027 = vst.msk [vmem:[%s6450_s8 + $0x1ec] sm:$0xf] %vm3903_vm3, %v5119_v51  ;;  %4025 = vst.msk [vmem:[%s6450_s8 + $0x1e4] sm:$0xf] %vm3903_vm3, %v5117_v18  ;;  %v3127_v20 = vmul.f32 %v5760_v48, %v2990_v34  ;;  %v3389_v39 = vmax.f32 %v3261_v17, 0.0 }
 0x2a8   : > { %v3259_v57 = vadd.f32 %v6805_v45, %v3124_v55  ;;  %v3230_v12 = vadd.f32 %v6805_v45, %v3095_v28  ;;  %v3125_v50 = vmul.f32 %v5760_v48, %v2982_v3  ;;  %v5090_v26 = vpack.c.bf16 %v3357_v44, %v3357_v44 }
 0x2a9   : > { %v3262_v31 = vadd.f32 %v5761_v13, %v3127_v20  ;;  %v5122_v60 = vpack.c.bf16 %v3389_v39, %v3389_v39 }
 0x2aa   : > { %v3387_v54 = vmax.f32 %v3259_v57, 0.0  ;;  %v3358_v61 = vmax.f32 %v3230_v12, 0.0  ;;  %v3260_v7 = vadd.f32 %v5761_v13, %v3125_v50  ;;  %3998 = vst.msk [vmem:[%s6450_s8 + $0x178] sm:$0xf] %vm3903_vm3, %v5090_v26  ;;  %4038 = sbr.rel (!%p5925_p3) target bundleno = 780 (0x30c), region = 40 }
 0x2ab   : > { %v3390_v32 = vmax.f32 %v3262_v31, 0.0  ;;  %4030 = vst.msk [vmem:[%s6450_s8 + $0x1f8] sm:$0xf] %vm3903_vm3, %v5122_v60 }
 0x2ac   : > { %v5120_v45 = vpack.c.bf16 %v3387_v54, %v3387_v54  ;;  %v5091_v62 = vpack.c.bf16 %v3358_v61, %v3358_v61  ;;  %v3388_v30 = vmax.f32 %v3260_v7, 0.0 }
 0x2ad   : > { %v5123_v59 = vpack.c.bf16 %v3390_v32, %v3390_v32 }
 0x2ae   : > { %4028 = vst.msk [vmem:[%s6450_s8 + $0x1f0] sm:$0xf] %vm3903_vm3, %v5120_v45  ;;  %3999 = vst.msk [vmem:[%s6450_s8 + $0x17c] sm:$0xf] %vm3903_vm3, %v5091_v62  ;;  %v5121_v4 = vpack.c.bf16 %v3388_v30, %v3388_v30 }
 0x2af   : > { %4031 = vst.msk [vmem:[%s6450_s8 + $0x1fc] sm:$0xf] %vm3903_vm3, %v5123_v59 }
 0x2b0   : > { %4029 = vst.msk [vmem:[%s6450_s8 + $0x1f4] sm:$0xf] %vm3903_vm3, %v5121_v4 }
 0x2b1   : > { %s7432_s24 = smov (!%p4041_p9, %s4040_s24), 128 }
 0x2b2   : > { %s4981_s5 = sshll.u32 %s7432_s24, 6 }
 0x2b3   : > { %p4984_p10 = scmp.eq.s32.totalorder %s4981_s5, 0 }
 0x2b4   : > { %s7185_s6 = sshrl.u32 (!%p4984_p10), %s7432_s24, 6 }
 0x2b5   : > { %4051 = sbr.rel (%p4984_p10) target bundleno = 780 (0x30c), region = 44  ;;  %p4985_p11 = scmp.le.s32.totalorder (!%p4984_p10), %s7185_s6, 0 }
 0x2bc   : > { %4480 = sbr.rel (%p4985_p11) target bundleno = 759 (0x2f7), region = 125  ;;  %s7422_s17 = smov (!%p4985_p11), %s7179_s30 }
 0x2bd   : > { %s7423_s23 = smov (!%p4985_p11), %s6450_s8  ;;  %s7194_s28 = smov (!%p4985_p11), 0  }
 0x2be   : > { %s7196_s7 = smov (!%p4985_p11), 0  }
 0x2c3 LB: >> { %v4067_v58 = vld [vmem:[%s5840_s23] sm:$0xf]  ;;  %v4069_v52 = vld [vmem:[%s5840_s23 + $0x4] sm:$0xf]  ;;  %v4071_v9 = vld [vmem:[%s5840_s23 + $0x8] sm:$0xf]  ;;  %s5848_s7 = sphi %s7196_s7, %s4061_s7   ;;  %s5844_s28 = sphi %s7194_s28, %s7424_s28   ;;  %s5840_s23 = sphi %s7423_s23, %s4200_s23   ;;  %s5836_s17 = sphi %s7422_s17, %s4201_s17  }
 0x2c4   : >> { %4068 = vst [vmem:[%s5836_s17] sm:$0xf] %v4067_v58  ;;  %4070 = vst [vmem:[%s5836_s17 + $0x4] sm:$0xf] %v4069_v52  ;;  %v4073_v25 = vld [vmem:[%s5840_s23 + $0xc] sm:$0xf]  ;;  %s4195_s15 = sadd.s32 1, %s5844_s28 }
 0x2c5   : >> { %4072 = vst [vmem:[%s5836_s17 + $0x8] sm:$0xf] %v4071_v9  ;;  %v4075_v19 = vld [vmem:[%s5840_s23 + $0x10] sm:$0xf]  ;;  %v4077_v24 = vld [vmem:[%s5840_s23 + $0x14] sm:$0xf]  ;;  %p4196_p12 = scmp.ge.s32.totalorder %s4195_s15, %s7185_s6 }
 0x2c6   : >> { %4074 = vst [vmem:[%s5836_s17 + $0xc] sm:$0xf] %v4073_v25  ;;  %4076 = vst [vmem:[%s5836_s17 + $0x10] sm:$0xf] %v4075_v19  ;;  %v4079_v46 = vld [vmem:[%s5840_s23 + $0x18] sm:$0xf] }
 0x2c7   : >> { %4078 = vst [vmem:[%s5836_s17 + $0x14] sm:$0xf] %v4077_v24  ;;  %v4081_v37 = vld [vmem:[%s5840_s23 + $0x1c] sm:$0xf]  ;;  %v4083_v47 = vld [vmem:[%s5840_s23 + $0x20] sm:$0xf] }
 0x2c8   : >> { %4080 = vst [vmem:[%s5836_s17 + $0x18] sm:$0xf] %v4079_v46  ;;  %4082 = vst [vmem:[%s5836_s17 + $0x1c] sm:$0xf] %v4081_v37  ;;  %v4085_v15 = vld [vmem:[%s5840_s23 + $0x24] sm:$0xf] }
 0x2c9   : >> { %4084 = vst [vmem:[%s5836_s17 + $0x20] sm:$0xf] %v4083_v47  ;;  %v4087_v1 = vld [vmem:[%s5840_s23 + $0x28] sm:$0xf]  ;;  %v4089_v8 = vld [vmem:[%s5840_s23 + $0x2c] sm:$0xf] }
 0x2ca   : >> { %4086 = vst [vmem:[%s5836_s17 + $0x24] sm:$0xf] %v4085_v15  ;;  %4088 = vst [vmem:[%s5836_s17 + $0x28] sm:$0xf] %v4087_v1  ;;  %v4091_v40 = vld [vmem:[%s5840_s23 + $0x30] sm:$0xf] }
 0x2cb   : >> { %4090 = vst [vmem:[%s5836_s17 + $0x2c] sm:$0xf] %v4089_v8  ;;  %v4093_v56 = vld [vmem:[%s5840_s23 + $0x34] sm:$0xf]  ;;  %v4095_v43 = vld [vmem:[%s5840_s23 + $0x38] sm:$0xf] }
 0x2cc   : >> { %4092 = vst [vmem:[%s5836_s17 + $0x30] sm:$0xf] %v4091_v40  ;;  %4094 = vst [vmem:[%s5836_s17 + $0x34] sm:$0xf] %v4093_v56  ;;  %v4097_v38 = vld [vmem:[%s5840_s23 + $0x3c] sm:$0xf] }
 0x2cd   : >> { %4096 = vst [vmem:[%s5836_s17 + $0x38] sm:$0xf] %v4095_v43  ;;  %v4099_v27 = vld [vmem:[%s5840_s23 + $0x40] sm:$0xf]  ;;  %v4101_v2 = vld [vmem:[%s5840_s23 + $0x44] sm:$0xf] }
 0x2ce   : >> { %4098 = vst [vmem:[%s5836_s17 + $0x3c] sm:$0xf] %v4097_v38  ;;  %4100 = vst [vmem:[%s5836_s17 + $0x40] sm:$0xf] %v4099_v27  ;;  %v4103_v35 = vld [vmem:[%s5840_s23 + $0x48] sm:$0xf] }
 0x2cf   : >> { %4102 = vst [vmem:[%s5836_s17 + $0x44] sm:$0xf] %v4101_v2  ;;  %v4105_v14 = vld [vmem:[%s5840_s23 + $0x4c] sm:$0xf]  ;;  %v4107_v49 = vld [vmem:[%s5840_s23 + $0x50] sm:$0xf] }
 0x2d0   : >> { %4104 = vst [vmem:[%s5836_s17 + $0x48] sm:$0xf] %v4103_v35  ;;  %4106 = vst [vmem:[%s5836_s17 + $0x4c] sm:$0xf] %v4105_v14  ;;  %v4109_v23 = vld [vmem:[%s5840_s23 + $0x54] sm:$0xf] }
 0x2d1   : >> { %4108 = vst [vmem:[%s5836_s17 + $0x50] sm:$0xf] %v4107_v49  ;;  %v4111_v5 = vld [vmem:[%s5840_s23 + $0x58] sm:$0xf]  ;;  %v4113_v53 = vld [vmem:[%s5840_s23 + $0x5c] sm:$0xf] }
 0x2d2   : >> { %4110 = vst [vmem:[%s5836_s17 + $0x54] sm:$0xf] %v4109_v23  ;;  %4112 = vst [vmem:[%s5836_s17 + $0x58] sm:$0xf] %v4111_v5  ;;  %v4115_v6 = vld [vmem:[%s5840_s23 + $0x60] sm:$0xf] }
 0x2d3   : >> { %4114 = vst [vmem:[%s5836_s17 + $0x5c] sm:$0xf] %v4113_v53  ;;  %v4117_v11 = vld [vmem:[%s5840_s23 + $0x64] sm:$0xf]  ;;  %v4119_v63 = vld [vmem:[%s5840_s23 + $0x68] sm:$0xf] }
 0x2d4   : >> { %4116 = vst [vmem:[%s5836_s17 + $0x60] sm:$0xf] %v4115_v6  ;;  %4118 = vst [vmem:[%s5836_s17 + $0x64] sm:$0xf] %v4117_v11  ;;  %v4121_v42 = vld [vmem:[%s5840_s23 + $0x6c] sm:$0xf] }
 0x2d5   : >> { %4120 = vst [vmem:[%s5836_s17 + $0x68] sm:$0xf] %v4119_v63  ;;  %v4123_v41 = vld [vmem:[%s5840_s23 + $0x70] sm:$0xf]  ;;  %v4125_v33 = vld [vmem:[%s5840_s23 + $0x74] sm:$0xf] }
 0x2d6   : >> { %4122 = vst [vmem:[%s5836_s17 + $0x6c] sm:$0xf] %v4121_v42  ;;  %4124 = vst [vmem:[%s5836_s17 + $0x70] sm:$0xf] %v4123_v41  ;;  %v4127_v21 = vld [vmem:[%s5840_s23 + $0x78] sm:$0xf] }
 0x2d7   : >> { %4126 = vst [vmem:[%s5836_s17 + $0x74] sm:$0xf] %v4125_v33  ;;  %v4129_v0 = vld [vmem:[%s5840_s23 + $0x7c] sm:$0xf]  ;;  %v4131_v22 = vld [vmem:[%s5840_s23 + $0x80] sm:$0xf] }
 0x2d8   : >> { %4128 = vst [vmem:[%s5836_s17 + $0x78] sm:$0xf] %v4127_v21  ;;  %4130 = vst [vmem:[%s5836_s17 + $0x7c] sm:$0xf] %v4129_v0  ;;  %v4133_v36 = vld [vmem:[%s5840_s23 + $0x84] sm:$0xf] }
 0x2d9   : >> { %4132 = vst [vmem:[%s5836_s17 + $0x80] sm:$0xf] %v4131_v22  ;;  %v4135_v51 = vld [vmem:[%s5840_s23 + $0x88] sm:$0xf]  ;;  %v4137_v18 = vld [vmem:[%s5840_s23 + $0x8c] sm:$0xf] }
 0x2da   : >> { %4134 = vst [vmem:[%s5836_s17 + $0x84] sm:$0xf] %v4133_v36  ;;  %4136 = vst [vmem:[%s5836_s17 + $0x88] sm:$0xf] %v4135_v51  ;;  %v4139_v29 = vld [vmem:[%s5840_s23 + $0x90] sm:$0xf] }
 0x2db   : >> { %4138 = vst [vmem:[%s5836_s17 + $0x8c] sm:$0xf] %v4137_v18  ;;  %v4141_v16 = vld [vmem:[%s5840_s23 + $0x94] sm:$0xf]  ;;  %v4143_v34 = vld [vmem:[%s5840_s23 + $0x98] sm:$0xf] }
 0x2dc   : >> { %4140 = vst [vmem:[%s5836_s17 + $0x90] sm:$0xf] %v4139_v29  ;;  %4142 = vst [vmem:[%s5836_s17 + $0x94] sm:$0xf] %v4141_v16  ;;  %v4145_v17 = vld [vmem:[%s5840_s23 + $0x9c] sm:$0xf] }
 0x2dd   : >> { %4144 = vst [vmem:[%s5836_s17 + $0x98] sm:$0xf] %v4143_v34  ;;  %v4147_v55 = vld [vmem:[%s5840_s23 + $0xa0] sm:$0xf]  ;;  %v4149_v48 = vld [vmem:[%s5840_s23 + $0xa4] sm:$0xf] }
 0x2de   : >> { %4146 = vst [vmem:[%s5836_s17 + $0x9c] sm:$0xf] %v4145_v17  ;;  %4148 = vst [vmem:[%s5836_s17 + $0xa0] sm:$0xf] %v4147_v55  ;;  %v4151_v28 = vld [vmem:[%s5840_s23 + $0xa8] sm:$0xf] }
 0x2df   : >> { %4150 = vst [vmem:[%s5836_s17 + $0xa4] sm:$0xf] %v4149_v48  ;;  %v4153_v10 = vld [vmem:[%s5840_s23 + $0xac] sm:$0xf]  ;;  %v4155_v3 = vld [vmem:[%s5840_s23 + $0xb0] sm:$0xf] }
 0x2e0   : >> { %4152 = vst [vmem:[%s5836_s17 + $0xa8] sm:$0xf] %v4151_v28  ;;  %4154 = vst [vmem:[%s5836_s17 + $0xac] sm:$0xf] %v4153_v10  ;;  %v4157_v44 = vld [vmem:[%s5840_s23 + $0xb4] sm:$0xf] }
 0x2e1   : >> { %4156 = vst [vmem:[%s5836_s17 + $0xb0] sm:$0xf] %v4155_v3  ;;  %v4159_v20 = vld [vmem:[%s5840_s23 + $0xb8] sm:$0xf]  ;;  %v4161_v39 = vld [vmem:[%s5840_s23 + $0xbc] sm:$0xf] }
 0x2e2   : >> { %4158 = vst [vmem:[%s5836_s17 + $0xb4] sm:$0xf] %v4157_v44  ;;  %4160 = vst [vmem:[%s5836_s17 + $0xb8] sm:$0xf] %v4159_v20  ;;  %v4163_v57 = vld [vmem:[%s5840_s23 + $0xc0] sm:$0xf] }
 0x2e3   : >> { %4162 = vst [vmem:[%s5836_s17 + $0xbc] sm:$0xf] %v4161_v39  ;;  %v4165_v12 = vld [vmem:[%s5840_s23 + $0xc4] sm:$0xf]  ;;  %v4167_v50 = vld [vmem:[%s5840_s23 + $0xc8] sm:$0xf] }
 0x2e4   : >> { %4164 = vst [vmem:[%s5836_s17 + $0xc0] sm:$0xf] %v4163_v57  ;;  %4166 = vst [vmem:[%s5836_s17 + $0xc4] sm:$0xf] %v4165_v12  ;;  %v4169_v26 = vld [vmem:[%s5840_s23 + $0xcc] sm:$0xf] }
 0x2e5   : >> { %4168 = vst [vmem:[%s5836_s17 + $0xc8] sm:$0xf] %v4167_v50  ;;  %v4171_v13 = vld [vmem:[%s5840_s23 + $0xd0] sm:$0xf]  ;;  %v4173_v31 = vld [vmem:[%s5840_s23 + $0xd4] sm:$0xf] }
 0x2e6   : >> { %4170 = vst [vmem:[%s5836_s17 + $0xcc] sm:$0xf] %v4169_v26  ;;  %4172 = vst [vmem:[%s5836_s17 + $0xd0] sm:$0xf] %v4171_v13  ;;  %v4175_v60 = vld [vmem:[%s5840_s23 + $0xd8] sm:$0xf] }
 0x2e7   : >> { %4174 = vst [vmem:[%s5836_s17 + $0xd4] sm:$0xf] %v4173_v31  ;;  %v4177_v54 = vld [vmem:[%s5840_s23 + $0xdc] sm:$0xf]  ;;  %v4179_v61 = vld [vmem:[%s5840_s23 + $0xe0] sm:$0xf] }
 0x2e8   : >> { %4176 = vst [vmem:[%s5836_s17 + $0xd8] sm:$0xf] %v4175_v60  ;;  %4178 = vst [vmem:[%s5836_s17 + $0xdc] sm:$0xf] %v4177_v54  ;;  %v4181_v7 = vld [vmem:[%s5840_s23 + $0xe4] sm:$0xf] }
 0x2e9   : >> { %4180 = vst [vmem:[%s5836_s17 + $0xe0] sm:$0xf] %v4179_v61  ;;  %v4183_v32 = vld [vmem:[%s5840_s23 + $0xe8] sm:$0xf]  ;;  %v4185_v45 = vld [vmem:[%s5840_s23 + $0xec] sm:$0xf] }
 0x2ea   : >> { %4182 = vst [vmem:[%s5836_s17 + $0xe4] sm:$0xf] %v4181_v7  ;;  %4184 = vst [vmem:[%s5836_s17 + $0xe8] sm:$0xf] %v4183_v32  ;;  %v4187_v62 = vld [vmem:[%s5840_s23 + $0xf0] sm:$0xf] }
 0x2eb   : >> { %4186 = vst [vmem:[%s5836_s17 + $0xec] sm:$0xf] %v4185_v45  ;;  %v4189_v30 = vld [vmem:[%s5840_s23 + $0xf4] sm:$0xf]  ;;  %v4191_v59 = vld [vmem:[%s5840_s23 + $0xf8] sm:$0xf] }
 0x2ec   : >> { %4188 = vst [vmem:[%s5836_s17 + $0xf0] sm:$0xf] %v4187_v62  ;;  %4190 = vst [vmem:[%s5836_s17 + $0xf4] sm:$0xf] %v4189_v30  ;;  %v4193_v4 = vld [vmem:[%s5840_s23 + $0xfc] sm:$0xf] }
 0x2ed   : >> { %4192 = vst [vmem:[%s5836_s17 + $0xf8] sm:$0xf] %v4191_v59  ;;  %4194 = vst [vmem:[%s5836_s17 + $0xfc] sm:$0xf] %v4193_v4  ;;  %s7434_s15 = smov (%p4196_p12, %s4195_s15), 0  ;;  %s4061_s7 = sadd.s32 1, %s5848_s7  }
 0x2ee   : >> { %s4986_s20 = sshll.u32 %s7434_s15, 8  ;;  %p4060_p13 = scmp.ge.s32.totalorder %s4061_s7, %s7185_s6 }
 0x2ef   : >> { %s4200_s23 = scalar_lea.vmem %s6450_s8, %s4986_s20 [#allocation2]   ;;  %s4201_s17 = scalar_lea.vmem %s7179_s30, %s4986_s20  }
 0x2f0   : >> { %s7424_s28 = smov %s7434_s15  ;;  %4063 = sbr.rel (!%p4060_p13) target bundleno = 707 (0x2c3), region = 131 }
 0x2f7 PF: > { %s7353_s9 = sand.u32 63, %s7432_s24   ;;  %s5125_s10 = sshll.u32 %s7185_s6, 8 }
 0x2f8   : > { %s4206_s11 = scalar_lea.vmem %s6450_s8, %s5125_s10 [#allocation2]   ;;  %s4208_s12 = scalar_lea.vmem %s7179_s30, %s5125_s10  }
 0x2f9   : > { %p4991_p0 = scmp.le.s32.totalorder %s7353_s9, 0 }
 0x2fa   : > { %s5850_s13 = smov (!%p4991_p0), %s4208_s12   ;;  %s5854_s14 = smov (!%p4991_p0), %s4206_s11  }
 0x2fb   : > { %4494 = sbr.rel (%p4991_p0) target bundleno = 780 (0x30c), region = 136  ;;  %s5858_s22 = smov (!%p4991_p0), 0  }
 0x2fc   : > { %s5862_s26 = smov (!%p4991_p0), 0  }
 0x302 LB: >> { %v4218_v58 = vld [vmem:[%s5856_s14] sm:$0xf]  ;;  %s4220_s24 = sadd.s32 1, %s5860_s22  ;;  %s4212_s26 = sadd.s32 1, %s5864_s26   ;;  %s5864_s26 = sphi %s5862_s26, %s4212_s26   ;;  %s5860_s22 = sphi %s5858_s22, %s5859_s22   ;;  %s5856_s14 = sphi %s5854_s14, %s4225_s14   ;;  %s5852_s13 = sphi %s5850_s13, %s4226_s13  }
 0x303   : >> { %4219 = vst [vmem:[%s5852_s13] sm:$0xf] %v4218_v58  ;;  %p4221_p1 = scmp.ge.s32.totalorder %s4220_s24, %s7353_s9  ;;  %p4211_p2 = scmp.ge.s32.totalorder %s4212_s26, %s7353_s9 }
 0x305   : >> { %s7436_s24 = smov (%p4221_p1, %s4220_s24), 0  ;;  %4214 = sbr.rel (!%p4211_p2) target bundleno = 770 (0x302), region = 142 }
 0x306   : >> { %s4992_s8 = sshll.u32 %s7436_s24, 2  ;;  %s5859_s22 = smov %s7436_s24  }
 0x307   : >> { %s4225_s14 = scalar_lea.vmem %s4206_s11, %s4992_s8 [#allocation2]   ;;  %s4226_s13 = scalar_lea.vmem %s4208_s12, %s4992_s8  }
 0x30c PF: > { %s14_s19 = sadd.s32 1, %s5832_s19   ;;  %s7425_s15 = smov %s5820_s16 }
 0x30d   : > { %p11_p3 = scmp.ge.s32.totalorder %s14_s19, 8   ;;  %s7426_s16 = smov %s5934_s25 }
 0x30e   : > { %s7427_s17 = smov %s5828_s18  ;;  %s7428_s18 = smov %s7430_s21 }
 0x30f   :  { %13 = sbr.rel (!%p11_p3) target bundleno = 3 (0x3), region = 153 }

// kernel: temporal_alexnet_forward.14
= control target key start
LH: loop header
LB: loop body
LE: loop exit
PB: predicated region body
PF: predicated region fallthrough
CT: control target
= control target key end

     0   :  { %s3458_s15 = smov 0   ;;  %s3460_s16 = smov 0   ;;  %s4343_s0 = inlined_call_operand.vmem [shape: bf16[1,900,300], index: 0, kind: input, shape index: {}]   ;;  %s4344_s1 = inlined_call_operand.vmem [shape: bf16[1,300,32], index: 1, kind: input, shape index: {}]   ;;  %s4345_s2 = inlined_call_operand.vmem [shape: f32[1,1,32], index: 2, kind: input, shape index: {}]   ;;  %s4346_s3 = inlined_call_operand.vmem [shape: f32[1,1,32], index: 3, kind: input, shape index: {}]   ;;  %s4347_s4 = inlined_call_operand.vmem [shape: bf16[1,900,32], index: 4, kind: output, shape index: {}]  }
   0x1   :  { %s3462_s17 = smov 0   ;;  %s3464_s18 = smov 0  }
   0x2   :  { %s3466_s19 = smov 0  }
   0x3 LB: > { %s2592_s20 = sadd.s32 4294967295, %s3396_s19   ;;  %s23_s21 = sadd.s32 1, %s3392_s18  ;;  %s3396_s19 = sphi %s3466_s19, %s14_s19   ;;  %s3392_s18 = sphi %s3464_s18, %s4355_s18   ;;  %s3388_s17 = sphi %s3462_s17, %s4354_s17   ;;  %s3384_s16 = sphi %s3460_s16, %s4353_s16   ;;  %s3380_s15 = sphi %s3458_s15, %s4352_s15  }
   0x4   : > { %p24_p0 = scmp.ge.s32.totalorder %s23_s21, 2  ;;  %s141_s22 = sadd.s32 1, %s3384_s16 }
   0x5   : > { %p151_p1 = scmp.ne.s32.totalorder %s3384_s16, %s3380_s15  ;;  %p152_p2 = scmp.eq.s32.totalorder %s2592_s20, 1 }
   0x6   : > { %s4357_s21 = smov (%p24_p0, %s23_s21), 0  ;;  %p2599_p4 = scmp.ge.s32.totalorder %s3396_s19, 1 }
   0x7   : > { %p3490_p3 = por %p152_p2, %p151_p1  ;;  %s137_s24 = ssub.s32 %s3392_s18, %s4357_s21 }
   0x8   : > { %p220_p5 = scmp.lt.s32.totalorder %s3396_s19, 3  ;;  %p139_p6 = scmp.eq.s32.totalorder %s137_s24, 0 }
   0xa   : > { %p221_p7 = pnand %p2599_p4, %p220_p5 }
   0xb   : > { %s3499_s25 = scalar_select %p139_p6, %s3384_s16, %s141_s22  }
   0xc   : > { %224 = sbr.rel (%p221_p7) target bundleno = 623 (0x26f), region = 36  ;;  %v3186_v0 = vld [vmem:[%s4344_s1] sm:$0xff] (!%p221_p7)   ;;  %v3430_v1 = vmov (!%p221_p7), 0   ;;  %v3187_v2 = vld [vmem:[%s4344_s1 + $0x8] sm:$0xff] (!%p221_p7)   ;;  %v3431_v3 = vmov (!%p221_p7), 0.0   ;;  %vm3432_vm0 = vmmov (!%p221_p7), 0  }
   0xd   : > { %1091 = vmatprep.subr.bf16.mxu1 (!%p221_p7), %v3430_v1  ;;  %2897 = vmatprep.subr.bf16.mxu0 (!%p221_p7), %v3431_v3  ;;  %s3513_s30 = smul.u32 (!%p221_p7), 57, %s3388_s17  ;;  %v3188_v4 = vld [vmem:[%s4344_s1 + $0x10] sm:$0xff] (!%p221_p7)   ;;  %v3189_v5 = vld [vmem:[%s4344_s1 + $0x18] sm:$0xff] (!%p221_p7)   ;;  %v3199_v6 = vld [vmem:[%s4344_s1 + $0x80] sm:$0xff] (!%p221_p7)   ;;  %vm1087_vm1 = vcmask (!%p221_p7), 1045504   ;;  %vm999_vm2 = vcmask (!%p221_p7), 359424  }
   0xe   : > { %1092 = vmatpush1.bf16.msra.mxu1 (!%p221_p7), %v3186_v0  ;;  %2903 = vmatprep.mubr.msk.bf16.mxu0 (!%p221_p7), %vm3432_vm0, %v3431_v3  ;;  %v3190_v7 = vld [vmem:[%s4344_s1 + $0x20] sm:$0xff] (!%p221_p7)   ;;  %v3201_v8 = vld [vmem:[%s4344_s1 + $0x88] sm:$0xff] (!%p221_p7)   ;;  %v3203_v9 = vld [vmem:[%s4344_s1 + $0x90] sm:$0x3f] (!%p221_p7)   ;;  %s263_s13 = sand.u32 (!%p221_p7), 1, %s3380_s15   ;;  %vm2033_vm3 = vcmask (!%p221_p7), 257024  }
   0xf   : > { %1093 = vmatprep.subr.bf16.mxu1 (!%p221_p7), %v3430_v1  ;;  %p274_p8 = scmp.lt.s32.totalorder (!%p221_p7), %s3513_s30, 112  ;;  %2898 = vmatpush3.bf16.msra.mxu0 (!%p221_p7), %v3199_v6  ;;  %v3191_v10 = vld [vmem:[%s4344_s1 + $0x28] sm:$0xff] (!%p221_p7)   ;;  %v3192_v11 = vld [vmem:[%s4344_s1 + $0x30] sm:$0xff] (!%p221_p7)   ;;  %v1089_v12 = vsel (!%p221_p7), %vm1087_vm1, %v3203_v9, 0  ;;  %v3193_v15 = vld [vmem:[%s4344_s1 + $0x38] sm:$0xff] (!%p221_p7)   ;;  %s3076_s15 = smul.u32 (!%p221_p7), 228, %s263_s13 }
  0x10   : > { %2899 = vmatprep.subr.bf16.mxu0 (!%p221_p7), %v3431_v3  ;;  %v3194_v16 = vld [vmem:[%s4344_s1 + $0x40] sm:$0xff] (!%p221_p7)   ;;  %v3195_v18 = vld [vmem:[%s4344_s1 + $0x48] sm:$0xff] (!%p221_p7)   ;;  %v3196_v19 = vld [vmem:[%s4344_s1 + $0x50] sm:$0xff] (!%p221_p7)  }
  0x11   : > { %v3197_v21 = vld [vmem:[%s4344_s1 + $0x58] sm:$0xff] (!%p221_p7)   ;;  %v3198_v22 = vld [vmem:[%s4344_s1 + $0x60] sm:$0xff] (!%p221_p7)   ;;  %v3200_v24 = vld [vmem:[%s4344_s1 + $0x68] sm:$0xff] (!%p221_p7)  }
  0x12   : > { %1094 = vmatpush1.bf16.msra.mxu1 (!%p221_p7), %v3187_v2  ;;  %v3202_v25 = vld [vmem:[%s4344_s1 + $0x70] sm:$0xff] (!%p221_p7)   ;;  %v3204_v27 = vld [vmem:[%s4344_s1 + $0x78] sm:$0xff] (!%p221_p7)  }
  0x13   : > { %1095 = vmatprep.subr.bf16.mxu1 %v3430_v1  ;;  %s275_s9 = scalar_select %p274_p8, %s3513_s30, 112  ;;  %2900 = vmatpush3.bf16.msra.mxu0 %v3201_v8 }
  0x14   : > { %2901 = vmatprep.subr.bf16.mxu0 %v3431_v3  ;;  %s2099_s28 = ssub.s32 (%p3490_p3), 113, %s3513_s30  ;;  %s2864_s29 = smul.u32 (%p3490_p3), 228, %s3388_s17 }
  0x15   : > { %s3077_s14 = smul.u32 12, %s275_s9  ;;  %p2100_p9 = scmp.lt.s32.totalorder (%p3490_p3), %s2099_s28, 57 }
  0x16   : > { %1096 = vmatpush1.bf16.msra.mxu1 %v3188_v4  ;;  %s4165_s8 = scalar_lea.vmem (%p3490_p3), %s4347_s4, %s2864_s29  }
  0x17   : > { %1097 = vmatprep.subr.bf16.mxu1 %v3430_v1  ;;  %s3545_s6 = scalar_lea.vmem %s4343_s0, %s3077_s14  ;;  %2902 = vmatpush3.bf16.msra.mxu0 %v1089_v12 }
  0x18   : > { %v3208_v13 = vld [vmem:[%s3545_s6 + $0x4] ss:$12 sps:$4 sm:$0xff]   ;;  %v3205_v14 = vld [vmem:[%s3545_s6 + $0x8] ss:$12 sps:$4 sm:$0xff]   ;;  %v3209_v17 = vld [vmem:[%s3545_s6 + $0x20] ss:$12 sps:$4 sm:$0xff]  }
  0x19   : > { %1123 = vmatprep.mubr.bf16.mxu1 %v3208_v13  ;;  %v3213_v20 = vld [vmem:[%s3545_s6 + $0x38] ss:$12 sps:$4 sm:$0xff]   ;;  %v3217_v23 = vld [vmem:[%s3545_s6 + $0x50] ss:$12 sps:$4 sm:$0xff]   ;;  %v3221_v26 = vld [vmem:[%s3545_s6 + $0x68] ss:$12 sps:$4 sm:$0xff]  }
  0x1a   : > { %1098 = vmatpush1.bf16.msra.mxu1 %v3189_v5  ;;  %2904 = vmatmul.mubr.msk.bf16.vlgmr.msra.gmra.mrb[0].mxu0 %vm999_vm2, %v3205_v14  ;;  %v3206_v28 = vld [vmem:[%s3545_s6] ss:$12 sps:$4 sm:$0xff]   ;;  %v3210_v29 = vld [vmem:[%s3545_s6 + $0x1c] ss:$12 sps:$4 sm:$0xff]   ;;  %v3212_v31 = vld [vmem:[%s3545_s6 + $0x18] ss:$12 sps:$4 sm:$0xff]  }
  0x1b   : > { %1099 = vmatprep.subr.bf16.mxu1 %v3430_v1  ;;  %2907 = vmatprep.mubr.msk.bf16.mxu0 %vm3432_vm0, %v3431_v3  ;;  %v3225_v30 = vld [vmem:[%s3545_s6 + $0x80] ss:$12 sps:$4 sm:$0xff]   ;;  %v3229_v33 = vld [vmem:[%s3545_s6 + $0x98] ss:$12 sps:$4 sm:$0xff]   ;;  %v3216_v34 = vld [vmem:[%s3545_s6 + $0x30] ss:$12 sps:$4 sm:$0xff]  }
  0x1c   : > { %v3214_v32 = vld [vmem:[%s3545_s6 + $0x34] ss:$12 sps:$4 sm:$0xff]   ;;  %v3218_v35 = vld [vmem:[%s3545_s6 + $0x4c] ss:$12 sps:$4 sm:$0xff]   ;;  %v3233_v36 = vld [vmem:[%s3545_s6 + $0xb0] ss:$12 sps:$4 sm:$0xff]  }
  0x1d   : > { %v3220_v37 = vld [vmem:[%s3545_s6 + $0x48] ss:$12 sps:$4 sm:$0xff]   ;;  %v3222_v38 = vld [vmem:[%s3545_s6 + $0x64] ss:$12 sps:$4 sm:$0xff]   ;;  %v3224_v40 = vld [vmem:[%s3545_s6 + $0x60] ss:$12 sps:$4 sm:$0xff]  }
  0x1e   : > { %1100 = vmatpush1.bf16.msra.mxu1 %v3190_v7  ;;  %v3237_v39 = vld [vmem:[%s3545_s6 + $0xc8] ss:$12 sps:$4 sm:$0xff]   ;;  %v3241_v42 = vld [vmem:[%s3545_s6 + $0xe0] ss:$12 sps:$4 sm:$0xff]   ;;  %v3228_v43 = vld [vmem:[%s3545_s6 + $0x78] ss:$12 sps:$4 sm:$0xff]  }
  0x1f   : > { %1101 = vmatprep.subr.bf16.mxu1 %v3430_v1  ;;  %v3226_v41 = vld [vmem:[%s3545_s6 + $0x7c] ss:$12 sps:$4 sm:$0xff]   ;;  %v3230_v44 = vld [vmem:[%s3545_s6 + $0x94] ss:$12 sps:$4 sm:$0xff]   ;;  %v3245_v45 = vld [vmem:[%s3545_s6 + $0xf8] ss:$12 sps:$4 sm:$0xff]  }
  0x20   : > { %v3232_v46 = vld [vmem:[%s3545_s6 + $0x90] ss:$12 sps:$4 sm:$0xff]   ;;  %v3234_v47 = vld [vmem:[%s3545_s6 + $0xac] ss:$12 sps:$4 sm:$0xff]   ;;  %v3236_v49 = vld [vmem:[%s3545_s6 + $0xa8] ss:$12 sps:$4 sm:$0xff]  }
  0x21   : > { %v3249_v48 = vld [vmem:[%s3545_s6 + $0x110] ss:$12 sps:$4 sm:$0xff]   ;;  %v3253_v51 = vld [vmem:[%s3545_s6 + $0x128] ss:$12 sps:$4 sm:$0xff]   ;;  %v3240_v52 = vld [vmem:[%s3545_s6 + $0xc0] ss:$12 sps:$4 sm:$0xff]  }
  0x22   : > { %1102 = vmatpush1.bf16.msra.mxu1 %v3191_v10  ;;  %2908 = vmatmul.mubr.msk.bf16.gmra.mrb[4].mxu0 %vm999_vm2, %v3209_v17  ;;  %v3238_v50 = vld [vmem:[%s3545_s6 + $0xc4] ss:$12 sps:$4 sm:$0xff]   ;;  %v3242_v53 = vld [vmem:[%s3545_s6 + $0xdc] ss:$12 sps:$4 sm:$0xff]   ;;  %v3257_v54 = vld [vmem:[%s3545_s6 + $0x140] ss:$12 sps:$4 sm:$0xff]  }
  0x23   : > { %1103 = vmatprep.subr.bf16.mxu1 %v3430_v1  ;;  %2911 = vmatprep.mubr.msk.bf16.mxu0 %vm3432_vm0, %v3431_v3  ;;  %v3244_v55 = vld [vmem:[%s3545_s6 + $0xd8] ss:$12 sps:$4 sm:$0xff]   ;;  %v3246_v56 = vld [vmem:[%s3545_s6 + $0xf4] ss:$12 sps:$4 sm:$0xff]   ;;  %v3248_v58 = vld [vmem:[%s3545_s6 + $0xf0] ss:$12 sps:$4 sm:$0xff]  }
  0x24   : > { %v3261_v57 = vld [vmem:[%s3545_s6 + $0x158] ss:$12 sps:$4 sm:$0xff]   ;;  %v3265_v60 = vld [vmem:[%s3545_s6 + $0x170] ss:$12 sps:$4 sm:$0xff]   ;;  %v3252_v61 = vld [vmem:[%s3545_s6 + $0x108] ss:$12 sps:$4 sm:$0xff]  }
  0x25   : > { %v3250_v59 = vld [vmem:[%s3545_s6 + $0x10c] ss:$12 sps:$4 sm:$0xff]   ;;  %v3254_v62 = vld [vmem:[%s3545_s6 + $0x124] ss:$12 sps:$4 sm:$0xff]   ;;  %v3269_v63 = vld [vmem:[%s3545_s6 + $0x188] ss:$12 sps:$4 sm:$0xff]  }
  0x26   : > { %1104 = vmatpush1.bf16.msra.mxu1 %v3192_v11  ;;  %v3256_v0 = vld [vmem:[%s3545_s6 + $0x120] ss:$12 sps:$4 sm:$0xff]   ;;  %v3260_v4 = vld [vmem:[%s3545_s6 + $0x138] ss:$12 sps:$4 sm:$0xff]   ;;  %v3264_v7 = vld [vmem:[%s3545_s6 + $0x150] ss:$12 sps:$4 sm:$0xff]  }
  0x27   : > { %1105 = vmatprep.subr.bf16.mxu1 %v3430_v1  ;;  %v3273_v2 = vld [vmem:[%s3545_s6 + $0x1a0] ss:$12 sps:$4 sm:$0xff]   ;;  %v3277_v6 = vld [vmem:[%s3545_s6 + $0x1b8] ss:$12 sps:$4 sm:$0xff]   ;;  %v3281_v9 = vld [vmem:[%s3545_s6 + $0x1d0] ss:$12 sps:$4 sm:$0xff]  }
  0x28   : > { %v3262_v5 = vld [vmem:[%s3545_s6 + $0x154] ss:$12 sps:$4 sm:$0xff]   ;;  %v3266_v8 = vld [vmem:[%s3545_s6 + $0x16c] ss:$12 sps:$4 sm:$0xff]   ;;  %v3270_v11 = vld [vmem:[%s3545_s6 + $0x184] ss:$12 sps:$4 sm:$0xff]  }
  0x29   : > { %v3268_v10 = vld [vmem:[%s3545_s6 + $0x168] ss:$12 sps:$4 sm:$0xff]   ;;  %v3272_v13 = vld [vmem:[%s3545_s6 + $0x180] ss:$12 sps:$4 sm:$0xff]  }
  0x2a   : > { %1106 = vmatpush1.bf16.msra.mxu1 %v3193_v15  ;;  %2912 = vmatmul.mubr.msk.bf16.gmra.mrb[8].mxu0 %vm999_vm2, %v3213_v20  ;;  %v3285_v12 = vld [vmem:[%s3545_s6 + $0x1e8] ss:$12 sps:$4 sm:$0xff]   ;;  %v3289_v15 = vld [vmem:[%s3545_s6 + $0x200] ss:$12 sps:$4 sm:$0xff]  }
  0x2b   : > { %1107 = vmatprep.subr.bf16.mxu1 %v3430_v1  ;;  %2915 = vmatprep.mubr.msk.bf16.mxu0 %vm3432_vm0, %v3431_v3  ;;  %v3274_v14 = vld [vmem:[%s3545_s6 + $0x19c] ss:$12 sps:$4 sm:$0xff]   ;;  %v3278_v17 = vld [vmem:[%s3545_s6 + $0x1b4] ss:$12 sps:$4 sm:$0xff]   ;;  %v3282_v20 = vld [vmem:[%s3545_s6 + $0x1cc] ss:$12 sps:$4 sm:$0xff]  }
  0x2e   : > { %1108 = vmatpush1.bf16.msra.mxu1 %v3194_v16  ;;  %v3276_v16 = vld [vmem:[%s3545_s6 + $0x198] ss:$12 sps:$4 sm:$0xff]  }
  0x2f   : > { %1109 = vmatprep.subr.bf16.mxu1 %v3430_v1 }
  0x32   : > { %1110 = vmatpush1.bf16.msra.mxu1 %v3195_v18  ;;  %2916 = vmatmul.mubr.msk.bf16.gmra.mrb[12].mxu0 %vm999_vm2, %v3217_v23  ;;  %v3293_v18 = vld [vmem:[%s3545_s6 + $0x218] ss:$12 sps:$4 sm:$0xff]  }
  0x33   : > { %1111 = vmatprep.subr.bf16.mxu1 %v3430_v1  ;;  %2919 = vmatprep.mubr.msk.bf16.mxu0 %vm3432_vm0, %v3431_v3  ;;  %v3286_v23 = vld [vmem:[%s3545_s6 + $0x1e4] ss:$12 sps:$4 sm:$0xff]  }
  0x36   : > { %1112 = vmatpush1.bf16.msra.mxu1 %v3196_v19  ;;  %v3280_v19 = vld [vmem:[%s3545_s6 + $0x1b0] ss:$12 sps:$4 sm:$0xff]  }
  0x37   : > { %1113 = vmatprep.subr.bf16.mxu1 %v3430_v1 }
  0x3a   : > { %1114 = vmatpush1.bf16.msra.mxu1 %v3197_v21  ;;  %2920 = vmatmul.mubr.msk.bf16.gmra.mrb[16].mxu0 %vm999_vm2, %v3221_v26  ;;  %v3297_v21 = vld [vmem:[%s3545_s6 + $0x230] ss:$12 sps:$4 sm:$0xff]  }
  0x3b   : > { %1115 = vmatprep.subr.bf16.mxu1 %v3430_v1  ;;  %2923 = vmatprep.mubr.msk.bf16.mxu0 %vm3432_vm0, %v3431_v3  ;;  %v3290_v26 = vld [vmem:[%s3545_s6 + $0x1fc] ss:$12 sps:$4 sm:$0xff]  }
  0x3e   : > { %1116 = vmatpush1.bf16.msra.mxu1 %v3198_v22  ;;  %v3284_v22 = vld [vmem:[%s3545_s6 + $0x1c8] ss:$12 sps:$4 sm:$0xff]  }
  0x3f   : > { %1117 = vmatprep.subr.bf16.mxu1 %v3430_v1 }
  0x42   : > { %1118 = vmatpush1.bf16.msra.mxu1 %v3200_v24  ;;  %2924 = vmatmul.mubr.msk.bf16.gmra.mrb[20].mxu0 %vm999_vm2, %v3225_v30  ;;  %v3301_v24 = vld [vmem:[%s3545_s6 + $0x248] ss:$12 sps:$4 sm:$0xff]   ;;  %v3309_v30 = vld [vmem:[%s3545_s6 + $0x278] ss:$12 sps:$4 sm:$0xff]  }
  0x43   : > { %1119 = vmatprep.subr.bf16.mxu1 %v3430_v1  ;;  %2927 = vmatprep.mubr.msk.bf16.mxu0 %vm3432_vm0, %v3431_v3 }
  0x46   : > { %1120 = vmatpush1.bf16.msra.mxu1 %v3202_v25  ;;  %v3288_v25 = vld [vmem:[%s3545_s6 + $0x1e0] ss:$12 sps:$4 sm:$0xff]  }
  0x47   : > { %1121 = vmatprep.subr.bf16.mxu1 %v3430_v1  ;;  %v3258_v1 = vld [vmem:[%s3545_s6 + $0x13c] ss:$12 sps:$4 sm:$0xff]  }
  0x4a   : > { %1122 = vmatpush1.bf16.msra.mxu1 %v3204_v27  ;;  %2928 = vmatmul.mubr.msk.bf16.gmra.mrb[24].mxu0 %vm999_vm2, %v3229_v33  ;;  %v3305_v27 = vld [vmem:[%s3545_s6 + $0x260] ss:$12 sps:$4 sm:$0xff]  }
  0x4b   : > { %2931 = vmatprep.mubr.msk.bf16.mxu0 %vm3432_vm0, %v3431_v3  ;;  %v3298_v33 = vld [vmem:[%s3545_s6 + $0x22c] ss:$12 sps:$4 sm:$0xff]  }
  0x4d   : > { %1124 = vmatmul.mubr.bf16.vlgmr.msra.gmra.mrb[0].mxu1 %v3206_v28  ;;  %v3292_v28 = vld [vmem:[%s3545_s6 + $0x1f8] ss:$12 sps:$4 sm:$0xff]  }
  0x4e   : > { %1131 = vmatprep.mubr.bf16.mxu1 %v3210_v29  ;;  %v3294_v29 = vld [vmem:[%s3545_s6 + $0x214] ss:$12 sps:$4 sm:$0xff]  }
  0x52   : > { %2932 = vmatmul.mubr.msk.bf16.gmra.mrb[28].mxu0 %vm999_vm2, %v3233_v36 }
  0x53   : > { %2935 = vmatprep.mubr.msk.bf16.mxu0 %vm3432_vm0, %v3431_v3 }
  0x55   : > { %1132 = vmatmul.mubr.bf16.gmra.mrb[4].mxu1 %v3212_v31  ;;  %v3296_v31 = vld [vmem:[%s3545_s6 + $0x210] ss:$12 sps:$4 sm:$0xff]  }
  0x56   : > { %1139 = vmatprep.mubr.bf16.mxu1 %v3214_v32 }
  0x5a   : > { %2936 = vmatmul.mubr.msk.bf16.gmra.mrb[32].mxu0 %vm999_vm2, %v3237_v39 }
  0x5b   : > { %2939 = vmatprep.mubr.msk.bf16.mxu0 %vm3432_vm0, %v3431_v3 }
  0x5d   : > { %1140 = vmatmul.mubr.bf16.gmra.mrb[8].mxu1 %v3216_v34 }
  0x5e   : > { %1147 = vmatprep.mubr.bf16.mxu1 %v3218_v35  ;;  %v3313_v35 = vld [vmem:[%s3545_s6 + $0x290] ss:$12 sps:$4 sm:$0xff]  }
  0x62   : > { %2940 = vmatmul.mubr.msk.bf16.gmra.mrb[36].mxu0 %vm999_vm2, %v3241_v42  ;;  %v3317_v42 = vld [vmem:[%s3545_s6 + $0x2a8] ss:$0 sps:$4 sm:$0xff]  }
  0x63   : > { %2943 = vmatprep.mubr.msk.bf16.mxu0 %vm3432_vm0, %v3431_v3 }
  0x65   : > { %1148 = vmatmul.mubr.bf16.gmra.mrb[12].mxu1 %v3220_v37 }
  0x66   : > { %1155 = vmatprep.mubr.bf16.mxu1 %v3222_v38  ;;  %v3300_v38 = vld [vmem:[%s3545_s6 + $0x228] ss:$12 sps:$4 sm:$0xff]  }
  0x6a   : > { %2944 = vmatmul.mubr.msk.bf16.gmra.mrb[40].mxu0 %vm999_vm2, %v3245_v45  ;;  %v3304_v45 = vld [vmem:[%s3545_s6 + $0x240] ss:$12 sps:$4 sm:$0xff]  }
  0x6b   : > { %2947 = vmatprep.mubr.msk.bf16.mxu0 %vm3432_vm0, %v3431_v3 }
  0x6d   : > { %1156 = vmatmul.mubr.bf16.gmra.mrb[16].mxu1 %v3224_v40  ;;  %v3302_v40 = vld [vmem:[%s3545_s6 + $0x244] ss:$12 sps:$4 sm:$0xff]  }
  0x6e   : > { %1163 = vmatprep.mubr.bf16.mxu1 %v3226_v41 }
  0x72   : > { %2948 = vmatmul.mubr.msk.bf16.gmra.mrb[44].mxu0 %vm999_vm2, %v3249_v48 }
  0x73   : > { %2951 = vmatprep.mubr.msk.bf16.mxu0 %vm3432_vm0, %v3431_v3 }
  0x75   : > { %1164 = vmatmul.mubr.bf16.gmra.mrb[20].mxu1 %v3228_v43 }
  0x76   : > { %1171 = vmatprep.mubr.bf16.mxu1 %v3230_v44 }
  0x7a   : > { %2952 = vmatmul.mubr.msk.bf16.gmra.mrb[48].mxu0 %vm999_vm2, %v3253_v51 }
  0x7b   : > { %2955 = vmatprep.mubr.msk.bf16.mxu0 %vm3432_vm0, %v3431_v3 }
  0x7d   : > { %1172 = vmatmul.mubr.bf16.gmra.mrb[24].mxu1 %v3232_v46 }
  0x7e   : > { %1179 = vmatprep.mubr.bf16.mxu1 %v3234_v47  ;;  %v3306_v47 = vld [vmem:[%s3545_s6 + $0x25c] ss:$12 sps:$4 sm:$0xff]  }
  0x82   : > { %2956 = vmatmul.mubr.msk.bf16.gmra.mrb[52].mxu0 %vm999_vm2, %v3257_v54 }
  0x83   : > { %2959 = vmatprep.mubr.msk.bf16.mxu0 %vm3432_vm0, %v3431_v3 }
  0x85   : > { %1180 = vmatmul.mubr.bf16.gmra.mrb[28].mxu1 %v3236_v49 }
  0x86   : > { %1187 = vmatprep.mubr.bf16.mxu1 %v3238_v50  ;;  %v3308_v50 = vld [vmem:[%s3545_s6 + $0x258] ss:$12 sps:$4 sm:$0xff]  }
  0x8a   : > { %2960 = vmatmul.mubr.msk.bf16.gmra.mrb[56].mxu0 %vm999_vm2, %v3261_v57 }
  0x8b   : > { %2963 = vmatprep.mubr.msk.bf16.mxu0 %vm3432_vm0, %v3431_v3 }
  0x8d   : > { %1188 = vmatmul.mubr.bf16.gmra.mrb[32].mxu1 %v3240_v52  ;;  %v3310_v52 = vld [vmem:[%s3545_s6 + $0x274] ss:$12 sps:$4 sm:$0xff]  }
  0x8e   : > { %1195 = vmatprep.mubr.bf16.mxu1 %v3242_v53 }
  0x92   : > { %2964 = vmatmul.mubr.msk.bf16.gmra.mrb[60].mxu0 %vm999_vm2, %v3265_v60 }
  0x93   : > { %2967 = vmatprep.mubr.msk.bf16.mxu0 %vm3432_vm0, %v3431_v3 }
  0x95   : > { %1196 = vmatmul.mubr.bf16.gmra.mrb[36].mxu1 %v3244_v55 }
  0x96   : > { %1203 = vmatprep.mubr.bf16.mxu1 %v3246_v56  ;;  %v3312_v56 = vld [vmem:[%s3545_s6 + $0x270] ss:$12 sps:$4 sm:$0xff]  }
  0x9a   : > { %2968 = vmatmul.mubr.msk.bf16.gmra.mrb[64].mxu0 %vm999_vm2, %v3269_v63 }
  0x9b   : > { %2971 = vmatprep.mubr.msk.bf16.mxu0 %vm3432_vm0, %v3431_v3 }
  0x9d   : > { %1204 = vmatmul.mubr.bf16.gmra.mrb[40].mxu1 %v3248_v58  ;;  %v3314_v58 = vld [vmem:[%s3545_s6 + $0x28c] ss:$12 sps:$4 sm:$0xff]  }
  0x9e   : > { %1211 = vmatprep.mubr.bf16.mxu1 %v3250_v59 }
  0xa2   : > { %2972 = vmatmul.mubr.msk.bf16.gmra.mrb[68].mxu0 %vm999_vm2, %v3273_v2 }
  0xa3   : > { %2975 = vmatprep.mubr.msk.bf16.mxu0 %vm3432_vm0, %v3431_v3 }
  0xa5   : > { %1212 = vmatmul.mubr.bf16.gmra.mrb[44].mxu1 %v3252_v61 }
  0xa6   : > { %1219 = vmatprep.mubr.bf16.mxu1 %v3254_v62  ;;  %v416_v62 = vld [vmem:[%s3545_s6 + $0x2a0] sm:$0xff] }
  0xaa   : > { %2976 = vmatmul.mubr.msk.bf16.gmra.mrb[72].mxu0 %vm999_vm2, %v3277_v6  ;;  %v3785_v6 = vld [vmem:[%s4346_s3] ss:$0 sm:$0xff] }
  0xab   : > { %2979 = vmatprep.mubr.msk.bf16.mxu0 %vm3432_vm0, %v3431_v3 }
  0xad   : > { %1220 = vmatmul.mubr.bf16.gmra.mrb[48].mxu1 %v3256_v0  ;;  %v3776_v0 = vld [vmem:[%s4345_s2] ss:$0 sm:$0xff] }
  0xae   : > { %1227 = vmatprep.mubr.bf16.mxu1 %v3258_v1 }
  0xb2   : > { %2980 = vmatmul.mubr.msk.bf16.gmra.mrb[76].mxu0 %vm999_vm2, %v3281_v9 }
  0xb3   : > { %2983 = vmatprep.mubr.msk.bf16.mxu0 %vm3432_vm0, %v3431_v3 }
  0xb5   : > { %1228 = vmatmul.mubr.bf16.gmra.mrb[52].mxu1 %v3260_v4  ;;  %v3316_v4 = vld [vmem:[%s3545_s6 + $0x288] ss:$12 sps:$4 sm:$0xff]   ;;  %s3795_s6 = scalar_lea.vmem [#allocation2], %s3076_s15  }
  0xb6   : > { %1235 = vmatprep.mubr.bf16.mxu1 %v3262_v5 }
  0xba   : > { %2984 = vmatmul.mubr.msk.bf16.gmra.mrb[80].mxu0 %vm999_vm2, %v3285_v12 }
  0xbb   : > { %2987 = vmatprep.mubr.msk.bf16.mxu0 %vm3432_vm0, %v3431_v3 }
  0xbd   : > { %1236 = vmatmul.mubr.bf16.gmra.mrb[56].mxu1 %v3264_v7 }
  0xbe   : > { %1243 = vmatprep.mubr.bf16.mxu1 %v3266_v8  ;;  %v2686_v8 = vcombine.high %v416_v62, %v416_v62 }
  0xc2   : > { %2988 = vmatmul.mubr.msk.bf16.gmra.mrb[84].mxu0 %vm999_vm2, %v3289_v15 }
  0xc3   : > { %2991 = vmatprep.mubr.msk.bf16.mxu0 %vm3432_vm0, %v3431_v3 }
  0xc5   : > { %1244 = vmatmul.mubr.bf16.gmra.mrb[60].mxu1 %v3268_v10 }
  0xc6   : > { %1251 = vmatprep.mubr.bf16.mxu1 %v3270_v11 }
  0xca   : > { %2992 = vmatmul.mubr.msk.bf16.gmra.mrb[88].mxu0 %vm999_vm2, %v3293_v18 }
  0xcb   : > { %2995 = vmatprep.mubr.msk.bf16.mxu0 %vm3432_vm0, %v3431_v3 }
  0xcd   : > { %1252 = vmatmul.mubr.bf16.gmra.mrb[64].mxu1 %v3272_v13 }
  0xce   : > { %1259 = vmatprep.mubr.bf16.mxu1 %v3274_v14 }
  0xd2   : > { %2996 = vmatmul.mubr.msk.bf16.gmra.mrb[92].mxu0 %vm999_vm2, %v3297_v21 }
  0xd3   : > { %2999 = vmatprep.mubr.msk.bf16.mxu0 %vm3432_vm0, %v3431_v3 }
  0xd5   : > { %1260 = vmatmul.mubr.bf16.gmra.mrb[68].mxu1 %v3276_v16 }
  0xd6   : > { %1267 = vmatprep.mubr.bf16.mxu1 %v3278_v17 }
  0xda   : > { %3000 = vmatmul.mubr.msk.bf16.gmra.mrb[96].mxu0 %vm999_vm2, %v3301_v24  ;;  %v2685_v24 = vcombine.low %v416_v62, %v416_v62 }
  0xdb   : > { %3003 = vmatprep.mubr.msk.bf16.mxu0 %vm3432_vm0, %v3431_v3 }
  0xdd   : > { %1268 = vmatmul.mubr.bf16.gmra.mrb[72].mxu1 %v3280_v19 }
  0xde   : > { %1275 = vmatprep.mubr.bf16.mxu1 %v3282_v20 }
  0xe2   : > { %3004 = vmatmul.mubr.msk.bf16.gmra.mrb[100].mxu0 %vm999_vm2, %v3305_v27 }
  0xe3   : > { %3007 = vmatprep.mubr.msk.bf16.mxu0 %vm3432_vm0, %v3431_v3 }
  0xe5   : > { %1276 = vmatmul.mubr.bf16.gmra.mrb[76].mxu1 %v3284_v22 }
  0xe6   : > { %1283 = vmatprep.mubr.bf16.mxu1 %v3286_v23 }
  0xea   : > { %3008 = vmatmul.mubr.msk.bf16.gmra.mrb[104].mxu0 %vm999_vm2, %v3309_v30 }
  0xeb   : > { %3011 = vmatprep.mubr.msk.bf16.mxu0 %vm3432_vm0, %v3431_v3 }
  0xed   : > { %1284 = vmatmul.mubr.bf16.gmra.mrb[80].mxu1 %v3288_v25  ;;  %v1389_v32 = vpop.f32.mrb[0].mxu0 }
  0xee   : > { %1291 = vmatprep.mubr.bf16.mxu1 %v3290_v26  ;;  %v2905_v34 = vpop.f32.mrb[1].mxu0 }
  0xef   : > { %v1392_v36 = vpop.f32.mrb[2].mxu0 }
  0xf0   : > { %v2906_v37 = vpop.f32.mrb[3].mxu0 }
  0xf2   : > { %3012 = vmatmul.mubr.msk.bf16.gmra.mrb[108].mxu0 %vm999_vm2, %v3313_v35 }
  0xf3   : > { %3015 = vmatprep.mubr.msk.bf16.mxu0 %vm3432_vm0, %v3431_v3 }
  0xf5   : > { %1292 = vmatmul.mubr.bf16.gmra.mrb[84].mxu1 %v3292_v28  ;;  %v1397_v39 = vpop.f32.mrb[4].mxu0 }
  0xf6   : > { %1299 = vmatprep.mubr.bf16.mxu1 %v3294_v29  ;;  %v2909_v41 = vpop.f32.mrb[5].mxu0 }
  0xf7   : > { %v3751_v43 = vpop.f32.mrb[6].mxu0 }
  0xf8   : > { %v2910_v44 = vpop.f32.mrb[7].mxu0 }
  0xfa   : > { %3016 = vmatmul.mubr.msk.bf16.gmra.mrb[112].mxu0 %vm999_vm2, %v3317_v42 }
  0xfd   : > { %1300 = vmatmul.mubr.bf16.gmra.mrb[88].mxu1 %v3296_v31  ;;  %v3755_v46 = vpop.f32.mrb[8].mxu0 }
  0xfe   : > { %1307 = vmatprep.mubr.bf16.mxu1 %v3298_v33  ;;  %v2913_v3 = vpop.f32.mrb[9].mxu0 }
  0xff   : > { %v3758_v48 = vpop.f32.mrb[10].mxu0 }
 0x100   : > { %v2914_v49 = vpop.f32.mrb[11].mxu0 }
 0x105   : > { %1308 = vmatmul.mubr.bf16.gmra.mrb[92].mxu1 %v3300_v38  ;;  %v3761_v51 = vpop.f32.mrb[12].mxu0 }
 0x106   : > { %1315 = vmatprep.mubr.bf16.mxu1 %v3302_v40  ;;  %v2917_v53 = vpop.f32.mrb[13].mxu0 }
 0x107   : > { %v3764_v54 = vpop.f32.mrb[14].mxu0 }
 0x108   : > { %v2918_v55 = vpop.f32.mrb[15].mxu0 }
 0x10d   : > { %1316 = vmatmul.mubr.bf16.gmra.mrb[96].mxu1 %v3304_v45  ;;  %v3767_v57 = vpop.f32.mrb[16].mxu0 }
 0x10e   : > { %1323 = vmatprep.mubr.bf16.mxu1 %v3306_v47  ;;  %v2921_v59 = vpop.f32.mrb[17].mxu0 }
 0x10f   : > { %v3770_v60 = vpop.f32.mrb[18].mxu0 }
 0x110   : > { %v2922_v61 = vpop.f32.mrb[19].mxu0 }
 0x115   : > { %1324 = vmatmul.mubr.bf16.gmra.mrb[100].mxu1 %v3308_v50  ;;  %v3780_v5 = vpop.f32.mrb[20].mxu0 }
 0x116   : > { %1331 = vmatprep.mubr.bf16.mxu1 %v3310_v52  ;;  %v2925_v9 = vpop.f32.mrb[21].mxu0 }
 0x117   : > { %v3788_v13 = vpop.f32.mrb[22].mxu0 }
 0x118   : > { %v2926_v14 = vpop.f32.mrb[23].mxu0 }
 0x11d   : > { %1332 = vmatmul.mubr.bf16.gmra.mrb[104].mxu1 %v3312_v56  ;;  %v3793_v25 = vpop.f32.mrb[24].mxu0 }
 0x11e   : > { %1339 = vmatprep.mubr.bf16.mxu1 %v3314_v58  ;;  %v2929_v27 = vpop.f32.mrb[25].mxu0 }
 0x120   : > { %v1125_v63 = vpop.f32.mrb[0].mxu1 }
 0x121   : > { %v1390_v1 = vadd.f32 %v1389_v32, %v1125_v63  ;;  %v1127_v2 = vpop.f32.mrb[1].mxu1  ;;  %v3801_v32 = vpop.f32.mrb[26].mxu0 }
 0x122   : > { %v1128_v7 = vpop.f32.mrb[2].mxu1  ;;  %v2930_v33 = vpop.f32.mrb[27].mxu0 }
 0x123   : > { %v1626_v10 = vmul.f32 %v3776_v0, %v1390_v1  ;;  %v1393_v11 = vadd.f32 %v1392_v36, %v1128_v7  ;;  %v1130_v12 = vpop.f32.mrb[3].mxu1 }
 0x125   : > { %v1690_v15 = vadd.f32 %v3785_v6, %v1626_v10  ;;  %v1627_v16 = vmul.f32 %v3776_v0, %v1393_v11  ;;  %1340 = vmatmul.mubr.bf16.gmra.mrb[108].mxu1 %v3316_v4 }
 0x126   : > { %1347 = vmatprep.mubr.bf16.mxu1 %v2686_v8 }
 0x127   : > { %v1747_v17 = vmax.f32 %v1690_v15, 0.0  ;;  %v1691_v18 = vadd.f32 %v3785_v6, %v1627_v16 }
 0x128   : > { %v1133_v19 = vpop.f32.mrb[4].mxu1 }
 0x129   : > { %v2807_v20 = vpack.c.bf16 %v1747_v17, %v1747_v17  ;;  %v1748_v21 = vmax.f32 %v1691_v18, 0.0  ;;  %v1398_v22 = vadd.f32 %v1397_v39, %v1133_v19  ;;  %v1135_v23 = vpop.f32.mrb[5].mxu1 }
 0x12a   : > { %v1136_v26 = vpop.f32.mrb[6].mxu1 }
 0x12b   : > { %2034 = vst.msk [vmem:[%s3795_s6] sm:$0xf] %vm2033_vm3, %v2807_v20  ;;  %v2808_v28 = vpack.c.bf16 %v1748_v21, %v1748_v21  ;;  %v1628_v29 = vmul.f32 %v3776_v0, %v1398_v22  ;;  %v1401_v30 = vadd.f32 %v3751_v43, %v1136_v26  ;;  %v1138_v31 = vpop.f32.mrb[7].mxu1  ;;  %v3809_v43 = vpop.f32.mrb[28].mxu0 }
 0x12c   : > { %v2933_v45 = vpop.f32.mrb[29].mxu0 }
 0x12d   : > { %2035 = vst.msk [vmem:[%s3795_s6 + $0x4] sm:$0xf] %vm2033_vm3, %v2808_v28  ;;  %v1692_v34 = vadd.f32 %v3785_v6, %v1628_v29  ;;  %v1629_v35 = vmul.f32 %v3776_v0, %v1401_v30  ;;  %1348 = vmatmul.mubr.bf16.gmra.mrb[112].mxu1 %v2685_v24  ;;  %v3815_v52 = vpop.f32.mrb[30].mxu0 }
 0x12e   : > { %v2934_v53 = vpop.f32.mrb[31].mxu0 }
 0x12f   : > { %v1749_v36 = vmax.f32 %v1692_v34, 0.0  ;;  %v1693_v37 = vadd.f32 %v3785_v6, %v1629_v35  ;;  %v3823_v1 = vpop.f32.mrb[32].mxu0 }
 0x130   : > { %v1141_v38 = vpop.f32.mrb[8].mxu1  ;;  %v2937_v4 = vpop.f32.mrb[33].mxu0 }
 0x131   : > { %v2809_v39 = vpack.c.bf16 %v1749_v36, %v1749_v36  ;;  %v1750_v40 = vmax.f32 %v1693_v37, 0.0  ;;  %v1406_v41 = vadd.f32 %v3755_v46, %v1141_v38  ;;  %v1143_v42 = vpop.f32.mrb[9].mxu1  ;;  %v3829_v11 = vpop.f32.mrb[34].mxu0 }
 0x132   : > { %v1144_v44 = vpop.f32.mrb[10].mxu1  ;;  %v2938_v12 = vpop.f32.mrb[35].mxu0 }
 0x133   : > { %2036 = vst.msk [vmem:[%s3795_s6 + $0x8] sm:$0xf] %vm2033_vm3, %v2809_v39  ;;  %v2810_v47 = vpack.c.bf16 %v1750_v40, %v1750_v40  ;;  %v1630_v3 = vmul.f32 %v3776_v0, %v1406_v41  ;;  %v1409_v49 = vadd.f32 %v3758_v48, %v1144_v44  ;;  %v1146_v50 = vpop.f32.mrb[11].mxu1 }
 0x135   : > { %2037 = vst.msk [vmem:[%s3795_s6 + $0xc] sm:$0xf] %vm2033_vm3, %v2810_v47  ;;  %v1694_v46 = vadd.f32 %v3785_v6, %v1630_v3  ;;  %v1631_v55 = vmul.f32 %v3776_v0, %v1409_v49  ;;  %v3837_v21 = vpop.f32.mrb[36].mxu0 }
 0x136   : > { %v2941_v23 = vpop.f32.mrb[37].mxu0 }
 0x137   : > { %v1751_v56 = vmax.f32 %v1694_v46, 0.0  ;;  %v1695_v58 = vadd.f32 %v3785_v6, %v1631_v55  ;;  %v3843_v29 = vpop.f32.mrb[38].mxu0 }
 0x138   : > { %v1149_v59 = vpop.f32.mrb[12].mxu1  ;;  %v2942_v30 = vpop.f32.mrb[39].mxu0 }
 0x139   : > { %v2811_v61 = vpack.c.bf16 %v1751_v56, %v1751_v56  ;;  %v1752_v62 = vmax.f32 %v1695_v58, 0.0  ;;  %v1414_v48 = vadd.f32 %v3761_v51, %v1149_v59  ;;  %v1151_v63 = vpop.f32.mrb[13].mxu1 }
 0x13a   : > { %v1152_v2 = vpop.f32.mrb[14].mxu1 }
 0x13b   : > { %2038 = vst.msk [vmem:[%s3795_s6 + $0x10] sm:$0xf] %vm2033_vm3, %v2811_v61  ;;  %v2812_v7 = vpack.c.bf16 %v1752_v62, %v1752_v62  ;;  %v1632_v8 = vmul.f32 %v3776_v0, %v1414_v48  ;;  %v1417_v9 = vadd.f32 %v3764_v54, %v1152_v2  ;;  %v1154_v10 = vpop.f32.mrb[15].mxu1 }
 0x13d   : > { %2039 = vst.msk [vmem:[%s3795_s6 + $0x14] sm:$0xf] %vm2033_vm3, %v2812_v7  ;;  %v1696_v51 = vadd.f32 %v3785_v6, %v1632_v8  ;;  %v1633_v14 = vmul.f32 %v3776_v0, %v1417_v9  ;;  %v3851_v39 = vpop.f32.mrb[40].mxu0 }
 0x13e   : > { %v2945_v41 = vpop.f32.mrb[41].mxu0 }
 0x13f   : > { %v1753_v15 = vmax.f32 %v1696_v51, 0.0  ;;  %v1697_v16 = vadd.f32 %v3785_v6, %v1633_v14  ;;  %v3857_v3 = vpop.f32.mrb[42].mxu0 }
 0x140   : > { %v1157_v17 = vpop.f32.mrb[16].mxu1  ;;  %v2946_v49 = vpop.f32.mrb[43].mxu0 }
 0x141   : > { %v2813_v18 = vpack.c.bf16 %v1753_v15, %v1753_v15  ;;  %v1754_v19 = vmax.f32 %v1697_v16, 0.0  ;;  %v1422_v54 = vadd.f32 %v3767_v57, %v1157_v17  ;;  %v1159_v20 = vpop.f32.mrb[17].mxu1 }
 0x142   : > { %v1160_v22 = vpop.f32.mrb[18].mxu1 }
 0x143   : > { %2040 = vst.msk [vmem:[%s3795_s6 + $0x18] sm:$0xf] %vm2033_vm3, %v2813_v18  ;;  %v2814_v24 = vpack.c.bf16 %v1754_v19, %v1754_v19  ;;  %v1634_v26 = vmul.f32 %v3776_v0, %v1422_v54  ;;  %v1425_v27 = vadd.f32 %v3770_v60, %v1160_v22  ;;  %v1162_v28 = vpop.f32.mrb[19].mxu1 }
 0x145   : > { %2041 = vst.msk [vmem:[%s3795_s6 + $0x1c] sm:$0xf] %vm2033_vm3, %v2814_v24  ;;  %v1698_v57 = vadd.f32 %v3785_v6, %v1634_v26  ;;  %v1635_v31 = vmul.f32 %v3776_v0, %v1425_v27  ;;  %v3865_v61 = vpop.f32.mrb[44].mxu0 }
 0x146   : > { %v2949_v48 = vpop.f32.mrb[45].mxu0 }
 0x147   : > { %v1755_v33 = vmax.f32 %v1698_v57, 0.0  ;;  %v1699_v34 = vadd.f32 %v3785_v6, %v1635_v31  ;;  %v3871_v8 = vpop.f32.mrb[46].mxu0 }
 0x148   : > { %v1165_v35 = vpop.f32.mrb[20].mxu1  ;;  %v2950_v9 = vpop.f32.mrb[47].mxu0 }
 0x149   : > { %v2815_v36 = vpack.c.bf16 %v1755_v33, %v1755_v33  ;;  %v1756_v37 = vmax.f32 %v1699_v34, 0.0  ;;  %v1430_v60 = vadd.f32 %v3780_v5, %v1165_v35  ;;  %v1167_v38 = vpop.f32.mrb[21].mxu1 }
 0x14a   : > { %v1168_v40 = vpop.f32.mrb[22].mxu1 }
 0x14b   : > { %2042 = vst.msk [vmem:[%s3795_s6 + $0x20] sm:$0xf] %vm2033_vm3, %v2815_v36  ;;  %v2816_v42 = vpack.c.bf16 %v1756_v37, %v1756_v37  ;;  %v1636_v44 = vmul.f32 %v3776_v0, %v1430_v60  ;;  %v1433_v45 = vadd.f32 %v3788_v13, %v1168_v40  ;;  %v1170_v47 = vpop.f32.mrb[23].mxu1 }
 0x14d   : > { %2043 = vst.msk [vmem:[%s3795_s6 + $0x24] sm:$0xf] %vm2033_vm3, %v2816_v42  ;;  %v1700_v5 = vadd.f32 %v3785_v6, %v1636_v44  ;;  %v1637_v50 = vmul.f32 %v3776_v0, %v1433_v45  ;;  %v3879_v18 = vpop.f32.mrb[48].mxu0 }
 0x14e   : > { %v2953_v54 = vpop.f32.mrb[49].mxu0 }
 0x14f   : > { %v1757_v53 = vmax.f32 %v1700_v5, 0.0  ;;  %v1701_v46 = vadd.f32 %v3785_v6, %v1637_v50  ;;  %v3885_v26 = vpop.f32.mrb[50].mxu0 }
 0x150   : > { %v1173_v55 = vpop.f32.mrb[24].mxu1  ;;  %v2954_v27 = vpop.f32.mrb[51].mxu0 }
 0x151   : > { %v2817_v56 = vpack.c.bf16 %v1757_v53, %v1757_v53  ;;  %v1758_v58 = vmax.f32 %v1701_v46, 0.0  ;;  %v1438_v13 = vadd.f32 %v3793_v25, %v1173_v55  ;;  %v1175_v59 = vpop.f32.mrb[25].mxu1 }
 0x152   : > { %v1176_v62 = vpop.f32.mrb[26].mxu1 }
 0x153   : > { %2044 = vst.msk [vmem:[%s3795_s6 + $0x28] sm:$0xf] %vm2033_vm3, %v2817_v56  ;;  %v2818_v63 = vpack.c.bf16 %v1758_v58, %v1758_v58  ;;  %v1638_v2 = vmul.f32 %v3776_v0, %v1438_v13  ;;  %v1441_v4 = vadd.f32 %v3801_v32, %v1176_v62  ;;  %v1178_v7 = vpop.f32.mrb[27].mxu1 }
 0x155   : > { %2045 = vst.msk [vmem:[%s3795_s6 + $0x2c] sm:$0xf] %vm2033_vm3, %v2818_v63  ;;  %v1702_v25 = vadd.f32 %v3785_v6, %v1638_v2  ;;  %v1639_v10 = vmul.f32 %v3776_v0, %v1441_v4  ;;  %v3893_v36 = vpop.f32.mrb[52].mxu0 }
 0x156   : > { %v2957_v60 = vpop.f32.mrb[53].mxu0 }
 0x157   : > { %v1759_v12 = vmax.f32 %v1702_v25, 0.0  ;;  %v1703_v51 = vadd.f32 %v3785_v6, %v1639_v10  ;;  %v3899_v44 = vpop.f32.mrb[54].mxu0 }
 0x158   : > { %v1181_v14 = vpop.f32.mrb[28].mxu1  ;;  %v2958_v45 = vpop.f32.mrb[55].mxu0 }
 0x159   : > { %v2819_v15 = vpack.c.bf16 %v1759_v12, %v1759_v12  ;;  %v1760_v16 = vmax.f32 %v1703_v51, 0.0  ;;  %v1446_v32 = vadd.f32 %v3809_v43, %v1181_v14  ;;  %v1183_v17 = vpop.f32.mrb[29].mxu1 }
 0x15a   : > { %v1184_v19 = vpop.f32.mrb[30].mxu1 }
 0x15b   : > { %2046 = vst.msk [vmem:[%s3795_s6 + $0x30] sm:$0xf] %vm2033_vm3, %v2819_v15  ;;  %v2820_v20 = vpack.c.bf16 %v1760_v16, %v1760_v16  ;;  %v1640_v22 = vmul.f32 %v3776_v0, %v1446_v32  ;;  %v1449_v23 = vadd.f32 %v3815_v52, %v1184_v19  ;;  %v1186_v24 = vpop.f32.mrb[31].mxu1 }
 0x15d   : > { %2047 = vst.msk [vmem:[%s3795_s6 + $0x34] sm:$0xf] %vm2033_vm3, %v2820_v20  ;;  %v1704_v43 = vadd.f32 %v3785_v6, %v1640_v22  ;;  %v1641_v28 = vmul.f32 %v3776_v0, %v1449_v23  ;;  %v3907_v56 = vpop.f32.mrb[56].mxu0 }
 0x15e   : > { %v2961_v13 = vpop.f32.mrb[57].mxu0 }
 0x15f   : > { %v1761_v30 = vmax.f32 %v1704_v43, 0.0  ;;  %v1705_v57 = vadd.f32 %v3785_v6, %v1641_v28  ;;  %v3913_v2 = vpop.f32.mrb[58].mxu0 }
 0x160   : > { %v1189_v31 = vpop.f32.mrb[32].mxu1  ;;  %v2962_v4 = vpop.f32.mrb[59].mxu0 }
 0x161   : > { %v2821_v33 = vpack.c.bf16 %v1761_v30, %v1761_v30  ;;  %v1762_v34 = vmax.f32 %v1705_v57, 0.0  ;;  %v1454_v52 = vadd.f32 %v3823_v1, %v1189_v31  ;;  %v1191_v35 = vpop.f32.mrb[33].mxu1 }
 0x162   : > { %v1192_v37 = vpop.f32.mrb[34].mxu1 }
 0x163   : > { %2048 = vst.msk [vmem:[%s3795_s6 + $0x38] sm:$0xf] %vm2033_vm3, %v2821_v33  ;;  %v2822_v38 = vpack.c.bf16 %v1762_v34, %v1762_v34  ;;  %v1642_v40 = vmul.f32 %v3776_v0, %v1454_v52  ;;  %v1457_v41 = vadd.f32 %v3829_v11, %v1192_v37  ;;  %v1194_v42 = vpop.f32.mrb[35].mxu1 }
 0x165   : > { %2049 = vst.msk [vmem:[%s3795_s6 + $0x3c] sm:$0xf] %vm2033_vm3, %v2822_v38  ;;  %v1706_v1 = vadd.f32 %v3785_v6, %v1642_v40  ;;  %v1643_v47 = vmul.f32 %v3776_v0, %v1457_v41  ;;  %v3921_v15 = vpop.f32.mrb[60].mxu0 }
 0x166   : > { %v2965_v32 = vpop.f32.mrb[61].mxu0 }
 0x167   : > { %v1763_v49 = vmax.f32 %v1706_v1, 0.0  ;;  %v1707_v5 = vadd.f32 %v3785_v6, %v1643_v47  ;;  %v3927_v22 = vpop.f32.mrb[62].mxu0 }
 0x168   : > { %v1197_v50 = vpop.f32.mrb[36].mxu1  ;;  %v2966_v23 = vpop.f32.mrb[63].mxu0 }
 0x169   : > { %v2823_v53 = vpack.c.bf16 %v1763_v49, %v1763_v49  ;;  %v1764_v46 = vmax.f32 %v1707_v5, 0.0  ;;  %v1462_v11 = vadd.f32 %v3837_v21, %v1197_v50  ;;  %v1199_v55 = vpop.f32.mrb[37].mxu1 }
 0x16a   : > { %v1200_v58 = vpop.f32.mrb[38].mxu1 }
 0x16b   : > { %2050 = vst.msk [vmem:[%s3795_s6 + $0x40] sm:$0xf] %vm2033_vm3, %v2823_v53  ;;  %v2824_v59 = vpack.c.bf16 %v1764_v46, %v1764_v46  ;;  %v1644_v62 = vmul.f32 %v3776_v0, %v1462_v11  ;;  %v1465_v48 = vadd.f32 %v3843_v29, %v1200_v58  ;;  %v1202_v63 = vpop.f32.mrb[39].mxu1 }
 0x16d   : > { %2051 = vst.msk [vmem:[%s3795_s6 + $0x44] sm:$0xf] %vm2033_vm3, %v2824_v59  ;;  %v1708_v21 = vadd.f32 %v3785_v6, %v1644_v62  ;;  %v1645_v7 = vmul.f32 %v3776_v0, %v1465_v48  ;;  %v3935_v33 = vpop.f32.mrb[64].mxu0 }
 0x16e   : > { %v2969_v52 = vpop.f32.mrb[65].mxu0 }
 0x16f   : > { %v1765_v9 = vmax.f32 %v1708_v21, 0.0  ;;  %v1709_v25 = vadd.f32 %v3785_v6, %v1645_v7  ;;  %v3941_v40 = vpop.f32.mrb[66].mxu0 }
 0x170   : > { %v1205_v10 = vpop.f32.mrb[40].mxu1  ;;  %v2970_v41 = vpop.f32.mrb[67].mxu0 }
 0x171   : > { %v2825_v12 = vpack.c.bf16 %v1765_v9, %v1765_v9  ;;  %v1766_v51 = vmax.f32 %v1709_v25, 0.0  ;;  %v1470_v29 = vadd.f32 %v3851_v39, %v1205_v10  ;;  %v1207_v14 = vpop.f32.mrb[41].mxu1 }
 0x172   : > { %v1208_v16 = vpop.f32.mrb[42].mxu1 }
 0x173   : > { %2052 = vst.msk [vmem:[%s3795_s6 + $0x48] sm:$0xf] %vm2033_vm3, %v2825_v12  ;;  %v2826_v17 = vpack.c.bf16 %v1766_v51, %v1766_v51  ;;  %v1646_v19 = vmul.f32 %v3776_v0, %v1470_v29  ;;  %v1473_v54 = vadd.f32 %v3857_v3, %v1208_v16  ;;  %v1210_v20 = vpop.f32.mrb[43].mxu1 }
 0x175   : > { %2053 = vst.msk [vmem:[%s3795_s6 + $0x4c] sm:$0xf] %vm2033_vm3, %v2826_v17  ;;  %v1710_v39 = vadd.f32 %v3785_v6, %v1646_v19  ;;  %v1647_v24 = vmul.f32 %v3776_v0, %v1473_v54  ;;  %v3949_v53 = vpop.f32.mrb[68].mxu0 }
 0x176   : > { %v2973_v11 = vpop.f32.mrb[69].mxu0 }
 0x177   : > { %v1767_v27 = vmax.f32 %v1710_v39, 0.0  ;;  %v1711_v43 = vadd.f32 %v3785_v6, %v1647_v24  ;;  %v3955_v62 = vpop.f32.mrb[70].mxu0 }
 0x178   : > { %v1213_v28 = vpop.f32.mrb[44].mxu1  ;;  %v2974_v48 = vpop.f32.mrb[71].mxu0 }
 0x179   : > { %v2827_v30 = vpack.c.bf16 %v1767_v27, %v1767_v27  ;;  %v1768_v57 = vmax.f32 %v1711_v43, 0.0  ;;  %v1478_v3 = vadd.f32 %v3865_v61, %v1213_v28  ;;  %v1215_v31 = vpop.f32.mrb[45].mxu1 }
 0x17a   : > { %v1216_v34 = vpop.f32.mrb[46].mxu1 }
 0x17b   : > { %2054 = vst.msk [vmem:[%s3795_s6 + $0x50] sm:$0xf] %vm2033_vm3, %v2827_v30  ;;  %v2828_v35 = vpack.c.bf16 %v1768_v57, %v1768_v57  ;;  %v1648_v37 = vmul.f32 %v3776_v0, %v1478_v3  ;;  %v1481_v60 = vadd.f32 %v3871_v8, %v1216_v34  ;;  %v1218_v38 = vpop.f32.mrb[47].mxu1 }
 0x17d   : > { %2055 = vst.msk [vmem:[%s3795_s6 + $0x54] sm:$0xf] %vm2033_vm3, %v2828_v35  ;;  %v1712_v61 = vadd.f32 %v3785_v6, %v1648_v37  ;;  %v1649_v42 = vmul.f32 %v3776_v0, %v1481_v60  ;;  %v3963_v12 = vpop.f32.mrb[72].mxu0 }
 0x17e   : > { %v2977_v29 = vpop.f32.mrb[73].mxu0 }
 0x17f   : > { %v1769_v45 = vmax.f32 %v1712_v61, 0.0  ;;  %v1713_v1 = vadd.f32 %v3785_v6, %v1649_v42  ;;  %v3969_v19 = vpop.f32.mrb[74].mxu0 }
 0x180   : > { %v1221_v47 = vpop.f32.mrb[48].mxu1  ;;  %v2978_v54 = vpop.f32.mrb[75].mxu0 }
 0x181   : > { %v2829_v49 = vpack.c.bf16 %v1769_v45, %v1769_v45  ;;  %v1770_v5 = vmax.f32 %v1713_v1, 0.0  ;;  %v1486_v8 = vadd.f32 %v3879_v18, %v1221_v47  ;;  %v1223_v50 = vpop.f32.mrb[49].mxu1 }
 0x182   : > { %v1224_v46 = vpop.f32.mrb[50].mxu1 }
 0x183   : > { %2056 = vst.msk [vmem:[%s3795_s6 + $0x58] sm:$0xf] %vm2033_vm3, %v2829_v49  ;;  %v2830_v55 = vpack.c.bf16 %v1770_v5, %v1770_v5  ;;  %v1650_v58 = vmul.f32 %v3776_v0, %v1486_v8  ;;  %v1489_v13 = vadd.f32 %v3885_v26, %v1224_v46  ;;  %v1226_v59 = vpop.f32.mrb[51].mxu1 }
 0x185   : > { %2057 = vst.msk [vmem:[%s3795_s6 + $0x5c] sm:$0xf] %vm2033_vm3, %v2830_v55  ;;  %v1714_v18 = vadd.f32 %v3785_v6, %v1650_v58  ;;  %v1651_v63 = vmul.f32 %v3776_v0, %v1489_v13  ;;  %v3977_v30 = vpop.f32.mrb[76].mxu0 }
 0x186   : > { %v2981_v3 = vpop.f32.mrb[77].mxu0 }
 0x187   : > { %v1771_v4 = vmax.f32 %v1714_v18, 0.0  ;;  %v1715_v21 = vadd.f32 %v3785_v6, %v1651_v63  ;;  %v3983_v37 = vpop.f32.mrb[78].mxu0 }
 0x188   : > { %v1229_v7 = vpop.f32.mrb[52].mxu1  ;;  %v2982_v60 = vpop.f32.mrb[79].mxu0 }
 0x189   : > { %v2831_v9 = vpack.c.bf16 %v1771_v4, %v1771_v4  ;;  %v1772_v25 = vmax.f32 %v1715_v21, 0.0  ;;  %v1494_v26 = vadd.f32 %v3893_v36, %v1229_v7  ;;  %v1231_v10 = vpop.f32.mrb[53].mxu1 }
 0x18a   : > { %v1232_v51 = vpop.f32.mrb[54].mxu1 }
 0x18b   : > { %2058 = vst.msk [vmem:[%s3795_s6 + $0x60] sm:$0xf] %vm2033_vm3, %v2831_v9  ;;  %v2832_v14 = vpack.c.bf16 %v1772_v25, %v1772_v25  ;;  %v1652_v16 = vmul.f32 %v3776_v0, %v1494_v26  ;;  %v1497_v32 = vadd.f32 %v3899_v44, %v1232_v51  ;;  %v1234_v17 = vpop.f32.mrb[55].mxu1 }
 0x18d   : > { %2059 = vst.msk [vmem:[%s3795_s6 + $0x64] sm:$0xf] %vm2033_vm3, %v2832_v14  ;;  %v1716_v36 = vadd.f32 %v3785_v6, %v1652_v16  ;;  %v1653_v20 = vmul.f32 %v3776_v0, %v1497_v32  ;;  %v3991_v49 = vpop.f32.mrb[80].mxu0 }
 0x18e   : > { %v2985_v8 = vpop.f32.mrb[81].mxu0 }
 0x18f   : > { %v1773_v23 = vmax.f32 %v1716_v36, 0.0  ;;  %v1717_v39 = vadd.f32 %v3785_v6, %v1653_v20  ;;  %v3997_v58 = vpop.f32.mrb[82].mxu0 }
 0x190   : > { %v1237_v24 = vpop.f32.mrb[56].mxu1  ;;  %v2986_v13 = vpop.f32.mrb[83].mxu0 }
 0x191   : > { %v2833_v27 = vpack.c.bf16 %v1773_v23, %v1773_v23  ;;  %v1774_v43 = vmax.f32 %v1717_v39, 0.0  ;;  %v1502_v44 = vadd.f32 %v3907_v56, %v1237_v24  ;;  %v1239_v28 = vpop.f32.mrb[57].mxu1 }
 0x192   : > { %v1240_v57 = vpop.f32.mrb[58].mxu1 }
 0x193   : > { %2060 = vst.msk [vmem:[%s3795_s6 + $0x68] sm:$0xf] %vm2033_vm3, %v2833_v27  ;;  %v2834_v31 = vpack.c.bf16 %v1774_v43, %v1774_v43  ;;  %v1654_v34 = vmul.f32 %v3776_v0, %v1502_v44  ;;  %v1505_v52 = vadd.f32 %v3913_v2, %v1240_v57  ;;  %v1242_v35 = vpop.f32.mrb[59].mxu1 }
 0x195   : > { %2061 = vst.msk [vmem:[%s3795_s6 + $0x6c] sm:$0xf] %vm2033_vm3, %v2834_v31  ;;  %v1718_v56 = vadd.f32 %v3785_v6, %v1654_v34  ;;  %v1655_v38 = vmul.f32 %v3776_v0, %v1505_v52  ;;  %v4005_v9 = vpop.f32.mrb[84].mxu0 }
 0x196   : > { %v2989_v26 = vpop.f32.mrb[85].mxu0 }
 0x197   : > { %v1775_v41 = vmax.f32 %v1718_v56, 0.0  ;;  %v1719_v61 = vadd.f32 %v3785_v6, %v1655_v38  ;;  %v4011_v16 = vpop.f32.mrb[86].mxu0 }
 0x198   : > { %v1245_v42 = vpop.f32.mrb[60].mxu1  ;;  %v2990_v32 = vpop.f32.mrb[87].mxu0 }
 0x199   : > { %v2835_v45 = vpack.c.bf16 %v1775_v41, %v1775_v41  ;;  %v1776_v1 = vmax.f32 %v1719_v61, 0.0  ;;  %v1510_v2 = vadd.f32 %v3921_v15, %v1245_v42  ;;  %v1247_v47 = vpop.f32.mrb[61].mxu1 }
 0x19a   : > { %v1248_v5 = vpop.f32.mrb[62].mxu1 }
 0x19b   : > { %2062 = vst.msk [vmem:[%s3795_s6 + $0x70] sm:$0xf] %vm2033_vm3, %v2835_v45  ;;  %v2836_v50 = vpack.c.bf16 %v1776_v1, %v1776_v1  ;;  %v1656_v46 = vmul.f32 %v3776_v0, %v1510_v2  ;;  %v1513_v11 = vadd.f32 %v3927_v22, %v1248_v5  ;;  %v1250_v55 = vpop.f32.mrb[63].mxu1 }
 0x19d   : > { %2063 = vst.msk [vmem:[%s3795_s6 + $0x74] sm:$0xf] %vm2033_vm3, %v2836_v50  ;;  %v1720_v15 = vadd.f32 %v3785_v6, %v1656_v46  ;;  %v1657_v59 = vmul.f32 %v3776_v0, %v1513_v11  ;;  %v4019_v27 = vpop.f32.mrb[88].mxu0 }
 0x19e   : > { %v2993_v44 = vpop.f32.mrb[89].mxu0 }
 0x19f   : > { %v1777_v48 = vmax.f32 %v1720_v15, 0.0  ;;  %v1721_v18 = vadd.f32 %v3785_v6, %v1657_v59  ;;  %v4025_v34 = vpop.f32.mrb[90].mxu0 }
 0x1a0   : > { %v1253_v63 = vpop.f32.mrb[64].mxu1  ;;  %v2994_v52 = vpop.f32.mrb[91].mxu0 }
 0x1a1   : > { %v2837_v4 = vpack.c.bf16 %v1777_v48, %v1777_v48  ;;  %v1778_v21 = vmax.f32 %v1721_v18, 0.0  ;;  %v1518_v22 = vadd.f32 %v3935_v33, %v1253_v63  ;;  %v1255_v7 = vpop.f32.mrb[65].mxu1 }
 0x1a2   : > { %v1256_v25 = vpop.f32.mrb[66].mxu1 }
 0x1a3   : > { %2064 = vst.msk [vmem:[%s3795_s6 + $0x78] sm:$0xf] %vm2033_vm3, %v2837_v4  ;;  %v2838_v10 = vpack.c.bf16 %v1778_v21, %v1778_v21  ;;  %v1658_v51 = vmul.f32 %v3776_v0, %v1518_v22  ;;  %v1521_v29 = vadd.f32 %v3941_v40, %v1256_v25  ;;  %v1258_v14 = vpop.f32.mrb[67].mxu1 }
 0x1a5   : > { %2065 = vst.msk [vmem:[%s3795_s6 + $0x7c] sm:$0xf] %vm2033_vm3, %v2838_v10  ;;  %v1722_v33 = vadd.f32 %v3785_v6, %v1658_v51  ;;  %v1659_v17 = vmul.f32 %v3776_v0, %v1521_v29  ;;  %v4033_v45 = vpop.f32.mrb[92].mxu0 }
 0x1a6   : > { %v2997_v2 = vpop.f32.mrb[93].mxu0 }
 0x1a7   : > { %v1779_v54 = vmax.f32 %v1722_v33, 0.0  ;;  %v1723_v36 = vadd.f32 %v3785_v6, %v1659_v17  ;;  %v4039_v46 = vpop.f32.mrb[94].mxu0 }
 0x1a8   : > { %v1261_v20 = vpop.f32.mrb[68].mxu1  ;;  %v2998_v11 = vpop.f32.mrb[95].mxu0 }
 0x1a9   : > { %v2839_v23 = vpack.c.bf16 %v1779_v54, %v1779_v54  ;;  %v1780_v39 = vmax.f32 %v1723_v36, 0.0  ;;  %v1526_v40 = vadd.f32 %v3949_v53, %v1261_v20  ;;  %v1263_v24 = vpop.f32.mrb[69].mxu1 }
 0x1aa   : > { %v1264_v43 = vpop.f32.mrb[70].mxu1 }
 0x1ab   : > { %2066 = vst.msk [vmem:[%s3795_s6 + $0x80] sm:$0xf] %vm2033_vm3, %v2839_v23  ;;  %v2840_v28 = vpack.c.bf16 %v1780_v39, %v1780_v39  ;;  %v1660_v57 = vmul.f32 %v3776_v0, %v1526_v40  ;;  %v1529_v3 = vadd.f32 %v3955_v62, %v1264_v43  ;;  %v1266_v31 = vpop.f32.mrb[71].mxu1 }
 0x1ad   : > { %2067 = vst.msk [vmem:[%s3795_s6 + $0x84] sm:$0xf] %vm2033_vm3, %v2840_v28  ;;  %v1724_v53 = vadd.f32 %v3785_v6, %v1660_v57  ;;  %v1661_v35 = vmul.f32 %v3776_v0, %v1529_v3  ;;  %v4047_v4 = vpop.f32.mrb[96].mxu0 }
 0x1ae   : > { %v3001_v22 = vpop.f32.mrb[97].mxu0 }
 0x1af   : > { %v1781_v60 = vmax.f32 %v1724_v53, 0.0  ;;  %v1725_v56 = vadd.f32 %v3785_v6, %v1661_v35  ;;  %v4053_v51 = vpop.f32.mrb[98].mxu0 }
 0x1b0   : > { %v1269_v38 = vpop.f32.mrb[72].mxu1  ;;  %v3002_v29 = vpop.f32.mrb[99].mxu0 }
 0x1b1   : > { %v2841_v41 = vpack.c.bf16 %v1781_v60, %v1781_v60  ;;  %v1782_v61 = vmax.f32 %v1725_v56, 0.0  ;;  %v1534_v62 = vadd.f32 %v3963_v12, %v1269_v38  ;;  %v1271_v42 = vpop.f32.mrb[73].mxu1 }
 0x1b2   : > { %v1272_v1 = vpop.f32.mrb[74].mxu1 }
 0x1b3   : > { %2068 = vst.msk [vmem:[%s3795_s6 + $0x88] sm:$0xf] %vm2033_vm3, %v2841_v41  ;;  %v2842_v47 = vpack.c.bf16 %v1782_v61, %v1782_v61  ;;  %v1662_v5 = vmul.f32 %v3776_v0, %v1534_v62  ;;  %v1537_v8 = vadd.f32 %v3969_v19, %v1272_v1  ;;  %v1274_v50 = vpop.f32.mrb[75].mxu1 }
 0x1b5   : > { %2069 = vst.msk [vmem:[%s3795_s6 + $0x8c] sm:$0xf] %vm2033_vm3, %v2842_v47  ;;  %v1726_v12 = vadd.f32 %v3785_v6, %v1662_v5  ;;  %v1663_v55 = vmul.f32 %v3776_v0, %v1537_v8  ;;  %v4061_v23 = vpop.f32.mrb[100].mxu0 }
 0x1b6   : > { %v3005_v40 = vpop.f32.mrb[101].mxu0 }
 0x1b7   : > { %v1783_v13 = vmax.f32 %v1726_v12, 0.0  ;;  %v1727_v15 = vadd.f32 %v3785_v6, %v1663_v55  ;;  %v4067_v57 = vpop.f32.mrb[102].mxu0 }
 0x1b8   : > { %v1277_v59 = vpop.f32.mrb[76].mxu1  ;;  %v3006_v3 = vpop.f32.mrb[103].mxu0 }
 0x1b9   : > { %v2843_v48 = vpack.c.bf16 %v1783_v13, %v1783_v13  ;;  %v1784_v18 = vmax.f32 %v1727_v15, 0.0  ;;  %v1542_v19 = vadd.f32 %v3977_v30, %v1277_v59  ;;  %v1279_v63 = vpop.f32.mrb[77].mxu1 }
 0x1ba   : > { %v1280_v21 = vpop.f32.mrb[78].mxu1 }
 0x1bb   : > { %2070 = vst.msk [vmem:[%s3795_s6 + $0x90] sm:$0xf] %vm2033_vm3, %v2843_v48  ;;  %v2844_v7 = vpack.c.bf16 %v1784_v18, %v1784_v18  ;;  %v1664_v25 = vmul.f32 %v3776_v0, %v1542_v19  ;;  %v1545_v26 = vadd.f32 %v3983_v37, %v1280_v21  ;;  %v1282_v10 = vpop.f32.mrb[79].mxu1 }
 0x1bd   : > { %2071 = vst.msk [vmem:[%s3795_s6 + $0x94] sm:$0xf] %vm2033_vm3, %v2844_v7  ;;  %v1728_v30 = vadd.f32 %v3785_v6, %v1664_v25  ;;  %v1665_v14 = vmul.f32 %v3776_v0, %v1545_v26  ;;  %v4075_v41 = vpop.f32.mrb[104].mxu0 }
 0x1be   : > { %v3009_v62 = vpop.f32.mrb[105].mxu0 }
 0x1bf   : > { %v1785_v32 = vmax.f32 %v1728_v30, 0.0  ;;  %v1729_v33 = vadd.f32 %v3785_v6, %v1665_v14  ;;  %v4081_v5 = vpop.f32.mrb[106].mxu0 }
 0x1c0   : > { %v1285_v17 = vpop.f32.mrb[80].mxu1  ;;  %v3010_v8 = vpop.f32.mrb[107].mxu0 }
 0x1c1   : > { %v2845_v54 = vpack.c.bf16 %v1785_v32, %v1785_v32  ;;  %v1786_v36 = vmax.f32 %v1729_v33, 0.0  ;;  %v1550_v37 = vadd.f32 %v3991_v49, %v1285_v17  ;;  %v1287_v20 = vpop.f32.mrb[81].mxu1 }
 0x1c2   : > { %v1288_v39 = vpop.f32.mrb[82].mxu1 }
 0x1c3   : > { %2072 = vst.msk [vmem:[%s3795_s6 + $0x98] sm:$0xf] %vm2033_vm3, %v2845_v54  ;;  %v2846_v24 = vpack.c.bf16 %v1786_v36, %v1786_v36  ;;  %v1666_v43 = vmul.f32 %v3776_v0, %v1550_v37  ;;  %v1553_v44 = vadd.f32 %v3997_v58, %v1288_v39  ;;  %v1290_v28 = vpop.f32.mrb[83].mxu1 }
 0x1c5   : > { %2073 = vst.msk [vmem:[%s3795_s6 + $0x9c] sm:$0xf] %vm2033_vm3, %v2846_v24  ;;  %v1730_v49 = vadd.f32 %v3785_v6, %v1666_v43  ;;  %v1667_v31 = vmul.f32 %v3776_v0, %v1553_v44  ;;  %v4089_v48 = vpop.f32.mrb[108].mxu0 }
 0x1c6   : > { %v3013_v19 = vpop.f32.mrb[109].mxu0 }
 0x1c7   : > { %v1787_v52 = vmax.f32 %v1730_v49, 0.0  ;;  %v1731_v53 = vadd.f32 %v3785_v6, %v1667_v31  ;;  %v4095_v25 = vpop.f32.mrb[110].mxu0 }
 0x1c8   : > { %v1293_v35 = vpop.f32.mrb[84].mxu1  ;;  %v3014_v26 = vpop.f32.mrb[111].mxu0 }
 0x1c9   : > { %v2847_v60 = vpack.c.bf16 %v1787_v52, %v1787_v52  ;;  %v1788_v56 = vmax.f32 %v1731_v53, 0.0  ;;  %v1558_v58 = vadd.f32 %v4005_v9, %v1293_v35  ;;  %v1295_v38 = vpop.f32.mrb[85].mxu1 }
 0x1ca   : > { %v1296_v61 = vpop.f32.mrb[86].mxu1 }
 0x1cb   : > { %2074 = vst.msk [vmem:[%s3795_s6 + $0xa0] sm:$0xf] %vm2033_vm3, %v2847_v60  ;;  %v2848_v42 = vpack.c.bf16 %v1788_v56, %v1788_v56  ;;  %v1668_v1 = vmul.f32 %v3776_v0, %v1558_v58  ;;  %v1561_v2 = vadd.f32 %v4011_v16, %v1296_v61  ;;  %v1298_v47 = vpop.f32.mrb[87].mxu1 }
 0x1cd   : > { %2075 = vst.msk [vmem:[%s3795_s6 + $0xa4] sm:$0xf] %vm2033_vm3, %v2848_v42  ;;  %v1732_v9 = vadd.f32 %v3785_v6, %v1668_v1  ;;  %v1669_v50 = vmul.f32 %v3776_v0, %v1561_v2  ;;  %v4103_v54 = vpop.f32.mrb[112].mxu0 }
 0x1ce   : > { %v3017_v37 = vpop.f32.mrb[113].mxu0 }
 0x1cf   : > { %v1789_v11 = vmax.f32 %v1732_v9, 0.0  ;;  %v1733_v12 = vadd.f32 %v3785_v6, %v1669_v50  ;;  %v1616_v43 = vpop.f32.mrb[114].mxu0 }
 0x1d0   : > { %v1301_v55 = vpop.f32.mrb[88].mxu1  ;;  %v3018_v44 = vpop.f32.mrb[115].mxu0 }
 0x1d1   : > { %v2849_v13 = vpack.c.bf16 %v1789_v11, %v1789_v11  ;;  %v1790_v15 = vmax.f32 %v1733_v12, 0.0  ;;  %v1566_v16 = vadd.f32 %v4019_v27, %v1301_v55  ;;  %v1303_v59 = vpop.f32.mrb[89].mxu1 }
 0x1d2   : > { %v1304_v18 = vpop.f32.mrb[90].mxu1 }
 0x1d3   : > { %2076 = vst.msk [vmem:[%s3795_s6 + $0xa8] sm:$0xf] %vm2033_vm3, %v2849_v13  ;;  %v2850_v63 = vpack.c.bf16 %v1790_v15, %v1790_v15  ;;  %v1670_v21 = vmul.f32 %v3776_v0, %v1566_v16  ;;  %v1569_v22 = vadd.f32 %v4025_v34, %v1304_v18  ;;  %v1306_v7 = vpop.f32.mrb[91].mxu1 }
 0x1d5   : > { %2077 = vst.msk [vmem:[%s3795_s6 + $0xac] sm:$0xf] %vm2033_vm3, %v2850_v63  ;;  %v1734_v27 = vadd.f32 %v3785_v6, %v1670_v21  ;;  %v1671_v10 = vmul.f32 %v3776_v0, %v1569_v22 }
 0x1d7   : > { %v1791_v29 = vmax.f32 %v1734_v27, 0.0  ;;  %v1735_v30 = vadd.f32 %v3785_v6, %v1671_v10 }
 0x1d8   : > { %v1309_v14 = vpop.f32.mrb[92].mxu1 }
 0x1d9   : > { %v2851_v32 = vpack.c.bf16 %v1791_v29, %v1791_v29  ;;  %v1792_v33 = vmax.f32 %v1735_v30, 0.0  ;;  %v1574_v34 = vadd.f32 %v4033_v45, %v1309_v14  ;;  %v1311_v17 = vpop.f32.mrb[93].mxu1 }
 0x1da   : > { %v1312_v36 = vpop.f32.mrb[94].mxu1 }
 0x1db   : > { %2078 = vst.msk [vmem:[%s3795_s6 + $0xb0] sm:$0xf] %vm2033_vm3, %v2851_v32  ;;  %v2852_v20 = vpack.c.bf16 %v1792_v33, %v1792_v33  ;;  %v1672_v39 = vmul.f32 %v3776_v0, %v1574_v34  ;;  %v1577_v40 = vadd.f32 %v4039_v46, %v1312_v36  ;;  %v1314_v24 = vpop.f32.mrb[95].mxu1 }
 0x1dd   : > { %2079 = vst.msk [vmem:[%s3795_s6 + $0xb4] sm:$0xf] %vm2033_vm3, %v2852_v20  ;;  %v1736_v45 = vadd.f32 %v3785_v6, %v1672_v39  ;;  %v1673_v28 = vmul.f32 %v3776_v0, %v1577_v40 }
 0x1df   : > { %v1793_v3 = vmax.f32 %v1736_v45, 0.0  ;;  %v1737_v49 = vadd.f32 %v3785_v6, %v1673_v28 }
 0x1e0   : > { %v1317_v31 = vpop.f32.mrb[96].mxu1 }
 0x1e1   : > { %v2853_v52 = vpack.c.bf16 %v1793_v3, %v1793_v3  ;;  %v1794_v53 = vmax.f32 %v1737_v49, 0.0  ;;  %v1582_v35 = vadd.f32 %v4047_v4, %v1317_v31  ;;  %v1319_v60 = vpop.f32.mrb[97].mxu1 }
 0x1e2   : > { %v1320_v46 = vpop.f32.mrb[98].mxu1 }
 0x1e3   : > { %2080 = vst.msk [vmem:[%s3795_s6 + $0xb8] sm:$0xf] %vm2033_vm3, %v2853_v52  ;;  %v2854_v56 = vpack.c.bf16 %v1794_v53, %v1794_v53  ;;  %v1674_v58 = vmul.f32 %v3776_v0, %v1582_v35  ;;  %v1585_v38 = vadd.f32 %v4053_v51, %v1320_v46  ;;  %v1322_v61 = vpop.f32.mrb[99].mxu1 }
 0x1e5   : > { %2081 = vst.msk [vmem:[%s3795_s6 + $0xbc] sm:$0xf] %vm2033_vm3, %v2854_v56  ;;  %v1738_v62 = vadd.f32 %v3785_v6, %v1674_v58  ;;  %v1675_v42 = vmul.f32 %v3776_v0, %v1585_v38 }
 0x1e7   : > { %v1795_v1 = vmax.f32 %v1738_v62, 0.0  ;;  %v1739_v4 = vadd.f32 %v3785_v6, %v1675_v42 }
 0x1e8   : > { %v1325_v2 = vpop.f32.mrb[100].mxu1 }
 0x1e9   : > { %v2855_v47 = vpack.c.bf16 %v1795_v1, %v1795_v1  ;;  %v1796_v8 = vmax.f32 %v1739_v4, 0.0  ;;  %v1590_v9 = vadd.f32 %v4061_v23, %v1325_v2  ;;  %v1327_v50 = vpop.f32.mrb[101].mxu1  ;;  %v3320_v23 = vld [vmem:[%s4345_s2] ss:$0 sm:$0xff] }
 0x1ea   : > { %v1328_v11 = vpop.f32.mrb[102].mxu1 }
 0x1eb   : > { %2082 = vst.msk [vmem:[%s3795_s6 + $0xc0] sm:$0xf] %vm2033_vm3, %v2855_v47  ;;  %v2856_v51 = vpack.c.bf16 %v1796_v8, %v1796_v8  ;;  %v1676_v12 = vmul.f32 %v3776_v0, %v1590_v9  ;;  %v1593_v55 = vadd.f32 %v4067_v57, %v1328_v11  ;;  %v1330_v13 = vpop.f32.mrb[103].mxu1 }
 0x1ed   : > { %2083 = vst.msk [vmem:[%s3795_s6 + $0xc4] sm:$0xf] %vm2033_vm3, %v2856_v51  ;;  %v1740_v15 = vadd.f32 %v3785_v6, %v1676_v12  ;;  %v1677_v16 = vmul.f32 %v3320_v23, %v1593_v55 }
 0x1ef   : > { %v1797_v59 = vmax.f32 %v1740_v15, 0.0  ;;  %v1741_v18 = vadd.f32 %v3785_v6, %v1677_v16  ;;  %v3321_v6 = vld [vmem:[%s4346_s3] ss:$0 sm:$0xff] }
 0x1f0   : > { %v1333_v19 = vpop.f32.mrb[104].mxu1 }
 0x1f1   : > { %v2857_v63 = vpack.c.bf16 %v1797_v59, %v1797_v59  ;;  %v1798_v21 = vmax.f32 %v1741_v18, 0.0  ;;  %v1598_v0 = vadd.f32 %v4075_v41, %v1333_v19  ;;  %v1335_v57 = vpop.f32.mrb[105].mxu1 }
 0x1f2   : > { %v1336_v22 = vpop.f32.mrb[106].mxu1 }
 0x1f3   : > { %2084 = vst.msk [vmem:[%s3795_s6 + $0xc8] sm:$0xf] %vm2033_vm3, %v2857_v63  ;;  %v2858_v7 = vpack.c.bf16 %v1798_v21, %v1798_v21  ;;  %v1678_v26 = vmul.f32 %v3320_v23, %v1598_v0  ;;  %v1601_v27 = vadd.f32 %v4081_v5, %v1336_v22  ;;  %v1338_v10 = vpop.f32.mrb[107].mxu1 }
 0x1f5   : > { %2085 = vst.msk [vmem:[%s3795_s6 + $0xcc] sm:$0xf] %vm2033_vm3, %v2858_v7  ;;  %v1742_v29 = vadd.f32 %v3321_v6, %v1678_v26  ;;  %v1679_v30 = vmul.f32 %v3320_v23, %v1601_v27 }
 0x1f7   : > { %v1799_v41 = vmax.f32 %v1742_v29, 0.0  ;;  %v1743_v14 = vadd.f32 %v3321_v6, %v1679_v30 }
 0x1f8   : > { %v1341_v32 = vpop.f32.mrb[108].mxu1 }
 0x1f9   : > { %v2859_v33 = vpack.c.bf16 %v1799_v41, %v1799_v41  ;;  %v1800_v34 = vmax.f32 %v1743_v14, 0.0  ;;  %v1606_v17 = vadd.f32 %v4089_v48, %v1341_v32  ;;  %v1343_v36 = vpop.f32.mrb[109].mxu1 }
 0x1fa   : > { %v1344_v37 = vpop.f32.mrb[110].mxu1 }
 0x1fb   : > { %2086 = vst.msk [vmem:[%s3795_s6 + $0xd0] sm:$0xf] %vm2033_vm3, %v2859_v33  ;;  %v2860_v5 = vpack.c.bf16 %v1800_v34, %v1800_v34  ;;  %v1680_v20 = vmul.f32 %v3320_v23, %v1606_v17  ;;  %v1609_v39 = vadd.f32 %v4095_v25, %v1344_v37  ;;  %v1346_v40 = vpop.f32.mrb[111].mxu1 }
 0x1fd   : > { %2087 = vst.msk [vmem:[%s3795_s6 + $0xd4] sm:$0xf] %vm2033_vm3, %v2860_v5  ;;  %v1744_v24 = vadd.f32 %v3321_v6, %v1680_v20  ;;  %v1681_v43 = vmul.f32 %v3320_v23, %v1609_v39 }
 0x1ff   : > { %v1801_v44 = vmax.f32 %v1744_v24, 0.0  ;;  %v1745_v45 = vadd.f32 %v3321_v6, %v1681_v43 }
 0x200   : > { %v1349_v28 = vpop.f32.mrb[112].mxu1 }
 0x201   : > { %v2861_v48 = vpack.c.bf16 %v1801_v44, %v1801_v44  ;;  %v1802_v3 = vmax.f32 %v1745_v45, 0.0  ;;  %v1614_v49 = vadd.f32 %v4103_v54, %v1349_v28  ;;  %v1351_v31 = vpop.f32.mrb[113].mxu1 }
 0x202   : > { %v1352_v52 = vpop.f32.mrb[114].mxu1 }
 0x203   : > { %2088 = vst.msk [vmem:[%s3795_s6 + $0xd8] sm:$0xf] %vm2033_vm3, %v2861_v48  ;;  %v2862_v53 = vpack.c.bf16 %v1802_v3, %v1802_v3  ;;  %v1682_v25 = vmul.f32 %v3320_v23, %v1614_v49  ;;  %v1353_v35 = vpop.f32.mrb[115].mxu1 }
 0x205   : > { %2089 = vst.msk [vmem:[%s3795_s6 + $0xdc] sm:$0xf] %vm2033_vm3, %v2862_v53  ;;  %v1746_v60 = vadd.f32 %v3321_v6, %v1682_v25  ;;  %2097 = sbr.rel (!%p3490_p3) target bundleno = 623 (0x26f), region = 40 }
 0x207   : > { %v1803_v46 = vmax.f32 %v1746_v60, 0.0 }
 0x209   : > { %v2863_v56 = vpack.c.bf16 %v1803_v46, %v1803_v46 }
 0x20b   : > { %2090 = vst.msk [vmem:[%s3795_s6 + $0xe0] sm:$0xf] %vm2033_vm3, %v2863_v56 }
 0x20c   : > { %s4359_s28 = smov (!%p2100_p9, %s2099_s28), 57 }
 0x20d   : > { %s2795_s9 = sshll.u32 %s4359_s28, 6 }
 0x20e   : > { %p2798_p10 = scmp.eq.s32.totalorder %s2795_s9, 0 }
 0x20f   : > { %3322 = sdivrem.u32 (!%p2798_p10), %s4359_s28, 57 }
 0x210   : > { %2110 = sbr.rel (%p2798_p10) target bundleno = 623 (0x26f), region = 44 }
 0x218   : > { %s4171_s23 = spop.drf %3322 }
 0x219   : > { %p2799_p11 = scmp.le.s32.totalorder %s4171_s23, 0 }
 0x21a   : > { %s4349_s17 = smov (!%p2799_p11), %s4165_s8  ;;  %s4350_s30 = smov (!%p2799_p11), %s3795_s6 }
 0x21b   : > { %2513 = sbr.rel (%p2799_p11) target bundleno = 594 (0x252), region = 125  ;;  %s4180_s10 = smov (!%p2799_p11), 0  }
 0x21c   : > { %s4182_s11 = smov (!%p2799_p11), 0  }
 0x222 LB: >> { %v2127_v54 = vld [vmem:[%s3404_s30] sm:$0xf]  ;;  %v2129_v58 = vld [vmem:[%s3404_s30 + $0x4] sm:$0xf]  ;;  %v2131_v38 = vld [vmem:[%s3404_s30 + $0x8] sm:$0xf]  ;;  %s3412_s11 = sphi %s4182_s11, %s2121_s11   ;;  %s3408_s10 = sphi %s4180_s10, %s4351_s10   ;;  %s3404_s30 = sphi %s4350_s30, %s2246_s30   ;;  %s3400_s17 = sphi %s4349_s17, %s2247_s17  }
 0x223   : >> { %2128 = vst [vmem:[%s3400_s17] sm:$0xf] %v2127_v54  ;;  %2130 = vst [vmem:[%s3400_s17 + $0x4] sm:$0xf] %v2129_v58  ;;  %v2133_v61 = vld [vmem:[%s3404_s30 + $0xc] sm:$0xf]  ;;  %s2241_s12 = sadd.s32 1, %s3408_s10 }
 0x224   : >> { %2132 = vst [vmem:[%s3400_s17 + $0x8] sm:$0xf] %v2131_v38  ;;  %v2135_v62 = vld [vmem:[%s3404_s30 + $0x10] sm:$0xf]  ;;  %v2137_v42 = vld [vmem:[%s3404_s30 + $0x14] sm:$0xf]  ;;  %p2242_p12 = scmp.ge.s32.totalorder %s2241_s12, %s4171_s23 }
 0x225   : >> { %2134 = vst [vmem:[%s3400_s17 + $0xc] sm:$0xf] %v2133_v61  ;;  %2136 = vst [vmem:[%s3400_s17 + $0x10] sm:$0xf] %v2135_v62  ;;  %v2139_v1 = vld [vmem:[%s3404_s30 + $0x18] sm:$0xf] }
 0x226   : >> { %2138 = vst [vmem:[%s3400_s17 + $0x14] sm:$0xf] %v2137_v42  ;;  %v2141_v4 = vld [vmem:[%s3404_s30 + $0x1c] sm:$0xf]  ;;  %v2143_v2 = vld [vmem:[%s3404_s30 + $0x20] sm:$0xf] }
 0x227   : >> { %2140 = vst [vmem:[%s3400_s17 + $0x18] sm:$0xf] %v2139_v1  ;;  %2142 = vst [vmem:[%s3400_s17 + $0x1c] sm:$0xf] %v2141_v4  ;;  %v2145_v47 = vld [vmem:[%s3404_s30 + $0x24] sm:$0xf] }
 0x228   : >> { %2144 = vst [vmem:[%s3400_s17 + $0x20] sm:$0xf] %v2143_v2  ;;  %v2147_v8 = vld [vmem:[%s3404_s30 + $0x28] sm:$0xf]  ;;  %v2149_v9 = vld [vmem:[%s3404_s30 + $0x2c] sm:$0xf] }
 0x229   : >> { %2146 = vst [vmem:[%s3400_s17 + $0x24] sm:$0xf] %v2145_v47  ;;  %2148 = vst [vmem:[%s3400_s17 + $0x28] sm:$0xf] %v2147_v8  ;;  %v2151_v50 = vld [vmem:[%s3404_s30 + $0x30] sm:$0xf] }
 0x22a   : >> { %2150 = vst [vmem:[%s3400_s17 + $0x2c] sm:$0xf] %v2149_v9  ;;  %v2153_v11 = vld [vmem:[%s3404_s30 + $0x34] sm:$0xf]  ;;  %v2155_v51 = vld [vmem:[%s3404_s30 + $0x38] sm:$0xf] }
 0x22b   : >> { %2152 = vst [vmem:[%s3400_s17 + $0x30] sm:$0xf] %v2151_v50  ;;  %2154 = vst [vmem:[%s3400_s17 + $0x34] sm:$0xf] %v2153_v11  ;;  %v2157_v12 = vld [vmem:[%s3404_s30 + $0x3c] sm:$0xf] }
 0x22c   : >> { %2156 = vst [vmem:[%s3400_s17 + $0x38] sm:$0xf] %v2155_v51  ;;  %v2159_v55 = vld [vmem:[%s3404_s30 + $0x40] sm:$0xf]  ;;  %v2161_v13 = vld [vmem:[%s3404_s30 + $0x44] sm:$0xf] }
 0x22d   : >> { %2158 = vst [vmem:[%s3400_s17 + $0x3c] sm:$0xf] %v2157_v12  ;;  %2160 = vst [vmem:[%s3400_s17 + $0x40] sm:$0xf] %v2159_v55  ;;  %v2163_v15 = vld [vmem:[%s3404_s30 + $0x48] sm:$0xf] }
 0x22e   : >> { %2162 = vst [vmem:[%s3400_s17 + $0x44] sm:$0xf] %v2161_v13  ;;  %v2165_v23 = vld [vmem:[%s3404_s30 + $0x4c] sm:$0xf]  ;;  %v2167_v16 = vld [vmem:[%s3404_s30 + $0x50] sm:$0xf] }
 0x22f   : >> { %2164 = vst [vmem:[%s3400_s17 + $0x48] sm:$0xf] %v2163_v15  ;;  %2166 = vst [vmem:[%s3400_s17 + $0x4c] sm:$0xf] %v2165_v23  ;;  %v2169_v59 = vld [vmem:[%s3404_s30 + $0x54] sm:$0xf] }
 0x230   : >> { %2168 = vst [vmem:[%s3400_s17 + $0x50] sm:$0xf] %v2167_v16  ;;  %v2171_v18 = vld [vmem:[%s3404_s30 + $0x58] sm:$0xf]  ;;  %v2173_v19 = vld [vmem:[%s3404_s30 + $0x5c] sm:$0xf] }
 0x231   : >> { %2170 = vst [vmem:[%s3400_s17 + $0x54] sm:$0xf] %v2169_v59  ;;  %2172 = vst [vmem:[%s3400_s17 + $0x58] sm:$0xf] %v2171_v18  ;;  %v2175_v63 = vld [vmem:[%s3404_s30 + $0x60] sm:$0xf] }
 0x232   : >> { %2174 = vst [vmem:[%s3400_s17 + $0x5c] sm:$0xf] %v2173_v19  ;;  %v2177_v21 = vld [vmem:[%s3404_s30 + $0x64] sm:$0xf]  ;;  %v2179_v0 = vld [vmem:[%s3404_s30 + $0x68] sm:$0xf] }
 0x233   : >> { %2176 = vst [vmem:[%s3400_s17 + $0x60] sm:$0xf] %v2175_v63  ;;  %2178 = vst [vmem:[%s3400_s17 + $0x64] sm:$0xf] %v2177_v21  ;;  %v2181_v57 = vld [vmem:[%s3404_s30 + $0x6c] sm:$0xf] }
 0x234   : >> { %2180 = vst [vmem:[%s3400_s17 + $0x68] sm:$0xf] %v2179_v0  ;;  %v2183_v22 = vld [vmem:[%s3404_s30 + $0x70] sm:$0xf]  ;;  %v2185_v7 = vld [vmem:[%s3404_s30 + $0x74] sm:$0xf] }
 0x235   : >> { %2182 = vst [vmem:[%s3400_s17 + $0x6c] sm:$0xf] %v2181_v57  ;;  %2184 = vst [vmem:[%s3400_s17 + $0x70] sm:$0xf] %v2183_v22  ;;  %v2187_v26 = vld [vmem:[%s3404_s30 + $0x78] sm:$0xf] }
 0x236   : >> { %2186 = vst [vmem:[%s3400_s17 + $0x74] sm:$0xf] %v2185_v7  ;;  %v2189_v27 = vld [vmem:[%s3404_s30 + $0x7c] sm:$0xf]  ;;  %v2191_v10 = vld [vmem:[%s3404_s30 + $0x80] sm:$0xf] }
 0x237   : >> { %2188 = vst [vmem:[%s3400_s17 + $0x78] sm:$0xf] %v2187_v26  ;;  %2190 = vst [vmem:[%s3400_s17 + $0x7c] sm:$0xf] %v2189_v27  ;;  %v2193_v6 = vld [vmem:[%s3404_s30 + $0x84] sm:$0xf] }
 0x238   : >> { %2192 = vst [vmem:[%s3400_s17 + $0x80] sm:$0xf] %v2191_v10  ;;  %v2195_v29 = vld [vmem:[%s3404_s30 + $0x88] sm:$0xf]  ;;  %v2197_v30 = vld [vmem:[%s3404_s30 + $0x8c] sm:$0xf] }
 0x239   : >> { %2194 = vst [vmem:[%s3400_s17 + $0x84] sm:$0xf] %v2193_v6  ;;  %2196 = vst [vmem:[%s3400_s17 + $0x88] sm:$0xf] %v2195_v29  ;;  %v2199_v41 = vld [vmem:[%s3404_s30 + $0x90] sm:$0xf] }
 0x23a   : >> { %2198 = vst [vmem:[%s3400_s17 + $0x8c] sm:$0xf] %v2197_v30  ;;  %v2201_v14 = vld [vmem:[%s3404_s30 + $0x94] sm:$0xf]  ;;  %v2203_v32 = vld [vmem:[%s3404_s30 + $0x98] sm:$0xf] }
 0x23b   : >> { %2200 = vst [vmem:[%s3400_s17 + $0x90] sm:$0xf] %v2199_v41  ;;  %2202 = vst [vmem:[%s3400_s17 + $0x94] sm:$0xf] %v2201_v14  ;;  %v2205_v33 = vld [vmem:[%s3404_s30 + $0x9c] sm:$0xf] }
 0x23c   : >> { %2204 = vst [vmem:[%s3400_s17 + $0x98] sm:$0xf] %v2203_v32  ;;  %v2207_v34 = vld [vmem:[%s3404_s30 + $0xa0] sm:$0xf]  ;;  %v2209_v17 = vld [vmem:[%s3404_s30 + $0xa4] sm:$0xf] }
 0x23d   : >> { %2206 = vst [vmem:[%s3400_s17 + $0x9c] sm:$0xf] %v2205_v33  ;;  %2208 = vst [vmem:[%s3400_s17 + $0xa0] sm:$0xf] %v2207_v34  ;;  %v2211_v36 = vld [vmem:[%s3404_s30 + $0xa8] sm:$0xf] }
 0x23e   : >> { %2210 = vst [vmem:[%s3400_s17 + $0xa4] sm:$0xf] %v2209_v17  ;;  %v2213_v37 = vld [vmem:[%s3404_s30 + $0xac] sm:$0xf]  ;;  %v2215_v5 = vld [vmem:[%s3404_s30 + $0xb0] sm:$0xf] }
 0x23f   : >> { %2212 = vst [vmem:[%s3400_s17 + $0xa8] sm:$0xf] %v2211_v36  ;;  %2214 = vst [vmem:[%s3400_s17 + $0xac] sm:$0xf] %v2213_v37  ;;  %v2217_v20 = vld [vmem:[%s3404_s30 + $0xb4] sm:$0xf] }
 0x240   : >> { %2216 = vst [vmem:[%s3400_s17 + $0xb0] sm:$0xf] %v2215_v5  ;;  %v2219_v39 = vld [vmem:[%s3404_s30 + $0xb8] sm:$0xf]  ;;  %v2221_v40 = vld [vmem:[%s3404_s30 + $0xbc] sm:$0xf] }
 0x241   : >> { %2218 = vst [vmem:[%s3400_s17 + $0xb4] sm:$0xf] %v2217_v20  ;;  %2220 = vst [vmem:[%s3400_s17 + $0xb8] sm:$0xf] %v2219_v39  ;;  %v2223_v24 = vld [vmem:[%s3404_s30 + $0xc0] sm:$0xf] }
 0x242   : >> { %2222 = vst [vmem:[%s3400_s17 + $0xbc] sm:$0xf] %v2221_v40  ;;  %v2225_v43 = vld [vmem:[%s3404_s30 + $0xc4] sm:$0xf]  ;;  %v2227_v44 = vld [vmem:[%s3404_s30 + $0xc8] sm:$0xf] }
 0x243   : >> { %2224 = vst [vmem:[%s3400_s17 + $0xc0] sm:$0xf] %v2223_v24  ;;  %2226 = vst [vmem:[%s3400_s17 + $0xc4] sm:$0xf] %v2225_v43  ;;  %v2229_v45 = vld [vmem:[%s3404_s30 + $0xcc] sm:$0xf] }
 0x244   : >> { %2228 = vst [vmem:[%s3400_s17 + $0xc8] sm:$0xf] %v2227_v44  ;;  %v2231_v28 = vld [vmem:[%s3404_s30 + $0xd0] sm:$0xf]  ;;  %v2233_v48 = vld [vmem:[%s3404_s30 + $0xd4] sm:$0xf] }
 0x245   : >> { %2230 = vst [vmem:[%s3400_s17 + $0xcc] sm:$0xf] %v2229_v45  ;;  %2232 = vst [vmem:[%s3400_s17 + $0xd0] sm:$0xf] %v2231_v28  ;;  %v2235_v3 = vld [vmem:[%s3404_s30 + $0xd8] sm:$0xf] }
 0x246   : >> { %2234 = vst [vmem:[%s3400_s17 + $0xd4] sm:$0xf] %v2233_v48  ;;  %v2237_v49 = vld [vmem:[%s3404_s30 + $0xdc] sm:$0xf]  ;;  %v2239_v31 = vld [vmem:[%s3404_s30 + $0xe0] sm:$0xf] }
 0x247   : >> { %2236 = vst [vmem:[%s3400_s17 + $0xd8] sm:$0xf] %v2235_v3  ;;  %2238 = vst [vmem:[%s3400_s17 + $0xdc] sm:$0xf] %v2237_v49  ;;  %s4361_s12 = smov (%p2242_p12, %s2241_s12), 0  ;;  %s2121_s11 = sadd.s32 1, %s3412_s11  }
 0x248   : >> { %2240 = vst [vmem:[%s3400_s17 + $0xe0] sm:$0xf] %v2239_v31  ;;  %s2244_s13 = smul.u32 228, %s4361_s12  ;;  %p2120_p13 = scmp.ge.s32.totalorder %s2121_s11, %s4171_s23 }
 0x249   : >> { %s4351_s10 = smov %s4361_s12 }
 0x24a   : >> { %s2246_s30 = scalar_lea.vmem %s3795_s6, %s2244_s13 [#allocation2]   ;;  %s2247_s17 = scalar_lea.vmem %s4165_s8, %s2244_s13  }
 0x24b   : > { %2123 = sbr.rel (!%p2120_p13) target bundleno = 546 (0x222), region = 131 }
 0x252 PF: > { %3324 = sdivrem.u32 %s4359_s28, 57 }
 0x253   : > { %s2800_s14 = smul.u32 228, %s4171_s23 }
 0x255   : > { %s2252_s20 = scalar_lea.vmem %s3795_s6, %s2800_s14 [#allocation2]   ;;  %s2254_s15 = scalar_lea.vmem %s4165_s8, %s2800_s14  }
 0x25b   : > { %s3325_s22 = spop.drf %3324 }
 0x25c   : > { %p2802_p0 = scmp.le.s32.totalorder %s3325_s22, 0 }
 0x25d   : > { %s3414_s24 = smov (!%p2802_p0), %s2254_s15   ;;  %s3418_s26 = smov (!%p2802_p0), %s2252_s20  }
 0x25e   : > { %2527 = sbr.rel (%p2802_p0) target bundleno = 623 (0x26f), region = 136  ;;  %s3422_s27 = smov (!%p2802_p0), 0  }
 0x25f   : > { %s3426_s29 = smov (!%p2802_p0), 0  }
 0x265 LB: >> { %v2264_v52 = vld [vmem:[%s3420_s26] sm:$0xf]  ;;  %s2266_s5 = sadd.s32 1, %s3424_s27  ;;  %s2258_s29 = sadd.s32 1, %s3428_s29   ;;  %s3428_s29 = sphi %s3426_s29, %s2258_s29   ;;  %s3424_s27 = sphi %s3422_s27, %s3423_s27   ;;  %s3420_s26 = sphi %s3418_s26, %s2271_s26   ;;  %s3416_s24 = sphi %s3414_s24, %s2272_s24  }
 0x266   : >> { %2265 = vst [vmem:[%s3416_s24] sm:$0xf] %v2264_v52  ;;  %p2267_p1 = scmp.ge.s32.totalorder %s2266_s5, %s3325_s22  ;;  %p2257_p2 = scmp.ge.s32.totalorder %s2258_s29, %s3325_s22 }
 0x268   : >> { %s4363_s5 = smov (%p2267_p1, %s2266_s5), 0  ;;  %2260 = sbr.rel (!%p2257_p2) target bundleno = 613 (0x265), region = 142 }
 0x269   : >> { %s2803_s6 = sshll.u32 %s4363_s5, 2  ;;  %s3423_s27 = smov %s4363_s5  }
 0x26a   : >> { %s2271_s26 = scalar_lea.vmem %s2252_s20, %s2803_s6 [#allocation2]   ;;  %s2272_s24 = scalar_lea.vmem %s2254_s15, %s2803_s6  }
 0x26f PF: > { %s14_s19 = sadd.s32 1, %s3396_s19   ;;  %s4352_s15 = smov %s3384_s16 }
 0x270   : > { %p11_p3 = scmp.ge.s32.totalorder %s14_s19, 4   ;;  %s4353_s16 = smov %s3499_s25 }
 0x271   : > { %s4354_s17 = smov %s3392_s18  ;;  %s4355_s18 = smov %s4357_s21 }
 0x272   :  { %13 = sbr.rel (!%p11_p3) target bundleno = 3 (0x3), region = 153 }

// kernel: temporal_alexnet_forward.15
= control target key start
LH: loop header
LB: loop body
LE: loop exit
PB: predicated region body
PF: predicated region fallthrough
CT: control target
= control target key end

     0   :  { %s1450_s15 = smov 0   ;;  %s1452_s16 = smov 0   ;;  %s1656_s0 = inlined_call_operand.vmem [shape: bf16[1,100,288], index: 0, kind: input, shape index: {}]   ;;  %s1657_s1 = inlined_call_operand.vmem [shape: bf16[1,288,48], index: 1, kind: input, shape index: {}]   ;;  %s1658_s2 = inlined_call_operand.vmem [shape: f32[1,1,48], index: 2, kind: input, shape index: {}]   ;;  %s1659_s3 = inlined_call_operand.vmem [shape: f32[1,1,48], index: 3, kind: input, shape index: {}]   ;;  %s1660_s4 = inlined_call_operand.vmem [shape: bf16[1,100,48], index: 4, kind: output, shape index: {}]  }
   0x1   :  { %s1454_s17 = smov 0   ;;  %s1456_s18 = smov 0  }
   0x2   :  { %s1458_s19 = smov 0  }
   0x3 LB: > { %s1031_s20 = sadd.s32 4294967295, %s1391_s19   ;;  %s23_s21 = sadd.s32 1, %s1387_s18  ;;  %s1391_s19 = sphi %s1458_s19, %s14_s19   ;;  %s1387_s18 = sphi %s1456_s18, %s1668_s18   ;;  %s1383_s17 = sphi %s1454_s17, %s1667_s17   ;;  %s1379_s16 = sphi %s1452_s16, %s1666_s16   ;;  %s1375_s15 = sphi %s1450_s15, %s1665_s15  }
   0x4   : > { %p24_p0 = scmp.ge.s32.totalorder %s23_s21, 2  ;;  %s141_s22 = sadd.s32 1, %s1379_s16 }
   0x5   : > { %p151_p1 = scmp.ne.s32.totalorder %s1379_s16, %s1375_s15  ;;  %p152_p2 = scmp.eq.s32.totalorder %s1031_s20, 1 }
   0x6   : > { %s1670_s21 = smov (%p24_p0, %s23_s21), 0  ;;  %p1038_p4 = scmp.ge.s32.totalorder %s1391_s19, 1 }
   0x7   : > { %p1482_p3 = por %p152_p2, %p151_p1  ;;  %s137_s24 = ssub.s32 %s1387_s18, %s1670_s21 }
   0x8   : > { %p220_p5 = scmp.lt.s32.totalorder %s1391_s19, 3  ;;  %p139_p6 = scmp.eq.s32.totalorder %s137_s24, 0 }
   0xa   : > { %p221_p7 = pnand %p1038_p4, %p220_p5 }
   0xb   : > { %s1491_s25 = scalar_select %p139_p6, %s1379_s16, %s141_s22  }
   0xc   : > { %224 = sbr.rel (%p221_p7) target bundleno = 355 (0x163), region = 36  ;;  %v1284_v0 = vld [vmem:[%s1657_s1 + $0x40] sm:$0xff] (!%p221_p7)   ;;  %v1286_v2 = vld [vmem:[%s1657_s1 + $0x48] sm:$0xff] (!%p221_p7)   ;;  %v1288_v4 = vld [vmem:[%s1657_s1 + $0x50] sm:$0xff] (!%p221_p7)   ;;  %vm517_vm0 = vcmask (!%p221_p7), 261120   ;;  %s263_s10 = sand.u32 (!%p221_p7), 1, %s1375_s15  }
   0xd   : > { %s1497_s28 = smul.u32 (!%p221_p7), 7, %s1383_s17  ;;  %v1285_v1 = vld [vmem:[%s1657_s1] sm:$0xff] (!%p221_p7)   ;;  %1103 = vmatprep.subr.bf16.mxu0 (!%p221_p7), %v1284_v0  ;;  %1161 = vmatprep.subr.bf16.mxu1 (!%p221_p7), %v1284_v0  ;;  %v1287_v3 = vld [vmem:[%s1657_s1 + $0x8] sm:$0xff] (!%p221_p7)   ;;  %v1289_v5 = vld [vmem:[%s1657_s1 + $0x10] sm:$0xff] (!%p221_p7)   ;;  %vm722_vm1 = vcmask (!%p221_p7), 388096  }
   0xe   : > { %1104 = vmatpush3.bf16.msra.mxu0 (!%p221_p7), %v1285_v1  ;;  %1169 = vmatpush3.bf16.msra.mxu1 (!%p221_p7), %v1285_v1  ;;  %v1290_v6 = vld [vmem:[%s1657_s1 + $0x58] sm:$0xff] (!%p221_p7)   ;;  %v1292_v8 = vld [vmem:[%s1657_s1 + $0x60] sm:$0xff] (!%p221_p7)   ;;  %v1294_v10 = vld [vmem:[%s1657_s1 + $0x68] sm:$0xff] (!%p221_p7)   ;;  %s1177_s13 = smul.u32 (!%p221_p7), 28, %s263_s10 }
   0xf   : > { %p274_p8 = scmp.lt.s32.totalorder (!%p221_p7), %s1497_s28, 12  ;;  %1105 = vmatprep.subr.bf16.mxu0 (!%p221_p7), %v1286_v2  ;;  %1162 = vmatprep.subr.bf16.mxu1 (!%p221_p7), %v1286_v2  ;;  %v1291_v7 = vld [vmem:[%s1657_s1 + $0x18] sm:$0xff] (!%p221_p7)   ;;  %v1293_v9 = vld [vmem:[%s1657_s1 + $0x20] sm:$0xff] (!%p221_p7)   ;;  %v1295_v14 = vld [vmem:[%s1657_s1 + $0x28] sm:$0xff] (!%p221_p7)  }
  0x10   : > { %v1296_v15 = vld [vmem:[%s1657_s1 + $0x70] sm:$0xff] (!%p221_p7)   ;;  %v1298_v17 = vld [vmem:[%s1657_s1 + $0x78] sm:$0xff] (!%p221_p7)   ;;  %v1305_v19 = vld [vmem:[%s1657_s1 + $0x80] sm:$0xff] (!%p221_p7)   ;;  %s1579_s15 = scalar_lea.vmem (!%p221_p7), [#allocation2], %s1177_s13  }
  0x11   : > { %v1297_v16 = vld [vmem:[%s1657_s1 + $0x30] sm:$0xff] (!%p221_p7)   ;;  %v1299_v18 = vld [vmem:[%s1657_s1 + $0x38] sm:$0xff] (!%p221_p7)   ;;  %v1306_v23 = vld [vmem:[%s1657_s1 + $0x88] sm:$0xff] (!%p221_p7)  }
  0x12   : > { %1106 = vmatpush3.bf16.msra.mxu0 (!%p221_p7), %v1287_v3  ;;  %1170 = vmatpush3.bf16.msra.mxu1 (!%p221_p7), %v1287_v3  ;;  %v1074_v45 = vld [vmem:[%s1658_s2] ss:$0 sm:$0xff] (!%p221_p7) }
  0x13   : > { %s275_s11 = scalar_select %p274_p8, %s1497_s28, 12  ;;  %1107 = vmatprep.subr.bf16.mxu0 %v1288_v4  ;;  %1163 = vmatprep.subr.bf16.mxu1 %v1288_v4  ;;  %v1075_v51 = vld [vmem:[%s1659_s3] ss:$0 sm:$0xff] }
  0x14   : > { %s738_s14 = ssub.s32 (%p1482_p3), 13, %s1497_s28  ;;  %s1102_s20 = smul.u32 (%p1482_p3), 28, %s1383_s17 }
  0x15   : > { %s1178_s22 = smul.u32 12, %s275_s11  ;;  %p739_p9 = scmp.lt.s32.totalorder (%p1482_p3), %s738_s14, 7 }
  0x16   : > { %1108 = vmatpush3.bf16.msra.mxu0 %v1289_v5  ;;  %1171 = vmatpush3.bf16.msra.mxu1 %v1289_v5  ;;  %s1602_s26 = scalar_lea.vmem (%p1482_p3), %s1660_s4, %s1102_s20  }
  0x17   : > { %1109 = vmatprep.subr.bf16.mxu0 %v1290_v6  ;;  %1164 = vmatprep.subr.bf16.mxu1 %v1290_v6  ;;  %s1528_s6 = scalar_lea.vmem %s1656_s0, %s1178_s22 }
  0x18   : > { %v1302_v11 = vld [vmem:[%s1528_s6 + $0x4] ss:$12 sps:$4 sm:$0xff]   ;;  %v316_v12 = vld [vmem:[%s1528_s6 + $0x48] sm:$0xff]  ;;  %v1312_v27 = vld [vmem:[%s1528_s6 + $0x34] ss:$12 sps:$4 sm:$0xff]  }
  0x19   : > { %v1050_v13 = vcombine.high %v316_v12, %v316_v12  ;;  %562 = vmatprep.mubr.bf16.mxu0 %v1302_v11  ;;  %v1300_v20 = vld [vmem:[%s1528_s6] ss:$12 sps:$4 sm:$0xff]   ;;  %v1049_v21 = vcombine.low %v316_v12, %v316_v12  ;;  %v1307_v22 = vld [vmem:[%s1528_s6 + $0x1c] ss:$12 sps:$4 sm:$0xff]   ;;  %v1310_v25 = vld [vmem:[%s1528_s6 + $0x18] ss:$12 sps:$4 sm:$0xff]  }
  0x1a   : > { %1110 = vmatpush3.bf16.msra.mxu0 %v1291_v7  ;;  %1172 = vmatpush3.bf16.msra.mxu1 %v1291_v7  ;;  %v1309_v24 = vld [vmem:[%s1528_s6 + $0x8] ss:$12 sps:$4 sm:$0xff]   ;;  %v1311_v26 = vld [vmem:[%s1528_s6 + $0x20] ss:$12 sps:$4 sm:$0xff]   ;;  %v1314_v28 = vld [vmem:[%s1528_s6 + $0x38] ss:$12 sps:$4 sm:$0xff]  }
  0x1b   : > { %1111 = vmatprep.subr.bf16.mxu0 %v1292_v8  ;;  %1165 = vmatprep.subr.bf16.mxu1 %v1292_v8  ;;  %v1315_v29 = vld [vmem:[%s1528_s6 + $0x30] ss:$12 sps:$4 sm:$0xff]  }
  0x1c   : > { %586 = vmatprep.mubr.bf16.mxu1 %v1050_v13  ;;  %v1316_v30 = vld [vmem:[%s1528_s6 + $0x50] ss:$0 sps:$4 sm:$0xff]  }
  0x1e   : > { %1112 = vmatpush3.bf16.msra.mxu0 %v1293_v9  ;;  %1173 = vmatpush3.bf16.msra.mxu1 %v1293_v9 }
  0x1f   : > { %1113 = vmatprep.subr.bf16.mxu0 %v1294_v10  ;;  %1166 = vmatprep.subr.bf16.mxu1 %v1294_v10 }
  0x22   : > { %1114 = vmatpush3.bf16.msra.mxu0 %v1295_v14  ;;  %1174 = vmatpush3.bf16.msra.mxu1 %v1295_v14 }
  0x23   : > { %1115 = vmatprep.subr.bf16.mxu0 %v1296_v15  ;;  %1167 = vmatprep.subr.bf16.mxu1 %v1296_v15 }
  0x26   : > { %1116 = vmatpush3.bf16.msra.mxu0 %v1297_v16  ;;  %1175 = vmatpush3.bf16.msra.mxu1 %v1297_v16 }
  0x27   : > { %1117 = vmatprep.subr.bf16.mxu0 %v1298_v17  ;;  %1168 = vmatprep.subr.bf16.mxu1 %v1298_v17 }
  0x2a   : > { %1118 = vmatpush3.bf16.msra.mxu0 %v1299_v18  ;;  %1176 = vmatpush3.bf16.msra.mxu1 %v1299_v18 }
  0x2b   : > { %1149 = vmatprep.subr.bf16.mxu1 %v1305_v19 }
  0x2d   : > { %563 = vmatmul.mubr.bf16.vlgmr.msra.gmra.mrb[0].mxu0 %v1300_v20  ;;  %587 = vmatmul.mubr.bf16.vlgmr.msra.gmra.mrb[0].mxu1 %v1049_v21 }
  0x2e   : > { %1150 = vmatpush3.bf16.msra.mxu1 %v1305_v19  ;;  %570 = vmatprep.mubr.bf16.mxu0 %v1307_v22 }
  0x2f   : > { %1151 = vmatprep.subr.bf16.mxu1 %v1306_v23  ;;  %1153 = vmatprep.mubr.msk.bf16.mxu1 %vm517_vm0, %v1309_v24 }
  0x32   : > { %1152 = vmatpush3.bf16.msra.mxu1 %v1306_v23 }
  0x35   : > { %571 = vmatmul.mubr.bf16.gmra.mrb[4].mxu0 %v1310_v25  ;;  %1154 = vmatmul.mubr.msk.bf16.vlgmr.msra.gmra.mrb[4].mxu1 %vm517_vm0, %v1311_v26 }
  0x36   : > { %578 = vmatprep.mubr.bf16.mxu0 %v1312_v27  ;;  %1157 = vmatprep.mubr.msk.bf16.mxu1 %vm517_vm0, %v1314_v28 }
  0x3d   : > { %579 = vmatmul.mubr.bf16.gmra.mrb[8].mxu0 %v1315_v29  ;;  %1158 = vmatmul.mubr.msk.bf16.gmra.mrb[8].mxu1 %vm517_vm0, %v1316_v30 }
 0x100   : > { %v1119_v31 = vpop.f32.mrb[0].mxu0  ;;  %v1137_v32 = vpop.f32.mrb[0].mxu1 }
 0x101   : > { %v1120_v33 = vpop.f32.mrb[1].mxu0  ;;  %v1138_v34 = vpop.f32.mrb[1].mxu1 }
 0x102   : > { %v1121_v35 = vadd.f32 %v1120_v33, %v1119_v31  ;;  %v1139_v36 = vadd.f32 %v1138_v34, %v1137_v32  ;;  %v1122_v37 = vpop.f32.mrb[2].mxu0  ;;  %v1140_v38 = vpop.f32.mrb[2].mxu1 }
 0x103   : > { %v1123_v39 = vpop.f32.mrb[3].mxu0  ;;  %v1141_v40 = vpop.f32.mrb[3].mxu1 }
 0x104   : > { %v1124_v41 = vadd.f32 %v1123_v39, %v1122_v37 }
 0x108   : > { %v1125_v42 = vpop.f32.mrb[4].mxu0  ;;  %v1155_v43 = vpop.f32.mrb[4].mxu1 }
 0x109   : > { %v1126_v44 = vpop.f32.mrb[5].mxu0  ;;  %v628_v46 = vpop.f32.mrb[5].mxu1 }
 0x10a   : > { %v1127_v47 = vadd.f32 %v1126_v44, %v1125_v42  ;;  %v629_v48 = vadd.f32 %v1121_v35, %v628_v46  ;;  %v1128_v49 = vpop.f32.mrb[6].mxu0  ;;  %v1156_v50 = vpop.f32.mrb[6].mxu1 }
 0x10b   : > { %v1129_v52 = vpop.f32.mrb[7].mxu0  ;;  %v631_v53 = vpop.f32.mrb[7].mxu1 }
 0x10c   : > { %v637_v54 = vadd.f32 %v1155_v43, %v1127_v47  ;;  %v665_v55 = vmul.f32 %v1074_v45, %v629_v48  ;;  %v1130_v56 = vadd.f32 %v1129_v52, %v1128_v49  ;;  %v632_v57 = vadd.f32 %v1124_v41, %v631_v53 }
 0x10e   : > { %v667_v58 = vmul.f32 %v1074_v45, %v637_v54  ;;  %v679_v59 = vadd.f32 %v1075_v51, %v665_v55  ;;  %v640_v60 = vadd.f32 %v1156_v50, %v1130_v56  ;;  %v666_v61 = vmul.f32 %v1074_v45, %v632_v57 }
 0x110   : > { %v681_v62 = vadd.f32 %v1075_v51, %v667_v58  ;;  %v686_v63 = vmax.f32 %v679_v59, 0.0  ;;  %v668_v0 = vmul.f32 %v1074_v45, %v640_v60  ;;  %v680_v1 = vadd.f32 %v1075_v51, %v666_v61  ;;  %v1131_v2 = vpop.f32.mrb[8].mxu0  ;;  %v1159_v3 = vpop.f32.mrb[8].mxu1 }
 0x111   : > { %v653_v4 = vadd.f32 %v1159_v3, %v1139_v36  ;;  %v1132_v5 = vpop.f32.mrb[9].mxu0  ;;  %v644_v6 = vpop.f32.mrb[9].mxu1 }
 0x112   : > { %v688_v7 = vmax.f32 %v681_v62, 0.0  ;;  %v1095_v8 = vpack.c.bf16 %v686_v63, %v686_v63  ;;  %v682_v9 = vadd.f32 %v1075_v51, %v668_v0  ;;  %v687_v10 = vmax.f32 %v680_v1, 0.0  ;;  %v1134_v11 = vpop.f32.mrb[10].mxu0  ;;  %v1160_v12 = vpop.f32.mrb[10].mxu1 }
 0x113   : > { %v671_v13 = vmul.f32 %v1074_v45, %v653_v4  ;;  %v1133_v14 = vadd.f32 %v1132_v5, %v1131_v2  ;;  %v1135_v15 = vpop.f32.mrb[11].mxu0  ;;  %v647_v16 = vpop.f32.mrb[11].mxu1 }
 0x114   : > { %v1097_v17 = vpack.c.bf16 %v688_v7, %v688_v7  ;;  %723 = vst.msk [vmem:[%s1579_s15] sm:$0xf] %vm722_vm1, %v1095_v8  ;;  %v689_v18 = vmax.f32 %v682_v9, 0.0  ;;  %v1096_v19 = vpack.c.bf16 %v687_v10, %v687_v10  ;;  %v1136_v20 = vadd.f32 %v1135_v15, %v1134_v11 }
 0x115   : > { %v685_v21 = vadd.f32 %v1075_v51, %v671_v13  ;;  %v645_v22 = vadd.f32 %v1133_v14, %v644_v6 }
 0x116   : > { %725 = vst.msk [vmem:[%s1579_s15 + $0x8] sm:$0xf] %vm722_vm1, %v1097_v17  ;;  %v1098_v23 = vpack.c.bf16 %v689_v18, %v689_v18  ;;  %724 = vst.msk [vmem:[%s1579_s15 + $0x4] sm:$0xf] %vm722_vm1, %v1096_v19  ;;  %v648_v24 = vadd.f32 %v1136_v20, %v647_v16 }
 0x117   : > { %v692_v25 = vmax.f32 %v685_v21, 0.0  ;;  %v669_v26 = vmul.f32 %v1074_v45, %v645_v22 }
 0x118   : > { %726 = vst.msk [vmem:[%s1579_s15 + $0xc] sm:$0xf] %vm722_vm1, %v1098_v23  ;;  %v670_v27 = vmul.f32 %v1074_v45, %v648_v24 }
 0x119   : > { %v1101_v28 = vpack.c.bf16 %v692_v25, %v692_v25  ;;  %v683_v29 = vadd.f32 %v1075_v51, %v669_v26 }
 0x11a   : > { %v684_v30 = vadd.f32 %v1075_v51, %v670_v27  ;;  %736 = sbr.rel (!%p1482_p3) target bundleno = 355 (0x163), region = 40 }
 0x11b   : > { %729 = vst.msk [vmem:[%s1579_s15 + $0x18] sm:$0xf] %vm722_vm1, %v1101_v28  ;;  %v690_v31 = vmax.f32 %v683_v29, 0.0 }
 0x11c   : > { %v691_v32 = vmax.f32 %v684_v30, 0.0 }
 0x11d   : > { %v1099_v33 = vpack.c.bf16 %v690_v31, %v690_v31 }
 0x11e   : > { %v1100_v34 = vpack.c.bf16 %v691_v32, %v691_v32 }
 0x11f   : > { %727 = vst.msk [vmem:[%s1579_s15 + $0x10] sm:$0xf] %vm722_vm1, %v1099_v33 }
 0x120   : > { %728 = vst.msk [vmem:[%s1579_s15 + $0x14] sm:$0xf] %vm722_vm1, %v1100_v34 }
 0x121   : > { %s1672_s14 = smov (!%p739_p9, %s738_s14), 7 }
 0x122   : > { %s1083_s27 = sshll.u32 %s1672_s14, 6 }
 0x123   : > { %p1086_p10 = scmp.eq.s32.totalorder %s1083_s27, 0 }
 0x124   : > { %1317 = sdivrem.u32 (!%p1086_p10), %s1672_s14, 7 }
 0x125   : > { %749 = sbr.rel (%p1086_p10) target bundleno = 355 (0x163), region = 44 }
 0x12d   : > { %s1608_s23 = spop.drf %1317 }
 0x12e   : > { %p1087_p11 = scmp.le.s32.totalorder %s1608_s23, 0 }
 0x12f   : > { %s1662_s17 = smov (!%p1087_p11), %s1602_s26  ;;  %s1663_s28 = smov (!%p1087_p11), %s1579_s15 }
 0x130   : > { %952 = sbr.rel (%p1087_p11) target bundleno = 326 (0x146), region = 125  ;;  %s1617_s29 = smov (!%p1087_p11), 0  }
 0x131   : > { %s1619_s30 = smov (!%p1087_p11), 0  }
 0x137 LB: >> { %v766_v35 = vld [vmem:[%s1399_s28] sm:$0xf]  ;;  %v768_v36 = vld [vmem:[%s1399_s28 + $0x4] sm:$0xf]  ;;  %v770_v37 = vld [vmem:[%s1399_s28 + $0x8] sm:$0xf]  ;;  %s1407_s30 = sphi %s1619_s30, %s760_s30   ;;  %s1403_s29 = sphi %s1617_s29, %s1664_s29   ;;  %s1399_s28 = sphi %s1663_s28, %s785_s28   ;;  %s1395_s17 = sphi %s1662_s17, %s786_s17  }
 0x138   : >> { %767 = vst [vmem:[%s1395_s17] sm:$0xf] %v766_v35  ;;  %769 = vst [vmem:[%s1395_s17 + $0x4] sm:$0xf] %v768_v36  ;;  %v772_v38 = vld [vmem:[%s1399_s28 + $0xc] sm:$0xf]  ;;  %s780_s5 = sadd.s32 1, %s1403_s29 }
 0x139   : >> { %771 = vst [vmem:[%s1395_s17 + $0x8] sm:$0xf] %v770_v37  ;;  %v774_v39 = vld [vmem:[%s1399_s28 + $0x10] sm:$0xf]  ;;  %v776_v40 = vld [vmem:[%s1399_s28 + $0x14] sm:$0xf]  ;;  %p781_p12 = scmp.ge.s32.totalorder %s780_s5, %s1608_s23 }
 0x13a   : >> { %773 = vst [vmem:[%s1395_s17 + $0xc] sm:$0xf] %v772_v38  ;;  %775 = vst [vmem:[%s1395_s17 + $0x10] sm:$0xf] %v774_v39  ;;  %v778_v41 = vld [vmem:[%s1399_s28 + $0x18] sm:$0xf] }
 0x13b   : >> { %777 = vst [vmem:[%s1395_s17 + $0x14] sm:$0xf] %v776_v40  ;;  %779 = vst [vmem:[%s1395_s17 + $0x18] sm:$0xf] %v778_v41  ;;  %s1674_s5 = smov (%p781_p12, %s780_s5), 0  ;;  %s760_s30 = sadd.s32 1, %s1407_s30  }
 0x13c   : >> { %s783_s7 = smul.u32 28, %s1674_s5  ;;  %p759_p13 = scmp.ge.s32.totalorder %s760_s30, %s1608_s23 }
 0x13d   : >> { %s1664_s29 = smov %s1674_s5 }
 0x13e   : >> { %s785_s28 = scalar_lea.vmem %s1579_s15, %s783_s7 [#allocation2]   ;;  %s786_s17 = scalar_lea.vmem %s1602_s26, %s783_s7  }
 0x13f   : > { %762 = sbr.rel (!%p759_p13) target bundleno = 311 (0x137), region = 131 }
 0x146 PF: > { %1319 = sdivrem.u32 %s1672_s14, 7 }
 0x147   : > { %s1088_s8 = smul.u32 28, %s1608_s23 }
 0x149   : > { %s791_s9 = scalar_lea.vmem %s1579_s15, %s1088_s8 [#allocation2]   ;;  %s793_s6 = scalar_lea.vmem %s1602_s26, %s1088_s8  }
 0x14f   : > { %s1320_s10 = spop.drf %1319 }
 0x150   : > { %p1090_p0 = scmp.le.s32.totalorder %s1320_s10, 0 }
 0x151   : > { %s1409_s11 = smov (!%p1090_p0), %s793_s6   ;;  %s1413_s12 = smov (!%p1090_p0), %s791_s9  }
 0x152   : > { %966 = sbr.rel (%p1090_p0) target bundleno = 355 (0x163), region = 136  ;;  %s1417_s13 = smov (!%p1090_p0), 0  }
 0x153   : > { %s1421_s20 = smov (!%p1090_p0), 0  }
 0x159 LB: >> { %v803_v42 = vld [vmem:[%s1415_s12] sm:$0xf]  ;;  %s805_s22 = sadd.s32 1, %s1419_s13  ;;  %s797_s20 = sadd.s32 1, %s1423_s20   ;;  %s1423_s20 = sphi %s1421_s20, %s797_s20   ;;  %s1419_s13 = sphi %s1417_s13, %s1418_s13   ;;  %s1415_s12 = sphi %s1413_s12, %s810_s12   ;;  %s1411_s11 = sphi %s1409_s11, %s811_s11  }
 0x15a   : >> { %804 = vst [vmem:[%s1411_s11] sm:$0xf] %v803_v42  ;;  %p806_p1 = scmp.ge.s32.totalorder %s805_s22, %s1320_s10  ;;  %p796_p2 = scmp.ge.s32.totalorder %s797_s20, %s1320_s10 }
 0x15c   : >> { %s1676_s22 = smov (%p806_p1, %s805_s22), 0  ;;  %799 = sbr.rel (!%p796_p2) target bundleno = 345 (0x159), region = 142 }
 0x15d   : >> { %s1091_s15 = sshll.u32 %s1676_s22, 2  ;;  %s1418_s13 = smov %s1676_s22  }
 0x15e   : >> { %s810_s12 = scalar_lea.vmem %s791_s9, %s1091_s15 [#allocation2]   ;;  %s811_s11 = scalar_lea.vmem %s793_s6, %s1091_s15  }
 0x163 PF: > { %s14_s19 = sadd.s32 1, %s1391_s19   ;;  %s1665_s15 = smov %s1379_s16 }
 0x164   : > { %p11_p3 = scmp.ge.s32.totalorder %s14_s19, 4   ;;  %s1666_s16 = smov %s1491_s25 }
 0x165   : > { %s1667_s17 = smov %s1387_s18  ;;  %s1668_s18 = smov %s1670_s21 }
 0x166   :  { %13 = sbr.rel (!%p11_p3) target bundleno = 3 (0x3), region = 153 }

// kernel: temporal_alexnet_forward.18
= control target key start
LH: loop header
LB: loop body
LE: loop exit
PB: predicated region body
PF: predicated region fallthrough
CT: control target
= control target key end

     0   :  { %s1485_s15 = smov 0   ;;  %s1487_s16 = smov 0   ;;  %s1732_s0 = inlined_call_operand.vmem [shape: bf16[1,100,432], index: 0, kind: input, shape index: {}]   ;;  %s1733_s1 = inlined_call_operand.vmem [shape: bf16[1,432,48], index: 1, kind: input, shape index: {}]   ;;  %s1734_s2 = inlined_call_operand.vmem [shape: f32[1,1,48], index: 2, kind: input, shape index: {}]   ;;  %s1735_s3 = inlined_call_operand.vmem [shape: f32[1,1,48], index: 3, kind: input, shape index: {}]   ;;  %s1736_s4 = inlined_call_operand.vmem [shape: f32[1,100,48], index: 4, kind: output, shape index: {}]  }
   0x1   :  { %s1489_s17 = smov 0   ;;  %s1491_s18 = smov 0  }
   0x2   :  { %s1493_s19 = smov 0  }
   0x3 LB: > { %s1082_s20 = sadd.s32 4294967295, %s1425_s19   ;;  %s23_s21 = sadd.s32 1, %s1421_s18  ;;  %s1425_s19 = sphi %s1493_s19, %s14_s19   ;;  %s1421_s18 = sphi %s1491_s18, %s1744_s18   ;;  %s1417_s17 = sphi %s1489_s17, %s1743_s17   ;;  %s1413_s16 = sphi %s1487_s16, %s1742_s16   ;;  %s1409_s15 = sphi %s1485_s15, %s1741_s15  }
   0x4   : > { %p24_p0 = scmp.ge.s32.totalorder %s23_s21, 2  ;;  %s141_s22 = sadd.s32 1, %s1413_s16 }
   0x5   : > { %p151_p1 = scmp.ne.s32.totalorder %s1413_s16, %s1409_s15  ;;  %p152_p2 = scmp.eq.s32.totalorder %s1082_s20, 1 }
   0x6   : > { %s1746_s21 = smov (%p24_p0, %s23_s21), 0  ;;  %p1089_p4 = scmp.ge.s32.totalorder %s1425_s19, 1 }
   0x7   : > { %p1517_p3 = por %p152_p2, %p151_p1  ;;  %s137_s24 = ssub.s32 %s1421_s18, %s1746_s21 }
   0x8   : > { %p220_p5 = scmp.lt.s32.totalorder %s1425_s19, 3  ;;  %p139_p6 = scmp.eq.s32.totalorder %s137_s24, 0 }
   0xa   : > { %p221_p7 = pnand %p1089_p4, %p220_p5 }
   0xb   : > { %s1526_s25 = scalar_select %p139_p6, %s1413_s16, %s141_s22  }
   0xc   : > { %224 = sbr.rel (%p221_p7) target bundleno = 361 (0x169), region = 36  ;;  %v1302_v0 = vld [vmem:[%s1733_s1 + $0x80] sm:$0xff] (!%p221_p7)   ;;  %v1459_v1 = vmov (!%p221_p7), 0   ;;  %v1303_v2 = vld [vmem:[%s1733_s1 + $0x88] sm:$0xff] (!%p221_p7)   ;;  %v1306_v5 = vld [vmem:[%s1733_s1 + $0x90] sm:$0xff] (!%p221_p7)   ;;  %vm604_vm0 = vcmask (!%p221_p7), 392192  }
   0xd   : > { %681 = vmatprep.subr.bf16.mxu1 (!%p221_p7), %v1459_v1  ;;  %v1304_v3 = vld [vmem:[%s1733_s1 + $0x40] sm:$0xff] (!%p221_p7)   ;;  %v1307_v6 = vld [vmem:[%s1733_s1 + $0x48] sm:$0xff] (!%p221_p7)   ;;  %v1310_v8 = vld [vmem:[%s1733_s1 + $0x50] sm:$0xff] (!%p221_p7)   ;;  %s1556_s22 = smul.u32 (!%p221_p7), 7, %s1417_s17  ;;  %s263_s8 = sand.u32 (!%p221_p7), 1, %s1409_s15  }
   0xe   : > { %682 = vmatpush1.bf16.msra.mxu1 (!%p221_p7), %v1302_v0  ;;  %v1305_v4 = vld [vmem:[%s1733_s1] sm:$0xff] (!%p221_p7)   ;;  %1155 = vmatprep.subr.bf16.mxu0 (!%p221_p7), %v1304_v3  ;;  %v1308_v7 = vld [vmem:[%s1733_s1 + $0x8] sm:$0xff] (!%p221_p7)   ;;  %v1311_v9 = vld [vmem:[%s1733_s1 + $0x10] sm:$0xff] (!%p221_p7)   ;;  %s1195_s9 = smul.u32 (!%p221_p7), 56, %s263_s8 }
   0xf   : > { %683 = vmatprep.subr.bf16.mxu1 (!%p221_p7), %v1459_v1  ;;  %1156 = vmatpush3.bf16.msra.mxu0 (!%p221_p7), %v1305_v4  ;;  %v1309_v10 = vld [vmem:[%s1733_s1 + $0x98] sm:$0xff] (!%p221_p7)   ;;  %v1312_v12 = vld [vmem:[%s1733_s1 + $0xa0] sm:$0xff] (!%p221_p7)   ;;  %p274_p8 = scmp.lt.s32.totalorder (!%p221_p7), %s1556_s22, 12  ;;  %v1315_v15 = vld [vmem:[%s1733_s1 + $0xa8] sm:$0xff] (!%p221_p7)  }
  0x10   : > { %1157 = vmatprep.subr.bf16.mxu0 (!%p221_p7), %v1307_v6  ;;  %v1313_v11 = vld [vmem:[%s1733_s1 + $0x58] sm:$0xff] (!%p221_p7)   ;;  %v1316_v14 = vld [vmem:[%s1733_s1 + $0x60] sm:$0xff] (!%p221_p7)   ;;  %v1319_v17 = vld [vmem:[%s1733_s1 + $0x68] sm:$0xff] (!%p221_p7)   ;;  %s1655_s15 = scalar_lea.vmem (!%p221_p7), [#allocation2], %s1195_s9  }
  0x11   : > { %v1314_v13 = vld [vmem:[%s1733_s1 + $0x18] sm:$0xff] (!%p221_p7)   ;;  %v1317_v16 = vld [vmem:[%s1733_s1 + $0x20] sm:$0xff] (!%p221_p7)   ;;  %v1318_v18 = vld [vmem:[%s1733_s1 + $0xb0] sm:$0xff] (!%p221_p7)  }
  0x12   : > { %684 = vmatpush1.bf16.msra.mxu1 (!%p221_p7), %v1303_v2  ;;  %v1320_v19 = vld [vmem:[%s1733_s1 + $0x28] sm:$0xff] (!%p221_p7)   ;;  %v1322_v20 = vld [vmem:[%s1733_s1 + $0x70] sm:$0xff] (!%p221_p7)   ;;  %v1321_v21 = vld [vmem:[%s1733_s1 + $0xb8] sm:$0xff] (!%p221_p7)  }
  0x13   : > { %685 = vmatprep.subr.bf16.mxu1 %v1459_v1  ;;  %1158 = vmatpush3.bf16.msra.mxu0 %v1308_v7  ;;  %s275_s13 = scalar_select %p274_p8, %s1556_s22, 12  ;;  %v1323_v22 = vld [vmem:[%s1733_s1 + $0x30] sm:$0xff]   ;;  %v1325_v23 = vld [vmem:[%s1733_s1 + $0x78] sm:$0xff]   ;;  %v1324_v27 = vld [vmem:[%s1733_s1 + $0xc0] sm:$0xff]  }
  0x14   : > { %1159 = vmatprep.subr.bf16.mxu0 %v1310_v8  ;;  %v1326_v25 = vld [vmem:[%s1733_s1 + $0x38] sm:$0xff]   ;;  %v1330_v30 = vld [vmem:[%s1733_s1 + $0xc8] sm:$0xff]   ;;  %v1331_v31 = vld [vmem:[%s1733_s1 + $0xd0] sm:$0xff]   ;;  %s788_s14 = ssub.s32 (%p1517_p3), 13, %s1556_s22  ;;  %s1154_s20 = smul.u32 (%p1517_p3), 56, %s1417_s17 }
  0x15   : > { %s1153_s29 = sshll.u32 %s275_s13, 4  ;;  %v1139_v54 = vld [vmem:[%s1734_s2] ss:$0 sm:$0xff]  ;;  %p789_p9 = scmp.lt.s32.totalorder (%p1517_p3), %s788_s14, 7 }
  0x16   : > { %686 = vmatpush1.bf16.msra.mxu1 %v1306_v5  ;;  %s1603_s10 = scalar_lea.vmem %s1732_s0, %s1153_s29  ;;  %v1140_v60 = vld [vmem:[%s1735_s3] ss:$0 sm:$0xff]  ;;  %s1678_s27 = scalar_lea.vmem (%p1517_p3), %s1736_s4, %s1154_s20  }
  0x17   : > { %687 = vmatprep.subr.bf16.mxu1 %v1459_v1  ;;  %1160 = vmatpush3.bf16.msra.mxu0 %v1311_v9  ;;  %v1329_v24 = vld [vmem:[%s1603_s10 + $0x4] ss:$16 sps:$4 sm:$0xff]   ;;  %v1334_v26 = vld [vmem:[%s1603_s10 + $0xc] ss:$16 sps:$4 sm:$0xff]   ;;  %v1327_v28 = vld [vmem:[%s1603_s10] ss:$16 sps:$4 sm:$0xff]  }
  0x18   : > { %1161 = vmatprep.subr.bf16.mxu0 %v1313_v11  ;;  %649 = vmatprep.mubr.bf16.mxu0 %v1329_v24  ;;  %v1335_v29 = vld [vmem:[%s1603_s10 + $0x24] ss:$16 sps:$4 sm:$0xff]   ;;  %v1337_v32 = vld [vmem:[%s1603_s10 + $0x20] ss:$16 sps:$4 sm:$0xff]   ;;  %v1332_v33 = vld [vmem:[%s1603_s10 + $0x8] ss:$16 sps:$4 sm:$0xff]  }
  0x19   : > { %1135 = vmatprep.mubr.msk.bf16.mxu1 %vm604_vm0, %v1334_v26  ;;  %v1341_v34 = vld [vmem:[%s1603_s10 + $0x44] ss:$16 sps:$4 sm:$0xff]   ;;  %v1338_v35 = vld [vmem:[%s1603_s10 + $0x2c] ss:$16 sps:$4 sm:$0xff]   ;;  %v1343_v37 = vld [vmem:[%s1603_s10 + $0x40] ss:$16 sps:$4 sm:$0xff]  }
  0x1a   : > { %688 = vmatpush1.bf16.msra.mxu1 %v1309_v10  ;;  %v316_v36 = vld [vmem:[%s1603_s10 + $0x60] sm:$0xff]  ;;  %v1340_v38 = vld [vmem:[%s1603_s10 + $0x28] ss:$16 sps:$4 sm:$0xff]   ;;  %v1344_v40 = vld [vmem:[%s1603_s10 + $0x4c] ss:$16 sps:$4 sm:$0xff]  }
  0x1b   : > { %689 = vmatprep.subr.bf16.mxu1 %v1459_v1  ;;  %1162 = vmatpush3.bf16.msra.mxu0 %v1314_v13  ;;  %v1105_v39 = vcombine.high %v316_v36, %v316_v36  ;;  %v317_v41 = vld [vmem:[%s1603_s10 + $0x68] sm:$0xff]  ;;  %v1104_v42 = vcombine.low %v316_v36, %v316_v36 }
  0x1c   : > { %1163 = vmatprep.subr.bf16.mxu0 %v1316_v14  ;;  %v1346_v43 = vld [vmem:[%s1603_s10 + $0x48] ss:$16 sps:$4 sm:$0xff]   ;;  %v1107_v44 = vcombine.high %v317_v41, %v317_v41  ;;  %v1106_v45 = vcombine.low %v317_v41, %v317_v41 }
  0x1e   : > { %690 = vmatpush1.bf16.msra.mxu1 %v1312_v12 }
  0x1f   : > { %691 = vmatprep.subr.bf16.mxu1 %v1459_v1  ;;  %1164 = vmatpush3.bf16.msra.mxu0 %v1317_v16 }
  0x20   : > { %1165 = vmatprep.subr.bf16.mxu0 %v1319_v17 }
  0x22   : > { %692 = vmatpush1.bf16.msra.mxu1 %v1315_v15 }
  0x23   : > { %693 = vmatprep.subr.bf16.mxu1 %v1459_v1  ;;  %1166 = vmatpush3.bf16.msra.mxu0 %v1320_v19 }
  0x24   : > { %1167 = vmatprep.subr.bf16.mxu0 %v1322_v20 }
  0x26   : > { %694 = vmatpush1.bf16.msra.mxu1 %v1318_v18 }
  0x27   : > { %695 = vmatprep.subr.bf16.mxu1 %v1459_v1  ;;  %1168 = vmatpush3.bf16.msra.mxu0 %v1323_v22 }
  0x28   : > { %1169 = vmatprep.subr.bf16.mxu0 %v1325_v23 }
  0x2a   : > { %696 = vmatpush1.bf16.msra.mxu1 %v1321_v21 }
  0x2b   : > { %697 = vmatprep.subr.bf16.mxu1 %v1459_v1  ;;  %1170 = vmatpush3.bf16.msra.mxu0 %v1326_v25 }
  0x2e   : > { %698 = vmatpush1.bf16.msra.mxu1 %v1324_v27  ;;  %650 = vmatmul.mubr.bf16.vlgmr.msra.gmra.mrb[0].mxu0 %v1327_v28 }
  0x2f   : > { %699 = vmatprep.subr.bf16.mxu1 %v1459_v1  ;;  %657 = vmatprep.mubr.bf16.mxu0 %v1335_v29 }
  0x32   : > { %700 = vmatpush1.bf16.msra.mxu1 %v1330_v30 }
  0x33   : > { %701 = vmatprep.subr.bf16.mxu1 %v1459_v1 }
  0x36   : > { %702 = vmatpush1.bf16.msra.mxu1 %v1331_v31  ;;  %658 = vmatmul.mubr.bf16.gmra.mrb[4].mxu0 %v1337_v32 }
  0x37   : > { %665 = vmatprep.mubr.bf16.mxu0 %v1341_v34 }
  0x39   : > { %714 = vmatmul.mubr.bf16.vlgmr.msra.gmra.mrb[0].mxu1 %v1332_v33 }
  0x3a   : > { %1136 = vmatprep.mubr.msk.bf16.mxu1 %vm604_vm0, %v1338_v35 }
  0x3e   : > { %666 = vmatmul.mubr.bf16.gmra.mrb[8].mxu0 %v1343_v37 }
  0x3f   : > { %673 = vmatprep.mubr.bf16.mxu0 %v1105_v39 }
  0x41   : > { %722 = vmatmul.mubr.bf16.gmra.mrb[4].mxu1 %v1340_v38 }
  0x42   : > { %1137 = vmatprep.mubr.msk.bf16.mxu1 %vm604_vm0, %v1344_v40 }
  0x46   : > { %674 = vmatmul.mubr.bf16.gmra.mrb[12].mxu0 %v1104_v42 }
  0x49   : > { %730 = vmatmul.mubr.bf16.gmra.mrb[8].mxu1 %v1346_v43 }
  0x4a   : > { %1138 = vmatprep.mubr.msk.bf16.mxu1 %vm604_vm0, %v1107_v44 }
  0x51   : > { %738 = vmatmul.mubr.bf16.gmra.mrb[12].mxu1 %v1106_v45 }
 0x101   : > { %v1171_v46 = vpop.f32.mrb[0].mxu0 }
 0x102   : > { %v1172_v47 = vpop.f32.mrb[1].mxu0 }
 0x103   : > { %v1173_v48 = vadd.f32 %v1172_v47, %v1171_v46  ;;  %v1174_v49 = vpop.f32.mrb[2].mxu0 }
 0x104   : > { %v1175_v50 = vpop.f32.mrb[3].mxu0 }
 0x105   : > { %v1176_v51 = vadd.f32 %v1175_v50, %v1174_v49 }
 0x109   : > { %v1177_v52 = vpop.f32.mrb[4].mxu0 }
 0x10a   : > { %v1178_v55 = vpop.f32.mrb[5].mxu0 }
 0x10b   : > { %v1179_v58 = vadd.f32 %v1178_v55, %v1177_v52  ;;  %v1180_v59 = vpop.f32.mrb[6].mxu0 }
 0x10c   : > { %v715_v53 = vpop.f32.mrb[0].mxu1  ;;  %v1181_v62 = vpop.f32.mrb[7].mxu0 }
 0x10d   : > { %v716_v56 = vadd.f32 %v1173_v48, %v715_v53  ;;  %v717_v57 = vpop.f32.mrb[1].mxu1  ;;  %v1182_v2 = vadd.f32 %v1181_v62, %v1180_v59 }
 0x10e   : > { %v718_v61 = vpop.f32.mrb[2].mxu1 }
 0x10f   : > { %v752_v63 = vmul.f32 %v1139_v54, %v716_v56  ;;  %v719_v0 = vadd.f32 %v1176_v51, %v718_v61  ;;  %v720_v1 = vpop.f32.mrb[3].mxu1 }
 0x111   : > { %v766_v3 = vadd.f32 %v1140_v60, %v752_v63  ;;  %v753_v4 = vmul.f32 %v1139_v54, %v719_v0  ;;  %v1183_v6 = vpop.f32.mrb[8].mxu0 }
 0x112   : > { %v1184_v8 = vpop.f32.mrb[9].mxu0 }
 0x113   : > { %773 = vst.msk [vmem:[%s1655_s15] sm:$0xff] %vm604_vm0, %v766_v3  ;;  %v767_v5 = vadd.f32 %v1140_v60, %v753_v4  ;;  %v1185_v11 = vadd.f32 %v1184_v8, %v1183_v6  ;;  %v1186_v12 = vpop.f32.mrb[10].mxu0 }
 0x114   : > { %v723_v7 = vpop.f32.mrb[4].mxu1  ;;  %v1187_v14 = vpop.f32.mrb[11].mxu0 }
 0x115   : > { %774 = vst.msk [vmem:[%s1655_s15 + $0x8] sm:$0xff] %vm604_vm0, %v767_v5  ;;  %v724_v9 = vadd.f32 %v1179_v58, %v723_v7  ;;  %v725_v10 = vpop.f32.mrb[5].mxu1  ;;  %v1188_v18 = vadd.f32 %v1187_v14, %v1186_v12 }
 0x116   : > { %v726_v13 = vpop.f32.mrb[6].mxu1 }
 0x117   : > { %v754_v15 = vmul.f32 %v1139_v54, %v724_v9  ;;  %v727_v16 = vadd.f32 %v1182_v2, %v726_v13  ;;  %v728_v17 = vpop.f32.mrb[7].mxu1 }
 0x119   : > { %v768_v19 = vadd.f32 %v1140_v60, %v754_v15  ;;  %v755_v20 = vmul.f32 %v1139_v54, %v727_v16  ;;  %v1189_v22 = vpop.f32.mrb[12].mxu0 }
 0x11a   : > { %v1190_v24 = vpop.f32.mrb[13].mxu0 }
 0x11b   : > { %775 = vst.msk [vmem:[%s1655_s15 + $0x10] sm:$0xff] %vm604_vm0, %v768_v19  ;;  %v769_v21 = vadd.f32 %v1140_v60, %v755_v20  ;;  %v1191_v27 = vadd.f32 %v1190_v24, %v1189_v22  ;;  %v1192_v28 = vpop.f32.mrb[14].mxu0 }
 0x11c   : > { %v731_v23 = vpop.f32.mrb[8].mxu1  ;;  %v1193_v30 = vpop.f32.mrb[15].mxu0 }
 0x11d   : > { %776 = vst.msk [vmem:[%s1655_s15 + $0x18] sm:$0xff] %vm604_vm0, %v769_v21  ;;  %v732_v25 = vadd.f32 %v1185_v11, %v731_v23  ;;  %v733_v26 = vpop.f32.mrb[9].mxu1 }
 0x11e   : > { %v734_v29 = vpop.f32.mrb[10].mxu1 }
 0x11f   : > { %v756_v31 = vmul.f32 %v1139_v54, %v732_v25  ;;  %v735_v32 = vadd.f32 %v1188_v18, %v734_v29  ;;  %v736_v33 = vpop.f32.mrb[11].mxu1 }
 0x121   : > { %v770_v34 = vadd.f32 %v1140_v60, %v756_v31  ;;  %v757_v35 = vmul.f32 %v1139_v54, %v735_v32 }
 0x123   : > { %777 = vst.msk [vmem:[%s1655_s15 + $0x20] sm:$0xff] %vm604_vm0, %v770_v34  ;;  %v771_v36 = vadd.f32 %v1140_v60, %v757_v35 }
 0x124   : > { %v739_v37 = vpop.f32.mrb[12].mxu1 }
 0x125   : > { %778 = vst.msk [vmem:[%s1655_s15 + $0x28] sm:$0xff] %vm604_vm0, %v771_v36  ;;  %v740_v38 = vadd.f32 %v1191_v27, %v739_v37  ;;  %v741_v39 = vpop.f32.mrb[13].mxu1  ;;  %786 = sbr.rel (!%p1517_p3) target bundleno = 361 (0x169), region = 40 }
 0x126   : > { %v742_v40 = vpop.f32.mrb[14].mxu1 }
 0x127   : > { %v758_v41 = vmul.f32 %v1139_v54, %v740_v38  ;;  %v743_v42 = vpop.f32.mrb[15].mxu1 }
 0x129   : > { %v772_v43 = vadd.f32 %v1140_v60, %v758_v41 }
 0x12b   : > { %779 = vst.msk [vmem:[%s1655_s15 + $0x30] sm:$0xff] %vm604_vm0, %v772_v43 }
 0x12c   : > { %s1748_s14 = smov (!%p789_p9, %s788_s14), 7 }
 0x12d   : > { %s1141_s28 = sshll.u32 %s1748_s14, 7 }
 0x12e   : > { %p1144_p10 = scmp.eq.s32.totalorder %s1141_s28, 0 }
 0x12f   : > { %1351 = sdivrem.u32 (!%p1144_p10), %s1748_s14, 7 }
 0x130   : > { %799 = sbr.rel (%p1144_p10) target bundleno = 361 (0x169), region = 44 }
 0x138   : > { %s1684_s23 = spop.drf %1351 }
 0x139   : > { %p1145_p11 = scmp.le.s32.totalorder %s1684_s23, 0 }
 0x13a   : > { %s1738_s17 = smov (!%p1145_p11), %s1678_s27  ;;  %s1739_s22 = smov (!%p1145_p11), %s1655_s15 }
 0x13b   : > { %1003 = sbr.rel (%p1145_p11) target bundleno = 332 (0x14c), region = 129  ;;  %s1693_s29 = smov (!%p1145_p11), 0  }
 0x13c   : > { %s1695_s30 = smov (!%p1145_p11), 0  }
 0x142 LB: >> { %v875_v44 = vld [vmem:[%s1433_s22] sm:$0xff]  ;;  %v877_v45 = vld [vmem:[%s1433_s22 + $0x8] sm:$0xff]  ;;  %v879_v46 = vld [vmem:[%s1433_s22 + $0x10] sm:$0xff]  ;;  %s889_s5 = sadd.s32 1, %s1437_s29  ;;  %s869_s30 = sadd.s32 1, %s1441_s30   ;;  %s1441_s30 = sphi %s1695_s30, %s869_s30   ;;  %s1437_s29 = sphi %s1693_s29, %s1740_s29   ;;  %s1433_s22 = sphi %s1739_s22, %s894_s22   ;;  %s1429_s17 = sphi %s1738_s17, %s895_s17  }
 0x143   : >> { %876 = vst [vmem:[%s1429_s17] sm:$0xff] %v875_v44  ;;  %878 = vst [vmem:[%s1429_s17 + $0x8] sm:$0xff] %v877_v45  ;;  %v881_v47 = vld [vmem:[%s1433_s22 + $0x18] sm:$0xff]  ;;  %v883_v48 = vld [vmem:[%s1433_s22 + $0x20] sm:$0xff]  ;;  %p890_p12 = scmp.ge.s32.totalorder %s889_s5, %s1684_s23  ;;  %p868_p13 = scmp.ge.s32.totalorder %s869_s30, %s1684_s23 }
 0x144   : >> { %880 = vst [vmem:[%s1429_s17 + $0x10] sm:$0xff] %v879_v46  ;;  %v885_v49 = vld [vmem:[%s1433_s22 + $0x28] sm:$0xff]  ;;  %882 = vst [vmem:[%s1429_s17 + $0x18] sm:$0xff] %v881_v47  ;;  %v887_v50 = vld [vmem:[%s1433_s22 + $0x30] sm:$0xff] }
 0x145   : >> { %884 = vst [vmem:[%s1429_s17 + $0x20] sm:$0xff] %v883_v48  ;;  %886 = vst [vmem:[%s1429_s17 + $0x28] sm:$0xff] %v885_v49  ;;  %s1750_s5 = smov (%p890_p12, %s889_s5), 0  ;;  %871 = sbr.rel (!%p868_p13) target bundleno = 322 (0x142), region = 135 }
 0x146   : >> { %888 = vst [vmem:[%s1429_s17 + $0x30] sm:$0xff] %v887_v50  ;;  %s892_s6 = smul.u32 56, %s1750_s5  ;;  %s1740_s29 = smov %s1750_s5 }
 0x148   : >> { %s894_s22 = scalar_lea.vmem %s1655_s15, %s892_s6 [#allocation2]   ;;  %s895_s17 = scalar_lea.vmem %s1678_s27, %s892_s6  }
 0x14c PF: > { %1353 = sdivrem.u32 %s1748_s14, 7 }
 0x14d   : > { %s1146_s7 = smul.u32 56, %s1684_s23 }
 0x14f   : > { %s900_s8 = scalar_lea.vmem %s1655_s15, %s1146_s7 [#allocation2]   ;;  %s902_s9 = scalar_lea.vmem %s1678_s27, %s1146_s7  }
 0x155   : > { %s1354_s11 = spop.drf %1353 }
 0x156   : > { %p1148_p0 = scmp.le.s32.totalorder %s1354_s11, 0 }
 0x157   : > { %s1443_s12 = smov (!%p1148_p0), %s902_s9   ;;  %s1447_s10 = smov (!%p1148_p0), %s900_s8  }
 0x158   : > { %1017 = sbr.rel (%p1148_p0) target bundleno = 361 (0x169), region = 140  ;;  %s1451_s13 = smov (!%p1148_p0), 0  }
 0x159   : > { %s1455_s20 = smov (!%p1148_p0), 0  }
 0x15f LB: >> { %v912_v51 = vld [vmem:[%s1449_s10] sm:$0xff]  ;;  %s914_s24 = sadd.s32 1, %s1453_s13  ;;  %s906_s20 = sadd.s32 1, %s1457_s20   ;;  %s1457_s20 = sphi %s1455_s20, %s906_s20   ;;  %s1453_s13 = sphi %s1451_s13, %s1452_s13   ;;  %s1449_s10 = sphi %s1447_s10, %s919_s10   ;;  %s1445_s12 = sphi %s1443_s12, %s920_s12  }
 0x160   : >> { %913 = vst [vmem:[%s1445_s12] sm:$0xff] %v912_v51  ;;  %p915_p1 = scmp.ge.s32.totalorder %s914_s24, %s1354_s11  ;;  %p905_p2 = scmp.ge.s32.totalorder %s906_s20, %s1354_s11 }
 0x162   : >> { %s1752_s24 = smov (%p915_p1, %s914_s24), 0  ;;  %908 = sbr.rel (!%p905_p2) target bundleno = 351 (0x15f), region = 146 }
 0x163   : >> { %s1149_s15 = sshll.u32 %s1752_s24, 3  ;;  %s1452_s13 = smov %s1752_s24  }
 0x164   : >> { %s919_s10 = scalar_lea.vmem %s900_s8, %s1149_s15 [#allocation2]   ;;  %s920_s12 = scalar_lea.vmem %s902_s9, %s1149_s15  }
 0x169 PF: > { %s14_s19 = sadd.s32 1, %s1425_s19   ;;  %s1741_s15 = smov %s1413_s16 }
 0x16a   : > { %p11_p3 = scmp.ge.s32.totalorder %s14_s19, 4   ;;  %s1742_s16 = smov %s1526_s25 }
 0x16b   : > { %s1743_s17 = smov %s1421_s18  ;;  %s1744_s18 = smov %s1746_s21 }
 0x16c   :  { %13 = sbr.rel (!%p11_p3) target bundleno = 3 (0x3), region = 157 }

// kernel: temporal_alexnet_forward.17
= control target key start
LH: loop header
LB: loop body
LE: loop exit
PB: predicated region body
PF: predicated region fallthrough
CT: control target
= control target key end

     0   :  { %s1486_s15 = smov 0   ;;  %s1488_s16 = smov 0   ;;  %s1733_s0 = inlined_call_operand.vmem [shape: bf16[1,100,432], index: 0, kind: input, shape index: {}]   ;;  %s1734_s1 = inlined_call_operand.vmem [shape: bf16[1,432,3], index: 1, kind: input, shape index: {}]   ;;  %s1735_s2 = inlined_call_operand.vmem [shape: f32[1,1,3], index: 2, kind: input, shape index: {}]   ;;  %s1736_s3 = inlined_call_operand.vmem [shape: f32[1,1,3], index: 3, kind: input, shape index: {}]   ;;  %s1737_s4 = inlined_call_operand.vmem [shape: f32[1,100,3], index: 4, kind: output, shape index: {}]  }
   0x1   :  { %s1490_s17 = smov 0   ;;  %s1492_s18 = smov 0  }
   0x2   :  { %s1494_s19 = smov 0  }
   0x3 LB: > { %s1083_s20 = sadd.s32 4294967295, %s1426_s19   ;;  %s23_s21 = sadd.s32 1, %s1422_s18  ;;  %s1426_s19 = sphi %s1494_s19, %s14_s19   ;;  %s1422_s18 = sphi %s1492_s18, %s1745_s18   ;;  %s1418_s17 = sphi %s1490_s17, %s1744_s17   ;;  %s1414_s16 = sphi %s1488_s16, %s1743_s16   ;;  %s1410_s15 = sphi %s1486_s15, %s1742_s15  }
   0x4   : > { %p24_p0 = scmp.ge.s32.totalorder %s23_s21, 2  ;;  %s141_s22 = sadd.s32 1, %s1414_s16 }
   0x5   : > { %p151_p1 = scmp.ne.s32.totalorder %s1414_s16, %s1410_s15  ;;  %p152_p2 = scmp.eq.s32.totalorder %s1083_s20, 1 }
   0x6   : > { %s1747_s21 = smov (%p24_p0, %s23_s21), 0  ;;  %p1090_p4 = scmp.ge.s32.totalorder %s1426_s19, 1 }
   0x7   : > { %p1518_p3 = por %p152_p2, %p151_p1  ;;  %s137_s24 = ssub.s32 %s1422_s18, %s1747_s21 }
   0x8   : > { %p220_p5 = scmp.lt.s32.totalorder %s1426_s19, 3  ;;  %p139_p6 = scmp.eq.s32.totalorder %s137_s24, 0 }
   0xa   : > { %p221_p7 = pnand %p1090_p4, %p220_p5 }
   0xb   : > { %s1527_s25 = scalar_select %p139_p6, %s1414_s16, %s141_s22  }
   0xc   : > { %224 = sbr.rel (%p221_p7) target bundleno = 361 (0x169), region = 36  ;;  %v1303_v0 = vld [vmem:[%s1734_s1 + $0x80] sm:$0xff] (!%p221_p7)   ;;  %v1460_v1 = vmov (!%p221_p7), 0   ;;  %v1304_v2 = vld [vmem:[%s1734_s1 + $0x88] sm:$0xff] (!%p221_p7)   ;;  %v1307_v5 = vld [vmem:[%s1734_s1 + $0x90] sm:$0xff] (!%p221_p7)   ;;  %vm604_vm0 = vcmask (!%p221_p7), 392192  }
   0xd   : > { %681 = vmatprep.subr.bf16.mxu1 (!%p221_p7), %v1460_v1  ;;  %v1305_v3 = vld [vmem:[%s1734_s1 + $0x40] sm:$0xff] (!%p221_p7)   ;;  %v1308_v6 = vld [vmem:[%s1734_s1 + $0x48] sm:$0xff] (!%p221_p7)   ;;  %v1311_v8 = vld [vmem:[%s1734_s1 + $0x50] sm:$0xff] (!%p221_p7)   ;;  %s1557_s22 = smul.u32 (!%p221_p7), 7, %s1418_s17  ;;  %s263_s8 = sand.u32 (!%p221_p7), 1, %s1410_s15   ;;  %vm773_vm1 = vcmask (!%p221_p7), 23552  }
   0xe   : > { %682 = vmatpush1.bf16.msra.mxu1 (!%p221_p7), %v1303_v0  ;;  %v1306_v4 = vld [vmem:[%s1734_s1] sm:$0xff] (!%p221_p7)   ;;  %1156 = vmatprep.subr.bf16.mxu0 (!%p221_p7), %v1305_v3  ;;  %v1309_v7 = vld [vmem:[%s1734_s1 + $0x8] sm:$0xff] (!%p221_p7)   ;;  %v1312_v9 = vld [vmem:[%s1734_s1 + $0x10] sm:$0xff] (!%p221_p7)   ;;  %s1196_s9 = smul.u32 (!%p221_p7), 56, %s263_s8 }
   0xf   : > { %683 = vmatprep.subr.bf16.mxu1 (!%p221_p7), %v1460_v1  ;;  %1157 = vmatpush3.bf16.msra.mxu0 (!%p221_p7), %v1306_v4  ;;  %v1310_v10 = vld [vmem:[%s1734_s1 + $0x98] sm:$0xff] (!%p221_p7)   ;;  %v1313_v12 = vld [vmem:[%s1734_s1 + $0xa0] sm:$0xff] (!%p221_p7)   ;;  %p274_p8 = scmp.lt.s32.totalorder (!%p221_p7), %s1557_s22, 12  ;;  %v1316_v15 = vld [vmem:[%s1734_s1 + $0xa8] sm:$0xff] (!%p221_p7)  }
  0x10   : > { %1158 = vmatprep.subr.bf16.mxu0 (!%p221_p7), %v1308_v6  ;;  %v1314_v11 = vld [vmem:[%s1734_s1 + $0x58] sm:$0xff] (!%p221_p7)   ;;  %v1317_v14 = vld [vmem:[%s1734_s1 + $0x60] sm:$0xff] (!%p221_p7)   ;;  %v1320_v17 = vld [vmem:[%s1734_s1 + $0x68] sm:$0xff] (!%p221_p7)   ;;  %s1656_s15 = scalar_lea.vmem (!%p221_p7), [#allocation2], %s1196_s9  }
  0x11   : > { %v1315_v13 = vld [vmem:[%s1734_s1 + $0x18] sm:$0xff] (!%p221_p7)   ;;  %v1318_v16 = vld [vmem:[%s1734_s1 + $0x20] sm:$0xff] (!%p221_p7)   ;;  %v1319_v18 = vld [vmem:[%s1734_s1 + $0xb0] sm:$0xff] (!%p221_p7)  }
  0x12   : > { %684 = vmatpush1.bf16.msra.mxu1 (!%p221_p7), %v1304_v2  ;;  %v1321_v19 = vld [vmem:[%s1734_s1 + $0x28] sm:$0xff] (!%p221_p7)   ;;  %v1323_v20 = vld [vmem:[%s1734_s1 + $0x70] sm:$0xff] (!%p221_p7)   ;;  %v1322_v21 = vld [vmem:[%s1734_s1 + $0xb8] sm:$0xff] (!%p221_p7)  }
  0x13   : > { %685 = vmatprep.subr.bf16.mxu1 %v1460_v1  ;;  %1159 = vmatpush3.bf16.msra.mxu0 %v1309_v7  ;;  %s275_s13 = scalar_select %p274_p8, %s1557_s22, 12  ;;  %v1324_v22 = vld [vmem:[%s1734_s1 + $0x30] sm:$0xff]   ;;  %v1326_v23 = vld [vmem:[%s1734_s1 + $0x78] sm:$0xff]   ;;  %v1325_v27 = vld [vmem:[%s1734_s1 + $0xc0] sm:$0xff]  }
  0x14   : > { %1160 = vmatprep.subr.bf16.mxu0 %v1311_v8  ;;  %v1327_v25 = vld [vmem:[%s1734_s1 + $0x38] sm:$0xff]   ;;  %v1331_v30 = vld [vmem:[%s1734_s1 + $0xc8] sm:$0xff]   ;;  %v1332_v31 = vld [vmem:[%s1734_s1 + $0xd0] sm:$0xff]   ;;  %s789_s14 = ssub.s32 (%p1518_p3), 13, %s1557_s22  ;;  %s1155_s20 = smul.u32 (%p1518_p3), 56, %s1418_s17 }
  0x15   : > { %s1154_s29 = sshll.u32 %s275_s13, 4  ;;  %v1140_v54 = vld [vmem:[%s1735_s2] ss:$0 sm:$0xff]  ;;  %p790_p9 = scmp.lt.s32.totalorder (%p1518_p3), %s789_s14, 7 }
  0x16   : > { %686 = vmatpush1.bf16.msra.mxu1 %v1307_v5  ;;  %s1604_s10 = scalar_lea.vmem %s1733_s0, %s1154_s29  ;;  %v1141_v60 = vld [vmem:[%s1736_s3] ss:$0 sm:$0xff]  ;;  %s1679_s27 = scalar_lea.vmem (%p1518_p3), %s1737_s4, %s1155_s20  }
  0x17   : > { %687 = vmatprep.subr.bf16.mxu1 %v1460_v1  ;;  %1161 = vmatpush3.bf16.msra.mxu0 %v1312_v9  ;;  %v1330_v24 = vld [vmem:[%s1604_s10 + $0x4] ss:$16 sps:$4 sm:$0xff]   ;;  %v1335_v26 = vld [vmem:[%s1604_s10 + $0xc] ss:$16 sps:$4 sm:$0xff]   ;;  %v1328_v28 = vld [vmem:[%s1604_s10] ss:$16 sps:$4 sm:$0xff]  }
  0x18   : > { %1162 = vmatprep.subr.bf16.mxu0 %v1314_v11  ;;  %649 = vmatprep.mubr.bf16.mxu0 %v1330_v24  ;;  %v1336_v29 = vld [vmem:[%s1604_s10 + $0x24] ss:$16 sps:$4 sm:$0xff]   ;;  %v1338_v32 = vld [vmem:[%s1604_s10 + $0x20] ss:$16 sps:$4 sm:$0xff]   ;;  %v1333_v33 = vld [vmem:[%s1604_s10 + $0x8] ss:$16 sps:$4 sm:$0xff]  }
  0x19   : > { %1136 = vmatprep.mubr.msk.bf16.mxu1 %vm604_vm0, %v1335_v26  ;;  %v1342_v34 = vld [vmem:[%s1604_s10 + $0x44] ss:$16 sps:$4 sm:$0xff]   ;;  %v1339_v35 = vld [vmem:[%s1604_s10 + $0x2c] ss:$16 sps:$4 sm:$0xff]   ;;  %v1344_v37 = vld [vmem:[%s1604_s10 + $0x40] ss:$16 sps:$4 sm:$0xff]  }
  0x1a   : > { %688 = vmatpush1.bf16.msra.mxu1 %v1310_v10  ;;  %v316_v36 = vld [vmem:[%s1604_s10 + $0x60] sm:$0xff]  ;;  %v1341_v38 = vld [vmem:[%s1604_s10 + $0x28] ss:$16 sps:$4 sm:$0xff]   ;;  %v1345_v40 = vld [vmem:[%s1604_s10 + $0x4c] ss:$16 sps:$4 sm:$0xff]  }
  0x1b   : > { %689 = vmatprep.subr.bf16.mxu1 %v1460_v1  ;;  %1163 = vmatpush3.bf16.msra.mxu0 %v1315_v13  ;;  %v1106_v39 = vcombine.high %v316_v36, %v316_v36  ;;  %v317_v41 = vld [vmem:[%s1604_s10 + $0x68] sm:$0xff]  ;;  %v1105_v42 = vcombine.low %v316_v36, %v316_v36 }
  0x1c   : > { %1164 = vmatprep.subr.bf16.mxu0 %v1317_v14  ;;  %v1347_v43 = vld [vmem:[%s1604_s10 + $0x48] ss:$16 sps:$4 sm:$0xff]   ;;  %v1108_v44 = vcombine.high %v317_v41, %v317_v41  ;;  %v1107_v45 = vcombine.low %v317_v41, %v317_v41 }
  0x1e   : > { %690 = vmatpush1.bf16.msra.mxu1 %v1313_v12 }
  0x1f   : > { %691 = vmatprep.subr.bf16.mxu1 %v1460_v1  ;;  %1165 = vmatpush3.bf16.msra.mxu0 %v1318_v16 }
  0x20   : > { %1166 = vmatprep.subr.bf16.mxu0 %v1320_v17 }
  0x22   : > { %692 = vmatpush1.bf16.msra.mxu1 %v1316_v15 }
  0x23   : > { %693 = vmatprep.subr.bf16.mxu1 %v1460_v1  ;;  %1167 = vmatpush3.bf16.msra.mxu0 %v1321_v19 }
  0x24   : > { %1168 = vmatprep.subr.bf16.mxu0 %v1323_v20 }
  0x26   : > { %694 = vmatpush1.bf16.msra.mxu1 %v1319_v18 }
  0x27   : > { %695 = vmatprep.subr.bf16.mxu1 %v1460_v1  ;;  %1169 = vmatpush3.bf16.msra.mxu0 %v1324_v22 }
  0x28   : > { %1170 = vmatprep.subr.bf16.mxu0 %v1326_v23 }
  0x2a   : > { %696 = vmatpush1.bf16.msra.mxu1 %v1322_v21 }
  0x2b   : > { %697 = vmatprep.subr.bf16.mxu1 %v1460_v1  ;;  %1171 = vmatpush3.bf16.msra.mxu0 %v1327_v25 }
  0x2e   : > { %698 = vmatpush1.bf16.msra.mxu1 %v1325_v27  ;;  %650 = vmatmul.mubr.bf16.vlgmr.msra.gmra.mrb[0].mxu0 %v1328_v28 }
  0x2f   : > { %699 = vmatprep.subr.bf16.mxu1 %v1460_v1  ;;  %657 = vmatprep.mubr.bf16.mxu0 %v1336_v29 }
  0x32   : > { %700 = vmatpush1.bf16.msra.mxu1 %v1331_v30 }
  0x33   : > { %701 = vmatprep.subr.bf16.mxu1 %v1460_v1 }
  0x36   : > { %702 = vmatpush1.bf16.msra.mxu1 %v1332_v31  ;;  %658 = vmatmul.mubr.bf16.gmra.mrb[4].mxu0 %v1338_v32 }
  0x37   : > { %665 = vmatprep.mubr.bf16.mxu0 %v1342_v34 }
  0x39   : > { %714 = vmatmul.mubr.bf16.vlgmr.msra.gmra.mrb[0].mxu1 %v1333_v33 }
  0x3a   : > { %1137 = vmatprep.mubr.msk.bf16.mxu1 %vm604_vm0, %v1339_v35 }
  0x3e   : > { %666 = vmatmul.mubr.bf16.gmra.mrb[8].mxu0 %v1344_v37 }
  0x3f   : > { %673 = vmatprep.mubr.bf16.mxu0 %v1106_v39 }
  0x41   : > { %722 = vmatmul.mubr.bf16.gmra.mrb[4].mxu1 %v1341_v38 }
  0x42   : > { %1138 = vmatprep.mubr.msk.bf16.mxu1 %vm604_vm0, %v1345_v40 }
  0x46   : > { %674 = vmatmul.mubr.bf16.gmra.mrb[12].mxu0 %v1105_v42 }
  0x49   : > { %730 = vmatmul.mubr.bf16.gmra.mrb[8].mxu1 %v1347_v43 }
  0x4a   : > { %1139 = vmatprep.mubr.msk.bf16.mxu1 %vm604_vm0, %v1108_v44 }
  0x51   : > { %738 = vmatmul.mubr.bf16.gmra.mrb[12].mxu1 %v1107_v45 }
 0x101   : > { %v1172_v46 = vpop.f32.mrb[0].mxu0 }
 0x102   : > { %v1173_v47 = vpop.f32.mrb[1].mxu0 }
 0x103   : > { %v1174_v48 = vadd.f32 %v1173_v47, %v1172_v46  ;;  %v1175_v49 = vpop.f32.mrb[2].mxu0 }
 0x104   : > { %v1176_v50 = vpop.f32.mrb[3].mxu0 }
 0x105   : > { %v1177_v51 = vadd.f32 %v1176_v50, %v1175_v49 }
 0x109   : > { %v1178_v52 = vpop.f32.mrb[4].mxu0 }
 0x10a   : > { %v1179_v55 = vpop.f32.mrb[5].mxu0 }
 0x10b   : > { %v1180_v58 = vadd.f32 %v1179_v55, %v1178_v52  ;;  %v1181_v59 = vpop.f32.mrb[6].mxu0 }
 0x10c   : > { %v715_v53 = vpop.f32.mrb[0].mxu1  ;;  %v1182_v62 = vpop.f32.mrb[7].mxu0 }
 0x10d   : > { %v716_v56 = vadd.f32 %v1174_v48, %v715_v53  ;;  %v717_v57 = vpop.f32.mrb[1].mxu1  ;;  %v1183_v2 = vadd.f32 %v1182_v62, %v1181_v59 }
 0x10e   : > { %v718_v61 = vpop.f32.mrb[2].mxu1 }
 0x10f   : > { %v752_v63 = vmul.f32 %v1140_v54, %v716_v56  ;;  %v719_v0 = vadd.f32 %v1177_v51, %v718_v61  ;;  %v720_v1 = vpop.f32.mrb[3].mxu1 }
 0x111   : > { %v766_v3 = vadd.f32 %v1141_v60, %v752_v63  ;;  %v753_v4 = vmul.f32 %v1140_v54, %v719_v0  ;;  %v1184_v6 = vpop.f32.mrb[8].mxu0 }
 0x112   : > { %v1185_v8 = vpop.f32.mrb[9].mxu0 }
 0x113   : > { %774 = vst.msk [vmem:[%s1656_s15] sm:$0xff] %vm773_vm1, %v766_v3  ;;  %v767_v5 = vadd.f32 %v1141_v60, %v753_v4  ;;  %v1186_v11 = vadd.f32 %v1185_v8, %v1184_v6  ;;  %v1187_v12 = vpop.f32.mrb[10].mxu0 }
 0x114   : > { %v723_v7 = vpop.f32.mrb[4].mxu1  ;;  %v1188_v14 = vpop.f32.mrb[11].mxu0 }
 0x115   : > { %775 = vst.msk [vmem:[%s1656_s15 + $0x8] sm:$0xff] %vm773_vm1, %v767_v5  ;;  %v724_v9 = vadd.f32 %v1180_v58, %v723_v7  ;;  %v725_v10 = vpop.f32.mrb[5].mxu1  ;;  %v1189_v18 = vadd.f32 %v1188_v14, %v1187_v12 }
 0x116   : > { %v726_v13 = vpop.f32.mrb[6].mxu1 }
 0x117   : > { %v754_v15 = vmul.f32 %v1140_v54, %v724_v9  ;;  %v727_v16 = vadd.f32 %v1183_v2, %v726_v13  ;;  %v728_v17 = vpop.f32.mrb[7].mxu1 }
 0x119   : > { %v768_v19 = vadd.f32 %v1141_v60, %v754_v15  ;;  %v755_v20 = vmul.f32 %v1140_v54, %v727_v16  ;;  %v1190_v22 = vpop.f32.mrb[12].mxu0 }
 0x11a   : > { %v1191_v24 = vpop.f32.mrb[13].mxu0 }
 0x11b   : > { %776 = vst.msk [vmem:[%s1656_s15 + $0x10] sm:$0xff] %vm773_vm1, %v768_v19  ;;  %v769_v21 = vadd.f32 %v1141_v60, %v755_v20  ;;  %v1192_v27 = vadd.f32 %v1191_v24, %v1190_v22  ;;  %v1193_v28 = vpop.f32.mrb[14].mxu0 }
 0x11c   : > { %v731_v23 = vpop.f32.mrb[8].mxu1  ;;  %v1194_v30 = vpop.f32.mrb[15].mxu0 }
 0x11d   : > { %777 = vst.msk [vmem:[%s1656_s15 + $0x18] sm:$0xff] %vm773_vm1, %v769_v21  ;;  %v732_v25 = vadd.f32 %v1186_v11, %v731_v23  ;;  %v733_v26 = vpop.f32.mrb[9].mxu1 }
 0x11e   : > { %v734_v29 = vpop.f32.mrb[10].mxu1 }
 0x11f   : > { %v756_v31 = vmul.f32 %v1140_v54, %v732_v25  ;;  %v735_v32 = vadd.f32 %v1189_v18, %v734_v29  ;;  %v736_v33 = vpop.f32.mrb[11].mxu1 }
 0x121   : > { %v770_v34 = vadd.f32 %v1141_v60, %v756_v31  ;;  %v757_v35 = vmul.f32 %v1140_v54, %v735_v32 }
 0x123   : > { %778 = vst.msk [vmem:[%s1656_s15 + $0x20] sm:$0xff] %vm773_vm1, %v770_v34  ;;  %v771_v36 = vadd.f32 %v1141_v60, %v757_v35 }
 0x124   : > { %v739_v37 = vpop.f32.mrb[12].mxu1 }
 0x125   : > { %779 = vst.msk [vmem:[%s1656_s15 + $0x28] sm:$0xff] %vm773_vm1, %v771_v36  ;;  %v740_v38 = vadd.f32 %v1192_v27, %v739_v37  ;;  %v741_v39 = vpop.f32.mrb[13].mxu1  ;;  %787 = sbr.rel (!%p1518_p3) target bundleno = 361 (0x169), region = 40 }
 0x126   : > { %v742_v40 = vpop.f32.mrb[14].mxu1 }
 0x127   : > { %v758_v41 = vmul.f32 %v1140_v54, %v740_v38  ;;  %v743_v42 = vpop.f32.mrb[15].mxu1 }
 0x129   : > { %v772_v43 = vadd.f32 %v1141_v60, %v758_v41 }
 0x12b   : > { %780 = vst.msk [vmem:[%s1656_s15 + $0x30] sm:$0xff] %vm773_vm1, %v772_v43 }
 0x12c   : > { %s1749_s14 = smov (!%p790_p9, %s789_s14), 7 }
 0x12d   : > { %s1142_s28 = sshll.u32 %s1749_s14, 7 }
 0x12e   : > { %p1145_p10 = scmp.eq.s32.totalorder %s1142_s28, 0 }
 0x12f   : > { %1352 = sdivrem.u32 (!%p1145_p10), %s1749_s14, 7 }
 0x130   : > { %800 = sbr.rel (%p1145_p10) target bundleno = 361 (0x169), region = 44 }
 0x138   : > { %s1685_s23 = spop.drf %1352 }
 0x139   : > { %p1146_p11 = scmp.le.s32.totalorder %s1685_s23, 0 }
 0x13a   : > { %s1739_s17 = smov (!%p1146_p11), %s1679_s27  ;;  %s1740_s22 = smov (!%p1146_p11), %s1656_s15 }
 0x13b   : > { %1004 = sbr.rel (%p1146_p11) target bundleno = 332 (0x14c), region = 129  ;;  %s1694_s29 = smov (!%p1146_p11), 0  }
 0x13c   : > { %s1696_s30 = smov (!%p1146_p11), 0  }
 0x142 LB: >> { %v876_v44 = vld [vmem:[%s1434_s22] sm:$0xff]  ;;  %v878_v45 = vld [vmem:[%s1434_s22 + $0x8] sm:$0xff]  ;;  %v880_v46 = vld [vmem:[%s1434_s22 + $0x10] sm:$0xff]  ;;  %s890_s5 = sadd.s32 1, %s1438_s29  ;;  %s870_s30 = sadd.s32 1, %s1442_s30   ;;  %s1442_s30 = sphi %s1696_s30, %s870_s30   ;;  %s1438_s29 = sphi %s1694_s29, %s1741_s29   ;;  %s1434_s22 = sphi %s1740_s22, %s895_s22   ;;  %s1430_s17 = sphi %s1739_s17, %s896_s17  }
 0x143   : >> { %877 = vst [vmem:[%s1430_s17] sm:$0xff] %v876_v44  ;;  %879 = vst [vmem:[%s1430_s17 + $0x8] sm:$0xff] %v878_v45  ;;  %v882_v47 = vld [vmem:[%s1434_s22 + $0x18] sm:$0xff]  ;;  %v884_v48 = vld [vmem:[%s1434_s22 + $0x20] sm:$0xff]  ;;  %p891_p12 = scmp.ge.s32.totalorder %s890_s5, %s1685_s23  ;;  %p869_p13 = scmp.ge.s32.totalorder %s870_s30, %s1685_s23 }
 0x144   : >> { %881 = vst [vmem:[%s1430_s17 + $0x10] sm:$0xff] %v880_v46  ;;  %v886_v49 = vld [vmem:[%s1434_s22 + $0x28] sm:$0xff]  ;;  %883 = vst [vmem:[%s1430_s17 + $0x18] sm:$0xff] %v882_v47  ;;  %v888_v50 = vld [vmem:[%s1434_s22 + $0x30] sm:$0xff] }
 0x145   : >> { %885 = vst [vmem:[%s1430_s17 + $0x20] sm:$0xff] %v884_v48  ;;  %887 = vst [vmem:[%s1430_s17 + $0x28] sm:$0xff] %v886_v49  ;;  %s1751_s5 = smov (%p891_p12, %s890_s5), 0  ;;  %872 = sbr.rel (!%p869_p13) target bundleno = 322 (0x142), region = 135 }
 0x146   : >> { %889 = vst [vmem:[%s1430_s17 + $0x30] sm:$0xff] %v888_v50  ;;  %s893_s6 = smul.u32 56, %s1751_s5  ;;  %s1741_s29 = smov %s1751_s5 }
 0x148   : >> { %s895_s22 = scalar_lea.vmem %s1656_s15, %s893_s6 [#allocation2]   ;;  %s896_s17 = scalar_lea.vmem %s1679_s27, %s893_s6  }
 0x14c PF: > { %1354 = sdivrem.u32 %s1749_s14, 7 }
 0x14d   : > { %s1147_s7 = smul.u32 56, %s1685_s23 }
 0x14f   : > { %s901_s8 = scalar_lea.vmem %s1656_s15, %s1147_s7 [#allocation2]   ;;  %s903_s9 = scalar_lea.vmem %s1679_s27, %s1147_s7  }
 0x155   : > { %s1355_s11 = spop.drf %1354 }
 0x156   : > { %p1149_p0 = scmp.le.s32.totalorder %s1355_s11, 0 }
 0x157   : > { %s1444_s12 = smov (!%p1149_p0), %s903_s9   ;;  %s1448_s10 = smov (!%p1149_p0), %s901_s8  }
 0x158   : > { %1018 = sbr.rel (%p1149_p0) target bundleno = 361 (0x169), region = 140  ;;  %s1452_s13 = smov (!%p1149_p0), 0  }
 0x159   : > { %s1456_s20 = smov (!%p1149_p0), 0  }
 0x15f LB: >> { %v913_v51 = vld [vmem:[%s1450_s10] sm:$0xff]  ;;  %s915_s24 = sadd.s32 1, %s1454_s13  ;;  %s907_s20 = sadd.s32 1, %s1458_s20   ;;  %s1458_s20 = sphi %s1456_s20, %s907_s20   ;;  %s1454_s13 = sphi %s1452_s13, %s1453_s13   ;;  %s1450_s10 = sphi %s1448_s10, %s920_s10   ;;  %s1446_s12 = sphi %s1444_s12, %s921_s12  }
 0x160   : >> { %914 = vst [vmem:[%s1446_s12] sm:$0xff] %v913_v51  ;;  %p916_p1 = scmp.ge.s32.totalorder %s915_s24, %s1355_s11  ;;  %p906_p2 = scmp.ge.s32.totalorder %s907_s20, %s1355_s11 }
 0x162   : >> { %s1753_s24 = smov (%p916_p1, %s915_s24), 0  ;;  %909 = sbr.rel (!%p906_p2) target bundleno = 351 (0x15f), region = 146 }
 0x163   : >> { %s1150_s15 = sshll.u32 %s1753_s24, 3  ;;  %s1453_s13 = smov %s1753_s24  }
 0x164   : >> { %s920_s10 = scalar_lea.vmem %s901_s8, %s1150_s15 [#allocation2]   ;;  %s921_s12 = scalar_lea.vmem %s903_s9, %s1150_s15  }
 0x169 PF: > { %s14_s19 = sadd.s32 1, %s1426_s19   ;;  %s1742_s15 = smov %s1414_s16 }
 0x16a   : > { %p11_p3 = scmp.ge.s32.totalorder %s14_s19, 4   ;;  %s1743_s16 = smov %s1527_s25 }
 0x16b   : > { %s1744_s17 = smov %s1422_s18  ;;  %s1745_s18 = smov %s1747_s21 }
 0x16c   :  { %13 = sbr.rel (!%p11_p3) target bundleno = 3 (0x3), region = 157 }

// kernel: temporal_alexnet_forward.16
= control target key start
LH: loop header
LB: loop body
LE: loop exit
PB: predicated region body
PF: predicated region fallthrough
CT: control target
= control target key end

     0   :  { %v638_v0 = vmov 0   ;;  %vm318_vm0 = vcmask 392192   ;;  %vm493_vm1 = vcmask 386048   ;;  %s835_s1 = inlined_call_operand.vmem [shape: bf16[1,432,48], index: 1, kind: input, shape index: {}]   ;;  %s836_s0 = inlined_call_operand.vmem [shape: bf16[1,50,432], index: 0, kind: input, shape index: {}]   ;;  %s837_s2 = inlined_call_operand.vmem [shape: f32[1,1,48], index: 2, kind: input, shape index: {}]   ;;  %s838_s3 = inlined_call_operand.vmem [shape: f32[1,1,48], index: 3, kind: input, shape index: {}]   ;;  %s839_s4 = inlined_call_operand.vmem [shape: f32[1,50,48], index: 4, kind: output, shape index: {}]  }
   0x1   :  { %395 = vmatprep.subr.bf16.mxu1 %v638_v0  ;;  %v589_v1 = vld [vmem:[%s835_s1 + $0x80] sm:$0xff]   ;;  %v590_v2 = vld [vmem:[%s835_s1 + $0x88] sm:$0xff]   ;;  %v593_v5 = vld [vmem:[%s835_s1 + $0x90] sm:$0xff]  }
   0x2   :  { %396 = vmatpush1.bf16.msra.mxu1 %v589_v1  ;;  %v591_v3 = vld [vmem:[%s835_s1 + $0x40] sm:$0xff]   ;;  %v594_v6 = vld [vmem:[%s835_s1 + $0x48] sm:$0xff]   ;;  %v597_v8 = vld [vmem:[%s835_s1 + $0x50] sm:$0xff]  }
   0x3   :  { %397 = vmatprep.subr.bf16.mxu1 %v638_v0  ;;  %v592_v4 = vld [vmem:[%s835_s1] sm:$0xff]   ;;  %548 = vmatprep.subr.bf16.mxu0 %v591_v3  ;;  %v595_v7 = vld [vmem:[%s835_s1 + $0x8] sm:$0xff]   ;;  %v598_v9 = vld [vmem:[%s835_s1 + $0x10] sm:$0xff]  }
   0x4   :  { %549 = vmatpush3.bf16.msra.mxu0 %v592_v4  ;;  %v596_v10 = vld [vmem:[%s835_s1 + $0x98] sm:$0xff]   ;;  %v599_v12 = vld [vmem:[%s835_s1 + $0xa0] sm:$0xff]   ;;  %v602_v15 = vld [vmem:[%s835_s1 + $0xa8] sm:$0xff]  }
   0x5   :  { %550 = vmatprep.subr.bf16.mxu0 %v594_v6  ;;  %v600_v11 = vld [vmem:[%s835_s1 + $0x58] sm:$0xff]   ;;  %v603_v14 = vld [vmem:[%s835_s1 + $0x60] sm:$0xff]   ;;  %v606_v17 = vld [vmem:[%s835_s1 + $0x68] sm:$0xff]  }
   0x6   :  { %398 = vmatpush1.bf16.msra.mxu1 %v590_v2  ;;  %v601_v13 = vld [vmem:[%s835_s1 + $0x18] sm:$0xff]   ;;  %v604_v16 = vld [vmem:[%s835_s1 + $0x20] sm:$0xff]   ;;  %v605_v18 = vld [vmem:[%s835_s1 + $0xb0] sm:$0xff]  }
   0x7   :  { %399 = vmatprep.subr.bf16.mxu1 %v638_v0  ;;  %v607_v19 = vld [vmem:[%s835_s1 + $0x28] sm:$0xff]   ;;  %v609_v20 = vld [vmem:[%s835_s1 + $0x70] sm:$0xff]   ;;  %v608_v21 = vld [vmem:[%s835_s1 + $0xb8] sm:$0xff]  }
   0x8   :  { %551 = vmatpush3.bf16.msra.mxu0 %v595_v7  ;;  %v610_v22 = vld [vmem:[%s835_s1 + $0x30] sm:$0xff]   ;;  %v612_v23 = vld [vmem:[%s835_s1 + $0x78] sm:$0xff]   ;;  %v611_v27 = vld [vmem:[%s835_s1 + $0xc0] sm:$0xff]  }
   0x9   :  { %552 = vmatprep.subr.bf16.mxu0 %v597_v8  ;;  %v616_v24 = vld [vmem:[%s836_s0 + $0x4] ss:$16 sps:$4 sm:$0xff]   ;;  %v613_v25 = vld [vmem:[%s835_s1 + $0x38] sm:$0xff]   ;;  %v614_v28 = vld [vmem:[%s836_s0] ss:$16 sps:$4 sm:$0xff]  }
   0xa   :  { %400 = vmatpush1.bf16.msra.mxu1 %v593_v5  ;;  %363 = vmatprep.mubr.bf16.mxu0 %v616_v24  ;;  %v621_v26 = vld [vmem:[%s836_s0 + $0xc] ss:$16 sps:$4 sm:$0xff]   ;;  %v622_v29 = vld [vmem:[%s836_s0 + $0x24] ss:$16 sps:$4 sm:$0xff]   ;;  %v624_v32 = vld [vmem:[%s836_s0 + $0x20] ss:$16 sps:$4 sm:$0xff]  }
   0xb   :  { %401 = vmatprep.subr.bf16.mxu1 %v638_v0  ;;  %542 = vmatprep.mubr.msk.bf16.mxu1 %vm318_vm0, %v621_v26  ;;  %v617_v30 = vld [vmem:[%s835_s1 + $0xc8] sm:$0xff]   ;;  %v618_v31 = vld [vmem:[%s835_s1 + $0xd0] sm:$0xff]   ;;  %v30_v36 = vld [vmem:[%s836_s0 + $0x60] sm:$0x11] }
   0xc   :  { %553 = vmatpush3.bf16.msra.mxu0 %v598_v9  ;;  %v619_v33 = vld [vmem:[%s836_s0 + $0x8] ss:$16 sps:$4 sm:$0xff]   ;;  %v628_v34 = vld [vmem:[%s836_s0 + $0x44] ss:$16 sps:$4 sm:$0xff]   ;;  %v625_v35 = vld [vmem:[%s836_s0 + $0x2c] ss:$16 sps:$4 sm:$0xff]   ;;  %v512_v39 = vcombine.high %v30_v36, %v30_v36  ;;  %v511_v42 = vcombine.low %v30_v36, %v30_v36 }
   0xd   :  { %554 = vmatprep.subr.bf16.mxu0 %v600_v11  ;;  %v630_v37 = vld [vmem:[%s836_s0 + $0x40] ss:$16 sps:$4 sm:$0xff]   ;;  %v627_v38 = vld [vmem:[%s836_s0 + $0x28] ss:$16 sps:$4 sm:$0xff]   ;;  %v631_v40 = vld [vmem:[%s836_s0 + $0x4c] ss:$16 sps:$4 sm:$0xff]  }
   0xe   :  { %402 = vmatpush1.bf16.msra.mxu1 %v596_v10  ;;  %v31_v41 = vld [vmem:[%s836_s0 + $0x68] sm:$0x11]  ;;  %v546_v54 = vld [vmem:[%s837_s2] ss:$0 sm:$0xff] }
   0xf   :  { %403 = vmatprep.subr.bf16.mxu1 %v638_v0  ;;  %v633_v43 = vld [vmem:[%s836_s0 + $0x48] ss:$16 sps:$4 sm:$0xff]   ;;  %v514_v44 = vcombine.high %v31_v41, %v31_v41  ;;  %v513_v45 = vcombine.low %v31_v41, %v31_v41  ;;  %v547_v60 = vld [vmem:[%s838_s3] ss:$0 sm:$0xff] }
  0x10   :  { %555 = vmatpush3.bf16.msra.mxu0 %v601_v13 }
  0x11   :  { %556 = vmatprep.subr.bf16.mxu0 %v603_v14 }
  0x12   :  { %404 = vmatpush1.bf16.msra.mxu1 %v599_v12 }
  0x13   :  { %405 = vmatprep.subr.bf16.mxu1 %v638_v0 }
  0x14   :  { %557 = vmatpush3.bf16.msra.mxu0 %v604_v16 }
  0x15   :  { %558 = vmatprep.subr.bf16.mxu0 %v606_v17 }
  0x16   :  { %406 = vmatpush1.bf16.msra.mxu1 %v602_v15 }
  0x17   :  { %407 = vmatprep.subr.bf16.mxu1 %v638_v0 }
  0x18   :  { %559 = vmatpush3.bf16.msra.mxu0 %v607_v19 }
  0x19   :  { %560 = vmatprep.subr.bf16.mxu0 %v609_v20 }
  0x1a   :  { %408 = vmatpush1.bf16.msra.mxu1 %v605_v18 }
  0x1b   :  { %409 = vmatprep.subr.bf16.mxu1 %v638_v0 }
  0x1c   :  { %561 = vmatpush3.bf16.msra.mxu0 %v610_v22 }
  0x1d   :  { %562 = vmatprep.subr.bf16.mxu0 %v612_v23 }
  0x1e   :  { %410 = vmatpush1.bf16.msra.mxu1 %v608_v21 }
  0x1f   :  { %411 = vmatprep.subr.bf16.mxu1 %v638_v0 }
  0x20   :  { %563 = vmatpush3.bf16.msra.mxu0 %v613_v25 }
  0x22   :  { %412 = vmatpush1.bf16.msra.mxu1 %v611_v27 }
  0x23   :  { %413 = vmatprep.subr.bf16.mxu1 %v638_v0  ;;  %364 = vmatmul.mubr.bf16.vlgmr.msra.gmra.mrb[0].mxu0 %v614_v28 }
  0x24   :  { %371 = vmatprep.mubr.bf16.mxu0 %v622_v29 }
  0x26   :  { %414 = vmatpush1.bf16.msra.mxu1 %v617_v30 }
  0x27   :  { %415 = vmatprep.subr.bf16.mxu1 %v638_v0 }
  0x2a   :  { %416 = vmatpush1.bf16.msra.mxu1 %v618_v31 }
  0x2b   :  { %372 = vmatmul.mubr.bf16.gmra.mrb[4].mxu0 %v624_v32 }
  0x2c   :  { %379 = vmatprep.mubr.bf16.mxu0 %v628_v34 }
  0x2d   :  { %428 = vmatmul.mubr.bf16.vlgmr.msra.gmra.mrb[0].mxu1 %v619_v33 }
  0x2e   :  { %543 = vmatprep.mubr.msk.bf16.mxu1 %vm318_vm0, %v625_v35 }
  0x33   :  { %380 = vmatmul.mubr.bf16.gmra.mrb[8].mxu0 %v630_v37 }
  0x34   :  { %387 = vmatprep.mubr.bf16.mxu0 %v512_v39 }
  0x35   :  { %436 = vmatmul.mubr.bf16.gmra.mrb[4].mxu1 %v627_v38 }
  0x36   :  { %544 = vmatprep.mubr.msk.bf16.mxu1 %vm318_vm0, %v631_v40 }
  0x3b   :  { %388 = vmatmul.mubr.bf16.gmra.mrb[12].mxu0 %v511_v42 }
  0x3d   :  { %444 = vmatmul.mubr.bf16.gmra.mrb[8].mxu1 %v633_v43 }
  0x3e   :  { %545 = vmatprep.mubr.msk.bf16.mxu1 %vm318_vm0, %v514_v44 }
  0x45   :  { %452 = vmatmul.mubr.bf16.gmra.mrb[12].mxu1 %v513_v45 }
  0xf6   :  { %v564_v46 = vpop.f32.mrb[0].mxu0 }
  0xf7   :  { %v565_v47 = vpop.f32.mrb[1].mxu0 }
  0xf8   :  { %v566_v48 = vadd.f32 %v565_v47, %v564_v46  ;;  %v567_v49 = vpop.f32.mrb[2].mxu0 }
  0xf9   :  { %v568_v50 = vpop.f32.mrb[3].mxu0 }
  0xfa   :  { %v569_v51 = vadd.f32 %v568_v50, %v567_v49 }
  0xfe   :  { %v570_v52 = vpop.f32.mrb[4].mxu0 }
  0xff   :  { %v571_v55 = vpop.f32.mrb[5].mxu0 }
 0x100   :  { %v429_v53 = vpop.f32.mrb[0].mxu1  ;;  %v572_v58 = vadd.f32 %v571_v55, %v570_v52  ;;  %v573_v59 = vpop.f32.mrb[6].mxu0 }
 0x101   :  { %v430_v56 = vadd.f32 %v566_v48, %v429_v53  ;;  %v431_v57 = vpop.f32.mrb[1].mxu1  ;;  %v574_v62 = vpop.f32.mrb[7].mxu0 }
 0x102   :  { %v432_v61 = vpop.f32.mrb[2].mxu1  ;;  %v575_v2 = vadd.f32 %v574_v62, %v573_v59 }
 0x103   :  { %v466_v63 = vmul.f32 %v546_v54, %v430_v56  ;;  %v433_v0 = vadd.f32 %v569_v51, %v432_v61  ;;  %v434_v1 = vpop.f32.mrb[3].mxu1 }
 0x105   :  { %v480_v3 = vadd.f32 %v547_v60, %v466_v63  ;;  %v467_v4 = vmul.f32 %v546_v54, %v433_v0 }
 0x106   :  { %v576_v6 = vpop.f32.mrb[8].mxu0 }
 0x107   :  { %487 = vst.msk [vmem:[%s839_s4] sm:$0xff] %vm318_vm0, %v480_v3  ;;  %v481_v5 = vadd.f32 %v547_v60, %v467_v4  ;;  %v577_v8 = vpop.f32.mrb[9].mxu0 }
 0x108   :  { %v437_v7 = vpop.f32.mrb[4].mxu1  ;;  %v578_v11 = vadd.f32 %v577_v8, %v576_v6  ;;  %v579_v12 = vpop.f32.mrb[10].mxu0 }
 0x109   :  { %488 = vst.msk [vmem:[%s839_s4 + $0x8] sm:$0xff] %vm318_vm0, %v481_v5  ;;  %v438_v9 = vadd.f32 %v572_v58, %v437_v7  ;;  %v439_v10 = vpop.f32.mrb[5].mxu1  ;;  %v580_v14 = vpop.f32.mrb[11].mxu0 }
 0x10a   :  { %v440_v13 = vpop.f32.mrb[6].mxu1  ;;  %v581_v18 = vadd.f32 %v580_v14, %v579_v12 }
 0x10b   :  { %v468_v15 = vmul.f32 %v546_v54, %v438_v9  ;;  %v441_v16 = vadd.f32 %v575_v2, %v440_v13  ;;  %v442_v17 = vpop.f32.mrb[7].mxu1 }
 0x10d   :  { %v482_v19 = vadd.f32 %v547_v60, %v468_v15  ;;  %v469_v20 = vmul.f32 %v546_v54, %v441_v16 }
 0x10e   :  { %v582_v22 = vpop.f32.mrb[12].mxu0 }
 0x10f   :  { %489 = vst.msk [vmem:[%s839_s4 + $0x10] sm:$0xff] %vm318_vm0, %v482_v19  ;;  %v483_v21 = vadd.f32 %v547_v60, %v469_v20  ;;  %v583_v24 = vpop.f32.mrb[13].mxu0 }
 0x110   :  { %v445_v23 = vpop.f32.mrb[8].mxu1  ;;  %v584_v27 = vadd.f32 %v583_v24, %v582_v22  ;;  %v585_v28 = vpop.f32.mrb[14].mxu0 }
 0x111   :  { %490 = vst.msk [vmem:[%s839_s4 + $0x18] sm:$0xff] %vm318_vm0, %v483_v21  ;;  %v446_v25 = vadd.f32 %v578_v11, %v445_v23  ;;  %v447_v26 = vpop.f32.mrb[9].mxu1  ;;  %v586_v30 = vpop.f32.mrb[15].mxu0 }
 0x112   :  { %v448_v29 = vpop.f32.mrb[10].mxu1 }
 0x113   :  { %v470_v31 = vmul.f32 %v546_v54, %v446_v25  ;;  %v449_v32 = vadd.f32 %v581_v18, %v448_v29  ;;  %v450_v33 = vpop.f32.mrb[11].mxu1 }
 0x115   :  { %v484_v34 = vadd.f32 %v547_v60, %v470_v31  ;;  %v471_v35 = vmul.f32 %v546_v54, %v449_v32 }
 0x117   :  { %491 = vst.msk [vmem:[%s839_s4 + $0x20] sm:$0xff] %vm318_vm0, %v484_v34  ;;  %v485_v36 = vadd.f32 %v547_v60, %v471_v35 }
 0x118   :  { %v453_v37 = vpop.f32.mrb[12].mxu1 }
 0x119   :  { %492 = vst.msk [vmem:[%s839_s4 + $0x28] sm:$0xff] %vm318_vm0, %v485_v36  ;;  %v454_v38 = vadd.f32 %v584_v27, %v453_v37  ;;  %v455_v39 = vpop.f32.mrb[13].mxu1 }
 0x11a   :  { %v456_v40 = vpop.f32.mrb[14].mxu1 }
 0x11b   :  { %v472_v41 = vmul.f32 %v546_v54, %v454_v38  ;;  %v457_v42 = vpop.f32.mrb[15].mxu1 }
 0x11d   :  { %v486_v43 = vadd.f32 %v547_v60, %v472_v41 }
 0x11f   :  { %494 = vst.msk [vmem:[%s839_s4 + $0x30] sm:$0x3] %vm493_vm1, %v486_v43 }

// kernel: temporal_alexnet_forward.19
= control target key start
LH: loop header
LB: loop body
LE: loop exit
PB: predicated region body
PF: predicated region fallthrough
CT: control target
= control target key end

     0   :  { %s3692_s21 = smov 0   ;;  %s3694_s22 = smov 0   ;;  %s4234_s0 = inlined_call_operand.vmem [shape: f32[2,25,48], index: 0, kind: input, shape index: {}]   ;;  %s4235_s1 = inlined_call_operand.vmem [shape: f32[9,25,25], index: 1, kind: input, shape index: {}]   ;;  %s4236_s2 = inlined_call_operand.vmem [shape: f32[9,48,3], index: 2, kind: input, shape index: {}]   ;;  %s4237_s3 = inlined_call_operand.vmem [shape: f32[1,3], index: 3, kind: input, shape index: {}]   ;;  %s4238_s4 = inlined_call_operand.vmem [shape: f32[2,2,3,25], index: 4, kind: input, shape index: {}]   ;;  %s4239_s5 = inlined_call_operand.vmem [shape: f32[2,2,25,48], index: 5, kind: input, shape index: {}]   ;;  %s4240_s6 = inlined_call_operand.vmem [shape: f32[2,2,1,48], index: 6, kind: output, shape index: {}]  }
   0x1   :  { %s3696_s23 = smov 0   ;;  %s3698_s24 = smov 0  }
   0x2   :  { %s3700_s25 = smov 0  }
   0x3 LB: > { %s25_s26 = sadd.s32 1, %s3646_s23  ;;  %s28_s27 = sadd.s32 1, %s3650_s24  ;;  %s3654_s25 = sphi %s3700_s25, %s16_s25   ;;  %s3650_s24 = sphi %s3698_s24, %s4248_s24   ;;  %s3646_s23 = sphi %s3696_s23, %s4247_s23   ;;  %s3642_s22 = sphi %s3694_s22, %s4246_s22   ;;  %s3638_s21 = sphi %s3692_s21, %s4245_s21  }
   0x4   : > { %p26_p0 = scmp.ge.s32.totalorder %s25_s26, 2  ;;  %p2645_p1 = scmp.ge.s32.totalorder %s3654_s25, 1 }
   0x5   : > { %p257_p2 = scmp.lt.s32.totalorder %s3654_s25, 5 }
   0x6   : > { %s4250_s26 = smov (%p26_p0, %s25_s26), 0  ;;  %s4252_s27 = smov (!%p26_p0, %s28_s27), %s3650_s24 }
   0x7   : > { %p258_p3 = pnand %p2645_p1, %p257_p2  ;;  %p30_p4 = scmp.ge.s32.totalorder %s4252_s27, 2 }
   0x8   : > { %p306_p5 = scmp.lt.s32.totalorder (!%p258_p3), %s3642_s22, 1  ;;  %p313_p6 = scmp.lt.s32.totalorder (!%p258_p3), %s3638_s21, 1 }
   0x9   : > { %s4254_s27 = smov (%p30_p4, %s4252_s27), 0  ;;  %261 = sbr.rel (%p258_p3) target bundleno = 1545 (0x609), region = 44 }
   0xa   : > { %4241 = sst [smem:[#allocation3_spill]] %s4254_s27  ;;  %p2654_p7 = scmp.ne.s32.totalorder (!%p258_p3), %s3638_s21, 0 }
  0x10   : > { %s4256_s22 = smov (!%p306_p5, %s3642_s22), 1  ;;  %vm343_vm0 = vcmask (!%p2654_p7), 392192   ;;  %vm347_vm1 = vcmask (!%p2654_p7), 385024  }
  0x11   : > { %s314_s28 = scalar_select %p313_p6, %s3638_s21, 1 }
  0x12   : > { %s2829_s29 = sshll.u32 %s4256_s22, 5  ;;  %s2648_s30 = sshll.u32 %s4256_s22, 1 }
  0x13   : > { %s310_s9 = scalar_lea.vmem %s4234_s0, %s2829_s29  ;;  %s3729_s10 = sadd.s32 %s2648_s30, %s314_s28 }
  0x14   : > { %s2649_s11 = sshll.u32 %s3729_s10, 2  ;;  %s2650_s12 = sshll.u32 %s314_s28, 2  ;;  %v339_v0 = vld [vmem:[%s310_s9] sm:$0xff] (!%p2654_p7)  ;;  %v340_v1 = vld [vmem:[%s310_s9 + $0x8] sm:$0xff] (!%p2654_p7)  ;;  %v341_v2 = vld [vmem:[%s310_s9 + $0x10] sm:$0xff] (!%p2654_p7) }
  0x15   : > { %s3735_s15 = scalar_lea.vmem %s4238_s4, %s2649_s11  ;;  %s2651_s16 = sshll.u32 %s4256_s22, 3  ;;  %344 = vst.msk [vmem:[#allocation2] sm:$0xff] (!%p2654_p7), %vm343_vm0, %v339_v0  ;;  %345 = vst.msk [vmem:[#allocation2 + $0x8] sm:$0xff] (!%p2654_p7), %vm343_vm0, %v340_v1  ;;  %v342_v3 = vld [vmem:[%s310_s9 + $0x18] sm:$0x1] (!%p2654_p7) }
  0x16   : > { %s325_s17 = sadd.s32 %s2651_s16, %s2650_s12  ;;  %s334_s20 = scalar_lea.vmem %s4240_s6, %s3729_s10  ;;  %346 = vst.msk [vmem:[#allocation2 + $0x10] sm:$0xff] (!%p2654_p7), %vm343_vm0, %v341_v2 }
  0x17   : > { %s2652_s27 = sshll.u32 %s325_s17, 3  ;;  %338 = sbr.rel (%p2654_p7) target bundleno = 30 (0x1e), region = 48  ;;  %348 = vst.msk [vmem:[#allocation2 + $0x18] sm:$0x1] (!%p2654_p7), %vm347_vm1, %v342_v3 }
  0x18   : > { %s3744_s30 = scalar_lea.vmem %s4239_s5, %s2652_s27 }
  0x1e PF: > { %v349_v4 = vld [vmem:[#allocation2] sm:$0xff]  ;;  %v350_v5 = vld [vmem:[#allocation2 + $0x8] sm:$0xff]  ;;  %v351_v6 = vld [vmem:[#allocation2 + $0x10] sm:$0xff]  ;;  %vm378_vm2 = vcmask 1040384   ;;  %vm365_vm3 = vcmask 203776   ;;  %vm3656_vm4 = vmmov 1  }
  0x1f   : > { %v3747_v7 = vpack.c.bf16 %v350_v5, %v349_v4  ;;  %v352_v8 = vld [vmem:[#allocation2 + $0x18] sm:$0x1]  ;;  %v361_v9 = vld [vmem:[%s4235_s1] sm:$0xff]  ;;  %vm3754_vm5 = vmpackc.low %vm378_vm2, %vm3656_vm4  ;;  %vm473_vm6 = vcmask 392192   ;;  %vm2269_vm7 = vcmask 1042432   ;;  %vm2256_vm8 = vcmask 23552  }
  0x20   : > { %v3752_v10 = vpack.c.bf16 %v352_v8, %v351_v6  ;;  %3013 = vmatprep.mubr.msk.f32.mxu0 %vm365_vm3, %v361_v9  ;;  %v467_v12 = vld [vmem:[%s4236_s2] sm:$0xff]  ;;  %v468_v13 = vld [vmem:[%s4236_s2 + $0x8] sm:$0xff]  ;;  %v469_v15 = vld [vmem:[%s4236_s2 + $0x10] sm:$0xff]  ;;  %vm2367_vm9 = vcmask 196608   ;;  %vm2510_vm10 = vcmask 385024  }
  0x21   : > { %3316 = vmatprep.subr.bf16.mxu0 %v3747_v7  ;;  %v3325_v14 = vpack.c.bf16 %v468_v13, %v467_v12  ;;  %v470_v16 = vld [vmem:[%s4236_s2 + $0x18] sm:$0xff]  ;;  %v362_v17 = vld [vmem:[%s4235_s1 + $0x8] sm:$0xff]  ;;  %v363_v18 = vld [vmem:[%s4235_s1 + $0x10] sm:$0xff] }
  0x22   : > { %3318 = vmatpush3.bf16.msra.mxu0 %v3747_v7  ;;  %v3329_v19 = vpack.c.bf16 %v470_v16, %v469_v15  ;;  %v471_v20 = vld [vmem:[%s4236_s2 + $0x20] sm:$0xff]  ;;  %v472_v21 = vld [vmem:[%s4236_s2 + $0x28] sm:$0xff]  ;;  %v364_v22 = vld [vmem:[%s4235_s1 + $0x18] sm:$0x1] }
  0x23   : > { %3321 = vmatprep.subr.msk.bf16.mxu0 %vm3754_vm5, %v3752_v10  ;;  %v3333_v23 = vpack.c.bf16 %v472_v21, %v471_v20  ;;  %v2674_v24 = vld [vmem:[%s4236_s2 + $0x30] sm:$0xff]  ;;  %v2675_v25 = vld [vmem:[%s4236_s2 + $0x38] sm:$0xff]  ;;  %v2665_v31 = vld [vmem:[%s4235_s1 + $0x20] sm:$0xff] }
  0x24   : > { %v3347_v26 = vpack.c.bf16 %v2675_v25, %v2674_v24  ;;  %v2666_v32 = vld [vmem:[%s4235_s1 + $0x28] sm:$0xff]  ;;  %v2667_v33 = vld [vmem:[%s4235_s1 + $0x30] sm:$0xff]  ;;  %v2668_v34 = vld [vmem:[%s4235_s1 + $0x38] sm:$0x1] }
  0x25   : > { %v2684_v35 = vld [vmem:[%s4235_s1 + $0x40] sm:$0xff]  ;;  %v2685_v36 = vld [vmem:[%s4235_s1 + $0x48] sm:$0xff]  ;;  %v2686_v37 = vld [vmem:[%s4235_s1 + $0x50] sm:$0xff] }
  0x26   : > { %3324 = vmatpush3.bf16.msk.msra.mxu0 %vm3754_vm5, %v3752_v10  ;;  %3348 = vmatprep.subr.bf16.mxu1 %v3347_v26  ;;  %v2687_v38 = vld [vmem:[%s4235_s1 + $0x58] sm:$0x1]  ;;  %v2703_v39 = vld [vmem:[%s4235_s1 + $0x60] sm:$0xff]  ;;  %v2704_v40 = vld [vmem:[%s4235_s1 + $0x68] sm:$0xff] }
  0x27   : > { %3326 = vmatprep.subr.bf16.mxu0 %v3325_v14  ;;  %3350 = vmatpush3.bf16.msra.mxu1 %v3347_v26  ;;  %v2705_v41 = vld [vmem:[%s4235_s1 + $0x70] sm:$0xff]  ;;  %v2706_v42 = vld [vmem:[%s4235_s1 + $0x78] sm:$0x1]  ;;  %v2722_v43 = vld [vmem:[%s4235_s1 + $0x80] sm:$0xff] }
  0x28   : > { %v2723_v44 = vld [vmem:[%s4235_s1 + $0x88] sm:$0xff]  ;;  %v2724_v45 = vld [vmem:[%s4235_s1 + $0x90] sm:$0xff]  ;;  %v2725_v46 = vld [vmem:[%s4235_s1 + $0x98] sm:$0x1] }
  0x29   : > { %3014 = vmatmul.mubr.msk.f32.vlgmr.msra.gmra.mrb[0].mxu0 %vm365_vm3, %v362_v17  ;;  %v2741_v47 = vld [vmem:[%s4235_s1 + $0xa0] sm:$0xff]  ;;  %v2742_v48 = vld [vmem:[%s4235_s1 + $0xa8] sm:$0xff]  ;;  %v2743_v49 = vld [vmem:[%s4235_s1 + $0xb0] sm:$0xff] }
  0x2a   : > { %3016 = vmatprep.mubr.msk.f32.mxu0 %vm365_vm3, %v363_v18  ;;  %3328 = vmatpush3.bf16.msra.mxu0 %v3325_v14  ;;  %v2744_v50 = vld [vmem:[%s4235_s1 + $0xb8] sm:$0x1]  ;;  %v2760_v51 = vld [vmem:[%s4235_s1 + $0xc0] sm:$0xff]  ;;  %v2761_v52 = vld [vmem:[%s4235_s1 + $0xc8] sm:$0xff] }
  0x2b   : > { %3330 = vmatprep.subr.bf16.mxu0 %v3329_v19  ;;  %v2762_v53 = vld [vmem:[%s4235_s1 + $0xd0] sm:$0xff]  ;;  %v2763_v54 = vld [vmem:[%s4235_s1 + $0xd8] sm:$0x1]  ;;  %v2779_v55 = vld [vmem:[%s4235_s1 + $0xe0] sm:$0xff] }
  0x2c   : > { %v2780_v56 = vld [vmem:[%s4235_s1 + $0xe8] sm:$0xff]  ;;  %v2781_v57 = vld [vmem:[%s4235_s1 + $0xf0] sm:$0xff]  ;;  %v2782_v58 = vld [vmem:[%s4235_s1 + $0xf8] sm:$0x1] }
  0x2d   : > { %3017 = vmatmul.mubr.msk.f32.gmra.mrb[2].mxu0 %vm365_vm3, %v364_v22  ;;  %v2798_v59 = vld [vmem:[%s4235_s1 + $0x100] sm:$0xff]  ;;  %v2799_v60 = vld [vmem:[%s4235_s1 + $0x108] sm:$0xff]  ;;  %v2800_v61 = vld [vmem:[%s4235_s1 + $0x110] sm:$0xff] }
  0x2e   : > { %3332 = vmatpush3.bf16.msra.mxu0 %v3329_v19  ;;  %v2801_v62 = vld [vmem:[%s4235_s1 + $0x118] sm:$0x1]  ;;  %v2676_v63 = vld [vmem:[%s4236_s2 + $0x40] sm:$0xff]  ;;  %v2677_v0 = vld [vmem:[%s4236_s2 + $0x48] sm:$0xff] }
  0x2f   : > { %3334 = vmatprep.subr.bf16.mxu0 %v3333_v23  ;;  %v3351_v1 = vpack.c.bf16 %v2677_v0, %v2676_v63  ;;  %v2678_v2 = vld [vmem:[%s4236_s2 + $0x50] sm:$0xff]  ;;  %v2679_v3 = vld [vmem:[%s4236_s2 + $0x58] sm:$0xff]  ;;  %v2693_v5 = vld [vmem:[%s4236_s2 + $0x60] sm:$0xff] }
  0x30   : > { %v3355_v4 = vpack.c.bf16 %v2679_v3, %v2678_v2  ;;  %v2694_v6 = vld [vmem:[%s4236_s2 + $0x68] sm:$0xff]  ;;  %v2255_v8 = vld [vmem:[%s3735_s15] sm:$0x7]  ;;  %v2695_v14 = vld [vmem:[%s4236_s2 + $0x70] sm:$0xff] }
  0x31   : > { %3352 = vmatprep.subr.bf16.mxu1 %v3351_v1  ;;  %v2696_v15 = vld [vmem:[%s4236_s2 + $0x78] sm:$0xff]  ;;  %v2697_v19 = vld [vmem:[%s4236_s2 + $0x80] sm:$0xff]  ;;  %v2698_v20 = vld [vmem:[%s4236_s2 + $0x88] sm:$0xff] }
  0x32   : > { %3336 = vmatpush3.bf16.msra.mxu0 %v3333_v23  ;;  %3354 = vmatpush3.bf16.msra.mxu1 %v3351_v1  ;;  %v3373_v18 = vpack.c.bf16 %v2696_v15, %v2695_v14  ;;  %v3377_v23 = vpack.c.bf16 %v2698_v20, %v2697_v19  ;;  %v2712_v24 = vld [vmem:[%s4236_s2 + $0x90] sm:$0xff]  ;;  %v2713_v25 = vld [vmem:[%s4236_s2 + $0x98] sm:$0xff]  ;;  %v2773_v20 = vld [vmem:[%s4236_s2 + $0x140] sm:$0xff] }
  0x33   : > { %3338 = vmatprep.subr.bf16.mxu0 %v3747_v7  ;;  %3356 = vmatprep.subr.bf16.mxu1 %v3355_v4  ;;  %v2754_v0 = vld [vmem:[%s4236_s2 + $0x110] sm:$0xff]  ;;  %v2755_v1 = vld [vmem:[%s4236_s2 + $0x118] sm:$0xff] }
  0x34   : > { %v3443_v3 = vpack.c.bf16 %v2755_v1, %v2754_v0  ;;  %v2771_v15 = vld [vmem:[%s4236_s2 + $0x130] sm:$0xff] }
  0x36   : > { %3358 = vmatpush3.bf16.msra.mxu1 %v3355_v4 }
  0xfc   : > { %v3015_v27 = vpop.f32.mrb[0].mxu0 }
  0xfd   : > { %v448_v28 = vpop.f32.mrb[1].mxu0 }
  0xfe   : > { %3031 = vmatprep.mubr.msk.f32.mxu0 %vm473_vm6, %v448_v28  ;;  %v3391_v28 = vpack.c.bf16 %v2713_v25, %v2712_v24  ;;  %v2788_v25 = vld [vmem:[%s4236_s2 + $0x150] sm:$0xff] }
  0xff   : > { %3032 = vmatmul.mubr.msk.f32.vlgmr.msra.gmra.mrb[4].mxu0 %vm473_vm6, %v3015_v27 }
 0x100   : > { %3340 = vmatpush3.bf16.msra.mxu0 %v3747_v7  ;;  %v3018_v29 = vpop.f32.mrb[2].mxu0 }
 0x101   : > { %v458_v30 = vpop.f32.mrb[3].mxu0  ;;  %3343 = vmatprep.subr.msk.bf16.mxu0 %vm3754_vm5, %v3752_v10 }
 0x102   : > { %3034 = vmatprep.mubr.msk.f32.mxu0 %vm473_vm6, %v458_v30  ;;  %v2715_v30 = vld [vmem:[%s4236_s2 + $0xa8] sm:$0xff] }
 0x103   : > { %3035 = vmatmul.mubr.msk.f32.gmra.mrb[6].mxu0 %vm473_vm6, %v3018_v29  ;;  %v2714_v29 = vld [vmem:[%s4236_s2 + $0xa0] sm:$0xff] }
 0x104   : > { %3346 = vmatpush3.bf16.msk.msra.mxu0 %vm3754_vm5, %v3752_v10  ;;  %3045 = vmatprep.mubr.msk.f32.mxu0 %vm365_vm3, %v2665_v31 }
 0x105   : > { %3360 = vmatprep.subr.bf16.mxu0 %v3747_v7 }
 0x107   : > { %3046 = vmatmul.mubr.msk.f32.vlgmr.msra.gmra.mrb[8].mxu0 %vm365_vm3, %v2666_v32  ;;  %v3395_v32 = vpack.c.bf16 %v2715_v30, %v2714_v29  ;;  %v2790_v30 = vld [vmem:[%s4236_s2 + $0x160] sm:$0xff] }
 0x108   : > { %3362 = vmatpush3.bf16.msra.mxu0 %v3747_v7  ;;  %3048 = vmatprep.mubr.msk.f32.mxu0 %vm365_vm3, %v2667_v33 }
 0x109   : > { %3365 = vmatprep.subr.msk.bf16.mxu0 %vm3754_vm5, %v3752_v10 }
 0x10b   : > { %3049 = vmatmul.mubr.msk.f32.gmra.mrb[10].mxu0 %vm365_vm3, %v2668_v34  ;;  %v2716_v34 = vld [vmem:[%s4236_s2 + $0xb0] sm:$0xff] }
 0x10c   : > { %3368 = vmatpush3.bf16.msk.msra.mxu0 %vm3754_vm5, %v3752_v10  ;;  %3077 = vmatprep.mubr.msk.f32.mxu0 %vm365_vm3, %v2684_v35  ;;  %v2717_v35 = vld [vmem:[%s4236_s2 + $0xb8] sm:$0xff] }
 0x10d   : > { %3382 = vmatprep.subr.bf16.mxu0 %v3747_v7 }
 0x10f   : > { %3078 = vmatmul.mubr.msk.f32.vlgmr.msra.gmra.mrb[12].mxu0 %vm365_vm3, %v2685_v36 }
 0x110   : > { %3384 = vmatpush3.bf16.msra.mxu0 %v3747_v7  ;;  %3080 = vmatprep.mubr.msk.f32.mxu0 %vm365_vm3, %v2686_v37  ;;  %v3399_v37 = vpack.c.bf16 %v2717_v35, %v2716_v34  ;;  %v2792_v35 = vld [vmem:[%s4236_s2 + $0x170] sm:$0xff] }
 0x111   : > { %3387 = vmatprep.subr.msk.bf16.mxu0 %vm3754_vm5, %v3752_v10 }
 0x113   : > { %3081 = vmatmul.mubr.msk.f32.gmra.mrb[14].mxu0 %vm365_vm3, %v2687_v38 }
 0x114   : > { %3390 = vmatpush3.bf16.msk.msra.mxu0 %vm3754_vm5, %v3752_v10  ;;  %3109 = vmatprep.mubr.msk.f32.mxu0 %vm365_vm3, %v2703_v39  ;;  %v2731_v39 = vld [vmem:[%s4236_s2 + $0xc0] sm:$0xff] }
 0x115   : > { %3404 = vmatprep.subr.bf16.mxu0 %v3747_v7 }
 0x117   : > { %3110 = vmatmul.mubr.msk.f32.vlgmr.msra.gmra.mrb[16].mxu0 %vm365_vm3, %v2704_v40  ;;  %v2732_v40 = vld [vmem:[%s4236_s2 + $0xc8] sm:$0xff] }
 0x118   : > { %3406 = vmatpush3.bf16.msra.mxu0 %v3747_v7  ;;  %3112 = vmatprep.mubr.msk.f32.mxu0 %vm365_vm3, %v2705_v41 }
 0x119   : > { %3409 = vmatprep.subr.msk.bf16.mxu0 %vm3754_vm5, %v3752_v10 }
 0x11b   : > { %3113 = vmatmul.mubr.msk.f32.gmra.mrb[18].mxu0 %vm365_vm3, %v2706_v42  ;;  %v3413_v42 = vpack.c.bf16 %v2732_v40, %v2731_v39  ;;  %v2808_v39 = vld [vmem:[%s4236_s2 + $0x188] sm:$0xff] }
 0x11c   : > { %3412 = vmatpush3.bf16.msk.msra.mxu0 %vm3754_vm5, %v3752_v10  ;;  %3141 = vmatprep.mubr.msk.f32.mxu0 %vm365_vm3, %v2722_v43 }
 0x11d   : > { %3426 = vmatprep.subr.bf16.mxu0 %v3747_v7 }
 0x11f   : > { %3142 = vmatmul.mubr.msk.f32.vlgmr.msra.gmra.mrb[20].mxu0 %vm365_vm3, %v2723_v44  ;;  %v2733_v44 = vld [vmem:[%s4236_s2 + $0xd0] sm:$0xff] }
 0x120   : > { %3428 = vmatpush3.bf16.msra.mxu0 %v3747_v7  ;;  %3144 = vmatprep.mubr.msk.f32.mxu0 %vm365_vm3, %v2724_v45  ;;  %v2734_v45 = vld [vmem:[%s4236_s2 + $0xd8] sm:$0xff] }
 0x121   : > { %3431 = vmatprep.subr.msk.bf16.mxu0 %vm3754_vm5, %v3752_v10 }
 0x123   : > { %3145 = vmatmul.mubr.msk.f32.gmra.mrb[22].mxu0 %vm365_vm3, %v2725_v46 }
 0x124   : > { %3434 = vmatpush3.bf16.msk.msra.mxu0 %vm3754_vm5, %v3752_v10  ;;  %3173 = vmatprep.mubr.msk.f32.mxu0 %vm365_vm3, %v2741_v47  ;;  %v3417_v47 = vpack.c.bf16 %v2734_v45, %v2733_v44  ;;  %v2811_v44 = vld [vmem:[%s4236_s2 + $0x1a0] sm:$0xff]  ;;  %v2812_v45 = vld [vmem:[%s4236_s2 + $0x1a8] sm:$0xff] }
 0x125   : > { %3448 = vmatprep.subr.bf16.mxu0 %v3747_v7 }
 0x127   : > { %3174 = vmatmul.mubr.msk.f32.vlgmr.msra.gmra.mrb[24].mxu0 %vm365_vm3, %v2742_v48 }
 0x128   : > { %3450 = vmatpush3.bf16.msra.mxu0 %v3747_v7  ;;  %3176 = vmatprep.mubr.msk.f32.mxu0 %vm365_vm3, %v2743_v49  ;;  %v2735_v49 = vld [vmem:[%s4236_s2 + $0xe0] sm:$0xff] }
 0x129   : > { %3453 = vmatprep.subr.msk.bf16.mxu0 %vm3754_vm5, %v3752_v10 }
 0x12b   : > { %3177 = vmatmul.mubr.msk.f32.gmra.mrb[26].mxu0 %vm365_vm3, %v2744_v50  ;;  %v2736_v50 = vld [vmem:[%s4236_s2 + $0xe8] sm:$0xff] }
 0x12c   : > { %3456 = vmatpush3.bf16.msk.msra.mxu0 %vm3754_vm5, %v3752_v10  ;;  %3205 = vmatprep.mubr.msk.f32.mxu0 %vm365_vm3, %v2760_v51 }
 0x12d   : > { %3470 = vmatprep.subr.bf16.mxu0 %v3747_v7 }
 0x12f   : > { %3206 = vmatmul.mubr.msk.f32.vlgmr.msra.gmra.mrb[28].mxu0 %vm365_vm3, %v2761_v52  ;;  %v3421_v52 = vpack.c.bf16 %v2736_v50, %v2735_v49 }
 0x130   : > { %3472 = vmatpush3.bf16.msra.mxu0 %v3747_v7  ;;  %3208 = vmatprep.mubr.msk.f32.mxu0 %vm365_vm3, %v2762_v53 }
 0x131   : > { %3475 = vmatprep.subr.msk.bf16.mxu0 %vm3754_vm5, %v3752_v10 }
 0x133   : > { %3209 = vmatmul.mubr.msk.f32.gmra.mrb[30].mxu0 %vm365_vm3, %v2763_v54  ;;  %v2750_v54 = vld [vmem:[%s4236_s2 + $0xf0] sm:$0xff] }
 0x134   : > { %3478 = vmatpush3.bf16.msk.msra.mxu0 %vm3754_vm5, %v3752_v10  ;;  %3237 = vmatprep.mubr.msk.f32.mxu0 %vm365_vm3, %v2779_v55  ;;  %v2751_v55 = vld [vmem:[%s4236_s2 + $0xf8] sm:$0xff] }
 0x135   : > { %3492 = vmatprep.subr.bf16.mxu0 %v3747_v7 }
 0x137   : > { %3238 = vmatmul.mubr.msk.f32.vlgmr.msra.gmra.mrb[32].mxu0 %vm365_vm3, %v2780_v56 }
 0x138   : > { %3494 = vmatpush3.bf16.msra.mxu0 %v3747_v7  ;;  %3240 = vmatprep.mubr.msk.f32.mxu0 %vm365_vm3, %v2781_v57  ;;  %v3369_v7 = vpack.c.bf16 %v2694_v6, %v2693_v5  ;;  %v3435_v57 = vpack.c.bf16 %v2751_v55, %v2750_v54  ;;  %v2769_v5 = vld [vmem:[%s4236_s2 + $0x120] sm:$0xff]  ;;  %v2770_v6 = vld [vmem:[%s4236_s2 + $0x128] sm:$0xff] }
 0x139   : > { %3497 = vmatprep.subr.msk.bf16.mxu0 %vm3754_vm5, %v3752_v10 }
 0x13a   : > { %3370 = vmatprep.subr.bf16.mxu1 %v3369_v7 }
 0x13b   : > { %3241 = vmatmul.mubr.msk.f32.gmra.mrb[34].mxu0 %vm365_vm3, %v2782_v58 }
 0x13c   : > { %3500 = vmatpush3.bf16.msk.msra.mxu0 %vm3754_vm5, %v3752_v10  ;;  %3269 = vmatprep.mubr.msk.f32.mxu0 %vm365_vm3, %v2798_v59  ;;  %v2752_v59 = vld [vmem:[%s4236_s2 + $0x100] sm:$0xff] }
 0x13d   : > { %3293 = vmatprep.subr.msk.mxu0 %vm2269_vm7, %v2255_v8 }
 0x13f   : > { %3270 = vmatmul.mubr.msk.f32.vlgmr.msra.gmra.mrb[36].mxu0 %vm365_vm3, %v2799_v60  ;;  %v2753_v60 = vld [vmem:[%s4236_s2 + $0x108] sm:$0xff] }
 0x140   : > { %3272 = vmatprep.mubr.msk.f32.mxu0 %vm365_vm3, %v2800_v61  ;;  %3294 = vmatpush3.msk.msra.mxu0 %vm2269_vm7, %v2255_v8  ;;  %v3457_v8 = vpack.c.bf16 %v2770_v6, %v2769_v5 }
 0x143   : > { %3273 = vmatmul.mubr.msk.f32.gmra.mrb[38].mxu0 %vm365_vm3, %v2801_v62  ;;  %v3439_v62 = vpack.c.bf16 %v2753_v60, %v2752_v59 }
 0x1d2   : > { %v4018_v9 = vpop.f32.mrb[4].mxu0 }
 0x1d3   : > { %v4020_v10 = vpop.f32.mrb[5].mxu0 }
 0x1d6   : > { %v4022_v12 = vpop.f32.mrb[6].mxu0 }
 0x1d7   : > { %v4024_v13 = vpop.f32.mrb[7].mxu0 }
 0x1da   : > { %v3047_v16 = vpop.f32.mrb[8].mxu0 }
 0x1db   : > { %v658_v17 = vpop.f32.mrb[9].mxu0 }
 0x1dc   : > { %3063 = vmatprep.mubr.msk.f32.mxu1 %vm473_vm6, %v658_v17 }
 0x1dd   : > { %3064 = vmatmul.mubr.msk.f32.vlgmr.msra.gmra.mrb[0].mxu1 %vm473_vm6, %v3047_v16  ;;  %v2772_v16 = vld [vmem:[%s4236_s2 + $0x138] sm:$0xff] }
 0x1de   : > { %3372 = vmatpush3.bf16.msra.mxu1 %v3369_v7  ;;  %v3050_v21 = vpop.f32.mrb[10].mxu0 }
 0x1df   : > { %3374 = vmatprep.subr.bf16.mxu1 %v3373_v18  ;;  %v668_v22 = vpop.f32.mrb[11].mxu0 }
 0x1e0   : > { %3066 = vmatprep.mubr.msk.f32.mxu1 %vm473_vm6, %v668_v22 }
 0x1e1   : > { %3067 = vmatmul.mubr.msk.f32.gmra.mrb[2].mxu1 %vm473_vm6, %v3050_v21  ;;  %v2774_v21 = vld [vmem:[%s4236_s2 + $0x148] sm:$0xff] }
 0x1e2   : > { %3376 = vmatpush3.bf16.msra.mxu1 %v3373_v18  ;;  %v3079_v26 = vpop.f32.mrb[12].mxu0  ;;  %v3461_v18 = vpack.c.bf16 %v2772_v16, %v2771_v15 }
 0x1e3   : > { %3378 = vmatprep.subr.bf16.mxu1 %v3377_v23  ;;  %v868_v27 = vpop.f32.mrb[13].mxu0 }
 0x1e4   : > { %3095 = vmatprep.mubr.msk.f32.mxu1 %vm473_vm6, %v868_v27 }
 0x1e6   : > { %3380 = vmatpush3.bf16.msra.mxu1 %v3377_v23  ;;  %v3082_v31 = vpop.f32.mrb[14].mxu0  ;;  %v3465_v23 = vpack.c.bf16 %v2774_v21, %v2773_v20 }
 0x1e7   : > { %3392 = vmatprep.subr.bf16.mxu1 %v3391_v28  ;;  %v878_v33 = vpop.f32.mrb[15].mxu0 }
 0x1e9   : > { %3096 = vmatmul.mubr.msk.f32.vlgmr.msra.gmra.mrb[0].mxu1 %vm473_vm6, %v3079_v26  ;;  %v2789_v26 = vld [vmem:[%s4236_s2 + $0x158] sm:$0xff] }
 0x1ea   : > { %3394 = vmatpush3.bf16.msra.mxu1 %v3391_v28  ;;  %3098 = vmatprep.mubr.msk.f32.mxu1 %vm473_vm6, %v878_v33  ;;  %v3111_v36 = vpop.f32.mrb[16].mxu0  ;;  %v3479_v28 = vpack.c.bf16 %v2789_v26, %v2788_v25  ;;  %v2403_v25 = vld [vmem:[%s3744_s30] sm:$0xff]  ;;  %v2404_v26 = vld [vmem:[%s3744_s30 + $0x8] sm:$0xff] }
 0x1eb   : > { %3396 = vmatprep.subr.bf16.mxu1 %v3395_v32  ;;  %v1078_v38 = vpop.f32.mrb[17].mxu0 }
 0x1ed   : > { %3099 = vmatmul.mubr.msk.f32.gmra.mrb[2].mxu1 %vm473_vm6, %v3082_v31  ;;  %v2791_v31 = vld [vmem:[%s4236_s2 + $0x168] sm:$0xff] }
 0x1ee   : > { %3398 = vmatpush3.bf16.msra.mxu1 %v3395_v32  ;;  %3127 = vmatprep.mubr.msk.f32.mxu1 %vm473_vm6, %v1078_v38  ;;  %v3114_v41 = vpop.f32.mrb[18].mxu0  ;;  %v3483_v33 = vpack.c.bf16 %v2791_v31, %v2790_v30  ;;  %v2807_v38 = vld [vmem:[%s4236_s2 + $0x180] sm:$0xff] }
 0x1ef   : > { %3400 = vmatprep.subr.bf16.mxu1 %v3399_v37  ;;  %v1088_v43 = vpop.f32.mrb[19].mxu0  ;;  %v3501_v40 = vpack.c.bf16 %v2808_v39, %v2807_v38 }
 0x1f2   : > { %3402 = vmatpush3.bf16.msra.mxu1 %v3399_v37  ;;  %v3143_v46 = vpop.f32.mrb[20].mxu0 }
 0x1f3   : > { %3414 = vmatprep.subr.bf16.mxu1 %v3413_v42  ;;  %v1288_v48 = vpop.f32.mrb[21].mxu0 }
 0x1f5   : > { %3128 = vmatmul.mubr.msk.f32.vlgmr.msra.gmra.mrb[0].mxu1 %vm473_vm6, %v3111_v36  ;;  %v2793_v36 = vld [vmem:[%s4236_s2 + $0x178] sm:$0xff] }
 0x1f6   : > { %3416 = vmatpush3.bf16.msra.mxu1 %v3413_v42  ;;  %3130 = vmatprep.mubr.msk.f32.mxu1 %vm473_vm6, %v1088_v43  ;;  %v3146_v51 = vpop.f32.mrb[22].mxu0  ;;  %v3487_v37 = vpack.c.bf16 %v2793_v36, %v2792_v35  ;;  %v2810_v42 = vld [vmem:[%s4236_s2 + $0x198] sm:$0xff] }
 0x1f7   : > { %3418 = vmatprep.subr.bf16.mxu1 %v3417_v47  ;;  %v1298_v53 = vpop.f32.mrb[23].mxu0 }
 0x1f9   : > { %3131 = vmatmul.mubr.msk.f32.gmra.mrb[2].mxu1 %vm473_vm6, %v3114_v41  ;;  %v2809_v41 = vld [vmem:[%s4236_s2 + $0x190] sm:$0xff] }
 0x1fa   : > { %3420 = vmatpush3.bf16.msra.mxu1 %v3417_v47  ;;  %3159 = vmatprep.mubr.msk.f32.mxu1 %vm473_vm6, %v1288_v48  ;;  %v3175_v56 = vpop.f32.mrb[24].mxu0  ;;  %v3505_v43 = vpack.c.bf16 %v2810_v42, %v2809_v41  ;;  %v2655_v47 = vld [vmem:[%s4237_s3] ss:$0 sm:$0xff] }
 0x1fb   : > { %3422 = vmatprep.subr.bf16.mxu1 %v3421_v52  ;;  %v1498_v58 = vpop.f32.mrb[25].mxu0  ;;  %v572_v48 = vadd.f32 %v4018_v9, %v2655_v47  ;;  %v571_v49 = vadd.f32 %v2655_v47, %v4020_v10  ;;  %v574_v54 = vadd.f32 %v4022_v12, %v2655_v47  ;;  %v573_v55 = vadd.f32 %v2655_v47, %v4024_v13 }
 0x1fe   : > { %3424 = vmatpush3.bf16.msra.mxu1 %v3421_v52  ;;  %v3178_v61 = vpop.f32.mrb[26].mxu0 }
 0x1ff   : > { %3436 = vmatprep.subr.bf16.mxu1 %v3435_v57  ;;  %v1508_v63 = vpop.f32.mrb[27].mxu0 }
 0x201   : > { %3160 = vmatmul.mubr.msk.f32.vlgmr.msra.gmra.mrb[0].mxu1 %vm473_vm6, %v3143_v46  ;;  %v3509_v46 = vpack.c.bf16 %v2812_v45, %v2811_v44 }
 0x202   : > { %3438 = vmatpush3.bf16.msra.mxu1 %v3435_v57  ;;  %3162 = vmatprep.mubr.msk.f32.mxu1 %vm473_vm6, %v1298_v53  ;;  %v3207_v2 = vpop.f32.mrb[28].mxu0 }
 0x203   : > { %3440 = vmatprep.subr.bf16.mxu1 %v3439_v62  ;;  %v1708_v4 = vpop.f32.mrb[29].mxu0 }
 0x205   : > { %3163 = vmatmul.mubr.msk.f32.gmra.mrb[2].mxu1 %vm473_vm6, %v3146_v51 }
 0x206   : > { %3442 = vmatpush3.bf16.msra.mxu1 %v3439_v62  ;;  %3191 = vmatprep.mubr.msk.f32.mxu1 %vm473_vm6, %v1498_v58  ;;  %v3210_v7 = vpop.f32.mrb[30].mxu0 }
 0x207   : > { %3444 = vmatprep.subr.bf16.mxu1 %v3443_v3  ;;  %v1718_v14 = vpop.f32.mrb[31].mxu0 }
 0x20a   : > { %3446 = vmatpush3.bf16.msra.mxu1 %v3443_v3  ;;  %v3239_v17 = vpop.f32.mrb[32].mxu0 }
 0x20b   : > { %3458 = vmatprep.subr.bf16.mxu1 %v3457_v8  ;;  %v1918_v19 = vpop.f32.mrb[33].mxu0 }
 0x20d   : > { %3192 = vmatmul.mubr.msk.f32.vlgmr.msra.gmra.mrb[0].mxu1 %vm473_vm6, %v3175_v56 }
 0x20e   : > { %3460 = vmatpush3.bf16.msra.mxu1 %v3457_v8  ;;  %3194 = vmatprep.mubr.msk.f32.mxu1 %vm473_vm6, %v1508_v63  ;;  %v3242_v22 = vpop.f32.mrb[34].mxu0 }
 0x20f   : > { %3462 = vmatprep.subr.bf16.mxu1 %v3461_v18  ;;  %v1928_v24 = vpop.f32.mrb[35].mxu0 }
 0x211   : > { %3195 = vmatmul.mubr.msk.f32.gmra.mrb[2].mxu1 %vm473_vm6, %v3178_v61 }
 0x212   : > { %3464 = vmatpush3.bf16.msra.mxu1 %v3461_v18  ;;  %3223 = vmatprep.mubr.msk.f32.mxu1 %vm473_vm6, %v1708_v4  ;;  %v3271_v27 = vpop.f32.mrb[36].mxu0 }
 0x213   : > { %3466 = vmatprep.subr.bf16.mxu1 %v3465_v23  ;;  %v2128_v29 = vpop.f32.mrb[37].mxu0 }
 0x216   : > { %3468 = vmatpush3.bf16.msra.mxu1 %v3465_v23  ;;  %v3274_v32 = vpop.f32.mrb[38].mxu0 }
 0x217   : > { %3480 = vmatprep.subr.bf16.mxu1 %v3479_v28  ;;  %v2138_v34 = vpop.f32.mrb[39].mxu0 }
 0x219   : > { %3224 = vmatmul.mubr.msk.f32.vlgmr.msra.gmra.mrb[0].mxu1 %vm473_vm6, %v3207_v2 }
 0x21a   : > { %3482 = vmatpush3.bf16.msra.mxu1 %v3479_v28  ;;  %3226 = vmatprep.mubr.msk.f32.mxu1 %vm473_vm6, %v1718_v14  ;;  %v2405_v28 = vld [vmem:[%s3744_s30 + $0x10] sm:$0xff] }
 0x21b   : > { %3484 = vmatprep.subr.bf16.mxu1 %v3483_v33 }
 0x21d   : > { %3227 = vmatmul.mubr.msk.f32.gmra.mrb[2].mxu1 %vm473_vm6, %v3210_v7 }
 0x21e   : > { %3486 = vmatpush3.bf16.msra.mxu1 %v3483_v33  ;;  %3255 = vmatprep.mubr.msk.f32.mxu1 %vm473_vm6, %v1918_v19 }
 0x21f   : > { %3488 = vmatprep.subr.bf16.mxu1 %v3487_v37 }
 0x222   : > { %3490 = vmatpush3.bf16.msra.mxu1 %v3487_v37 }
 0x223   : > { %3502 = vmatprep.subr.bf16.mxu1 %v3501_v40 }
 0x225   : > { %3256 = vmatmul.mubr.msk.f32.vlgmr.msra.gmra.mrb[0].mxu1 %vm473_vm6, %v3239_v17 }
 0x226   : > { %3504 = vmatpush3.bf16.msra.mxu1 %v3501_v40  ;;  %3258 = vmatprep.mubr.msk.f32.mxu1 %vm473_vm6, %v1928_v24 }
 0x227   : > { %3506 = vmatprep.subr.bf16.mxu1 %v3505_v43 }
 0x229   : > { %3259 = vmatmul.mubr.msk.f32.gmra.mrb[2].mxu1 %vm473_vm6, %v3242_v22 }
 0x22a   : > { %3508 = vmatpush3.bf16.msra.mxu1 %v3505_v43  ;;  %3287 = vmatprep.mubr.msk.f32.mxu1 %vm473_vm6, %v2128_v29  ;;  %v2406_v29 = vld [vmem:[%s3744_s30 + $0x18] sm:$0x1] }
 0x22b   : > { %3510 = vmatprep.subr.bf16.mxu1 %v3509_v46  ;;  %v3517_v30 = vpack.c.bf16 %v2406_v29, %v2405_v28 }
 0x22e   : > { %3512 = vmatpush3.bf16.msra.mxu1 %v3509_v46 }
 0x231   : > { %3288 = vmatmul.mubr.msk.f32.vlgmr.msra.gmra.mrb[0].mxu1 %vm473_vm6, %v3271_v27  ;;  %v3513_v27 = vpack.c.bf16 %v2404_v26, %v2403_v25 }
 0x232   : > { %3290 = vmatprep.mubr.msk.f32.mxu1 %vm473_vm6, %v2138_v34 }
 0x233   : > { %3514 = vmatprep.subr.bf16.mxu0 %v3513_v27 }
 0x235   : > { %3291 = vmatmul.mubr.msk.f32.gmra.mrb[2].mxu1 %vm473_vm6, %v3274_v32 }
 0x304   : > { %v3289_v50 = vpop.f32.mrb[0].mxu1 }
 0x305   : > { %v3524_v51 = vadd.f32 %v3289_v50, %v572_v48  ;;  %v2232_v52 = vpop.f32.mrb[1].mxu1 }
 0x306   : > { %v3526_v53 = vadd.f32 %v2232_v52, %v571_v49 }
 0x308   : > { %v3292_v56 = vpop.f32.mrb[2].mxu1  ;;  %3295 = vmatprep.mubr.msk.f32.mxu0 %vm2256_vm8, %v3526_v53 }
 0x309   : > { %v3528_v57 = vadd.f32 %v3292_v56, %v574_v54  ;;  %v2242_v58 = vpop.f32.mrb[3].mxu1  ;;  %3296 = vmatmul.mubr.msk.f32.vlgmr.msra.gmra.mrb[40].mxu0 %vm2256_vm8, %v3524_v51 }
 0x30a   : > { %v3530_v59 = vadd.f32 %v2242_v58, %v573_v55  ;;  %3516 = vmatpush3.bf16.msra.mxu0 %v3513_v27 }
 0x30b   : > { %3519 = vmatprep.subr.msk.bf16.mxu0 %vm3754_vm5, %v3517_v30 }
 0x30c   : > { %3298 = vmatprep.mubr.msk.f32.mxu0 %vm2256_vm8, %v3530_v59 }
 0x30d   : > { %3299 = vmatmul.mubr.msk.f32.gmra.mrb[42].mxu0 %vm2256_vm8, %v3528_v57 }
 0x30e   : > { %3522 = vmatpush3.bf16.msk.msra.mxu0 %vm3754_vm5, %v3517_v30 }
 0x3dc   : > { %v3297_v9 = vpop.f32.mrb[40].mxu0 }
 0x3dd   : > { %v2339_v60 = vpop.f32.mrb[41].mxu0  ;;  %v2361_v63 = vsel %vm365_vm3, %v3297_v9, -inf }
 0x3de   : > { %v2358_v10 = vsel %vm365_vm3, %v2339_v60, -inf }
 0x3df   : > { %2359 = vmax.xlane.f32.xlu0 %v2358_v10 }
 0x3e0   : > { %v3300_v61 = vpop.f32.mrb[42].mxu0 }
 0x3e1   : > { %v2349_v62 = vpop.f32.mrb[43].mxu0  ;;  %v2368_v13 = vsel %vm2367_vm9, %v3300_v61, -inf }
 0x3e2   : > { %v2364_v12 = vsel %vm365_vm3, %v2349_v62, -inf }
 0x3e3   : > { %2362 = vmax.xlane.f32.xlu0 %v2361_v63  ;;  %2365 = vmax.xlane.f32.xlu1 %v2364_v12 }
 0x3e7   : > { %2369 = vmax.xlane.f32.xlu1 %v2368_v13 }
 0x46c   : > { %v2360_v0 = vpop.xlane.xlu0 %2359 }
 0x46d   : > { %v2371_v1 = vsub.f32 %v2339_v60, %v2360_v0 }
 0x46f   : > { %v2375_v2 = vmul.f32 1.442695, %v2371_v1 }
 0x470   : > { %v2363_v3 = vpop.xlane.xlu0 %2362  ;;  %v2366_v4 = vpop.xlane.xlu1 %2365 }
 0x471   : > { %3600 = vpow2.f32 %v2375_v2  ;;  %v2372_v5 = vsub.f32 %v3297_v9, %v2363_v3  ;;  %v2373_v6 = vsub.f32 %v2349_v62, %v2366_v4 }
 0x473   : > { %v2377_v7 = vmul.f32 1.442695, %v2372_v5  ;;  %v2379_v8 = vmul.f32 1.442695, %v2373_v6 }
 0x474   : > { %v2370_v14 = vpop.xlane.xlu1 %2369 }
 0x475   : > { %3602 = vpow2.f32 %v2377_v7  ;;  %v2374_v15 = vsub.f32 %v3300_v61, %v2370_v14 }
 0x476   : > { %3604 = vpow2.f32 %v2379_v8 }
 0x477   : > { %v2381_v16 = vmul.f32 1.442695, %v2374_v15 }
 0x479   : > { %3606 = vpow2.f32 %v2381_v16 }
 0x47b   : > { %v3601_v17 = vpop.eup %3600 }
 0x47c   : > { %v2383_v18 = vsel %vm365_vm3, %v3601_v17, 0.0 }
 0x47d   : > { %2384 = vadd.xlane.f32.xlu0 %v2383_v18 }
 0x47f   : > { %v3603_v19 = vpop.eup %3602 }
 0x480   : > { %v3605_v20 = vpop.eup %3604  ;;  %v2386_v21 = vsel %vm365_vm3, %v3603_v19, 0.0 }
 0x481   : > { %2387 = vadd.xlane.f32.xlu1 %v2386_v21  ;;  %v2389_v22 = vsel %vm365_vm3, %v3605_v20, 0.0 }
 0x482   : > { %2390 = vadd.xlane.f32.xlu0 %v2389_v22 }
 0x483   : > { %v3607_v23 = vpop.eup %3606 }
 0x484   : > { %v2392_v24 = vsel %vm2367_vm9, %v3607_v23, 0.0 }
 0x485   : > { %2393 = vadd.xlane.f32.xlu1 %v2392_v24 }
 0x50a   : > { %v2385_v31 = vpop.xlane.xlu0 %2384 }
 0x50b   : > { %3608 = vrcp.f32 %v2385_v31 }
 0x50e   : > { %v2388_v32 = vpop.xlane.xlu1 %2387 }
 0x50f   : > { %v2391_v33 = vpop.xlane.xlu0 %2390  ;;  %3610 = vrcp.f32 %v2388_v32 }
 0x510   : > { %3612 = vrcp.f32 %v2391_v33 }
 0x512   : > { %v2394_v34 = vpop.xlane.xlu1 %2393 }
 0x513   : > { %3614 = vrcp.f32 %v2394_v34 }
 0x515   : > { %v3609_v35 = vpop.eup %3608 }
 0x516   : > { %v2399_v36 = vmul.f32 %v3609_v35, %v3601_v17 }
 0x518   : > { %3309 = vmatprep.mubr.msk.f32.mxu0 %vm365_vm3, %v2399_v36 }
 0x519   : > { %v3611_v37 = vpop.eup %3610 }
 0x51a   : > { %v3613_v38 = vpop.eup %3612  ;;  %v2400_v39 = vmul.f32 %v3611_v37, %v3603_v19 }
 0x51b   : > { %v2401_v40 = vmul.f32 %v3613_v38, %v3605_v20 }
 0x51c   : > { %3310 = vmatmul.mubr.msk.f32.vlgmr.msra.gmra.mrb[44].mxu0 %vm365_vm3, %v2400_v39 }
 0x51d   : > { %v3615_v11 = vpop.eup %3614  ;;  %3312 = vmatprep.mubr.msk.f32.mxu0 %vm365_vm3, %v2401_v40 }
 0x51e   : > { %v2402_v41 = vmul.f32 %v3615_v11, %v3607_v23 }
 0x520   : > { %3313 = vmatmul.mubr.msk.f32.gmra.mrb[46].mxu0 %vm365_vm3, %v2402_v41 }
 0x5ef   : > { %v3311_v42 = vpop.f32.mrb[44].mxu0 }
 0x5f0   : > { %2508 = vst.msk [vmem:[#allocation2 + $0x8] sm:$0xff] %vm473_vm6, %v3311_v42  ;;  %v2513_v43 = vsel %vm473_vm6, %v3311_v42, 0.0  ;;  %v2488_v44 = vpop.f32.mrb[45].mxu0 }
 0x5f1   : > { %2507 = vst.msk [vmem:[#allocation2] sm:$0xff] %vm473_vm6, %v2488_v44  ;;  %v2512_v45 = vsel %vm473_vm6, %v2488_v44, 0.0 }
 0x5f2   : > { %v2514_v46 = vadd.f32 %v2513_v43, %v2512_v45 }
 0x5f3   : > { %v3314_v47 = vpop.f32.mrb[46].mxu0 }
 0x5f4   : > { %2511 = vst.msk [vmem:[#allocation2 + $0x18] sm:$0x1] %vm2510_vm10, %v3314_v47  ;;  %v2498_v48 = vpop.f32.mrb[47].mxu0  ;;  %v2517_v51 = vsel %vm2510_vm10, %v3314_v47, 0.0 }
 0x5f5   : > { %2509 = vst.msk [vmem:[#allocation2 + $0x10] sm:$0xff] %vm473_vm6, %v2498_v48  ;;  %v2515_v49 = vsel %vm473_vm6, %v2498_v48, 0.0 }
 0x5f6   : > { %v2516_v50 = vadd.f32 %v2515_v49, %v2514_v46 }
 0x5f8   : > { %v2518_v52 = vadd.f32 %v2517_v51, %v2516_v50 }
 0x5fa   : > { %v2519_v53 = vrot.slane %v2518_v52, 4 }
 0x5fc   : > { %v2520_v54 = vadd.f32 %v2519_v53, %v2518_v52 }
 0x5fe   : > { %v2521_v55 = vrot.slane %v2520_v54, 2 }
 0x600   : > { %v2522_v56 = vadd.f32 %v2521_v55, %v2520_v54 }
 0x602   : > { %v2523_v57 = vrot.slane %v2522_v56, 1 }
 0x604   : > { %v2524_v58 = vadd.f32 %v2523_v57, %v2522_v56 }
 0x606   : > { %v2526_v59 = vmul.f32 0.04, %v2524_v58 }
 0x608   : > { %2527 = vst.msk [vmem:[%s334_s20] sm:$0x1] %vm2510_vm10, %v2526_v59 }
 0x609 PF: > { %s16_s25 = sadd.s32 1, %s3654_s25   ;;  %s4244_s27 = sld [smem:[#allocation3_spill]] }
 0x60a   : > { %p13_p8 = scmp.ge.s32.totalorder %s16_s25, 6   ;;  %s4245_s21 = smov %s3646_s23 }
 0x60b   : > { %s4246_s22 = smov %s3650_s24  ;;  %s4247_s23 = smov %s4250_s26 }
 0x60c   :  { %15 = sbr.rel (!%p13_p8) target bundleno = 3 (0x3), region = 100 }
 0x60f   : > { %s4248_s24 = smov %s4244_s27 }

// kernel: temporal_alexnet_forward.20
= control target key start
LH: loop header
LB: loop body
LE: loop exit
PB: predicated region body
PF: predicated region fallthrough
CT: control target
= control target key end

     0   :  { %s953_s15 = smov 0   ;;  %s955_s16 = smov 0   ;;  %s1048_s0 = inlined_call_operand.vmem [shape: bf16[4,9,432], index: 0, kind: input, shape index: {}]   ;;  %s1049_s1 = inlined_call_operand.vmem [shape: bf16[4,432,48], index: 1, kind: input, shape index: {}]   ;;  %s1050_s2 = inlined_call_operand.vmem [shape: f32[4,1,48], index: 2, kind: input, shape index: {}]   ;;  %s1051_s3 = inlined_call_operand.vmem [shape: f32[4,1,48], index: 3, kind: input, shape index: {}]   ;;  %s1052_s4 = inlined_call_operand.vmem [shape: bf16[4,9,48], index: 4, kind: output, shape index: {}]  }
   0x1   :  { %s957_s17 = smov 0  }
   0x2 LB: > { %s26_s18 = sadd.s32 1, %s921_s16  ;;  %p774_p0 = scmp.ge.s32.totalorder %s925_s17, 1  ;;  %s925_s17 = sphi %s957_s17, %s14_s17   ;;  %s921_s16 = sphi %s955_s16, %s1054_s16   ;;  %s917_s15 = sphi %s953_s15, %s1053_s15  }
   0x3   : > { %p28_p1 = scmp.ge.s32.totalorder %s26_s18, 4  ;;  %p210_p2 = scmp.lt.s32.totalorder %s925_s17, 5 }
   0x5   : > { %s1056_s18 = smov (%p28_p1, %s26_s18), 0  ;;  %p211_p3 = pnand %p774_p0, %p210_p2 }
   0x6   : > { %p257_p4 = scmp.lt.s32.totalorder (!%p211_p3), %s917_s15, 3  ;;  %v927_v0 = vmov (!%p211_p3), 0   ;;  %vm528_vm0 = vcmask (!%p211_p3), 392192   ;;  %vm644_vm1 = vcmask (!%p211_p3), 385024   ;;  %vm645_vm2 = vsmask.f32 (!%p211_p3), 256 }
   0x7   : > { %214 = sbr.rel (%p211_p3) target bundleno = 288 (0x120), region = 36  ;;  %573 = vmatprep.subr.bf16.mxu1 (!%p211_p3), %v927_v0  ;;  %vm642_vm3 = vcmask (!%p211_p3), 388096   ;;  %vm646_vm4 = vmand (!%p211_p3), %vm644_vm1, %vm645_vm2 }
   0xe   : > { %s1058_s15 = smov (!%p257_p4, %s917_s15), 3 }
   0xf   : > { %s844_s19 = smul.u32 216, %s1058_s15  ;;  %s818_s20 = sshll.u32 %s1058_s15, 5 }
  0x10   : > { %s979_s23 = scalar_lea.vmem %s1048_s0, %s818_s20  ;;  %s274_s29 = scalar_lea.vmem %s1050_s2, %s1058_s15 }
  0x11   : > { %s984_s26 = scalar_lea.vmem %s1049_s1, %s844_s19  ;;  %v897_v24 = vld [vmem:[%s979_s23 + $0x4] ss:$16 sps:$4 sm:$0x1f]   ;;  %v902_v25 = vld [vmem:[%s979_s23 + $0xc] ss:$16 sps:$4 sm:$0x1f]   ;;  %s277_s6 = scalar_lea.vmem %s1051_s3, %s1058_s15 }
  0x12   : > { %v870_v1 = vld [vmem:[%s984_s26 + $0x80] sm:$0xff]   ;;  %v871_v2 = vld [vmem:[%s984_s26 + $0x88] sm:$0xff]   ;;  %v874_v5 = vld [vmem:[%s984_s26 + $0x90] sm:$0xff]   ;;  %564 = vmatprep.mubr.bf16.mxu0 %v897_v24  ;;  %811 = vmatprep.mubr.msk.bf16.mxu1 %vm528_vm0, %v902_v25  ;;  %s819_s7 = sshll.u32 %s1058_s15, 3 }
  0x13   : > { %574 = vmatpush1.bf16.msra.mxu1 %v870_v1  ;;  %v872_v3 = vld [vmem:[%s984_s26 + $0x40] sm:$0xff]   ;;  %v875_v6 = vld [vmem:[%s984_s26 + $0x48] sm:$0xff]   ;;  %v878_v8 = vld [vmem:[%s984_s26 + $0x50] sm:$0xff]   ;;  %s286_s10 = scalar_lea.vmem %s1052_s4, %s819_s7 }
  0x14   : > { %575 = vmatprep.subr.bf16.mxu1 %v927_v0  ;;  %v873_v4 = vld [vmem:[%s984_s26] sm:$0xff]   ;;  %822 = vmatprep.subr.bf16.mxu0 %v872_v3  ;;  %v876_v7 = vld [vmem:[%s984_s26 + $0x8] sm:$0xff]   ;;  %v879_v9 = vld [vmem:[%s984_s26 + $0x10] sm:$0xff]  }
  0x15   : > { %823 = vmatpush3.bf16.msra.mxu0 %v873_v4  ;;  %v877_v10 = vld [vmem:[%s984_s26 + $0x98] sm:$0xff]   ;;  %v880_v12 = vld [vmem:[%s984_s26 + $0xa0] sm:$0xff]   ;;  %v883_v15 = vld [vmem:[%s984_s26 + $0xa8] sm:$0xff]  }
  0x16   : > { %824 = vmatprep.subr.bf16.mxu0 %v875_v6  ;;  %v881_v11 = vld [vmem:[%s984_s26 + $0x58] sm:$0xff]   ;;  %v884_v14 = vld [vmem:[%s984_s26 + $0x60] sm:$0xff]   ;;  %v887_v17 = vld [vmem:[%s984_s26 + $0x68] sm:$0xff]  }
  0x17   : > { %576 = vmatpush1.bf16.msra.mxu1 %v871_v2  ;;  %v882_v13 = vld [vmem:[%s984_s26 + $0x18] sm:$0xff]   ;;  %v885_v16 = vld [vmem:[%s984_s26 + $0x20] sm:$0xff]   ;;  %v886_v18 = vld [vmem:[%s984_s26 + $0xb0] sm:$0xff]  }
  0x18   : > { %577 = vmatprep.subr.bf16.mxu1 %v927_v0  ;;  %v888_v19 = vld [vmem:[%s984_s26 + $0x28] sm:$0xff]   ;;  %v890_v20 = vld [vmem:[%s984_s26 + $0x70] sm:$0xff]   ;;  %v889_v21 = vld [vmem:[%s984_s26 + $0xb8] sm:$0xff]  }
  0x19   : > { %825 = vmatpush3.bf16.msra.mxu0 %v876_v7  ;;  %v891_v22 = vld [vmem:[%s984_s26 + $0x30] sm:$0xff]   ;;  %v893_v23 = vld [vmem:[%s984_s26 + $0x78] sm:$0xff]   ;;  %v892_v27 = vld [vmem:[%s984_s26 + $0xc0] sm:$0xff]  }
  0x1a   : > { %826 = vmatprep.subr.bf16.mxu0 %v878_v8  ;;  %v894_v26 = vld [vmem:[%s984_s26 + $0x38] sm:$0xff]   ;;  %v895_v28 = vld [vmem:[%s979_s23] ss:$16 sps:$4 sm:$0x1f]   ;;  %v898_v29 = vld [vmem:[%s984_s26 + $0xc8] sm:$0xff]  }
  0x1b   : > { %578 = vmatpush1.bf16.msra.mxu1 %v874_v5  ;;  %v899_v30 = vld [vmem:[%s984_s26 + $0xd0] sm:$0xff]   ;;  %v900_v31 = vld [vmem:[%s979_s23 + $0x8] ss:$16 sps:$4 sm:$0x1f]   ;;  %v812_v39 = vld [vmem:[%s274_s29] ss:$0 sm:$0xff] }
  0x1c   : > { %579 = vmatprep.subr.bf16.mxu1 %v927_v0  ;;  %v813_v42 = vld [vmem:[%s277_s6] ss:$0 sm:$0xff]  ;;  %v647_v53 = vld [vmem:[%s286_s10 + $0x4] sm:$0x1] }
  0x1d   : > { %827 = vmatpush3.bf16.msra.mxu0 %v879_v9 }
  0x1e   : > { %828 = vmatprep.subr.bf16.mxu0 %v881_v11 }
  0x1f   : > { %580 = vmatpush1.bf16.msra.mxu1 %v877_v10 }
  0x20   : > { %581 = vmatprep.subr.bf16.mxu1 %v927_v0 }
  0x21   : > { %829 = vmatpush3.bf16.msra.mxu0 %v882_v13 }
  0x22   : > { %830 = vmatprep.subr.bf16.mxu0 %v884_v14 }
  0x23   : > { %582 = vmatpush1.bf16.msra.mxu1 %v880_v12 }
  0x24   : > { %583 = vmatprep.subr.bf16.mxu1 %v927_v0 }
  0x25   : > { %831 = vmatpush3.bf16.msra.mxu0 %v885_v16 }
  0x26   : > { %832 = vmatprep.subr.bf16.mxu0 %v887_v17 }
  0x27   : > { %584 = vmatpush1.bf16.msra.mxu1 %v883_v15 }
  0x28   : > { %585 = vmatprep.subr.bf16.mxu1 %v927_v0 }
  0x29   : > { %833 = vmatpush3.bf16.msra.mxu0 %v888_v19 }
  0x2a   : > { %834 = vmatprep.subr.bf16.mxu0 %v890_v20 }
  0x2b   : > { %586 = vmatpush1.bf16.msra.mxu1 %v886_v18 }
  0x2c   : > { %587 = vmatprep.subr.bf16.mxu1 %v927_v0 }
  0x2d   : > { %835 = vmatpush3.bf16.msra.mxu0 %v891_v22 }
  0x2e   : > { %836 = vmatprep.subr.bf16.mxu0 %v893_v23 }
  0x2f   : > { %588 = vmatpush1.bf16.msra.mxu1 %v889_v21 }
  0x30   : > { %589 = vmatprep.subr.bf16.mxu1 %v927_v0 }
  0x31   : > { %837 = vmatpush3.bf16.msra.mxu0 %v894_v26 }
  0x33   : > { %590 = vmatpush1.bf16.msra.mxu1 %v892_v27 }
  0x34   : > { %591 = vmatprep.subr.bf16.mxu1 %v927_v0  ;;  %565 = vmatmul.mubr.bf16.vlgmr.msra.gmra.mrb[0].mxu0 %v895_v28 }
  0x37   : > { %592 = vmatpush1.bf16.msra.mxu1 %v898_v29 }
  0x38   : > { %593 = vmatprep.subr.bf16.mxu1 %v927_v0 }
  0x3b   : > { %594 = vmatpush1.bf16.msra.mxu1 %v899_v30 }
  0x3e   : > { %606 = vmatmul.mubr.bf16.vlgmr.msra.gmra.mrb[0].mxu1 %v900_v31 }
 0x107   : > { %v838_v32 = vpop.f32.mrb[0].mxu0 }
 0x108   : > { %v839_v33 = vpop.f32.mrb[1].mxu0 }
 0x109   : > { %v840_v34 = vadd.f32 %v839_v33, %v838_v32  ;;  %v841_v35 = vpop.f32.mrb[2].mxu0 }
 0x10a   : > { %v842_v36 = vpop.f32.mrb[3].mxu0 }
 0x10b   : > { %v843_v37 = vadd.f32 %v842_v36, %v841_v35 }
 0x111   : > { %v607_v38 = vpop.f32.mrb[0].mxu1 }
 0x112   : > { %v608_v40 = vadd.f32 %v840_v34, %v607_v38  ;;  %v609_v41 = vpop.f32.mrb[1].mxu1 }
 0x113   : > { %v610_v43 = vpop.f32.mrb[2].mxu1 }
 0x114   : > { %v621_v44 = vmul.f32 %v812_v39, %v608_v40  ;;  %v611_v45 = vadd.f32 %v843_v37, %v610_v43  ;;  %v612_v46 = vpop.f32.mrb[3].mxu1 }
 0x116   : > { %v630_v47 = vadd.f32 %v813_v42, %v621_v44  ;;  %v622_v48 = vmul.f32 %v812_v39, %v611_v45 }
 0x118   : > { %v632_v49 = vmax.f32 %v630_v47, 0.0  ;;  %v631_v50 = vadd.f32 %v813_v42, %v622_v48 }
 0x11a   : > { %v820_v51 = vpack.c.bf16 %v632_v49, %v632_v49  ;;  %v633_v52 = vmax.f32 %v631_v50, 0.0 }
 0x11c   : > { %643 = vst.msk [vmem:[%s286_s10] sm:$0xf] %vm642_vm3, %v820_v51  ;;  %v821_v54 = vpack.c.bf16 %v633_v52, %v633_v52 }
 0x11e   : > { %v648_v55 = vsel %vm646_vm4, %v821_v54, %v647_v53 }
 0x11f   : > { %649 = vst [vmem:[%s286_s10 + $0x4] sm:$0x1] %v648_v55 }
 0x120 PF: > { %s14_s17 = sadd.s32 1, %s925_s17   ;;  %s1053_s15 = smov %s921_s16 }
 0x121   : > { %p11_p5 = scmp.ge.s32.totalorder %s14_s17, 6   ;;  %s1054_s16 = smov %s1056_s18 }
 0x123   :  { %13 = sbr.rel (!%p11_p5) target bundleno = 2 (0x2), region = 75 }

// kernel: temporal_alexnet_forward.25
= control target key start
LH: loop header
LB: loop body
LE: loop exit
PB: predicated region body
PF: predicated region fallthrough
CT: control target
= control target key end

     0   :  { %9 = vsyncpa [#allocation3], 0  ;;  %s1148_s0 = inlined_call_operand.vmem [shape: bf16[4,1,432], index: 0, kind: input, shape index: {}]   ;;  %s1149_s1 = inlined_call_operand.vmem [shape: bf16[4,432,32], index: 1, kind: input, shape index: {}]   ;;  %s1150_s2 = inlined_call_operand.vmem [shape: f32[4,1,32], index: 2, kind: input, shape index: {}]   ;;  %s1151_s3 = inlined_call_operand.vmem [shape: f32[4,1,32], index: 3, kind: input, shape index: {}]   ;;  %s1152_s4 = inlined_call_operand.hbm [shape: f32[4,1,32], index: 4, kind: output, shape index: {}]  }
   0x1   :  { %11 = vsyncpa [#allocation3 + $0x1], 0  ;;  %s972_s15 = smov 0   ;;  %s974_s16 = smov 0  }
   0x2   :  { %s976_s17 = smov 0   ;;  %s978_s18 = smov 0  }
   0x3   :  { %s980_s19 = smov 0   ;;  %s982_s20 = smov 0  }
   0x4 LB: > { %s718_s21 = sadd.s32 4294967295, %s942_s20   ;;  %s719_s22 = sadd.s32 4294967294, %s942_s20   ;;  %s942_s20 = sphi %s982_s20, %s17_s20   ;;  %s938_s19 = sphi %s980_s19, %s1159_s19   ;;  %s934_s18 = sphi %s978_s18, %s1158_s18   ;;  %s930_s17 = sphi %s976_s17, %s1157_s17   ;;  %s926_s16 = sphi %s974_s16, %s1156_s16   ;;  %s922_s15 = sphi %s972_s15, %s1155_s15  }
   0x5   : > { %s29_s23 = sadd.s32 1, %s938_s19  ;;  %s144_s24 = sadd.s32 1, %s930_s17 }
   0x6   : > { %p31_p0 = scmp.ge.s32.totalorder %s29_s23, 4  ;;  %p154_p1 = scmp.ne.s32.totalorder %s930_s17, %s926_s16 }
   0x7   : > { %p155_p2 = scmp.eq.s32.totalorder %s718_s21, 3  ;;  %p160_p3 = scmp.ne.s32.totalorder %s926_s16, %s922_s15 }
   0x8   : > { %s1161_s23 = smov (%p31_p0, %s29_s23), 0  ;;  %p161_p5 = scmp.eq.s32.totalorder %s719_s22, 3 }
   0x9   : > { %p1012_p4 = por %p155_p2, %p154_p1  ;;  %s139_s26 = ssub.s32 %s938_s19, %s1161_s23 }
   0xa   : > { %p722_p6 = scmp.ge.s32.totalorder %s942_s20, 1  ;;  %p142_p7 = scmp.eq.s32.totalorder %s139_s26, 0 }
   0xb   : > { %p1019_p8 = por %p161_p5, %p160_p3  ;;  %p210_p9 = scmp.lt.s32.totalorder %s942_s20, 5 }
   0xc   : > { %s1025_s28 = scalar_select %p142_p7, %s930_s17, %s144_s24  }
   0xd   : > { %p211_p10 = pnand %p722_p6, %p210_p9 }
   0xe   : > { %p249_p11 = scmp.lt.s32.totalorder (!%p211_p10), %s934_s18, 3  ;;  %v336_v0 = vlaneseq (!%p211_p10)  ;;  %v944_v1 = vmov (!%p211_p10), 0   ;;  %v945_v2 = vmov (!%p211_p10), 1966171168   ;;  %vm514_vm0 = vcmask (!%p211_p10), 392192   ;;  %s247_s12 = sand.u32 (!%p211_p10), 1, %s926_s16  }
   0xf   : > { %214 = sbr.rel (%p211_p10) target bundleno = 303 (0x12f), region = 36  ;;  %558 = vmatprep.subr.bf16.mxu1 (!%p211_p10), %v944_v1  ;;  %v334_v3 = vunpack.c.l.s4 (!%p211_p10), %v945_v2  ;;  %vm602_vm1 = vcmask (!%p211_p10), 253952  }
  0x10   : > { %v337_v4 = vshrl.u32 (!%p211_p10), %v336_v0, 7 }
  0x11   : > { %v335_v5 = vunpack.c.0.s8 (!%p211_p10), %v334_v3 }
  0x13   : > { %v1037_v6 = vsub.s32 (!%p211_p10), %v335_v5, %v337_v4 }
  0x16   : > { %s1030_s29 = scalar_select %p249_p11, %s934_s18, 3 }
  0x18   : > { %s779_s30 = smul.u32 216, %s1030_s29  ;;  %s723_s5 = sshll.u32 %s1030_s29, 2 }
  0x19   : > { %s256_s8 = scalar_lea.vmem %s1148_s0, %s723_s5  ;;  %s264_s21 = scalar_lea.vmem %s1150_s2, %s1030_s29 }
  0x1a   : > { %s1042_s11 = scalar_lea.vmem %s1149_s1, %s779_s30  ;;  %v1044_v7 = vld.sshfl [vmem:[%s256_s8] sm:$0x33 pattern:$0x75316420]  ;;  %s267_s26 = scalar_lea.vmem %s1151_s3, %s1030_s29 }
  0x1b   : > { %v837_v8 = vld [vmem:[%s1042_s11 + $0x80] sm:$0xff]   ;;  %v332_v9 = vcombine.high %v1044_v7, %v1044_v7  ;;  %v838_v10 = vld [vmem:[%s1042_s11 + $0x88] sm:$0xff]   ;;  %v841_v14 = vld [vmem:[%s1042_s11 + $0x90] sm:$0xff]   ;;  %v339_v36 = vrot.slane %v1044_v7, %v1037_v6  ;;  %s754_s30 = sshll.u32 %s934_s18, 4  ;;  %s248_s5 = scalar_lea.vmem [#allocation2], %s247_s12 }
  0x1c   : > { %559 = vmatpush1.bf16.msra.mxu1 %v837_v8  ;;  %v839_v11 = vld [vmem:[%s1042_s11 + $0x40] sm:$0xff]   ;;  %v842_v16 = vld [vmem:[%s1042_s11 + $0x48] sm:$0xff]   ;;  %v845_v18 = vld [vmem:[%s1042_s11 + $0x50] sm:$0xff]   ;;  %s618_s6 = sshll.u32 %s248_s5, 4  ;;  %s1101_s9 = scalar_lea.hbm %s1152_s4, %s754_s30  ;;  %s1103_s6 = int_to_ptr.vmem [resolvable:$true] %s618_s6 }
  0x1d   : > { %v346_v12 = vrot.slane %v332_v9, %v1037_v6  ;;  %560 = vmatprep.subr.bf16.mxu1 %v944_v1  ;;  %v840_v13 = vld [vmem:[%s1042_s11] sm:$0xff]   ;;  %757 = vmatprep.subr.bf16.mxu0 %v839_v11  ;;  %v843_v17 = vld [vmem:[%s1042_s11 + $0x8] sm:$0xff]   ;;  %v846_v19 = vld [vmem:[%s1042_s11 + $0x10] sm:$0xff]   ;;  %v347_v39 = vcombine.high %v339_v36, %v339_v36  ;;  %s605_s29 = scalar_lea.sflag [#allocation3], %s247_s12  ;;  %s864_s10 = scalar_lea.vmem %s1103_s6, 16 }
  0x1e   : > { %758 = vmatpush3.bf16.msra.mxu0 %v840_v13  ;;  %v844_v20 = vld [vmem:[%s1042_s11 + $0x98] sm:$0xff]   ;;  %v847_v22 = vld [vmem:[%s1042_s11 + $0xa0] sm:$0xff]   ;;  %v850_v25 = vld [vmem:[%s1042_s11 + $0xa8] sm:$0xff]   ;;  %p865_p12 = scmp.ne.s32.totalorder %s1103_s6, %s864_s10  ;;  %s946_s18 = smov [#allocation2]  }
  0x1f   : > { %550 = vmatprep.mubr.bf16.mxu0 %v346_v12  ;;  %v348_v15 = vcombine.high %v346_v12, %v346_v12  ;;  %759 = vmatprep.subr.bf16.mxu0 %v842_v16  ;;  %v848_v21 = vld [vmem:[%s1042_s11 + $0x58] sm:$0xff]   ;;  %v851_v24 = vld [vmem:[%s1042_s11 + $0x60] sm:$0xff]   ;;  %v854_v27 = vld [vmem:[%s1042_s11 + $0x68] sm:$0xff]  }
  0x20   : > { %561 = vmatpush1.bf16.msra.mxu1 %v838_v10  ;;  %v849_v23 = vld [vmem:[%s1042_s11 + $0x18] sm:$0xff]   ;;  %v852_v26 = vld [vmem:[%s1042_s11 + $0x20] sm:$0xff]   ;;  %v853_v28 = vld [vmem:[%s1042_s11 + $0xb0] sm:$0xff]   ;;  %p866_p13 = pnand %p865_p12, %p1012_p4 }
  0x21   : > { %753 = vmatprep.mubr.msk.bf16.mxu1 %vm514_vm0, %v348_v15  ;;  %562 = vmatprep.subr.bf16.mxu1 %v944_v1  ;;  %v855_v29 = vld [vmem:[%s1042_s11 + $0x28] sm:$0xff]   ;;  %v857_v30 = vld [vmem:[%s1042_s11 + $0x70] sm:$0xff]   ;;  %v856_v31 = vld [vmem:[%s1042_s11 + $0xb8] sm:$0xff]  }
  0x22   : > { %760 = vmatpush3.bf16.msra.mxu0 %v843_v17  ;;  %v858_v32 = vld [vmem:[%s1042_s11 + $0x30] sm:$0xff]   ;;  %v860_v33 = vld [vmem:[%s1042_s11 + $0x78] sm:$0xff]   ;;  %v859_v35 = vld [vmem:[%s1042_s11 + $0xc0] sm:$0xff]   ;;  %p867_p0 = pneg %p866_p13 }
  0x23   : > { %761 = vmatprep.subr.bf16.mxu0 %v845_v18  ;;  %v861_v34 = vld [vmem:[%s1042_s11 + $0x38] sm:$0xff]   ;;  %v862_v37 = vld [vmem:[%s1042_s11 + $0xc8] sm:$0xff]   ;;  %v863_v38 = vld [vmem:[%s1042_s11 + $0xd0] sm:$0xff]   ;;  %s868_s11 = sshll.u32 %s946_s18, 4  ;;  %s869_s11 = int_to_ptr.vmem [resolvable:$false] %s868_s11 }
  0x24   : > { %563 = vmatpush1.bf16.msra.mxu1 %v841_v14  ;;  %v598_v46 = vld [vmem:[%s264_s21] sm:$0x1]  ;;  %s870_s13 = scalar_lea.vmem %s869_s11, 32  ;;  %p871_p1 = scmp.lt.s32.totalorder %s1103_s6, %s869_s11 }
  0x25   : > { %564 = vmatprep.subr.bf16.mxu1 %v944_v1  ;;  %v600_v49 = vld [vmem:[%s267_s26] sm:$0x1]  ;;  %p872_p2 = scmp.lt.s32.totalorder %s870_s13, %s864_s10 }
  0x26   : > { %762 = vmatpush3.bf16.msra.mxu0 %v846_v19 }
  0x27   : > { %763 = vmatprep.subr.bf16.mxu0 %v848_v21  ;;  %p873_p3 = por %p872_p2, %p871_p1 }
  0x28   : > { %565 = vmatpush1.bf16.msra.mxu1 %v844_v20 }
  0x29   : > { %566 = vmatprep.subr.bf16.mxu1 %v944_v1  ;;  %p874_p5 = pnand %p873_p3, %p867_p0 }
  0x2a   : > { %764 = vmatpush3.bf16.msra.mxu0 %v849_v23 }
  0x2b   : > { %765 = vmatprep.subr.bf16.mxu0 %v851_v24 }
  0x2c   : > { %567 = vmatpush1.bf16.msra.mxu1 %v847_v22 }
  0x2d   : > { %568 = vmatprep.subr.bf16.mxu1 %v944_v1 }
  0x2e   : > { %766 = vmatpush3.bf16.msra.mxu0 %v852_v26 }
  0x2f   : > { %767 = vmatprep.subr.bf16.mxu0 %v854_v27 }
  0x30   : > { %569 = vmatpush1.bf16.msra.mxu1 %v850_v25 }
  0x31   : > { %570 = vmatprep.subr.bf16.mxu1 %v944_v1 }
  0x32   : > { %768 = vmatpush3.bf16.msra.mxu0 %v855_v29 }
  0x33   : > { %769 = vmatprep.subr.bf16.mxu0 %v857_v30 }
  0x34   : > { %571 = vmatpush1.bf16.msra.mxu1 %v853_v28 }
  0x35   : > { %572 = vmatprep.subr.bf16.mxu1 %v944_v1 }
  0x36   : > { %770 = vmatpush3.bf16.msra.mxu0 %v858_v32 }
  0x37   : > { %771 = vmatprep.subr.bf16.mxu0 %v860_v33 }
  0x38   : > { %573 = vmatpush1.bf16.msra.mxu1 %v856_v31 }
  0x39   : > { %574 = vmatprep.subr.bf16.mxu1 %v944_v1 }
  0x3a   : > { %772 = vmatpush3.bf16.msra.mxu0 %v861_v34 }
  0x3c   : > { %575 = vmatpush1.bf16.msra.mxu1 %v859_v35 }
  0x3d   : > { %576 = vmatprep.subr.bf16.mxu1 %v944_v1  ;;  %551 = vmatmul.mubr.bf16.vlgmr.msra.gmra.mrb[0].mxu0 %v339_v36 }
  0x40   : > { %577 = vmatpush1.bf16.msra.mxu1 %v862_v37 }
  0x41   : > { %578 = vmatprep.subr.bf16.mxu1 %v944_v1 }
  0x44   : > { %579 = vmatpush1.bf16.msra.mxu1 %v863_v38 }
  0x47   : > { %591 = vmatmul.mubr.bf16.vlgmr.msra.gmra.mrb[0].mxu1 %v347_v39 }
 0x110   : > { %v773_v40 = vpop.f32.mrb[0].mxu0 }
 0x111   : > { %v774_v41 = vpop.f32.mrb[1].mxu0 }
 0x112   : > { %v775_v42 = vadd.f32 %v774_v41, %v773_v40  ;;  %v776_v43 = vpop.f32.mrb[2].mxu0 }
 0x113   : > { %v777_v44 = vpop.f32.mrb[3].mxu0 }
 0x11a   : > { %v592_v45 = vpop.f32.mrb[0].mxu1 }
 0x11b   : > { %v593_v47 = vadd.f32 %v775_v42, %v592_v45  ;;  %v594_v48 = vpop.f32.mrb[1].mxu1 }
 0x11c   : > { %v595_v50 = vpop.f32.mrb[2].mxu1 }
 0x11d   : > { %v599_v51 = vmul.f32 %v598_v46, %v593_v47  ;;  %v596_v52 = vpop.f32.mrb[3].mxu1 }
 0x11f   : > { %v601_v53 = vadd.f32 %v600_v49, %v599_v51 }
 0x121   : > { %603 = vst.msk [vmem:[%s248_s5] sm:$0x1] %vm602_vm1, %v601_v53 }
 0x122   : > { %877 = shalt.err (!%p874_p5)
}
 0x123   : > { %s878_s12 = scalar_lea.hbm %s1101_s9, 16  ;;  %s882_s22 = scalar_lea.hbm %s1152_s4, 64 }
 0x124   : > { %p879_p6 = scmp.ne.s32.totalorder %s1101_s9, %s878_s12  ;;  %p883_p10 = scmp.lt.u32.totalorder %s1101_s9, %s1152_s4 }
 0x125   : > { %p884_p11 = scmp.lt.u32.totalorder %s882_s22, %s878_s12  ;;  %p886_p13 = scmp.lt.u32.totalorder %s878_s12, %s1101_s9 }
 0x126   : > { %p880_p7 = pnand %p879_p6, %p1012_p4 }
 0x127   : > { %p885_p12 = por %p884_p11, %p883_p10 }
 0x128   : > { %p881_p9 = pneg %p880_p7 }
 0x129   : > { %p887_p0 = por %p886_p13, %p885_p12 }
 0x12b   : > { %p888_p1 = pnand %p887_p0, %p881_p9 }
 0x12d   : > { %891 = shalt.err (!%p888_p1)
}
 0x12e   : > { %780 = dma.vmem_to_hbm [thread:$0]  (%p1012_p4), %s1103_s6, 16, %s1101_s9, %s605_s29  }
 0x12f PF: > { %p786_p2 = scmp.ge.s32.totalorder %s942_s20, 2  ;;  %s630_s30 = sand.u32 1, %s922_s15  }
 0x130   : > { %s631_s5 = scalar_lea.sflag [#allocation3], %s630_s30 }
 0x131   : > { %p783_p3 = pnand %p786_p2, %p1019_p8 }
 0x133   : > { %917 = dma.done.wait (!%p783_p3), %s631_s5, 16  }
 0x134   : > { %919 = vsyncadd (!%p783_p3), %s631_s5, 4294967280  ;;  %s17_s20 = sadd.s32 1, %s942_s20   ;;  %s1155_s15 = smov %s926_s16 }
 0x135   : > { %p14_p5 = scmp.ge.s32.totalorder %s17_s20, 6   ;;  %s1156_s16 = smov %s930_s17 }
 0x136   : > { %s1157_s17 = smov %s1025_s28  ;;  %s1158_s18 = smov %s938_s19 }
 0x137   : > { %s1159_s19 = smov %s1161_s23  ;;  %16 = sbr.rel (!%p14_p5) target bundleno = 4 (0x4), region = 80 }
 0x13e   :  { %635 = vsyncpa [#allocation3], 1 }
 0x13f   :  { %637 = vsyncpa [#allocation3 + $0x1], 1 }

</bundles_post_ra>
